<compile_context>
chip_gen: v6e
topology: v6e:2x2x1
jax: 0.10.0
libtpu: 0.0.40
codegen_flags: <defaults>
</compile_context>

<pallas_src>
import jax
import jax.numpy as jnp
from jax.experimental import pallas as pl
from jax.experimental.pallas import tpu as pltpu


# ----------------------------------------------------------------------------
# helpers
# ----------------------------------------------------------------------------
def _round_up(x, m):
    return ((x + m - 1) // m) * m


def _conv_taps(stride):
    """Per-tap (phase, row_offset, col_offset) into the prepped activation.

    stride 2: prepped activation is space-to-depth, phase p = (dy%2)*2 + dx%2,
              window offset (dy//2, dx//2).
    stride 1: single phase, window offset (dy, dx).
    """
    taps = []
    for dy in range(4):
        for dx in range(4):
            if stride == 2:
                taps.append(((dy % 2) * 2 + (dx % 2), dy // 2, dx // 2))
            else:
                taps.append((0, dy, dx))
    return taps


# ----------------------------------------------------------------------------
# fused conv kernel (4x4 taps unrolled, f32 accumulation, optional BN stats)
# ----------------------------------------------------------------------------
def _make_conv_kernel(taps, oh, ow, with_stats):
    rows = oh * ow

    def kernel(x_ref, w_ref, o_ref, *stats_refs):
        cin = x_ref.shape[-1]
        cout = o_ref.shape[-1]
        acc = jnp.zeros((rows, cout), jnp.float32)
        # Statically unrolled 4x4 taps; each tap is a contiguous VMEM window of
        # the space-to-depth image -> one MXU matmul accumulated in f32.
        for t, (p, r0, c0) in enumerate(taps):
            a = x_ref[0, p, r0:r0 + oh, c0:c0 + ow, :].reshape(rows, cin)
            acc = acc + jnp.dot(a, w_ref[t], preferred_element_type=jnp.float32)
        o_ref[0] = acc.astype(o_ref.dtype)
        if with_stats:
            sum_ref, ssq_ref = stats_refs
            # Plain column reduces of the exact f32 accumulator (no masking).
            sum_ref[0] = jnp.sum(acc, axis=0, keepdims=True)
            ssq_ref[0] = jnp.sum(acc * acc, axis=0, keepdims=True)

    return kernel


def pallas_conv4x4(x_prep, w_taps, *, oh, ow, stride, with_stats,
                   out_dtype=jnp.bfloat16):
    """Fused 4x4 conv (input already padded / space-to-depth rearranged).

    x_prep : [N, P, Hq, Wq, Cin_p] bf16   (P = 4 for stride 2, 1 for stride 1)
    w_taps : [16, Cin_p, Cout_p]   bf16   (tap-major, zero-padded channels)
    returns  y [N, OH*OW, Cout_p]  (+ per-image col sums / sums-of-squares)
    """
    n, nph, hq, wq, cin = x_prep.shape
    kk, cin2, cout = w_taps.shape
    assert kk == 16 and cin2 == cin and cout % 128 == 0
    rows = oh * ow
    tn = 128                 # lane tile on Cout (v5e-friendly; weights stream
                             # once per image either way)
    gj = cout // tn
    kernel = _make_conv_kernel(_conv_taps(stride), oh, ow, with_stats)

    out_shape = [jax.ShapeDtypeStruct((n, rows, cout), out_dtype)]
    out_specs = [pl.BlockSpec((1, rows, tn), lambda i, j: (i, 0, j))]
    if with_stats:
        out_shape += [jax.ShapeDtypeStruct((n, 1, cout), jnp.float32),
                      jax.ShapeDtypeStruct((n, 1, cout), jnp.float32)]
        out_specs += [pl.BlockSpec((1, 1, tn), lambda i, j: (i, 0, j)),
                      pl.BlockSpec((1, 1, tn), lambda i, j: (i, 0, j))]

    out_bytes = rows * cout * jnp.dtype(out_dtype).itemsize
    cost = pl.CostEstimate(
        flops=2 * n * rows * cout * 16 * cin,
        transcendentals=0,
        bytes_accessed=int(x_prep.size * 2 + n * w_taps.size * 2
                           + n * (out_bytes + (8 * cout if with_stats else 0))),
    )

    result = pl.pallas_call(
        kernel,
        out_shape=tuple(out_shape),
        grid_spec=pltpu.PrefetchScalarGridSpec(
            num_scalar_prefetch=0,
            grid=(n, gj),
            in_specs=[
                # Whole prepped image for one batch element; its block index is
                # constant while j sweeps Cout tiles, so it is DMA'd only once.
                pl.BlockSpec((1, nph, hq, wq, cin),
                             lambda i, j: (i, 0, 0, 0, 0)),
                pl.BlockSpec((16, cin, tn), lambda i, j: (0, 0, j)),
            ],
            out_specs=tuple(out_specs),
        ),
        compiler_params=pltpu.CompilerParams(
            # Both axes parallel: v7x megacore shards the batch axis.
            dimension_semantics=("parallel", "parallel"),
            vmem_limit_bytes=32 * 1024 * 1024,
        ),
        cost_estimate=cost,
    )(x_prep, w_taps)
    return result if with_stats else result[0]


# ----------------------------------------------------------------------------
# JAX glue: layout prep, BN stat finishing, fused affine+LeakyReLU re-layout
# ----------------------------------------------------------------------------
def _pad_s2d(x_nhwc, stride):
    """Zero-pad (conv pad=1) and space-to-depth rearrange for the fused conv."""
    x = jnp.pad(x_nhwc, ((0, 0), (1, 1), (1, 1), (0, 0)))
    n, hp, wp, c = x.shape
    if stride == 2:
        assert hp % 2 == 0 and wp % 2 == 0
        x = x.reshape(n, hp // 2, 2, wp // 2, 2, c)
        x = x.transpose(0, 2, 4, 1, 3, 5).reshape(n, 4, hp // 2, wp // 2, c)
    else:
        x = x.reshape(n, 1, hp, wp, c)
    return x


def _bn_scale_shift(psum, pssq, gamma, beta, count, eps=1e-5):
    """Training-mode BatchNorm (biased var) folded to per-channel scale/shift."""
    total = jnp.sum(psum, axis=(0, 1))
    total_sq = jnp.sum(pssq, axis=(0, 1))
    mean = total / count
    var = jnp.maximum(total_sq / count - mean * mean, 0.0)  # cancellation guard
    inv = jax.lax.rsqrt(var + eps)
    scale = gamma * inv
    shift = beta - mean * scale
    return scale, shift


def _conv_bn_lrelu(x_nhwc, w_taps, gamma, beta):
    n, h, w, _ = x_nhwc.shape
    assert h % 2 == 0 and w % 2 == 0
    oh, ow = h // 2, w // 2
    xp = _pad_s2d(x_nhwc, stride=2)
    y, psum, pssq = pallas_conv4x4(xp, w_taps, oh=oh, ow=ow, stride=2,
                                   with_stats=True)
    scale, shift = _bn_scale_shift(psum, pssq, gamma, beta, float(n * oh * ow))
    # BN affine + LeakyReLU(0.2): applied here (in f32, then bf16) so XLA fuses
    # it into the same pass that re-lays the activation out for the next conv.
    y = y.astype(jnp.float32) * scale + shift
    y = jnp.where(y >= 0.0, y, 0.2 * y).astype(jnp.bfloat16)
    return y.reshape(n, oh, ow, w_taps.shape[-1])


# ----------------------------------------------------------------------------
# Parameters (PyTorch layout) and one-time prep (pad / reorder / cast to bf16)
# ----------------------------------------------------------------------------
def init_params(key, nc, ndf):
    ks = jax.random.split(key, 4)
    s = 0.05
    return {
        "w1": s * jax.random.normal(ks[0], (ndf, nc, 4, 4), jnp.float32),
        "g1": jnp.ones((ndf,), jnp.float32), "b1": jnp.zeros((ndf,), jnp.float32),
        "w2": s * jax.random.normal(ks[1], (ndf * 2, ndf, 4, 4), jnp.float32),
        "g2": jnp.ones((ndf * 2,), jnp.float32), "b2": jnp.zeros((ndf * 2,), jnp.float32),
        "w3": s * jax.random.normal(ks[2], (ndf * 4, ndf * 2, 4, 4), jnp.float32),
        "g3": jnp.ones((ndf * 4,), jnp.float32), "b3": jnp.zeros((ndf * 4,), jnp.float32),
        "w4": s * jax.random.normal(ks[3], (1, ndf * 4, 4, 4), jnp.float32),
    }


def _pack_conv_weight(w_oihw, cin_p, cout_p):
    """PyTorch [Cout, Cin, 4, 4] -> tap-major bf16 [16, Cin_p, Cout_p] (0-pad)."""
    cout, cin, kh, kw = w_oihw.shape
    w = jnp.transpose(w_oihw, (2, 3, 1, 0))            # [kh, kw, cin, cout]
    w = jnp.pad(w, ((0, 0), (0, 0), (0, cin_p - cin), (0, cout_p - cout)))
    return w.reshape(kh * kw, cin_p, cout_p).astype(jnp.bfloat16)


def prepare_params(params):
    ndf, nc = params["w1"].shape[0], params["w1"].shape[1]
    nc_p = _round_up(nc, 128)
    c1p = _round_up(ndf, 128)
    c2p = _round_up(2 * ndf, 128)
    c3p = _round_up(4 * ndf, 128)
    c4p = 128

    def pad_gb(g, b, cp):
        padn = cp - g.shape[0]
        # gamma pads with 0 -> padded output lanes are forced to exactly 0.
        return (jnp.pad(g, (0, padn)).astype(jnp.float32),
                jnp.pad(b, (0, padn)).astype(jnp.float32))

    g1, b1 = pad_gb(params["g1"], params["b1"], c1p)
    g2, b2 = pad_gb(params["g2"], params["b2"], c2p)
    g3, b3 = pad_gb(params["g3"], params["b3"], c3p)
    return {
        "w1": _pack_conv_weight(params["w1"], nc_p, c1p),
        "w2": _pack_conv_weight(params["w2"], c1p, c2p),
        "w3": _pack_conv_weight(params["w3"], c2p, c3p),
        "w4": _pack_conv_weight(params["w4"], c3p, c4p),
        "g1": g1, "b1": b1, "g2": g2, "b2": b2, "g3": g3, "b3": b3,
    }


# ----------------------------------------------------------------------------
# Discriminator3 forward
# ----------------------------------------------------------------------------
@jax.jit
def discriminator3_forward(prep, x_nchw):
    # NCHW (PyTorch) -> NHWC, bf16, channel-padded once (lane-dense end-to-end).
    x = jnp.transpose(x_nchw, (0, 2, 3, 1)).astype(jnp.bfloat16)
    cin_p = prep["w1"].shape[1]
    if cin_p != x.shape[-1]:
        x = jnp.pad(x, ((0, 0), (0, 0), (0, 0), (0, cin_p - x.shape[-1])))

    # Blocks 1..3: fused Conv(4,2,1) + BN(batch stats) + LeakyReLU(0.2)
    x = _conv_bn_lrelu(x, prep["w1"], prep["g1"], prep["b1"])
    x = _conv_bn_lrelu(x, prep["w2"], prep["g2"], prep["b2"])
    x = _conv_bn_lrelu(x, prep["w3"], prep["g3"], prep["b3"])

    # Final Conv(4,1,1) -> 1 channel: stats-free kernel variant, f32 output.
    n, h, w, _ = x.shape
    oh, ow = h - 1, w - 1
    xp = _pad_s2d(x, stride=1)
    y = pallas_conv4x4(xp, prep["w4"], oh=oh, ow=ow, stride=1,
                       with_stats=False, out_dtype=jnp.float32)
    out = y[:, :, :1].reshape(n, oh, ow, 1)
    return jnp.transpose(out, (0, 3, 1, 2))             # back to NCHW, f32


if __name__ == "__main__":
    # Small shapes consistent with the forward: nc=8, ndf=8, input [2, 8, 16, 16]
    nc, ndf = 8, 8
    key = jax.random.PRNGKey(0)
    k_param, k_in = jax.random.split(key)
    params = init_params(k_param, nc, ndf)
    prep = prepare_params(params)
    x = jax.random.normal(k_in, (2, nc, 16, 16), jnp.float32)

    out = discriminator3_forward(prep, x)
    out = jax.block_until_ready(out)
    assert out.shape == (2, 1, 1, 1), out.shape
    assert bool(jnp.all(jnp.isfinite(out))), "non-finite output"
    print("KERNEL_OK")
</pallas_src>

<mosaic_0001>
module attributes {stable_mosaic.version = 11 : i64} {
  func.func @kernel(%arg0: i32, %arg1: i32, %arg2: memref<1x4x9x9x128xbf16, #tpu.memory_space<vmem>>, %arg3: memref<16x128x128xbf16, #tpu.memory_space<vmem>>, %arg4: memref<1x64x128xbf16, #tpu.memory_space<vmem>>, %arg5: memref<1x1x128xf32, #tpu.memory_space<vmem>>, %arg6: memref<1x1x128xf32, #tpu.memory_space<vmem>>) attributes {dimension_semantics = [#tpu.dimension_semantics<parallel>, #tpu.dimension_semantics<parallel>], iteration_bounds = array<i64: 2, 1>, scalar_prefetch = 0 : i64, scratch_operands = 0 : i64, tpu.core_type = #tpu.core_type<tc>, window_params = [{transform_indices = @transform_0, window_bounds = array<i64: 1, 4, 9, 9, 128>}, {transform_indices = @transform_1, window_bounds = array<i64: 16, 128, 128>}, {transform_indices = @transform_2, window_bounds = array<i64: 1, 64, 128>}, {transform_indices = @transform_3, window_bounds = array<i64: 1, 1, 128>}, {transform_indices = @transform_4, window_bounds = array<i64: 1, 1, 128>}]} {
    %cst = arith.constant 0.000000e+00 : f32
    %0 = vector.broadcast %cst : f32 to vector<64x128xf32>
    %c0 = arith.constant 0 : index
    %c0_0 = arith.constant 0 : index
    %c0_1 = arith.constant 0 : index
    %c0_2 = arith.constant 0 : index
    %c0_3 = arith.constant 0 : index
    %1 = vector.load %arg2[%c0, %c0_0, %c0_1, %c0_2, %c0_3] : memref<1x4x9x9x128xbf16, #tpu.memory_space<vmem>>, vector<1x1x8x8x128xbf16>
    %2 = vector.shape_cast %1 : vector<1x1x8x8x128xbf16> to vector<8x8x128xbf16>
    %3 = vector.shape_cast %2 : vector<8x8x128xbf16> to vector<64x128xbf16>
    %c0_4 = arith.constant 0 : index
    %c0_5 = arith.constant 0 : index
    %c0_6 = arith.constant 0 : index
    %4 = vector.load %arg3[%c0_4, %c0_5, %c0_6] : memref<16x128x128xbf16, #tpu.memory_space<vmem>>, vector<1x128x128xbf16>
    %5 = vector.shape_cast %4 : vector<1x128x128xbf16> to vector<128x128xbf16>
    %cst_7 = arith.constant dense<0.000000e+00> : vector<64x128xf32>
    %6 = tpu.matmul %3, %5, %cst_7 {dimension_numbers = #tpu.dot_dimension_numbers<[1], [0], [0], [1], [0, 0, 1, 1], [], []>} : vector<64x128xbf16>, vector<128x128xbf16>, vector<64x128xf32> -> vector<64x128xf32>
    %7 = arith.addf %0, %6 : vector<64x128xf32>
    %c0_8 = arith.constant 0 : index
    %c1 = arith.constant 1 : index
    %c0_9 = arith.constant 0 : index
    %c0_10 = arith.constant 0 : index
    %c0_11 = arith.constant 0 : index
    %8 = vector.load %arg2[%c0_8, %c1, %c0_9, %c0_10, %c0_11] : memref<1x4x9x9x128xbf16, #tpu.memory_space<vmem>>, vector<1x1x8x8x128xbf16>
    %9 = vector.shape_cast %8 : vector<1x1x8x8x128xbf16> to vector<8x8x128xbf16>
    %10 = vector.shape_cast %9 : vector<8x8x128xbf16> to vector<64x128xbf16>
    %c1_12 = arith.constant 1 : index
    %c0_13 = arith.constant 0 : index
    %c0_14 = arith.constant 0 : index
    %11 = vector.load %arg3[%c1_12, %c0_13, %c0_14] : memref<16x128x128xbf16, #tpu.memory_space<vmem>>, vector<1x128x128xbf16>
    %12 = vector.shape_cast %11 : vector<1x128x128xbf16> to vector<128x128xbf16>
    %cst_15 = arith.constant dense<0.000000e+00> : vector<64x128xf32>
    %13 = tpu.matmul %10, %12, %cst_15 {dimension_numbers = #tpu.dot_dimension_numbers<[1], [0], [0], [1], [0, 0, 1, 1], [], []>} : vector<64x128xbf16>, vector<128x128xbf16>, vector<64x128xf32> -> vector<64x128xf32>
    %14 = arith.addf %7, %13 : vector<64x128xf32>
    %c0_16 = arith.constant 0 : index
    %c0_17 = arith.constant 0 : index
    %c0_18 = arith.constant 0 : index
    %c1_19 = arith.constant 1 : index
    %c0_20 = arith.constant 0 : index
    %15 = vector.load %arg2[%c0_16, %c0_17, %c0_18, %c1_19, %c0_20] : memref<1x4x9x9x128xbf16, #tpu.memory_space<vmem>>, vector<1x1x8x8x128xbf16>
    %16 = vector.shape_cast %15 : vector<1x1x8x8x128xbf16> to vector<8x8x128xbf16>
    %17 = vector.shape_cast %16 : vector<8x8x128xbf16> to vector<64x128xbf16>
    %c2 = arith.constant 2 : index
    %c0_21 = arith.constant 0 : index
    %c0_22 = arith.constant 0 : index
    %18 = vector.load %arg3[%c2, %c0_21, %c0_22] : memref<16x128x128xbf16, #tpu.memory_space<vmem>>, vector<1x128x128xbf16>
    %19 = vector.shape_cast %18 : vector<1x128x128xbf16> to vector<128x128xbf16>
    %cst_23 = arith.constant dense<0.000000e+00> : vector<64x128xf32>
    %20 = tpu.matmul %17, %19, %cst_23 {dimension_numbers = #tpu.dot_dimension_numbers<[1], [0], [0], [1], [0, 0, 1, 1], [], []>} : vector<64x128xbf16>, vector<128x128xbf16>, vector<64x128xf32> -> vector<64x128xf32>
    %21 = arith.addf %14, %20 : vector<64x128xf32>
    %c0_24 = arith.constant 0 : index
    %c1_25 = arith.constant 1 : index
    %c0_26 = arith.constant 0 : index
    %c1_27 = arith.constant 1 : index
    %c0_28 = arith.constant 0 : index
    %22 = vector.load %arg2[%c0_24, %c1_25, %c0_26, %c1_27, %c0_28] : memref<1x4x9x9x128xbf16, #tpu.memory_space<vmem>>, vector<1x1x8x8x128xbf16>
    %23 = vector.shape_cast %22 : vector<1x1x8x8x128xbf16> to vector<8x8x128xbf16>
    %24 = vector.shape_cast %23 : vector<8x8x128xbf16> to vector<64x128xbf16>
    %c3 = arith.constant 3 : index
    %c0_29 = arith.constant 0 : index
    %c0_30 = arith.constant 0 : index
    %25 = vector.load %arg3[%c3, %c0_29, %c0_30] : memref<16x128x128xbf16, #tpu.memory_space<vmem>>, vector<1x128x128xbf16>
    %26 = vector.shape_cast %25 : vector<1x128x128xbf16> to vector<128x128xbf16>
    %cst_31 = arith.constant dense<0.000000e+00> : vector<64x128xf32>
    %27 = tpu.matmul %24, %26, %cst_31 {dimension_numbers = #tpu.dot_dimension_numbers<[1], [0], [0], [1], [0, 0, 1, 1], [], []>} : vector<64x128xbf16>, vector<128x128xbf16>, vector<64x128xf32> -> vector<64x128xf32>
    %28 = arith.addf %21, %27 : vector<64x128xf32>
    %c0_32 = arith.constant 0 : index
    %c2_33 = arith.constant 2 : index
    %c0_34 = arith.constant 0 : index
    %c0_35 = arith.constant 0 : index
    %c0_36 = arith.constant 0 : index
    %29 = vector.load %arg2[%c0_32, %c2_33, %c0_34, %c0_35, %c0_36] : memref<1x4x9x9x128xbf16, #tpu.memory_space<vmem>>, vector<1x1x8x8x128xbf16>
    %30 = vector.shape_cast %29 : vector<1x1x8x8x128xbf16> to vector<8x8x128xbf16>
    %31 = vector.shape_cast %30 : vector<8x8x128xbf16> to vector<64x128xbf16>
    %c4 = arith.constant 4 : index
    %c0_37 = arith.constant 0 : index
    %c0_38 = arith.constant 0 : index
    %32 = vector.load %arg3[%c4, %c0_37, %c0_38] : memref<16x128x128xbf16, #tpu.memory_space<vmem>>, vector<1x128x128xbf16>
    %33 = vector.shape_cast %32 : vector<1x128x128xbf16> to vector<128x128xbf16>
    %cst_39 = arith.constant dense<0.000000e+00> : vector<64x128xf32>
    %34 = tpu.matmul %31, %33, %cst_39 {dimension_numbers = #tpu.dot_dimension_numbers<[1], [0], [0], [1], [0, 0, 1, 1], [], []>} : vector<64x128xbf16>, vector<128x128xbf16>, vector<64x128xf32> -> vector<64x128xf32>
    %35 = arith.addf %28, %34 : vector<64x128xf32>
    %c0_40 = arith.constant 0 : index
    %c3_41 = arith.constant 3 : index
    %c0_42 = arith.constant 0 : index
    %c0_43 = arith.constant 0 : index
    %c0_44 = arith.constant 0 : index
    %36 = vector.load %arg2[%c0_40, %c3_41, %c0_42, %c0_43, %c0_44] : memref<1x4x9x9x128xbf16, #tpu.memory_space<vmem>>, vector<1x1x8x8x128xbf16>
    %37 = vector.shape_cast %36 : vector<1x1x8x8x128xbf16> to vector<8x8x128xbf16>
    %38 = vector.shape_cast %37 : vector<8x8x128xbf16> to vector<64x128xbf16>
    %c5 = arith.constant 5 : index
    %c0_45 = arith.constant 0 : index
    %c0_46 = arith.constant 0 : index
    %39 = vector.load %arg3[%c5, %c0_45, %c0_46] : memref<16x128x128xbf16, #tpu.memory_space<vmem>>, vector<1x128x128xbf16>
    %40 = vector.shape_cast %39 : vector<1x128x128xbf16> to vector<128x128xbf16>
    %cst_47 = arith.constant dense<0.000000e+00> : vector<64x128xf32>
    %41 = tpu.matmul %38, %40, %cst_47 {dimension_numbers = #tpu.dot_dimension_numbers<[1], [0], [0], [1], [0, 0, 1, 1], [], []>} : vector<64x128xbf16>, vector<128x128xbf16>, vector<64x128xf32> -> vector<64x128xf32>
    %42 = arith.addf %35, %41 : vector<64x128xf32>
    %c0_48 = arith.constant 0 : index
    %c2_49 = arith.constant 2 : index
    %c0_50 = arith.constant 0 : index
    %c1_51 = arith.constant 1 : index
    %c0_52 = arith.constant 0 : index
    %43 = vector.load %arg2[%c0_48, %c2_49, %c0_50, %c1_51, %c0_52] : memref<1x4x9x9x128xbf16, #tpu.memory_space<vmem>>, vector<1x1x8x8x128xbf16>
    %44 = vector.shape_cast %43 : vector<1x1x8x8x128xbf16> to vector<8x8x128xbf16>
    %45 = vector.shape_cast %44 : vector<8x8x128xbf16> to vector<64x128xbf16>
    %c6 = arith.constant 6 : index
    %c0_53 = arith.constant 0 : index
    %c0_54 = arith.constant 0 : index
    %46 = vector.load %arg3[%c6, %c0_53, %c0_54] : memref<16x128x128xbf16, #tpu.memory_space<vmem>>, vector<1x128x128xbf16>
    %47 = vector.shape_cast %46 : vector<1x128x128xbf16> to vector<128x128xbf16>
    %cst_55 = arith.constant dense<0.000000e+00> : vector<64x128xf32>
    %48 = tpu.matmul %45, %47, %cst_55 {dimension_numbers = #tpu.dot_dimension_numbers<[1], [0], [0], [1], [0, 0, 1, 1], [], []>} : vector<64x128xbf16>, vector<128x128xbf16>, vector<64x128xf32> -> vector<64x128xf32>
    %49 = arith.addf %42, %48 : vector<64x128xf32>
    %c0_56 = arith.constant 0 : index
    %c3_57 = arith.constant 3 : index
    %c0_58 = arith.constant 0 : index
    %c1_59 = arith.constant 1 : index
    %c0_60 = arith.constant 0 : index
    %50 = vector.load %arg2[%c0_56, %c3_57, %c0_58, %c1_59, %c0_60] : memref<1x4x9x9x128xbf16, #tpu.memory_space<vmem>>, vector<1x1x8x8x128xbf16>
    %51 = vector.shape_cast %50 : vector<1x1x8x8x128xbf16> to vector<8x8x128xbf16>
    %52 = vector.shape_cast %51 : vector<8x8x128xbf16> to vector<64x128xbf16>
    %c7 = arith.constant 7 : index
    %c0_61 = arith.constant 0 : index
    %c0_62 = arith.constant 0 : index
    %53 = vector.load %arg3[%c7, %c0_61, %c0_62] : memref<16x128x128xbf16, #tpu.memory_space<vmem>>, vector<1x128x128xbf16>
    %54 = vector.shape_cast %53 : vector<1x128x128xbf16> to vector<128x128xbf16>
    %cst_63 = arith.constant dense<0.000000e+00> : vector<64x128xf32>
    %55 = tpu.matmul %52, %54, %cst_63 {dimension_numbers = #tpu.dot_dimension_numbers<[1], [0], [0], [1], [0, 0, 1, 1], [], []>} : vector<64x128xbf16>, vector<128x128xbf16>, vector<64x128xf32> -> vector<64x128xf32>
    %56 = arith.addf %49, %55 : vector<64x128xf32>
    %c0_64 = arith.constant 0 : index
    %c0_65 = arith.constant 0 : index
    %c1_66 = arith.constant 1 : index
    %c0_67 = arith.constant 0 : index
    %c0_68 = arith.constant 0 : index
    %57 = vector.load %arg2[%c0_64, %c0_65, %c1_66, %c0_67, %c0_68] : memref<1x4x9x9x128xbf16, #tpu.memory_space<vmem>>, vector<1x1x8x8x128xbf16>
    %58 = vector.shape_cast %57 : vector<1x1x8x8x128xbf16> to vector<8x8x128xbf16>
    %59 = vector.shape_cast %58 : vector<8x8x128xbf16> to vector<64x128xbf16>
    %c8 = arith.constant 8 : index
    %c0_69 = arith.constant 0 : index
    %c0_70 = arith.constant 0 : index
    %60 = vector.load %arg3[%c8, %c0_69, %c0_70] : memref<16x128x128xbf16, #tpu.memory_space<vmem>>, vector<1x128x128xbf16>
    %61 = vector.shape_cast %60 : vector<1x128x128xbf16> to vector<128x128xbf16>
    %cst_71 = arith.constant dense<0.000000e+00> : vector<64x128xf32>
    %62 = tpu.matmul %59, %61, %cst_71 {dimension_numbers = #tpu.dot_dimension_numbers<[1], [0], [0], [1], [0, 0, 1, 1], [], []>} : vector<64x128xbf16>, vector<128x128xbf16>, vector<64x128xf32> -> vector<64x128xf32>
    %63 = arith.addf %56, %62 : vector<64x128xf32>
    %c0_72 = arith.constant 0 : index
    %c1_73 = arith.constant 1 : index
    %c1_74 = arith.constant 1 : index
    %c0_75 = arith.constant 0 : index
    %c0_76 = arith.constant 0 : index
    %64 = vector.load %arg2[%c0_72, %c1_73, %c1_74, %c0_75, %c0_76] : memref<1x4x9x9x128xbf16, #tpu.memory_space<vmem>>, vector<1x1x8x8x128xbf16>
    %65 = vector.shape_cast %64 : vector<1x1x8x8x128xbf16> to vector<8x8x128xbf16>
    %66 = vector.shape_cast %65 : vector<8x8x128xbf16> to vector<64x128xbf16>
    %c9 = arith.constant 9 : index
    %c0_77 = arith.constant 0 : index
    %c0_78 = arith.constant 0 : index
    %67 = vector.load %arg3[%c9, %c0_77, %c0_78] : memref<16x128x128xbf16, #tpu.memory_space<vmem>>, vector<1x128x128xbf16>
    %68 = vector.shape_cast %67 : vector<1x128x128xbf16> to vector<128x128xbf16>
    %cst_79 = arith.constant dense<0.000000e+00> : vector<64x128xf32>
    %69 = tpu.matmul %66, %68, %cst_79 {dimension_numbers = #tpu.dot_dimension_numbers<[1], [0], [0], [1], [0, 0, 1, 1], [], []>} : vector<64x128xbf16>, vector<128x128xbf16>, vector<64x128xf32> -> vector<64x128xf32>
    %70 = arith.addf %63, %69 : vector<64x128xf32>
    %c0_80 = arith.constant 0 : index
    %c0_81 = arith.constant 0 : index
    %c1_82 = arith.constant 1 : index
    %c1_83 = arith.constant 1 : index
    %c0_84 = arith.constant 0 : index
    %71 = vector.load %arg2[%c0_80, %c0_81, %c1_82, %c1_83, %c0_84] : memref<1x4x9x9x128xbf16, #tpu.memory_space<vmem>>, vector<1x1x8x8x128xbf16>
    %72 = vector.shape_cast %71 : vector<1x1x8x8x128xbf16> to vector<8x8x128xbf16>
    %73 = vector.shape_cast %72 : vector<8x8x128xbf16> to vector<64x128xbf16>
    %c10 = arith.constant 10 : index
    %c0_85 = arith.constant 0 : index
    %c0_86 = arith.constant 0 : index
    %74 = vector.load %arg3[%c10, %c0_85, %c0_86] : memref<16x128x128xbf16, #tpu.memory_space<vmem>>, vector<1x128x128xbf16>
    %75 = vector.shape_cast %74 : vector<1x128x128xbf16> to vector<128x128xbf16>
    %cst_87 = arith.constant dense<0.000000e+00> : vector<64x128xf32>
    %76 = tpu.matmul %73, %75, %cst_87 {dimension_numbers = #tpu.dot_dimension_numbers<[1], [0], [0], [1], [0, 0, 1, 1], [], []>} : vector<64x128xbf16>, vector<128x128xbf16>, vector<64x128xf32> -> vector<64x128xf32>
    %77 = arith.addf %70, %76 : vector<64x128xf32>
    %c0_88 = arith.constant 0 : index
    %c1_89 = arith.constant 1 : index
    %c1_90 = arith.constant 1 : index
    %c1_91 = arith.constant 1 : index
    %c0_92 = arith.constant 0 : index
    %78 = vector.load %arg2[%c0_88, %c1_89, %c1_90, %c1_91, %c0_92] : memref<1x4x9x9x128xbf16, #tpu.memory_space<vmem>>, vector<1x1x8x8x128xbf16>
    %79 = vector.shape_cast %78 : vector<1x1x8x8x128xbf16> to vector<8x8x128xbf16>
    %80 = vector.shape_cast %79 : vector<8x8x128xbf16> to vector<64x128xbf16>
    %c11 = arith.constant 11 : index
    %c0_93 = arith.constant 0 : index
    %c0_94 = arith.constant 0 : index
    %81 = vector.load %arg3[%c11, %c0_93, %c0_94] : memref<16x128x128xbf16, #tpu.memory_space<vmem>>, vector<1x128x128xbf16>
    %82 = vector.shape_cast %81 : vector<1x128x128xbf16> to vector<128x128xbf16>
    %cst_95 = arith.constant dense<0.000000e+00> : vector<64x128xf32>
    %83 = tpu.matmul %80, %82, %cst_95 {dimension_numbers = #tpu.dot_dimension_numbers<[1], [0], [0], [1], [0, 0, 1, 1], [], []>} : vector<64x128xbf16>, vector<128x128xbf16>, vector<64x128xf32> -> vector<64x128xf32>
    %84 = arith.addf %77, %83 : vector<64x128xf32>
    %c0_96 = arith.constant 0 : index
    %c2_97 = arith.constant 2 : index
    %c1_98 = arith.constant 1 : index
    %c0_99 = arith.constant 0 : index
    %c0_100 = arith.constant 0 : index
    %85 = vector.load %arg2[%c0_96, %c2_97, %c1_98, %c0_99, %c0_100] : memref<1x4x9x9x128xbf16, #tpu.memory_space<vmem>>, vector<1x1x8x8x128xbf16>
    %86 = vector.shape_cast %85 : vector<1x1x8x8x128xbf16> to vector<8x8x128xbf16>
    %87 = vector.shape_cast %86 : vector<8x8x128xbf16> to vector<64x128xbf16>
    %c12 = arith.constant 12 : index
    %c0_101 = arith.constant 0 : index
    %c0_102 = arith.constant 0 : index
    %88 = vector.load %arg3[%c12, %c0_101, %c0_102] : memref<16x128x128xbf16, #tpu.memory_space<vmem>>, vector<1x128x128xbf16>
    %89 = vector.shape_cast %88 : vector<1x128x128xbf16> to vector<128x128xbf16>
    %cst_103 = arith.constant dense<0.000000e+00> : vector<64x128xf32>
    %90 = tpu.matmul %87, %89, %cst_103 {dimension_numbers = #tpu.dot_dimension_numbers<[1], [0], [0], [1], [0, 0, 1, 1], [], []>} : vector<64x128xbf16>, vector<128x128xbf16>, vector<64x128xf32> -> vector<64x128xf32>
    %91 = arith.addf %84, %90 : vector<64x128xf32>
    %c0_104 = arith.constant 0 : index
    %c3_105 = arith.constant 3 : index
    %c1_106 = arith.constant 1 : index
    %c0_107 = arith.constant 0 : index
    %c0_108 = arith.constant 0 : index
    %92 = vector.load %arg2[%c0_104, %c3_105, %c1_106, %c0_107, %c0_108] : memref<1x4x9x9x128xbf16, #tpu.memory_space<vmem>>, vector<1x1x8x8x128xbf16>
    %93 = vector.shape_cast %92 : vector<1x1x8x8x128xbf16> to vector<8x8x128xbf16>
    %94 = vector.shape_cast %93 : vector<8x8x128xbf16> to vector<64x128xbf16>
    %c13 = arith.constant 13 : index
    %c0_109 = arith.constant 0 : index
    %c0_110 = arith.constant 0 : index
    %95 = vector.load %arg3[%c13, %c0_109, %c0_110] : memref<16x128x128xbf16, #tpu.memory_space<vmem>>, vector<1x128x128xbf16>
    %96 = vector.shape_cast %95 : vector<1x128x128xbf16> to vector<128x128xbf16>
    %cst_111 = arith.constant dense<0.000000e+00> : vector<64x128xf32>
    %97 = tpu.matmul %94, %96, %cst_111 {dimension_numbers = #tpu.dot_dimension_numbers<[1], [0], [0], [1], [0, 0, 1, 1], [], []>} : vector<64x128xbf16>, vector<128x128xbf16>, vector<64x128xf32> -> vector<64x128xf32>
    %98 = arith.addf %91, %97 : vector<64x128xf32>
    %c0_112 = arith.constant 0 : index
    %c2_113 = arith.constant 2 : index
    %c1_114 = arith.constant 1 : index
    %c1_115 = arith.constant 1 : index
    %c0_116 = arith.constant 0 : index
    %99 = vector.load %arg2[%c0_112, %c2_113, %c1_114, %c1_115, %c0_116] : memref<1x4x9x9x128xbf16, #tpu.memory_space<vmem>>, vector<1x1x8x8x128xbf16>
    %100 = vector.shape_cast %99 : vector<1x1x8x8x128xbf16> to vector<8x8x128xbf16>
    %101 = vector.shape_cast %100 : vector<8x8x128xbf16> to vector<64x128xbf16>
    %c14 = arith.constant 14 : index
    %c0_117 = arith.constant 0 : index
    %c0_118 = arith.constant 0 : index
    %102 = vector.load %arg3[%c14, %c0_117, %c0_118] : memref<16x128x128xbf16, #tpu.memory_space<vmem>>, vector<1x128x128xbf16>
    %103 = vector.shape_cast %102 : vector<1x128x128xbf16> to vector<128x128xbf16>
    %cst_119 = arith.constant dense<0.000000e+00> : vector<64x128xf32>
    %104 = tpu.matmul %101, %103, %cst_119 {dimension_numbers = #tpu.dot_dimension_numbers<[1], [0], [0], [1], [0, 0, 1, 1], [], []>} : vector<64x128xbf16>, vector<128x128xbf16>, vector<64x128xf32> -> vector<64x128xf32>
    %105 = arith.addf %98, %104 : vector<64x128xf32>
    %c0_120 = arith.constant 0 : index
    %c3_121 = arith.constant 3 : index
    %c1_122 = arith.constant 1 : index
    %c1_123 = arith.constant 1 : index
    %c0_124 = arith.constant 0 : index
    %106 = vector.load %arg2[%c0_120, %c3_121, %c1_122, %c1_123, %c0_124] : memref<1x4x9x9x128xbf16, #tpu.memory_space<vmem>>, vector<1x1x8x8x128xbf16>
    %107 = vector.shape_cast %106 : vector<1x1x8x8x128xbf16> to vector<8x8x128xbf16>
    %108 = vector.shape_cast %107 : vector<8x8x128xbf16> to vector<64x128xbf16>
    %c15 = arith.constant 15 : index
    %c0_125 = arith.constant 0 : index
    %c0_126 = arith.constant 0 : index
    %109 = vector.load %arg3[%c15, %c0_125, %c0_126] : memref<16x128x128xbf16, #tpu.memory_space<vmem>>, vector<1x128x128xbf16>
    %110 = vector.shape_cast %109 : vector<1x128x128xbf16> to vector<128x128xbf16>
    %cst_127 = arith.constant dense<0.000000e+00> : vector<64x128xf32>
    %111 = tpu.matmul %108, %110, %cst_127 {dimension_numbers = #tpu.dot_dimension_numbers<[1], [0], [0], [1], [0, 0, 1, 1], [], []>} : vector<64x128xbf16>, vector<128x128xbf16>, vector<64x128xf32> -> vector<64x128xf32>
    %112 = arith.addf %105, %111 : vector<64x128xf32>
    %113 = arith.truncf %112 : vector<64x128xf32> to vector<64x128xbf16>
    %c0_128 = arith.constant 0 : index
    %c0_129 = arith.constant 0 : index
    %c0_130 = arith.constant 0 : index
    %114 = vector.load %arg4[%c0_128, %c0_129, %c0_130] : memref<1x64x128xbf16, #tpu.memory_space<vmem>>, vector<1x64x128xbf16>
    %115 = vector.shape_cast %114 : vector<1x64x128xbf16> to vector<64x128xbf16>
    %116 = vector.shape_cast %113 : vector<64x128xbf16> to vector<1x64x128xbf16>
    tpu.vector_store %arg4[%c0_128, %c0_129, %c0_130], %116 {strides = array<i32>} : memref<1x64x128xbf16, #tpu.memory_space<vmem>>, vector<1x64x128xbf16>,
    %cst_131 = arith.constant dense<0.000000e+00> : vector<128xf32>
    %117 = vector.multi_reduction <add>, %112, %cst_131 [0] : vector<64x128xf32> to vector<128xf32>
    %118 = vector.shape_cast %117 : vector<128xf32> to vector<1x128xf32>
    %c0_132 = arith.constant 0 : index
    %c0_133 = arith.constant 0 : index
    %c0_134 = arith.constant 0 : index
    %119 = vector.load %arg5[%c0_132, %c0_133, %c0_134] : memref<1x1x128xf32, #tpu.memory_space<vmem>>, vector<1x1x128xf32>
    %120 = vector.shape_cast %119 : vector<1x1x128xf32> to vector<1x128xf32>
    %121 = vector.shape_cast %118 : vector<1x128xf32> to vector<1x1x128xf32>
    tpu.vector_store %arg5[%c0_132, %c0_133, %c0_134], %121 {strides = array<i32>} : memref<1x1x128xf32, #tpu.memory_space<vmem>>, vector<1x1x128xf32>,
    %122 = arith.mulf %112, %112 : vector<64x128xf32>
    %cst_135 = arith.constant dense<0.000000e+00> : vector<128xf32>
    %123 = vector.multi_reduction <add>, %122, %cst_135 [0] : vector<64x128xf32> to vector<128xf32>
    %124 = vector.shape_cast %123 : vector<128xf32> to vector<1x128xf32>
    %c0_136 = arith.constant 0 : index
    %c0_137 = arith.constant 0 : index
    %c0_138 = arith.constant 0 : index
    %125 = vector.load %arg6[%c0_136, %c0_137, %c0_138] : memref<1x1x128xf32, #tpu.memory_space<vmem>>, vector<1x1x128xf32>
    %126 = vector.shape_cast %125 : vector<1x1x128xf32> to vector<1x128xf32>
    %127 = vector.shape_cast %124 : vector<1x128xf32> to vector<1x1x128xf32>
    tpu.vector_store %arg6[%c0_136, %c0_137, %c0_138], %127 {strides = array<i32>} : memref<1x1x128xf32, #tpu.memory_space<vmem>>, vector<1x1x128xf32>,
    return
  }
  func.func @transform_0(%arg0: i32, %arg1: i32) -> (i32, i32, i32, i32, i32) {
    %c0_i32 = arith.constant 0 : i32
    %c0_i32_0 = arith.constant 0 : i32
    %c0_i32_1 = arith.constant 0 : i32
    %c0_i32_2 = arith.constant 0 : i32
    %c0_i32_3 = arith.constant 0 : i32
    return %arg0, %c0_i32, %c0_i32_0, %c0_i32_1, %c0_i32_2 : i32, i32, i32, i32, i32
  }
  func.func @transform_1(%arg0: i32, %arg1: i32) -> (i32, i32, i32) {
    %c0_i32 = arith.constant 0 : i32
    %c0_i32_0 = arith.constant 0 : i32
    %c0_i32_1 = arith.constant 0 : i32
    return %c0_i32, %c0_i32_0, %arg1 : i32, i32, i32
  }
  func.func @transform_2(%arg0: i32, %arg1: i32) -> (i32, i32, i32) {
    %c0_i32 = arith.constant 0 : i32
    %c0_i32_0 = arith.constant 0 : i32
    return %arg0, %c0_i32, %arg1 : i32, i32, i32
  }
  func.func @transform_3(%arg0: i32, %arg1: i32) -> (i32, i32, i32) {
    %c0_i32 = arith.constant 0 : i32
    %c0_i32_0 = arith.constant 0 : i32
    return %arg0, %c0_i32, %arg1 : i32, i32, i32
  }
  func.func @transform_4(%arg0: i32, %arg1: i32) -> (i32, i32, i32) {
    %c0_i32 = arith.constant 0 : i32
    %c0_i32_0 = arith.constant 0 : i32
    return %arg0, %c0_i32, %arg1 : i32, i32, i32
  }
}

module attributes {stable_mosaic.version = 11 : i64} {
  func.func @kernel(%arg0: i32, %arg1: i32, %arg2: memref<1x4x5x5x128xbf16, #tpu.memory_space<vmem>>, %arg3: memref<16x128x128xbf16, #tpu.memory_space<vmem>>, %arg4: memref<1x16x128xbf16, #tpu.memory_space<vmem>>, %arg5: memref<1x1x128xf32, #tpu.memory_space<vmem>>, %arg6: memref<1x1x128xf32, #tpu.memory_space<vmem>>) attributes {dimension_semantics = [#tpu.dimension_semantics<parallel>, #tpu.dimension_semantics<parallel>], iteration_bounds = array<i64: 2, 1>, scalar_prefetch = 0 : i64, scratch_operands = 0 : i64, tpu.core_type = #tpu.core_type<tc>, window_params = [{transform_indices = @transform_0, window_bounds = array<i64: 1, 4, 5, 5, 128>}, {transform_indices = @transform_1, window_bounds = array<i64: 16, 128, 128>}, {transform_indices = @transform_2, window_bounds = array<i64: 1, 16, 128>}, {transform_indices = @transform_3, window_bounds = array<i64: 1, 1, 128>}, {transform_indices = @transform_4, window_bounds = array<i64: 1, 1, 128>}]} {
    %cst = arith.constant 0.000000e+00 : f32
    %0 = vector.broadcast %cst : f32 to vector<16x128xf32>
    %c0 = arith.constant 0 : index
    %c0_0 = arith.constant 0 : index
    %c0_1 = arith.constant 0 : index
    %c0_2 = arith.constant 0 : index
    %c0_3 = arith.constant 0 : index
    %1 = vector.load %arg2[%c0, %c0_0, %c0_1, %c0_2, %c0_3] : memref<1x4x5x5x128xbf16, #tpu.memory_space<vmem>>, vector<1x1x4x4x128xbf16>
    %2 = vector.shape_cast %1 : vector<1x1x4x4x128xbf16> to vector<4x4x128xbf16>
    %3 = vector.shape_cast %2 : vector<4x4x128xbf16> to vector<16x128xbf16>
    %c0_4 = arith.constant 0 : index
    %c0_5 = arith.constant 0 : index
    %c0_6 = arith.constant 0 : index
    %4 = vector.load %arg3[%c0_4, %c0_5, %c0_6] : memref<16x128x128xbf16, #tpu.memory_space<vmem>>, vector<1x128x128xbf16>
    %5 = vector.shape_cast %4 : vector<1x128x128xbf16> to vector<128x128xbf16>
    %cst_7 = arith.constant dense<0.000000e+00> : vector<16x128xf32>
    %6 = tpu.matmul %3, %5, %cst_7 {dimension_numbers = #tpu.dot_dimension_numbers<[1], [0], [0], [1], [0, 0, 1, 1], [], []>} : vector<16x128xbf16>, vector<128x128xbf16>, vector<16x128xf32> -> vector<16x128xf32>
    %7 = arith.addf %0, %6 : vector<16x128xf32>
    %c0_8 = arith.constant 0 : index
    %c1 = arith.constant 1 : index
    %c0_9 = arith.constant 0 : index
    %c0_10 = arith.constant 0 : index
    %c0_11 = arith.constant 0 : index
    %8 = vector.load %arg2[%c0_8, %c1, %c0_9, %c0_10, %c0_11] : memref<1x4x5x5x128xbf16, #tpu.memory_space<vmem>>, vector<1x1x4x4x128xbf16>
    %9 = vector.shape_cast %8 : vector<1x1x4x4x128xbf16> to vector<4x4x128xbf16>
    %10 = vector.shape_cast %9 : vector<4x4x128xbf16> to vector<16x128xbf16>
    %c1_12 = arith.constant 1 : index
    %c0_13 = arith.constant 0 : index
    %c0_14 = arith.constant 0 : index
    %11 = vector.load %arg3[%c1_12, %c0_13, %c0_14] : memref<16x128x128xbf16, #tpu.memory_space<vmem>>, vector<1x128x128xbf16>
    %12 = vector.shape_cast %11 : vector<1x128x128xbf16> to vector<128x128xbf16>
    %cst_15 = arith.constant dense<0.000000e+00> : vector<16x128xf32>
    %13 = tpu.matmul %10, %12, %cst_15 {dimension_numbers = #tpu.dot_dimension_numbers<[1], [0], [0], [1], [0, 0, 1, 1], [], []>} : vector<16x128xbf16>, vector<128x128xbf16>, vector<16x128xf32> -> vector<16x128xf32>
    %14 = arith.addf %7, %13 : vector<16x128xf32>
    %c0_16 = arith.constant 0 : index
    %c0_17 = arith.constant 0 : index
    %c0_18 = arith.constant 0 : index
    %c1_19 = arith.constant 1 : index
    %c0_20 = arith.constant 0 : index
    %15 = vector.load %arg2[%c0_16, %c0_17, %c0_18, %c1_19, %c0_20] : memref<1x4x5x5x128xbf16, #tpu.memory_space<vmem>>, vector<1x1x4x4x128xbf16>
    %16 = vector.shape_cast %15 : vector<1x1x4x4x128xbf16> to vector<4x4x128xbf16>
    %17 = vector.shape_cast %16 : vector<4x4x128xbf16> to vector<16x128xbf16>
    %c2 = arith.constant 2 : index
    %c0_21 = arith.constant 0 : index
    %c0_22 = arith.constant 0 : index
    %18 = vector.load %arg3[%c2, %c0_21, %c0_22] : memref<16x128x128xbf16, #tpu.memory_space<vmem>>, vector<1x128x128xbf16>
    %19 = vector.shape_cast %18 : vector<1x128x128xbf16> to vector<128x128xbf16>
    %cst_23 = arith.constant dense<0.000000e+00> : vector<16x128xf32>
    %20 = tpu.matmul %17, %19, %cst_23 {dimension_numbers = #tpu.dot_dimension_numbers<[1], [0], [0], [1], [0, 0, 1, 1], [], []>} : vector<16x128xbf16>, vector<128x128xbf16>, vector<16x128xf32> -> vector<16x128xf32>
    %21 = arith.addf %14, %20 : vector<16x128xf32>
    %c0_24 = arith.constant 0 : index
    %c1_25 = arith.constant 1 : index
    %c0_26 = arith.constant 0 : index
    %c1_27 = arith.constant 1 : index
    %c0_28 = arith.constant 0 : index
    %22 = vector.load %arg2[%c0_24, %c1_25, %c0_26, %c1_27, %c0_28] : memref<1x4x5x5x128xbf16, #tpu.memory_space<vmem>>, vector<1x1x4x4x128xbf16>
    %23 = vector.shape_cast %22 : vector<1x1x4x4x128xbf16> to vector<4x4x128xbf16>
    %24 = vector.shape_cast %23 : vector<4x4x128xbf16> to vector<16x128xbf16>
    %c3 = arith.constant 3 : index
    %c0_29 = arith.constant 0 : index
    %c0_30 = arith.constant 0 : index
    %25 = vector.load %arg3[%c3, %c0_29, %c0_30] : memref<16x128x128xbf16, #tpu.memory_space<vmem>>, vector<1x128x128xbf16>
    %26 = vector.shape_cast %25 : vector<1x128x128xbf16> to vector<128x128xbf16>
    %cst_31 = arith.constant dense<0.000000e+00> : vector<16x128xf32>
    %27 = tpu.matmul %24, %26, %cst_31 {dimension_numbers = #tpu.dot_dimension_numbers<[1], [0], [0], [1], [0, 0, 1, 1], [], []>} : vector<16x128xbf16>, vector<128x128xbf16>, vector<16x128xf32> -> vector<16x128xf32>
    %28 = arith.addf %21, %27 : vector<16x128xf32>
    %c0_32 = arith.constant 0 : index
    %c2_33 = arith.constant 2 : index
    %c0_34 = arith.constant 0 : index
    %c0_35 = arith.constant 0 : index
    %c0_36 = arith.constant 0 : index
    %29 = vector.load %arg2[%c0_32, %c2_33, %c0_34, %c0_35, %c0_36] : memref<1x4x5x5x128xbf16, #tpu.memory_space<vmem>>, vector<1x1x4x4x128xbf16>
    %30 = vector.shape_cast %29 : vector<1x1x4x4x128xbf16> to vector<4x4x128xbf16>
    %31 = vector.shape_cast %30 : vector<4x4x128xbf16> to vector<16x128xbf16>
    %c4 = arith.constant 4 : index
    %c0_37 = arith.constant 0 : index
    %c0_38 = arith.constant 0 : index
    %32 = vector.load %arg3[%c4, %c0_37, %c0_38] : memref<16x128x128xbf16, #tpu.memory_space<vmem>>, vector<1x128x128xbf16>
    %33 = vector.shape_cast %32 : vector<1x128x128xbf16> to vector<128x128xbf16>
    %cst_39 = arith.constant dense<0.000000e+00> : vector<16x128xf32>
    %34 = tpu.matmul %31, %33, %cst_39 {dimension_numbers = #tpu.dot_dimension_numbers<[1], [0], [0], [1], [0, 0, 1, 1], [], []>} : vector<16x128xbf16>, vector<128x128xbf16>, vector<16x128xf32> -> vector<16x128xf32>
    %35 = arith.addf %28, %34 : vector<16x128xf32>
    %c0_40 = arith.constant 0 : index
    %c3_41 = arith.constant 3 : index
    %c0_42 = arith.constant 0 : index
    %c0_43 = arith.constant 0 : index
    %c0_44 = arith.constant 0 : index
    %36 = vector.load %arg2[%c0_40, %c3_41, %c0_42, %c0_43, %c0_44] : memref<1x4x5x5x128xbf16, #tpu.memory_space<vmem>>, vector<1x1x4x4x128xbf16>
    %37 = vector.shape_cast %36 : vector<1x1x4x4x128xbf16> to vector<4x4x128xbf16>
    %38 = vector.shape_cast %37 : vector<4x4x128xbf16> to vector<16x128xbf16>
    %c5 = arith.constant 5 : index
    %c0_45 = arith.constant 0 : index
    %c0_46 = arith.constant 0 : index
    %39 = vector.load %arg3[%c5, %c0_45, %c0_46] : memref<16x128x128xbf16, #tpu.memory_space<vmem>>, vector<1x128x128xbf16>
    %40 = vector.shape_cast %39 : vector<1x128x128xbf16> to vector<128x128xbf16>
    %cst_47 = arith.constant dense<0.000000e+00> : vector<16x128xf32>
    %41 = tpu.matmul %38, %40, %cst_47 {dimension_numbers = #tpu.dot_dimension_numbers<[1], [0], [0], [1], [0, 0, 1, 1], [], []>} : vector<16x128xbf16>, vector<128x128xbf16>, vector<16x128xf32> -> vector<16x128xf32>
    %42 = arith.addf %35, %41 : vector<16x128xf32>
    %c0_48 = arith.constant 0 : index
    %c2_49 = arith.constant 2 : index
    %c0_50 = arith.constant 0 : index
    %c1_51 = arith.constant 1 : index
    %c0_52 = arith.constant 0 : index
    %43 = vector.load %arg2[%c0_48, %c2_49, %c0_50, %c1_51, %c0_52] : memref<1x4x5x5x128xbf16, #tpu.memory_space<vmem>>, vector<1x1x4x4x128xbf16>
    %44 = vector.shape_cast %43 : vector<1x1x4x4x128xbf16> to vector<4x4x128xbf16>
    %45 = vector.shape_cast %44 : vector<4x4x128xbf16> to vector<16x128xbf16>
    %c6 = arith.constant 6 : index
    %c0_53 = arith.constant 0 : index
    %c0_54 = arith.constant 0 : index
    %46 = vector.load %arg3[%c6, %c0_53, %c0_54] : memref<16x128x128xbf16, #tpu.memory_space<vmem>>, vector<1x128x128xbf16>
    %47 = vector.shape_cast %46 : vector<1x128x128xbf16> to vector<128x128xbf16>
    %cst_55 = arith.constant dense<0.000000e+00> : vector<16x128xf32>
    %48 = tpu.matmul %45, %47, %cst_55 {dimension_numbers = #tpu.dot_dimension_numbers<[1], [0], [0], [1], [0, 0, 1, 1], [], []>} : vector<16x128xbf16>, vector<128x128xbf16>, vector<16x128xf32> -> vector<16x128xf32>
    %49 = arith.addf %42, %48 : vector<16x128xf32>
    %c0_56 = arith.constant 0 : index
    %c3_57 = arith.constant 3 : index
    %c0_58 = arith.constant 0 : index
    %c1_59 = arith.constant 1 : index
    %c0_60 = arith.constant 0 : index
    %50 = vector.load %arg2[%c0_56, %c3_57, %c0_58, %c1_59, %c0_60] : memref<1x4x5x5x128xbf16, #tpu.memory_space<vmem>>, vector<1x1x4x4x128xbf16>
    %51 = vector.shape_cast %50 : vector<1x1x4x4x128xbf16> to vector<4x4x128xbf16>
    %52 = vector.shape_cast %51 : vector<4x4x128xbf16> to vector<16x128xbf16>
    %c7 = arith.constant 7 : index
    %c0_61 = arith.constant 0 : index
    %c0_62 = arith.constant 0 : index
    %53 = vector.load %arg3[%c7, %c0_61, %c0_62] : memref<16x128x128xbf16, #tpu.memory_space<vmem>>, vector<1x128x128xbf16>
    %54 = vector.shape_cast %53 : vector<1x128x128xbf16> to vector<128x128xbf16>
    %cst_63 = arith.constant dense<0.000000e+00> : vector<16x128xf32>
    %55 = tpu.matmul %52, %54, %cst_63 {dimension_numbers = #tpu.dot_dimension_numbers<[1], [0], [0], [1], [0, 0, 1, 1], [], []>} : vector<16x128xbf16>, vector<128x128xbf16>, vector<16x128xf32> -> vector<16x128xf32>
    %56 = arith.addf %49, %55 : vector<16x128xf32>
    %c0_64 = arith.constant 0 : index
    %c0_65 = arith.constant 0 : index
    %c1_66 = arith.constant 1 : index
    %c0_67 = arith.constant 0 : index
    %c0_68 = arith.constant 0 : index
    %57 = vector.load %arg2[%c0_64, %c0_65, %c1_66, %c0_67, %c0_68] : memref<1x4x5x5x128xbf16, #tpu.memory_space<vmem>>, vector<1x1x4x4x128xbf16>
    %58 = vector.shape_cast %57 : vector<1x1x4x4x128xbf16> to vector<4x4x128xbf16>
    %59 = vector.shape_cast %58 : vector<4x4x128xbf16> to vector<16x128xbf16>
    %c8 = arith.constant 8 : index
    %c0_69 = arith.constant 0 : index
    %c0_70 = arith.constant 0 : index
    %60 = vector.load %arg3[%c8, %c0_69, %c0_70] : memref<16x128x128xbf16, #tpu.memory_space<vmem>>, vector<1x128x128xbf16>
    %61 = vector.shape_cast %60 : vector<1x128x128xbf16> to vector<128x128xbf16>
    %cst_71 = arith.constant dense<0.000000e+00> : vector<16x128xf32>
    %62 = tpu.matmul %59, %61, %cst_71 {dimension_numbers = #tpu.dot_dimension_numbers<[1], [0], [0], [1], [0, 0, 1, 1], [], []>} : vector<16x128xbf16>, vector<128x128xbf16>, vector<16x128xf32> -> vector<16x128xf32>
    %63 = arith.addf %56, %62 : vector<16x128xf32>
    %c0_72 = arith.constant 0 : index
    %c1_73 = arith.constant 1 : index
    %c1_74 = arith.constant 1 : index
    %c0_75 = arith.constant 0 : index
    %c0_76 = arith.constant 0 : index
    %64 = vector.load %arg2[%c0_72, %c1_73, %c1_74, %c0_75, %c0_76] : memref<1x4x5x5x128xbf16, #tpu.memory_space<vmem>>, vector<1x1x4x4x128xbf16>
    %65 = vector.shape_cast %64 : vector<1x1x4x4x128xbf16> to vector<4x4x128xbf16>
    %66 = vector.shape_cast %65 : vector<4x4x128xbf16> to vector<16x128xbf16>
    %c9 = arith.constant 9 : index
    %c0_77 = arith.constant 0 : index
    %c0_78 = arith.constant 0 : index
    %67 = vector.load %arg3[%c9, %c0_77, %c0_78] : memref<16x128x128xbf16, #tpu.memory_space<vmem>>, vector<1x128x128xbf16>
    %68 = vector.shape_cast %67 : vector<1x128x128xbf16> to vector<128x128xbf16>
    %cst_79 = arith.constant dense<0.000000e+00> : vector<16x128xf32>
    %69 = tpu.matmul %66, %68, %cst_79 {dimension_numbers = #tpu.dot_dimension_numbers<[1], [0], [0], [1], [0, 0, 1, 1], [], []>} : vector<16x128xbf16>, vector<128x128xbf16>, vector<16x128xf32> -> vector<16x128xf32>
    %70 = arith.addf %63, %69 : vector<16x128xf32>
    %c0_80 = arith.constant 0 : index
    %c0_81 = arith.constant 0 : index
    %c1_82 = arith.constant 1 : index
    %c1_83 = arith.constant 1 : index
    %c0_84 = arith.constant 0 : index
    %71 = vector.load %arg2[%c0_80, %c0_81, %c1_82, %c1_83, %c0_84] : memref<1x4x5x5x128xbf16, #tpu.memory_space<vmem>>, vector<1x1x4x4x128xbf16>
    %72 = vector.shape_cast %71 : vector<1x1x4x4x128xbf16> to vector<4x4x128xbf16>
    %73 = vector.shape_cast %72 : vector<4x4x128xbf16> to vector<16x128xbf16>
    %c10 = arith.constant 10 : index
    %c0_85 = arith.constant 0 : index
    %c0_86 = arith.constant 0 : index
    %74 = vector.load %arg3[%c10, %c0_85, %c0_86] : memref<16x128x128xbf16, #tpu.memory_space<vmem>>, vector<1x128x128xbf16>
    %75 = vector.shape_cast %74 : vector<1x128x128xbf16> to vector<128x128xbf16>
    %cst_87 = arith.constant dense<0.000000e+00> : vector<16x128xf32>
    %76 = tpu.matmul %73, %75, %cst_87 {dimension_numbers = #tpu.dot_dimension_numbers<[1], [0], [0], [1], [0, 0, 1, 1], [], []>} : vector<16x128xbf16>, vector<128x128xbf16>, vector<16x128xf32> -> vector<16x128xf32>
    %77 = arith.addf %70, %76 : vector<16x128xf32>
    %c0_88 = arith.constant 0 : index
    %c1_89 = arith.constant 1 : index
    %c1_90 = arith.constant 1 : index
    %c1_91 = arith.constant 1 : index
    %c0_92 = arith.constant 0 : index
    %78 = vector.load %arg2[%c0_88, %c1_89, %c1_90, %c1_91, %c0_92] : memref<1x4x5x5x128xbf16, #tpu.memory_space<vmem>>, vector<1x1x4x4x128xbf16>
    %79 = vector.shape_cast %78 : vector<1x1x4x4x128xbf16> to vector<4x4x128xbf16>
    %80 = vector.shape_cast %79 : vector<4x4x128xbf16> to vector<16x128xbf16>
    %c11 = arith.constant 11 : index
    %c0_93 = arith.constant 0 : index
    %c0_94 = arith.constant 0 : index
    %81 = vector.load %arg3[%c11, %c0_93, %c0_94] : memref<16x128x128xbf16, #tpu.memory_space<vmem>>, vector<1x128x128xbf16>
    %82 = vector.shape_cast %81 : vector<1x128x128xbf16> to vector<128x128xbf16>
    %cst_95 = arith.constant dense<0.000000e+00> : vector<16x128xf32>
    %83 = tpu.matmul %80, %82, %cst_95 {dimension_numbers = #tpu.dot_dimension_numbers<[1], [0], [0], [1], [0, 0, 1, 1], [], []>} : vector<16x128xbf16>, vector<128x128xbf16>, vector<16x128xf32> -> vector<16x128xf32>
    %84 = arith.addf %77, %83 : vector<16x128xf32>
    %c0_96 = arith.constant 0 : index
    %c2_97 = arith.constant 2 : index
    %c1_98 = arith.constant 1 : index
    %c0_99 = arith.constant 0 : index
    %c0_100 = arith.constant 0 : index
    %85 = vector.load %arg2[%c0_96, %c2_97, %c1_98, %c0_99, %c0_100] : memref<1x4x5x5x128xbf16, #tpu.memory_space<vmem>>, vector<1x1x4x4x128xbf16>
    %86 = vector.shape_cast %85 : vector<1x1x4x4x128xbf16> to vector<4x4x128xbf16>
    %87 = vector.shape_cast %86 : vector<4x4x128xbf16> to vector<16x128xbf16>
    %c12 = arith.constant 12 : index
    %c0_101 = arith.constant 0 : index
    %c0_102 = arith.constant 0 : index
    %88 = vector.load %arg3[%c12, %c0_101, %c0_102] : memref<16x128x128xbf16, #tpu.memory_space<vmem>>, vector<1x128x128xbf16>
    %89 = vector.shape_cast %88 : vector<1x128x128xbf16> to vector<128x128xbf16>
    %cst_103 = arith.constant dense<0.000000e+00> : vector<16x128xf32>
    %90 = tpu.matmul %87, %89, %cst_103 {dimension_numbers = #tpu.dot_dimension_numbers<[1], [0], [0], [1], [0, 0, 1, 1], [], []>} : vector<16x128xbf16>, vector<128x128xbf16>, vector<16x128xf32> -> vector<16x128xf32>
    %91 = arith.addf %84, %90 : vector<16x128xf32>
    %c0_104 = arith.constant 0 : index
    %c3_105 = arith.constant 3 : index
    %c1_106 = arith.constant 1 : index
    %c0_107 = arith.constant 0 : index
    %c0_108 = arith.constant 0 : index
    %92 = vector.load %arg2[%c0_104, %c3_105, %c1_106, %c0_107, %c0_108] : memref<1x4x5x5x128xbf16, #tpu.memory_space<vmem>>, vector<1x1x4x4x128xbf16>
    %93 = vector.shape_cast %92 : vector<1x1x4x4x128xbf16> to vector<4x4x128xbf16>
    %94 = vector.shape_cast %93 : vector<4x4x128xbf16> to vector<16x128xbf16>
    %c13 = arith.constant 13 : index
    %c0_109 = arith.constant 0 : index
    %c0_110 = arith.constant 0 : index
    %95 = vector.load %arg3[%c13, %c0_109, %c0_110] : memref<16x128x128xbf16, #tpu.memory_space<vmem>>, vector<1x128x128xbf16>
    %96 = vector.shape_cast %95 : vector<1x128x128xbf16> to vector<128x128xbf16>
    %cst_111 = arith.constant dense<0.000000e+00> : vector<16x128xf32>
    %97 = tpu.matmul %94, %96, %cst_111 {dimension_numbers = #tpu.dot_dimension_numbers<[1], [0], [0], [1], [0, 0, 1, 1], [], []>} : vector<16x128xbf16>, vector<128x128xbf16>, vector<16x128xf32> -> vector<16x128xf32>
    %98 = arith.addf %91, %97 : vector<16x128xf32>
    %c0_112 = arith.constant 0 : index
    %c2_113 = arith.constant 2 : index
    %c1_114 = arith.constant 1 : index
    %c1_115 = arith.constant 1 : index
    %c0_116 = arith.constant 0 : index
    %99 = vector.load %arg2[%c0_112, %c2_113, %c1_114, %c1_115, %c0_116] : memref<1x4x5x5x128xbf16, #tpu.memory_space<vmem>>, vector<1x1x4x4x128xbf16>
    %100 = vector.shape_cast %99 : vector<1x1x4x4x128xbf16> to vector<4x4x128xbf16>
    %101 = vector.shape_cast %100 : vector<4x4x128xbf16> to vector<16x128xbf16>
    %c14 = arith.constant 14 : index
    %c0_117 = arith.constant 0 : index
    %c0_118 = arith.constant 0 : index
    %102 = vector.load %arg3[%c14, %c0_117, %c0_118] : memref<16x128x128xbf16, #tpu.memory_space<vmem>>, vector<1x128x128xbf16>
    %103 = vector.shape_cast %102 : vector<1x128x128xbf16> to vector<128x128xbf16>
    %cst_119 = arith.constant dense<0.000000e+00> : vector<16x128xf32>
    %104 = tpu.matmul %101, %103, %cst_119 {dimension_numbers = #tpu.dot_dimension_numbers<[1], [0], [0], [1], [0, 0, 1, 1], [], []>} : vector<16x128xbf16>, vector<128x128xbf16>, vector<16x128xf32> -> vector<16x128xf32>
    %105 = arith.addf %98, %104 : vector<16x128xf32>
    %c0_120 = arith.constant 0 : index
    %c3_121 = arith.constant 3 : index
    %c1_122 = arith.constant 1 : index
    %c1_123 = arith.constant 1 : index
    %c0_124 = arith.constant 0 : index
    %106 = vector.load %arg2[%c0_120, %c3_121, %c1_122, %c1_123, %c0_124] : memref<1x4x5x5x128xbf16, #tpu.memory_space<vmem>>, vector<1x1x4x4x128xbf16>
    %107 = vector.shape_cast %106 : vector<1x1x4x4x128xbf16> to vector<4x4x128xbf16>
    %108 = vector.shape_cast %107 : vector<4x4x128xbf16> to vector<16x128xbf16>
    %c15 = arith.constant 15 : index
    %c0_125 = arith.constant 0 : index
    %c0_126 = arith.constant 0 : index
    %109 = vector.load %arg3[%c15, %c0_125, %c0_126] : memref<16x128x128xbf16, #tpu.memory_space<vmem>>, vector<1x128x128xbf16>
    %110 = vector.shape_cast %109 : vector<1x128x128xbf16> to vector<128x128xbf16>
    %cst_127 = arith.constant dense<0.000000e+00> : vector<16x128xf32>
    %111 = tpu.matmul %108, %110, %cst_127 {dimension_numbers = #tpu.dot_dimension_numbers<[1], [0], [0], [1], [0, 0, 1, 1], [], []>} : vector<16x128xbf16>, vector<128x128xbf16>, vector<16x128xf32> -> vector<16x128xf32>
    %112 = arith.addf %105, %111 : vector<16x128xf32>
    %113 = arith.truncf %112 : vector<16x128xf32> to vector<16x128xbf16>
    %c0_128 = arith.constant 0 : index
    %c0_129 = arith.constant 0 : index
    %c0_130 = arith.constant 0 : index
    %114 = vector.load %arg4[%c0_128, %c0_129, %c0_130] : memref<1x16x128xbf16, #tpu.memory_space<vmem>>, vector<1x16x128xbf16>
    %115 = vector.shape_cast %114 : vector<1x16x128xbf16> to vector<16x128xbf16>
    %116 = vector.shape_cast %113 : vector<16x128xbf16> to vector<1x16x128xbf16>
    tpu.vector_store %arg4[%c0_128, %c0_129, %c0_130], %116 {strides = array<i32>} : memref<1x16x128xbf16, #tpu.memory_space<vmem>>, vector<1x16x128xbf16>,
    %cst_131 = arith.constant dense<0.000000e+00> : vector<128xf32>
    %117 = vector.multi_reduction <add>, %112, %cst_131 [0] : vector<16x128xf32> to vector<128xf32>
    %118 = vector.shape_cast %117 : vector<128xf32> to vector<1x128xf32>
    %c0_132 = arith.constant 0 : index
    %c0_133 = arith.constant 0 : index
    %c0_134 = arith.constant 0 : index
    %119 = vector.load %arg5[%c0_132, %c0_133, %c0_134] : memref<1x1x128xf32, #tpu.memory_space<vmem>>, vector<1x1x128xf32>
    %120 = vector.shape_cast %119 : vector<1x1x128xf32> to vector<1x128xf32>
    %121 = vector.shape_cast %118 : vector<1x128xf32> to vector<1x1x128xf32>
    tpu.vector_store %arg5[%c0_132, %c0_133, %c0_134], %121 {strides = array<i32>} : memref<1x1x128xf32, #tpu.memory_space<vmem>>, vector<1x1x128xf32>,
    %122 = arith.mulf %112, %112 : vector<16x128xf32>
    %cst_135 = arith.constant dense<0.000000e+00> : vector<128xf32>
    %123 = vector.multi_reduction <add>, %122, %cst_135 [0] : vector<16x128xf32> to vector<128xf32>
    %124 = vector.shape_cast %123 : vector<128xf32> to vector<1x128xf32>
    %c0_136 = arith.constant 0 : index
    %c0_137 = arith.constant 0 : index
    %c0_138 = arith.constant 0 : index
    %125 = vector.load %arg6[%c0_136, %c0_137, %c0_138] : memref<1x1x128xf32, #tpu.memory_space<vmem>>, vector<1x1x128xf32>
    %126 = vector.shape_cast %125 : vector<1x1x128xf32> to vector<1x128xf32>
    %127 = vector.shape_cast %124 : vector<1x128xf32> to vector<1x1x128xf32>
    tpu.vector_store %arg6[%c0_136, %c0_137, %c0_138], %127 {strides = array<i32>} : memref<1x1x128xf32, #tpu.memory_space<vmem>>, vector<1x1x128xf32>,
    return
  }
  func.func @transform_0(%arg0: i32, %arg1: i32) -> (i32, i32, i32, i32, i32) {
    %c0_i32 = arith.constant 0 : i32
    %c0_i32_0 = arith.constant 0 : i32
    %c0_i32_1 = arith.constant 0 : i32
    %c0_i32_2 = arith.constant 0 : i32
    %c0_i32_3 = arith.constant 0 : i32
    return %arg0, %c0_i32, %c0_i32_0, %c0_i32_1, %c0_i32_2 : i32, i32, i32, i32, i32
  }
  func.func @transform_1(%arg0: i32, %arg1: i32) -> (i32, i32, i32) {
    %c0_i32 = arith.constant 0 : i32
    %c0_i32_0 = arith.constant 0 : i32
    %c0_i32_1 = arith.constant 0 : i32
    return %c0_i32, %c0_i32_0, %arg1 : i32, i32, i32
  }
  func.func @transform_2(%arg0: i32, %arg1: i32) -> (i32, i32, i32) {
    %c0_i32 = arith.constant 0 : i32
    %c0_i32_0 = arith.constant 0 : i32
    return %arg0, %c0_i32, %arg1 : i32, i32, i32
  }
  func.func @transform_3(%arg0: i32, %arg1: i32) -> (i32, i32, i32) {
    %c0_i32 = arith.constant 0 : i32
    %c0_i32_0 = arith.constant 0 : i32
    return %arg0, %c0_i32, %arg1 : i32, i32, i32
  }
  func.func @transform_4(%arg0: i32, %arg1: i32) -> (i32, i32, i32) {
    %c0_i32 = arith.constant 0 : i32
    %c0_i32_0 = arith.constant 0 : i32
    return %arg0, %c0_i32, %arg1 : i32, i32, i32
  }
}

module attributes {stable_mosaic.version = 11 : i64} {
  func.func @kernel(%arg0: i32, %arg1: i32, %arg2: memref<1x4x3x3x128xbf16, #tpu.memory_space<vmem>>, %arg3: memref<16x128x128xbf16, #tpu.memory_space<vmem>>, %arg4: memref<1x4x128xbf16, #tpu.memory_space<vmem>>, %arg5: memref<1x1x128xf32, #tpu.memory_space<vmem>>, %arg6: memref<1x1x128xf32, #tpu.memory_space<vmem>>) attributes {dimension_semantics = [#tpu.dimension_semantics<parallel>, #tpu.dimension_semantics<parallel>], iteration_bounds = array<i64: 2, 1>, scalar_prefetch = 0 : i64, scratch_operands = 0 : i64, tpu.core_type = #tpu.core_type<tc>, window_params = [{transform_indices = @transform_0, window_bounds = array<i64: 1, 4, 3, 3, 128>}, {transform_indices = @transform_1, window_bounds = array<i64: 16, 128, 128>}, {transform_indices = @transform_2, window_bounds = array<i64: 1, 4, 128>}, {transform_indices = @transform_3, window_bounds = array<i64: 1, 1, 128>}, {transform_indices = @transform_4, window_bounds = array<i64: 1, 1, 128>}]} {
    %cst = arith.constant 0.000000e+00 : f32
    %0 = vector.broadcast %cst : f32 to vector<4x128xf32>
    %c0 = arith.constant 0 : index
    %c0_0 = arith.constant 0 : index
    %c0_1 = arith.constant 0 : index
    %c0_2 = arith.constant 0 : index
    %c0_3 = arith.constant 0 : index
    %1 = vector.load %arg2[%c0, %c0_0, %c0_1, %c0_2, %c0_3] : memref<1x4x3x3x128xbf16, #tpu.memory_space<vmem>>, vector<1x1x2x2x128xbf16>
    %2 = vector.shape_cast %1 : vector<1x1x2x2x128xbf16> to vector<2x2x128xbf16>
    %3 = vector.shape_cast %2 : vector<2x2x128xbf16> to vector<4x128xbf16>
    %c0_4 = arith.constant 0 : index
    %c0_5 = arith.constant 0 : index
    %c0_6 = arith.constant 0 : index
    %4 = vector.load %arg3[%c0_4, %c0_5, %c0_6] : memref<16x128x128xbf16, #tpu.memory_space<vmem>>, vector<1x128x128xbf16>
    %5 = vector.shape_cast %4 : vector<1x128x128xbf16> to vector<128x128xbf16>
    %cst_7 = arith.constant dense<0.000000e+00> : vector<4x128xf32>
    %6 = tpu.matmul %3, %5, %cst_7 {dimension_numbers = #tpu.dot_dimension_numbers<[1], [0], [0], [1], [0, 0, 1, 1], [], []>} : vector<4x128xbf16>, vector<128x128xbf16>, vector<4x128xf32> -> vector<4x128xf32>
    %7 = arith.addf %0, %6 : vector<4x128xf32>
    %c0_8 = arith.constant 0 : index
    %c1 = arith.constant 1 : index
    %c0_9 = arith.constant 0 : index
    %c0_10 = arith.constant 0 : index
    %c0_11 = arith.constant 0 : index
    %8 = vector.load %arg2[%c0_8, %c1, %c0_9, %c0_10, %c0_11] : memref<1x4x3x3x128xbf16, #tpu.memory_space<vmem>>, vector<1x1x2x2x128xbf16>
    %9 = vector.shape_cast %8 : vector<1x1x2x2x128xbf16> to vector<2x2x128xbf16>
    %10 = vector.shape_cast %9 : vector<2x2x128xbf16> to vector<4x128xbf16>
    %c1_12 = arith.constant 1 : index
    %c0_13 = arith.constant 0 : index
    %c0_14 = arith.constant 0 : index
    %11 = vector.load %arg3[%c1_12, %c0_13, %c0_14] : memref<16x128x128xbf16, #tpu.memory_space<vmem>>, vector<1x128x128xbf16>
    %12 = vector.shape_cast %11 : vector<1x128x128xbf16> to vector<128x128xbf16>
    %cst_15 = arith.constant dense<0.000000e+00> : vector<4x128xf32>
    %13 = tpu.matmul %10, %12, %cst_15 {dimension_numbers = #tpu.dot_dimension_numbers<[1], [0], [0], [1], [0, 0, 1, 1], [], []>} : vector<4x128xbf16>, vector<128x128xbf16>, vector<4x128xf32> -> vector<4x128xf32>
    %14 = arith.addf %7, %13 : vector<4x128xf32>
    %c0_16 = arith.constant 0 : index
    %c0_17 = arith.constant 0 : index
    %c0_18 = arith.constant 0 : index
    %c1_19 = arith.constant 1 : index
    %c0_20 = arith.constant 0 : index
    %15 = vector.load %arg2[%c0_16, %c0_17, %c0_18, %c1_19, %c0_20] : memref<1x4x3x3x128xbf16, #tpu.memory_space<vmem>>, vector<1x1x2x2x128xbf16>
    %16 = vector.shape_cast %15 : vector<1x1x2x2x128xbf16> to vector<2x2x128xbf16>
    %17 = vector.shape_cast %16 : vector<2x2x128xbf16> to vector<4x128xbf16>
    %c2 = arith.constant 2 : index
    %c0_21 = arith.constant 0 : index
    %c0_22 = arith.constant 0 : index
    %18 = vector.load %arg3[%c2, %c0_21, %c0_22] : memref<16x128x128xbf16, #tpu.memory_space<vmem>>, vector<1x128x128xbf16>
    %19 = vector.shape_cast %18 : vector<1x128x128xbf16> to vector<128x128xbf16>
    %cst_23 = arith.constant dense<0.000000e+00> : vector<4x128xf32>
    %20 = tpu.matmul %17, %19, %cst_23 {dimension_numbers = #tpu.dot_dimension_numbers<[1], [0], [0], [1], [0, 0, 1, 1], [], []>} : vector<4x128xbf16>, vector<128x128xbf16>, vector<4x128xf32> -> vector<4x128xf32>
    %21 = arith.addf %14, %20 : vector<4x128xf32>
    %c0_24 = arith.constant 0 : index
    %c1_25 = arith.constant 1 : index
    %c0_26 = arith.constant 0 : index
    %c1_27 = arith.constant 1 : index
    %c0_28 = arith.constant 0 : index
    %22 = vector.load %arg2[%c0_24, %c1_25, %c0_26, %c1_27, %c0_28] : memref<1x4x3x3x128xbf16, #tpu.memory_space<vmem>>, vector<1x1x2x2x128xbf16>
    %23 = vector.shape_cast %22 : vector<1x1x2x2x128xbf16> to vector<2x2x128xbf16>
    %24 = vector.shape_cast %23 : vector<2x2x128xbf16> to vector<4x128xbf16>
    %c3 = arith.constant 3 : index
    %c0_29 = arith.constant 0 : index
    %c0_30 = arith.constant 0 : index
    %25 = vector.load %arg3[%c3, %c0_29, %c0_30] : memref<16x128x128xbf16, #tpu.memory_space<vmem>>, vector<1x128x128xbf16>
    %26 = vector.shape_cast %25 : vector<1x128x128xbf16> to vector<128x128xbf16>
    %cst_31 = arith.constant dense<0.000000e+00> : vector<4x128xf32>
    %27 = tpu.matmul %24, %26, %cst_31 {dimension_numbers = #tpu.dot_dimension_numbers<[1], [0], [0], [1], [0, 0, 1, 1], [], []>} : vector<4x128xbf16>, vector<128x128xbf16>, vector<4x128xf32> -> vector<4x128xf32>
    %28 = arith.addf %21, %27 : vector<4x128xf32>
    %c0_32 = arith.constant 0 : index
    %c2_33 = arith.constant 2 : index
    %c0_34 = arith.constant 0 : index
    %c0_35 = arith.constant 0 : index
    %c0_36 = arith.constant 0 : index
    %29 = vector.load %arg2[%c0_32, %c2_33, %c0_34, %c0_35, %c0_36] : memref<1x4x3x3x128xbf16, #tpu.memory_space<vmem>>, vector<1x1x2x2x128xbf16>
    %30 = vector.shape_cast %29 : vector<1x1x2x2x128xbf16> to vector<2x2x128xbf16>
    %31 = vector.shape_cast %30 : vector<2x2x128xbf16> to vector<4x128xbf16>
    %c4 = arith.constant 4 : index
    %c0_37 = arith.constant 0 : index
    %c0_38 = arith.constant 0 : index
    %32 = vector.load %arg3[%c4, %c0_37, %c0_38] : memref<16x128x128xbf16, #tpu.memory_space<vmem>>, vector<1x128x128xbf16>
    %33 = vector.shape_cast %32 : vector<1x128x128xbf16> to vector<128x128xbf16>
    %cst_39 = arith.constant dense<0.000000e+00> : vector<4x128xf32>
    %34 = tpu.matmul %31, %33, %cst_39 {dimension_numbers = #tpu.dot_dimension_numbers<[1], [0], [0], [1], [0, 0, 1, 1], [], []>} : vector<4x128xbf16>, vector<128x128xbf16>, vector<4x128xf32> -> vector<4x128xf32>
    %35 = arith.addf %28, %34 : vector<4x128xf32>
    %c0_40 = arith.constant 0 : index
    %c3_41 = arith.constant 3 : index
    %c0_42 = arith.constant 0 : index
    %c0_43 = arith.constant 0 : index
    %c0_44 = arith.constant 0 : index
    %36 = vector.load %arg2[%c0_40, %c3_41, %c0_42, %c0_43, %c0_44] : memref<1x4x3x3x128xbf16, #tpu.memory_space<vmem>>, vector<1x1x2x2x128xbf16>
    %37 = vector.shape_cast %36 : vector<1x1x2x2x128xbf16> to vector<2x2x128xbf16>
    %38 = vector.shape_cast %37 : vector<2x2x128xbf16> to vector<4x128xbf16>
    %c5 = arith.constant 5 : index
    %c0_45 = arith.constant 0 : index
    %c0_46 = arith.constant 0 : index
    %39 = vector.load %arg3[%c5, %c0_45, %c0_46] : memref<16x128x128xbf16, #tpu.memory_space<vmem>>, vector<1x128x128xbf16>
    %40 = vector.shape_cast %39 : vector<1x128x128xbf16> to vector<128x128xbf16>
    %cst_47 = arith.constant dense<0.000000e+00> : vector<4x128xf32>
    %41 = tpu.matmul %38, %40, %cst_47 {dimension_numbers = #tpu.dot_dimension_numbers<[1], [0], [0], [1], [0, 0, 1, 1], [], []>} : vector<4x128xbf16>, vector<128x128xbf16>, vector<4x128xf32> -> vector<4x128xf32>
    %42 = arith.addf %35, %41 : vector<4x128xf32>
    %c0_48 = arith.constant 0 : index
    %c2_49 = arith.constant 2 : index
    %c0_50 = arith.constant 0 : index
    %c1_51 = arith.constant 1 : index
    %c0_52 = arith.constant 0 : index
    %43 = vector.load %arg2[%c0_48, %c2_49, %c0_50, %c1_51, %c0_52] : memref<1x4x3x3x128xbf16, #tpu.memory_space<vmem>>, vector<1x1x2x2x128xbf16>
    %44 = vector.shape_cast %43 : vector<1x1x2x2x128xbf16> to vector<2x2x128xbf16>
    %45 = vector.shape_cast %44 : vector<2x2x128xbf16> to vector<4x128xbf16>
    %c6 = arith.constant 6 : index
    %c0_53 = arith.constant 0 : index
    %c0_54 = arith.constant 0 : index
    %46 = vector.load %arg3[%c6, %c0_53, %c0_54] : memref<16x128x128xbf16, #tpu.memory_space<vmem>>, vector<1x128x128xbf16>
    %47 = vector.shape_cast %46 : vector<1x128x128xbf16> to vector<128x128xbf16>
    %cst_55 = arith.constant dense<0.000000e+00> : vector<4x128xf32>
    %48 = tpu.matmul %45, %47, %cst_55 {dimension_numbers = #tpu.dot_dimension_numbers<[1], [0], [0], [1], [0, 0, 1, 1], [], []>} : vector<4x128xbf16>, vector<128x128xbf16>, vector<4x128xf32> -> vector<4x128xf32>
    %49 = arith.addf %42, %48 : vector<4x128xf32>
    %c0_56 = arith.constant 0 : index
    %c3_57 = arith.constant 3 : index
    %c0_58 = arith.constant 0 : index
    %c1_59 = arith.constant 1 : index
    %c0_60 = arith.constant 0 : index
    %50 = vector.load %arg2[%c0_56, %c3_57, %c0_58, %c1_59, %c0_60] : memref<1x4x3x3x128xbf16, #tpu.memory_space<vmem>>, vector<1x1x2x2x128xbf16>
    %51 = vector.shape_cast %50 : vector<1x1x2x2x128xbf16> to vector<2x2x128xbf16>
    %52 = vector.shape_cast %51 : vector<2x2x128xbf16> to vector<4x128xbf16>
    %c7 = arith.constant 7 : index
    %c0_61 = arith.constant 0 : index
    %c0_62 = arith.constant 0 : index
    %53 = vector.load %arg3[%c7, %c0_61, %c0_62] : memref<16x128x128xbf16, #tpu.memory_space<vmem>>, vector<1x128x128xbf16>
    %54 = vector.shape_cast %53 : vector<1x128x128xbf16> to vector<128x128xbf16>
    %cst_63 = arith.constant dense<0.000000e+00> : vector<4x128xf32>
    %55 = tpu.matmul %52, %54, %cst_63 {dimension_numbers = #tpu.dot_dimension_numbers<[1], [0], [0], [1], [0, 0, 1, 1], [], []>} : vector<4x128xbf16>, vector<128x128xbf16>, vector<4x128xf32> -> vector<4x128xf32>
    %56 = arith.addf %49, %55 : vector<4x128xf32>
    %c0_64 = arith.constant 0 : index
    %c0_65 = arith.constant 0 : index
    %c1_66 = arith.constant 1 : index
    %c0_67 = arith.constant 0 : index
    %c0_68 = arith.constant 0 : index
    %57 = vector.load %arg2[%c0_64, %c0_65, %c1_66, %c0_67, %c0_68] : memref<1x4x3x3x128xbf16, #tpu.memory_space<vmem>>, vector<1x1x2x2x128xbf16>
    %58 = vector.shape_cast %57 : vector<1x1x2x2x128xbf16> to vector<2x2x128xbf16>
    %59 = vector.shape_cast %58 : vector<2x2x128xbf16> to vector<4x128xbf16>
    %c8 = arith.constant 8 : index
    %c0_69 = arith.constant 0 : index
    %c0_70 = arith.constant 0 : index
    %60 = vector.load %arg3[%c8, %c0_69, %c0_70] : memref<16x128x128xbf16, #tpu.memory_space<vmem>>, vector<1x128x128xbf16>
    %61 = vector.shape_cast %60 : vector<1x128x128xbf16> to vector<128x128xbf16>
    %cst_71 = arith.constant dense<0.000000e+00> : vector<4x128xf32>
    %62 = tpu.matmul %59, %61, %cst_71 {dimension_numbers = #tpu.dot_dimension_numbers<[1], [0], [0], [1], [0, 0, 1, 1], [], []>} : vector<4x128xbf16>, vector<128x128xbf16>, vector<4x128xf32> -> vector<4x128xf32>
    %63 = arith.addf %56, %62 : vector<4x128xf32>
    %c0_72 = arith.constant 0 : index
    %c1_73 = arith.constant 1 : index
    %c1_74 = arith.constant 1 : index
    %c0_75 = arith.constant 0 : index
    %c0_76 = arith.constant 0 : index
    %64 = vector.load %arg2[%c0_72, %c1_73, %c1_74, %c0_75, %c0_76] : memref<1x4x3x3x128xbf16, #tpu.memory_space<vmem>>, vector<1x1x2x2x128xbf16>
    %65 = vector.shape_cast %64 : vector<1x1x2x2x128xbf16> to vector<2x2x128xbf16>
    %66 = vector.shape_cast %65 : vector<2x2x128xbf16> to vector<4x128xbf16>
    %c9 = arith.constant 9 : index
    %c0_77 = arith.constant 0 : index
    %c0_78 = arith.constant 0 : index
    %67 = vector.load %arg3[%c9, %c0_77, %c0_78] : memref<16x128x128xbf16, #tpu.memory_space<vmem>>, vector<1x128x128xbf16>
    %68 = vector.shape_cast %67 : vector<1x128x128xbf16> to vector<128x128xbf16>
    %cst_79 = arith.constant dense<0.000000e+00> : vector<4x128xf32>
    %69 = tpu.matmul %66, %68, %cst_79 {dimension_numbers = #tpu.dot_dimension_numbers<[1], [0], [0], [1], [0, 0, 1, 1], [], []>} : vector<4x128xbf16>, vector<128x128xbf16>, vector<4x128xf32> -> vector<4x128xf32>
    %70 = arith.addf %63, %69 : vector<4x128xf32>
    %c0_80 = arith.constant 0 : index
    %c0_81 = arith.constant 0 : index
    %c1_82 = arith.constant 1 : index
    %c1_83 = arith.constant 1 : index
    %c0_84 = arith.constant 0 : index
    %71 = vector.load %arg2[%c0_80, %c0_81, %c1_82, %c1_83, %c0_84] : memref<1x4x3x3x128xbf16, #tpu.memory_space<vmem>>, vector<1x1x2x2x128xbf16>
    %72 = vector.shape_cast %71 : vector<1x1x2x2x128xbf16> to vector<2x2x128xbf16>
    %73 = vector.shape_cast %72 : vector<2x2x128xbf16> to vector<4x128xbf16>
    %c10 = arith.constant 10 : index
    %c0_85 = arith.constant 0 : index
    %c0_86 = arith.constant 0 : index
    %74 = vector.load %arg3[%c10, %c0_85, %c0_86] : memref<16x128x128xbf16, #tpu.memory_space<vmem>>, vector<1x128x128xbf16>
    %75 = vector.shape_cast %74 : vector<1x128x128xbf16> to vector<128x128xbf16>
    %cst_87 = arith.constant dense<0.000000e+00> : vector<4x128xf32>
    %76 = tpu.matmul %73, %75, %cst_87 {dimension_numbers = #tpu.dot_dimension_numbers<[1], [0], [0], [1], [0, 0, 1, 1], [], []>} : vector<4x128xbf16>, vector<128x128xbf16>, vector<4x128xf32> -> vector<4x128xf32>
    %77 = arith.addf %70, %76 : vector<4x128xf32>
    %c0_88 = arith.constant 0 : index
    %c1_89 = arith.constant 1 : index
    %c1_90 = arith.constant 1 : index
    %c1_91 = arith.constant 1 : index
    %c0_92 = arith.constant 0 : index
    %78 = vector.load %arg2[%c0_88, %c1_89, %c1_90, %c1_91, %c0_92] : memref<1x4x3x3x128xbf16, #tpu.memory_space<vmem>>, vector<1x1x2x2x128xbf16>
    %79 = vector.shape_cast %78 : vector<1x1x2x2x128xbf16> to vector<2x2x128xbf16>
    %80 = vector.shape_cast %79 : vector<2x2x128xbf16> to vector<4x128xbf16>
    %c11 = arith.constant 11 : index
    %c0_93 = arith.constant 0 : index
    %c0_94 = arith.constant 0 : index
    %81 = vector.load %arg3[%c11, %c0_93, %c0_94] : memref<16x128x128xbf16, #tpu.memory_space<vmem>>, vector<1x128x128xbf16>
    %82 = vector.shape_cast %81 : vector<1x128x128xbf16> to vector<128x128xbf16>
    %cst_95 = arith.constant dense<0.000000e+00> : vector<4x128xf32>
    %83 = tpu.matmul %80, %82, %cst_95 {dimension_numbers = #tpu.dot_dimension_numbers<[1], [0], [0], [1], [0, 0, 1, 1], [], []>} : vector<4x128xbf16>, vector<128x128xbf16>, vector<4x128xf32> -> vector<4x128xf32>
    %84 = arith.addf %77, %83 : vector<4x128xf32>
    %c0_96 = arith.constant 0 : index
    %c2_97 = arith.constant 2 : index
    %c1_98 = arith.constant 1 : index
    %c0_99 = arith.constant 0 : index
    %c0_100 = arith.constant 0 : index
    %85 = vector.load %arg2[%c0_96, %c2_97, %c1_98, %c0_99, %c0_100] : memref<1x4x3x3x128xbf16, #tpu.memory_space<vmem>>, vector<1x1x2x2x128xbf16>
    %86 = vector.shape_cast %85 : vector<1x1x2x2x128xbf16> to vector<2x2x128xbf16>
    %87 = vector.shape_cast %86 : vector<2x2x128xbf16> to vector<4x128xbf16>
    %c12 = arith.constant 12 : index
    %c0_101 = arith.constant 0 : index
    %c0_102 = arith.constant 0 : index
    %88 = vector.load %arg3[%c12, %c0_101, %c0_102] : memref<16x128x128xbf16, #tpu.memory_space<vmem>>, vector<1x128x128xbf16>
    %89 = vector.shape_cast %88 : vector<1x128x128xbf16> to vector<128x128xbf16>
    %cst_103 = arith.constant dense<0.000000e+00> : vector<4x128xf32>
    %90 = tpu.matmul %87, %89, %cst_103 {dimension_numbers = #tpu.dot_dimension_numbers<[1], [0], [0], [1], [0, 0, 1, 1], [], []>} : vector<4x128xbf16>, vector<128x128xbf16>, vector<4x128xf32> -> vector<4x128xf32>
    %91 = arith.addf %84, %90 : vector<4x128xf32>
    %c0_104 = arith.constant 0 : index
    %c3_105 = arith.constant 3 : index
    %c1_106 = arith.constant 1 : index
    %c0_107 = arith.constant 0 : index
    %c0_108 = arith.constant 0 : index
    %92 = vector.load %arg2[%c0_104, %c3_105, %c1_106, %c0_107, %c0_108] : memref<1x4x3x3x128xbf16, #tpu.memory_space<vmem>>, vector<1x1x2x2x128xbf16>
    %93 = vector.shape_cast %92 : vector<1x1x2x2x128xbf16> to vector<2x2x128xbf16>
    %94 = vector.shape_cast %93 : vector<2x2x128xbf16> to vector<4x128xbf16>
    %c13 = arith.constant 13 : index
    %c0_109 = arith.constant 0 : index
    %c0_110 = arith.constant 0 : index
    %95 = vector.load %arg3[%c13, %c0_109, %c0_110] : memref<16x128x128xbf16, #tpu.memory_space<vmem>>, vector<1x128x128xbf16>
    %96 = vector.shape_cast %95 : vector<1x128x128xbf16> to vector<128x128xbf16>
    %cst_111 = arith.constant dense<0.000000e+00> : vector<4x128xf32>
    %97 = tpu.matmul %94, %96, %cst_111 {dimension_numbers = #tpu.dot_dimension_numbers<[1], [0], [0], [1], [0, 0, 1, 1], [], []>} : vector<4x128xbf16>, vector<128x128xbf16>, vector<4x128xf32> -> vector<4x128xf32>
    %98 = arith.addf %91, %97 : vector<4x128xf32>
    %c0_112 = arith.constant 0 : index
    %c2_113 = arith.constant 2 : index
    %c1_114 = arith.constant 1 : index
    %c1_115 = arith.constant 1 : index
    %c0_116 = arith.constant 0 : index
    %99 = vector.load %arg2[%c0_112, %c2_113, %c1_114, %c1_115, %c0_116] : memref<1x4x3x3x128xbf16, #tpu.memory_space<vmem>>, vector<1x1x2x2x128xbf16>
    %100 = vector.shape_cast %99 : vector<1x1x2x2x128xbf16> to vector<2x2x128xbf16>
    %101 = vector.shape_cast %100 : vector<2x2x128xbf16> to vector<4x128xbf16>
    %c14 = arith.constant 14 : index
    %c0_117 = arith.constant 0 : index
    %c0_118 = arith.constant 0 : index
    %102 = vector.load %arg3[%c14, %c0_117, %c0_118] : memref<16x128x128xbf16, #tpu.memory_space<vmem>>, vector<1x128x128xbf16>
    %103 = vector.shape_cast %102 : vector<1x128x128xbf16> to vector<128x128xbf16>
    %cst_119 = arith.constant dense<0.000000e+00> : vector<4x128xf32>
    %104 = tpu.matmul %101, %103, %cst_119 {dimension_numbers = #tpu.dot_dimension_numbers<[1], [0], [0], [1], [0, 0, 1, 1], [], []>} : vector<4x128xbf16>, vector<128x128xbf16>, vector<4x128xf32> -> vector<4x128xf32>
    %105 = arith.addf %98, %104 : vector<4x128xf32>
    %c0_120 = arith.constant 0 : index
    %c3_121 = arith.constant 3 : index
    %c1_122 = arith.constant 1 : index
    %c1_123 = arith.constant 1 : index
    %c0_124 = arith.constant 0 : index
    %106 = vector.load %arg2[%c0_120, %c3_121, %c1_122, %c1_123, %c0_124] : memref<1x4x3x3x128xbf16, #tpu.memory_space<vmem>>, vector<1x1x2x2x128xbf16>
    %107 = vector.shape_cast %106 : vector<1x1x2x2x128xbf16> to vector<2x2x128xbf16>
    %108 = vector.shape_cast %107 : vector<2x2x128xbf16> to vector<4x128xbf16>
    %c15 = arith.constant 15 : index
    %c0_125 = arith.constant 0 : index
    %c0_126 = arith.constant 0 : index
    %109 = vector.load %arg3[%c15, %c0_125, %c0_126] : memref<16x128x128xbf16, #tpu.memory_space<vmem>>, vector<1x128x128xbf16>
    %110 = vector.shape_cast %109 : vector<1x128x128xbf16> to vector<128x128xbf16>
    %cst_127 = arith.constant dense<0.000000e+00> : vector<4x128xf32>
    %111 = tpu.matmul %108, %110, %cst_127 {dimension_numbers = #tpu.dot_dimension_numbers<[1], [0], [0], [1], [0, 0, 1, 1], [], []>} : vector<4x128xbf16>, vector<128x128xbf16>, vector<4x128xf32> -> vector<4x128xf32>
    %112 = arith.addf %105, %111 : vector<4x128xf32>
    %113 = arith.truncf %112 : vector<4x128xf32> to vector<4x128xbf16>
    %c0_128 = arith.constant 0 : index
    %c0_129 = arith.constant 0 : index
    %c0_130 = arith.constant 0 : index
    %114 = vector.load %arg4[%c0_128, %c0_129, %c0_130] : memref<1x4x128xbf16, #tpu.memory_space<vmem>>, vector<1x4x128xbf16>
    %115 = vector.shape_cast %114 : vector<1x4x128xbf16> to vector<4x128xbf16>
    %116 = vector.shape_cast %113 : vector<4x128xbf16> to vector<1x4x128xbf16>
    tpu.vector_store %arg4[%c0_128, %c0_129, %c0_130], %116 {strides = array<i32>} : memref<1x4x128xbf16, #tpu.memory_space<vmem>>, vector<1x4x128xbf16>,
    %cst_131 = arith.constant dense<0.000000e+00> : vector<128xf32>
    %117 = vector.multi_reduction <add>, %112, %cst_131 [0] : vector<4x128xf32> to vector<128xf32>
    %118 = vector.shape_cast %117 : vector<128xf32> to vector<1x128xf32>
    %c0_132 = arith.constant 0 : index
    %c0_133 = arith.constant 0 : index
    %c0_134 = arith.constant 0 : index
    %119 = vector.load %arg5[%c0_132, %c0_133, %c0_134] : memref<1x1x128xf32, #tpu.memory_space<vmem>>, vector<1x1x128xf32>
    %120 = vector.shape_cast %119 : vector<1x1x128xf32> to vector<1x128xf32>
    %121 = vector.shape_cast %118 : vector<1x128xf32> to vector<1x1x128xf32>
    tpu.vector_store %arg5[%c0_132, %c0_133, %c0_134], %121 {strides = array<i32>} : memref<1x1x128xf32, #tpu.memory_space<vmem>>, vector<1x1x128xf32>,
    %122 = arith.mulf %112, %112 : vector<4x128xf32>
    %cst_135 = arith.constant dense<0.000000e+00> : vector<128xf32>
    %123 = vector.multi_reduction <add>, %122, %cst_135 [0] : vector<4x128xf32> to vector<128xf32>
    %124 = vector.shape_cast %123 : vector<128xf32> to vector<1x128xf32>
    %c0_136 = arith.constant 0 : index
    %c0_137 = arith.constant 0 : index
    %c0_138 = arith.constant 0 : index
    %125 = vector.load %arg6[%c0_136, %c0_137, %c0_138] : memref<1x1x128xf32, #tpu.memory_space<vmem>>, vector<1x1x128xf32>
    %126 = vector.shape_cast %125 : vector<1x1x128xf32> to vector<1x128xf32>
    %127 = vector.shape_cast %124 : vector<1x128xf32> to vector<1x1x128xf32>
    tpu.vector_store %arg6[%c0_136, %c0_137, %c0_138], %127 {strides = array<i32>} : memref<1x1x128xf32, #tpu.memory_space<vmem>>, vector<1x1x128xf32>,
    return
  }
  func.func @transform_0(%arg0: i32, %arg1: i32) -> (i32, i32, i32, i32, i32) {
    %c0_i32 = arith.constant 0 : i32
    %c0_i32_0 = arith.constant 0 : i32
    %c0_i32_1 = arith.constant 0 : i32
    %c0_i32_2 = arith.constant 0 : i32
    %c0_i32_3 = arith.constant 0 : i32
    return %arg0, %c0_i32, %c0_i32_0, %c0_i32_1, %c0_i32_2 : i32, i32, i32, i32, i32
  }
  func.func @transform_1(%arg0: i32, %arg1: i32) -> (i32, i32, i32) {
    %c0_i32 = arith.constant 0 : i32
    %c0_i32_0 = arith.constant 0 : i32
    %c0_i32_1 = arith.constant 0 : i32
    return %c0_i32, %c0_i32_0, %arg1 : i32, i32, i32
  }
  func.func @transform_2(%arg0: i32, %arg1: i32) -> (i32, i32, i32) {
    %c0_i32 = arith.constant 0 : i32
    %c0_i32_0 = arith.constant 0 : i32
    return %arg0, %c0_i32, %arg1 : i32, i32, i32
  }
  func.func @transform_3(%arg0: i32, %arg1: i32) -> (i32, i32, i32) {
    %c0_i32 = arith.constant 0 : i32
    %c0_i32_0 = arith.constant 0 : i32
    return %arg0, %c0_i32, %arg1 : i32, i32, i32
  }
  func.func @transform_4(%arg0: i32, %arg1: i32) -> (i32, i32, i32) {
    %c0_i32 = arith.constant 0 : i32
    %c0_i32_0 = arith.constant 0 : i32
    return %arg0, %c0_i32, %arg1 : i32, i32, i32
  }
}

module attributes {stable_mosaic.version = 11 : i64} {
  func.func @kernel(%arg0: i32, %arg1: i32, %arg2: memref<1x1x4x4x128xbf16, #tpu.memory_space<vmem>>, %arg3: memref<16x128x128xbf16, #tpu.memory_space<vmem>>, %arg4: memref<1x1x128xf32, #tpu.memory_space<vmem>>) attributes {dimension_semantics = [#tpu.dimension_semantics<parallel>, #tpu.dimension_semantics<parallel>], iteration_bounds = array<i64: 2, 1>, scalar_prefetch = 0 : i64, scratch_operands = 0 : i64, tpu.core_type = #tpu.core_type<tc>, window_params = [{transform_indices = @transform_0, window_bounds = array<i64: 1, 1, 4, 4, 128>}, {transform_indices = @transform_1, window_bounds = array<i64: 16, 128, 128>}, {transform_indices = @transform_2, window_bounds = array<i64: 1, 1, 128>}]} {
    %cst = arith.constant 0.000000e+00 : f32
    %0 = vector.broadcast %cst : f32 to vector<1x128xf32>
    %c0 = arith.constant 0 : index
    %c0_0 = arith.constant 0 : index
    %c0_1 = arith.constant 0 : index
    %c0_2 = arith.constant 0 : index
    %c0_3 = arith.constant 0 : index
    %1 = vector.load %arg2[%c0, %c0_0, %c0_1, %c0_2, %c0_3] : memref<1x1x4x4x128xbf16, #tpu.memory_space<vmem>>, vector<1x1x1x1x128xbf16>
    %2 = vector.shape_cast %1 : vector<1x1x1x1x128xbf16> to vector<1x1x128xbf16>
    %3 = vector.shape_cast %2 : vector<1x1x128xbf16> to vector<1x128xbf16>
    %c0_4 = arith.constant 0 : index
    %c0_5 = arith.constant 0 : index
    %c0_6 = arith.constant 0 : index
    %4 = vector.load %arg3[%c0_4, %c0_5, %c0_6] : memref<16x128x128xbf16, #tpu.memory_space<vmem>>, vector<1x128x128xbf16>
    %5 = vector.shape_cast %4 : vector<1x128x128xbf16> to vector<128x128xbf16>
    %cst_7 = arith.constant dense<0.000000e+00> : vector<1x128xf32>
    %6 = tpu.matmul %3, %5, %cst_7 {dimension_numbers = #tpu.dot_dimension_numbers<[1], [0], [0], [1], [0, 0, 1, 1], [], []>} : vector<1x128xbf16>, vector<128x128xbf16>, vector<1x128xf32> -> vector<1x128xf32>
    %7 = arith.addf %0, %6 : vector<1x128xf32>
    %c0_8 = arith.constant 0 : index
    %c0_9 = arith.constant 0 : index
    %c0_10 = arith.constant 0 : index
    %c1 = arith.constant 1 : index
    %c0_11 = arith.constant 0 : index
    %8 = vector.load %arg2[%c0_8, %c0_9, %c0_10, %c1, %c0_11] : memref<1x1x4x4x128xbf16, #tpu.memory_space<vmem>>, vector<1x1x1x1x128xbf16>
    %9 = vector.shape_cast %8 : vector<1x1x1x1x128xbf16> to vector<1x1x128xbf16>
    %10 = vector.shape_cast %9 : vector<1x1x128xbf16> to vector<1x128xbf16>
    %c1_12 = arith.constant 1 : index
    %c0_13 = arith.constant 0 : index
    %c0_14 = arith.constant 0 : index
    %11 = vector.load %arg3[%c1_12, %c0_13, %c0_14] : memref<16x128x128xbf16, #tpu.memory_space<vmem>>, vector<1x128x128xbf16>
    %12 = vector.shape_cast %11 : vector<1x128x128xbf16> to vector<128x128xbf16>
    %cst_15 = arith.constant dense<0.000000e+00> : vector<1x128xf32>
    %13 = tpu.matmul %10, %12, %cst_15 {dimension_numbers = #tpu.dot_dimension_numbers<[1], [0], [0], [1], [0, 0, 1, 1], [], []>} : vector<1x128xbf16>, vector<128x128xbf16>, vector<1x128xf32> -> vector<1x128xf32>
    %14 = arith.addf %7, %13 : vector<1x128xf32>
    %c0_16 = arith.constant 0 : index
    %c0_17 = arith.constant 0 : index
    %c0_18 = arith.constant 0 : index
    %c2 = arith.constant 2 : index
    %c0_19 = arith.constant 0 : index
    %15 = vector.load %arg2[%c0_16, %c0_17, %c0_18, %c2, %c0_19] : memref<1x1x4x4x128xbf16, #tpu.memory_space<vmem>>, vector<1x1x1x1x128xbf16>
    %16 = vector.shape_cast %15 : vector<1x1x1x1x128xbf16> to vector<1x1x128xbf16>
    %17 = vector.shape_cast %16 : vector<1x1x128xbf16> to vector<1x128xbf16>
    %c2_20 = arith.constant 2 : index
    %c0_21 = arith.constant 0 : index
    %c0_22 = arith.constant 0 : index
    %18 = vector.load %arg3[%c2_20, %c0_21, %c0_22] : memref<16x128x128xbf16, #tpu.memory_space<vmem>>, vector<1x128x128xbf16>
    %19 = vector.shape_cast %18 : vector<1x128x128xbf16> to vector<128x128xbf16>
    %cst_23 = arith.constant dense<0.000000e+00> : vector<1x128xf32>
    %20 = tpu.matmul %17, %19, %cst_23 {dimension_numbers = #tpu.dot_dimension_numbers<[1], [0], [0], [1], [0, 0, 1, 1], [], []>} : vector<1x128xbf16>, vector<128x128xbf16>, vector<1x128xf32> -> vector<1x128xf32>
    %21 = arith.addf %14, %20 : vector<1x128xf32>
    %c0_24 = arith.constant 0 : index
    %c0_25 = arith.constant 0 : index
    %c0_26 = arith.constant 0 : index
    %c3 = arith.constant 3 : index
    %c0_27 = arith.constant 0 : index
    %22 = vector.load %arg2[%c0_24, %c0_25, %c0_26, %c3, %c0_27] : memref<1x1x4x4x128xbf16, #tpu.memory_space<vmem>>, vector<1x1x1x1x128xbf16>
    %23 = vector.shape_cast %22 : vector<1x1x1x1x128xbf16> to vector<1x1x128xbf16>
    %24 = vector.shape_cast %23 : vector<1x1x128xbf16> to vector<1x128xbf16>
    %c3_28 = arith.constant 3 : index
    %c0_29 = arith.constant 0 : index
    %c0_30 = arith.constant 0 : index
    %25 = vector.load %arg3[%c3_28, %c0_29, %c0_30] : memref<16x128x128xbf16, #tpu.memory_space<vmem>>, vector<1x128x128xbf16>
    %26 = vector.shape_cast %25 : vector<1x128x128xbf16> to vector<128x128xbf16>
    %cst_31 = arith.constant dense<0.000000e+00> : vector<1x128xf32>
    %27 = tpu.matmul %24, %26, %cst_31 {dimension_numbers = #tpu.dot_dimension_numbers<[1], [0], [0], [1], [0, 0, 1, 1], [], []>} : vector<1x128xbf16>, vector<128x128xbf16>, vector<1x128xf32> -> vector<1x128xf32>
    %28 = arith.addf %21, %27 : vector<1x128xf32>
    %c0_32 = arith.constant 0 : index
    %c0_33 = arith.constant 0 : index
    %c1_34 = arith.constant 1 : index
    %c0_35 = arith.constant 0 : index
    %c0_36 = arith.constant 0 : index
    %29 = vector.load %arg2[%c0_32, %c0_33, %c1_34, %c0_35, %c0_36] : memref<1x1x4x4x128xbf16, #tpu.memory_space<vmem>>, vector<1x1x1x1x128xbf16>
    %30 = vector.shape_cast %29 : vector<1x1x1x1x128xbf16> to vector<1x1x128xbf16>
    %31 = vector.shape_cast %30 : vector<1x1x128xbf16> to vector<1x128xbf16>
    %c4 = arith.constant 4 : index
    %c0_37 = arith.constant 0 : index
    %c0_38 = arith.constant 0 : index
    %32 = vector.load %arg3[%c4, %c0_37, %c0_38] : memref<16x128x128xbf16, #tpu.memory_space<vmem>>, vector<1x128x128xbf16>
    %33 = vector.shape_cast %32 : vector<1x128x128xbf16> to vector<128x128xbf16>
    %cst_39 = arith.constant dense<0.000000e+00> : vector<1x128xf32>
    %34 = tpu.matmul %31, %33, %cst_39 {dimension_numbers = #tpu.dot_dimension_numbers<[1], [0], [0], [1], [0, 0, 1, 1], [], []>} : vector<1x128xbf16>, vector<128x128xbf16>, vector<1x128xf32> -> vector<1x128xf32>
    %35 = arith.addf %28, %34 : vector<1x128xf32>
    %c0_40 = arith.constant 0 : index
    %c0_41 = arith.constant 0 : index
    %c1_42 = arith.constant 1 : index
    %c1_43 = arith.constant 1 : index
    %c0_44 = arith.constant 0 : index
    %36 = vector.load %arg2[%c0_40, %c0_41, %c1_42, %c1_43, %c0_44] : memref<1x1x4x4x128xbf16, #tpu.memory_space<vmem>>, vector<1x1x1x1x128xbf16>
    %37 = vector.shape_cast %36 : vector<1x1x1x1x128xbf16> to vector<1x1x128xbf16>
    %38 = vector.shape_cast %37 : vector<1x1x128xbf16> to vector<1x128xbf16>
    %c5 = arith.constant 5 : index
    %c0_45 = arith.constant 0 : index
    %c0_46 = arith.constant 0 : index
    %39 = vector.load %arg3[%c5, %c0_45, %c0_46] : memref<16x128x128xbf16, #tpu.memory_space<vmem>>, vector<1x128x128xbf16>
    %40 = vector.shape_cast %39 : vector<1x128x128xbf16> to vector<128x128xbf16>
    %cst_47 = arith.constant dense<0.000000e+00> : vector<1x128xf32>
    %41 = tpu.matmul %38, %40, %cst_47 {dimension_numbers = #tpu.dot_dimension_numbers<[1], [0], [0], [1], [0, 0, 1, 1], [], []>} : vector<1x128xbf16>, vector<128x128xbf16>, vector<1x128xf32> -> vector<1x128xf32>
    %42 = arith.addf %35, %41 : vector<1x128xf32>
    %c0_48 = arith.constant 0 : index
    %c0_49 = arith.constant 0 : index
    %c1_50 = arith.constant 1 : index
    %c2_51 = arith.constant 2 : index
    %c0_52 = arith.constant 0 : index
    %43 = vector.load %arg2[%c0_48, %c0_49, %c1_50, %c2_51, %c0_52] : memref<1x1x4x4x128xbf16, #tpu.memory_space<vmem>>, vector<1x1x1x1x128xbf16>
    %44 = vector.shape_cast %43 : vector<1x1x1x1x128xbf16> to vector<1x1x128xbf16>
    %45 = vector.shape_cast %44 : vector<1x1x128xbf16> to vector<1x128xbf16>
    %c6 = arith.constant 6 : index
    %c0_53 = arith.constant 0 : index
    %c0_54 = arith.constant 0 : index
    %46 = vector.load %arg3[%c6, %c0_53, %c0_54] : memref<16x128x128xbf16, #tpu.memory_space<vmem>>, vector<1x128x128xbf16>
    %47 = vector.shape_cast %46 : vector<1x128x128xbf16> to vector<128x128xbf16>
    %cst_55 = arith.constant dense<0.000000e+00> : vector<1x128xf32>
    %48 = tpu.matmul %45, %47, %cst_55 {dimension_numbers = #tpu.dot_dimension_numbers<[1], [0], [0], [1], [0, 0, 1, 1], [], []>} : vector<1x128xbf16>, vector<128x128xbf16>, vector<1x128xf32> -> vector<1x128xf32>
    %49 = arith.addf %42, %48 : vector<1x128xf32>
    %c0_56 = arith.constant 0 : index
    %c0_57 = arith.constant 0 : index
    %c1_58 = arith.constant 1 : index
    %c3_59 = arith.constant 3 : index
    %c0_60 = arith.constant 0 : index
    %50 = vector.load %arg2[%c0_56, %c0_57, %c1_58, %c3_59, %c0_60] : memref<1x1x4x4x128xbf16, #tpu.memory_space<vmem>>, vector<1x1x1x1x128xbf16>
    %51 = vector.shape_cast %50 : vector<1x1x1x1x128xbf16> to vector<1x1x128xbf16>
    %52 = vector.shape_cast %51 : vector<1x1x128xbf16> to vector<1x128xbf16>
    %c7 = arith.constant 7 : index
    %c0_61 = arith.constant 0 : index
    %c0_62 = arith.constant 0 : index
    %53 = vector.load %arg3[%c7, %c0_61, %c0_62] : memref<16x128x128xbf16, #tpu.memory_space<vmem>>, vector<1x128x128xbf16>
    %54 = vector.shape_cast %53 : vector<1x128x128xbf16> to vector<128x128xbf16>
    %cst_63 = arith.constant dense<0.000000e+00> : vector<1x128xf32>
    %55 = tpu.matmul %52, %54, %cst_63 {dimension_numbers = #tpu.dot_dimension_numbers<[1], [0], [0], [1], [0, 0, 1, 1], [], []>} : vector<1x128xbf16>, vector<128x128xbf16>, vector<1x128xf32> -> vector<1x128xf32>
    %56 = arith.addf %49, %55 : vector<1x128xf32>
    %c0_64 = arith.constant 0 : index
    %c0_65 = arith.constant 0 : index
    %c2_66 = arith.constant 2 : index
    %c0_67 = arith.constant 0 : index
    %c0_68 = arith.constant 0 : index
    %57 = vector.load %arg2[%c0_64, %c0_65, %c2_66, %c0_67, %c0_68] : memref<1x1x4x4x128xbf16, #tpu.memory_space<vmem>>, vector<1x1x1x1x128xbf16>
    %58 = vector.shape_cast %57 : vector<1x1x1x1x128xbf16> to vector<1x1x128xbf16>
    %59 = vector.shape_cast %58 : vector<1x1x128xbf16> to vector<1x128xbf16>
    %c8 = arith.constant 8 : index
    %c0_69 = arith.constant 0 : index
    %c0_70 = arith.constant 0 : index
    %60 = vector.load %arg3[%c8, %c0_69, %c0_70] : memref<16x128x128xbf16, #tpu.memory_space<vmem>>, vector<1x128x128xbf16>
    %61 = vector.shape_cast %60 : vector<1x128x128xbf16> to vector<128x128xbf16>
    %cst_71 = arith.constant dense<0.000000e+00> : vector<1x128xf32>
    %62 = tpu.matmul %59, %61, %cst_71 {dimension_numbers = #tpu.dot_dimension_numbers<[1], [0], [0], [1], [0, 0, 1, 1], [], []>} : vector<1x128xbf16>, vector<128x128xbf16>, vector<1x128xf32> -> vector<1x128xf32>
    %63 = arith.addf %56, %62 : vector<1x128xf32>
    %c0_72 = arith.constant 0 : index
    %c0_73 = arith.constant 0 : index
    %c2_74 = arith.constant 2 : index
    %c1_75 = arith.constant 1 : index
    %c0_76 = arith.constant 0 : index
    %64 = vector.load %arg2[%c0_72, %c0_73, %c2_74, %c1_75, %c0_76] : memref<1x1x4x4x128xbf16, #tpu.memory_space<vmem>>, vector<1x1x1x1x128xbf16>
    %65 = vector.shape_cast %64 : vector<1x1x1x1x128xbf16> to vector<1x1x128xbf16>
    %66 = vector.shape_cast %65 : vector<1x1x128xbf16> to vector<1x128xbf16>
    %c9 = arith.constant 9 : index
    %c0_77 = arith.constant 0 : index
    %c0_78 = arith.constant 0 : index
    %67 = vector.load %arg3[%c9, %c0_77, %c0_78] : memref<16x128x128xbf16, #tpu.memory_space<vmem>>, vector<1x128x128xbf16>
    %68 = vector.shape_cast %67 : vector<1x128x128xbf16> to vector<128x128xbf16>
    %cst_79 = arith.constant dense<0.000000e+00> : vector<1x128xf32>
    %69 = tpu.matmul %66, %68, %cst_79 {dimension_numbers = #tpu.dot_dimension_numbers<[1], [0], [0], [1], [0, 0, 1, 1], [], []>} : vector<1x128xbf16>, vector<128x128xbf16>, vector<1x128xf32> -> vector<1x128xf32>
    %70 = arith.addf %63, %69 : vector<1x128xf32>
    %c0_80 = arith.constant 0 : index
    %c0_81 = arith.constant 0 : index
    %c2_82 = arith.constant 2 : index
    %c2_83 = arith.constant 2 : index
    %c0_84 = arith.constant 0 : index
    %71 = vector.load %arg2[%c0_80, %c0_81, %c2_82, %c2_83, %c0_84] : memref<1x1x4x4x128xbf16, #tpu.memory_space<vmem>>, vector<1x1x1x1x128xbf16>
    %72 = vector.shape_cast %71 : vector<1x1x1x1x128xbf16> to vector<1x1x128xbf16>
    %73 = vector.shape_cast %72 : vector<1x1x128xbf16> to vector<1x128xbf16>
    %c10 = arith.constant 10 : index
    %c0_85 = arith.constant 0 : index
    %c0_86 = arith.constant 0 : index
    %74 = vector.load %arg3[%c10, %c0_85, %c0_86] : memref<16x128x128xbf16, #tpu.memory_space<vmem>>, vector<1x128x128xbf16>
    %75 = vector.shape_cast %74 : vector<1x128x128xbf16> to vector<128x128xbf16>
    %cst_87 = arith.constant dense<0.000000e+00> : vector<1x128xf32>
    %76 = tpu.matmul %73, %75, %cst_87 {dimension_numbers = #tpu.dot_dimension_numbers<[1], [0], [0], [1], [0, 0, 1, 1], [], []>} : vector<1x128xbf16>, vector<128x128xbf16>, vector<1x128xf32> -> vector<1x128xf32>
    %77 = arith.addf %70, %76 : vector<1x128xf32>
    %c0_88 = arith.constant 0 : index
    %c0_89 = arith.constant 0 : index
    %c2_90 = arith.constant 2 : index
    %c3_91 = arith.constant 3 : index
    %c0_92 = arith.constant 0 : index
    %78 = vector.load %arg2[%c0_88, %c0_89, %c2_90, %c3_91, %c0_92] : memref<1x1x4x4x128xbf16, #tpu.memory_space<vmem>>, vector<1x1x1x1x128xbf16>
    %79 = vector.shape_cast %78 : vector<1x1x1x1x128xbf16> to vector<1x1x128xbf16>
    %80 = vector.shape_cast %79 : vector<1x1x128xbf16> to vector<1x128xbf16>
    %c11 = arith.constant 11 : index
    %c0_93 = arith.constant 0 : index
    %c0_94 = arith.constant 0 : index
    %81 = vector.load %arg3[%c11, %c0_93, %c0_94] : memref<16x128x128xbf16, #tpu.memory_space<vmem>>, vector<1x128x128xbf16>
    %82 = vector.shape_cast %81 : vector<1x128x128xbf16> to vector<128x128xbf16>
    %cst_95 = arith.constant dense<0.000000e+00> : vector<1x128xf32>
    %83 = tpu.matmul %80, %82, %cst_95 {dimension_numbers = #tpu.dot_dimension_numbers<[1], [0], [0], [1], [0, 0, 1, 1], [], []>} : vector<1x128xbf16>, vector<128x128xbf16>, vector<1x128xf32> -> vector<1x128xf32>
    %84 = arith.addf %77, %83 : vector<1x128xf32>
    %c0_96 = arith.constant 0 : index
    %c0_97 = arith.constant 0 : index
    %c3_98 = arith.constant 3 : index
    %c0_99 = arith.constant 0 : index
    %c0_100 = arith.constant 0 : index
    %85 = vector.load %arg2[%c0_96, %c0_97, %c3_98, %c0_99, %c0_100] : memref<1x1x4x4x128xbf16, #tpu.memory_space<vmem>>, vector<1x1x1x1x128xbf16>
    %86 = vector.shape_cast %85 : vector<1x1x1x1x128xbf16> to vector<1x1x128xbf16>
    %87 = vector.shape_cast %86 : vector<1x1x128xbf16> to vector<1x128xbf16>
    %c12 = arith.constant 12 : index
    %c0_101 = arith.constant 0 : index
    %c0_102 = arith.constant 0 : index
    %88 = vector.load %arg3[%c12, %c0_101, %c0_102] : memref<16x128x128xbf16, #tpu.memory_space<vmem>>, vector<1x128x128xbf16>
    %89 = vector.shape_cast %88 : vector<1x128x128xbf16> to vector<128x128xbf16>
    %cst_103 = arith.constant dense<0.000000e+00> : vector<1x128xf32>
    %90 = tpu.matmul %87, %89, %cst_103 {dimension_numbers = #tpu.dot_dimension_numbers<[1], [0], [0], [1], [0, 0, 1, 1], [], []>} : vector<1x128xbf16>, vector<128x128xbf16>, vector<1x128xf32> -> vector<1x128xf32>
    %91 = arith.addf %84, %90 : vector<1x128xf32>
    %c0_104 = arith.constant 0 : index
    %c0_105 = arith.constant 0 : index
    %c3_106 = arith.constant 3 : index
    %c1_107 = arith.constant 1 : index
    %c0_108 = arith.constant 0 : index
    %92 = vector.load %arg2[%c0_104, %c0_105, %c3_106, %c1_107, %c0_108] : memref<1x1x4x4x128xbf16, #tpu.memory_space<vmem>>, vector<1x1x1x1x128xbf16>
    %93 = vector.shape_cast %92 : vector<1x1x1x1x128xbf16> to vector<1x1x128xbf16>
    %94 = vector.shape_cast %93 : vector<1x1x128xbf16> to vector<1x128xbf16>
    %c13 = arith.constant 13 : index
    %c0_109 = arith.constant 0 : index
    %c0_110 = arith.constant 0 : index
    %95 = vector.load %arg3[%c13, %c0_109, %c0_110] : memref<16x128x128xbf16, #tpu.memory_space<vmem>>, vector<1x128x128xbf16>
    %96 = vector.shape_cast %95 : vector<1x128x128xbf16> to vector<128x128xbf16>
    %cst_111 = arith.constant dense<0.000000e+00> : vector<1x128xf32>
    %97 = tpu.matmul %94, %96, %cst_111 {dimension_numbers = #tpu.dot_dimension_numbers<[1], [0], [0], [1], [0, 0, 1, 1], [], []>} : vector<1x128xbf16>, vector<128x128xbf16>, vector<1x128xf32> -> vector<1x128xf32>
    %98 = arith.addf %91, %97 : vector<1x128xf32>
    %c0_112 = arith.constant 0 : index
    %c0_113 = arith.constant 0 : index
    %c3_114 = arith.constant 3 : index
    %c2_115 = arith.constant 2 : index
    %c0_116 = arith.constant 0 : index
    %99 = vector.load %arg2[%c0_112, %c0_113, %c3_114, %c2_115, %c0_116] : memref<1x1x4x4x128xbf16, #tpu.memory_space<vmem>>, vector<1x1x1x1x128xbf16>
    %100 = vector.shape_cast %99 : vector<1x1x1x1x128xbf16> to vector<1x1x128xbf16>
    %101 = vector.shape_cast %100 : vector<1x1x128xbf16> to vector<1x128xbf16>
    %c14 = arith.constant 14 : index
    %c0_117 = arith.constant 0 : index
    %c0_118 = arith.constant 0 : index
    %102 = vector.load %arg3[%c14, %c0_117, %c0_118] : memref<16x128x128xbf16, #tpu.memory_space<vmem>>, vector<1x128x128xbf16>
    %103 = vector.shape_cast %102 : vector<1x128x128xbf16> to vector<128x128xbf16>
    %cst_119 = arith.constant dense<0.000000e+00> : vector<1x128xf32>
    %104 = tpu.matmul %101, %103, %cst_119 {dimension_numbers = #tpu.dot_dimension_numbers<[1], [0], [0], [1], [0, 0, 1, 1], [], []>} : vector<1x128xbf16>, vector<128x128xbf16>, vector<1x128xf32> -> vector<1x128xf32>
    %105 = arith.addf %98, %104 : vector<1x128xf32>
    %c0_120 = arith.constant 0 : index
    %c0_121 = arith.constant 0 : index
    %c3_122 = arith.constant 3 : index
    %c3_123 = arith.constant 3 : index
    %c0_124 = arith.constant 0 : index
    %106 = vector.load %arg2[%c0_120, %c0_121, %c3_122, %c3_123, %c0_124] : memref<1x1x4x4x128xbf16, #tpu.memory_space<vmem>>, vector<1x1x1x1x128xbf16>
    %107 = vector.shape_cast %106 : vector<1x1x1x1x128xbf16> to vector<1x1x128xbf16>
    %108 = vector.shape_cast %107 : vector<1x1x128xbf16> to vector<1x128xbf16>
    %c15 = arith.constant 15 : index
    %c0_125 = arith.constant 0 : index
    %c0_126 = arith.constant 0 : index
    %109 = vector.load %arg3[%c15, %c0_125, %c0_126] : memref<16x128x128xbf16, #tpu.memory_space<vmem>>, vector<1x128x128xbf16>
    %110 = vector.shape_cast %109 : vector<1x128x128xbf16> to vector<128x128xbf16>
    %cst_127 = arith.constant dense<0.000000e+00> : vector<1x128xf32>
    %111 = tpu.matmul %108, %110, %cst_127 {dimension_numbers = #tpu.dot_dimension_numbers<[1], [0], [0], [1], [0, 0, 1, 1], [], []>} : vector<1x128xbf16>, vector<128x128xbf16>, vector<1x128xf32> -> vector<1x128xf32>
    %112 = arith.addf %105, %111 : vector<1x128xf32>
    %c0_128 = arith.constant 0 : index
    %c0_129 = arith.constant 0 : index
    %c0_130 = arith.constant 0 : index
    %113 = vector.load %arg4[%c0_128, %c0_129, %c0_130] : memref<1x1x128xf32, #tpu.memory_space<vmem>>, vector<1x1x128xf32>
    %114 = vector.shape_cast %113 : vector<1x1x128xf32> to vector<1x128xf32>
    %115 = vector.shape_cast %112 : vector<1x128xf32> to vector<1x1x128xf32>
    tpu.vector_store %arg4[%c0_128, %c0_129, %c0_130], %115 {strides = array<i32>} : memref<1x1x128xf32, #tpu.memory_space<vmem>>, vector<1x1x128xf32>,
    return
  }
  func.func @transform_0(%arg0: i32, %arg1: i32) -> (i32, i32, i32, i32, i32) {
    %c0_i32 = arith.constant 0 : i32
    %c0_i32_0 = arith.constant 0 : i32
    %c0_i32_1 = arith.constant 0 : i32
    %c0_i32_2 = arith.constant 0 : i32
    %c0_i32_3 = arith.constant 0 : i32
    return %arg0, %c0_i32, %c0_i32_0, %c0_i32_1, %c0_i32_2 : i32, i32, i32, i32, i32
  }
  func.func @transform_1(%arg0: i32, %arg1: i32) -> (i32, i32, i32) {
    %c0_i32 = arith.constant 0 : i32
    %c0_i32_0 = arith.constant 0 : i32
    %c0_i32_1 = arith.constant 0 : i32
    return %c0_i32, %c0_i32_0, %arg1 : i32, i32, i32
  }
  func.func @transform_2(%arg0: i32, %arg1: i32) -> (i32, i32, i32) {
    %c0_i32 = arith.constant 0 : i32
    %c0_i32_0 = arith.constant 0 : i32
    return %arg0, %c0_i32, %arg1 : i32, i32, i32
  }
}

</mosaic_0001>

<bundles_post_ra>
// kernel: discriminator3_forward.6
= control target key start
LH: loop header
LB: loop body
LE: loop exit
PB: predicated region body
PF: predicated region fallthrough
CT: control target
= control target key end

     0   :  { %s3861_s15 = smov 0   ;;  %s3863_s16 = smov 0   ;;  %s4562_s0 = inlined_call_operand.vmem [shape: bf16[2,4,3,3,128], index: 0, kind: input, shape index: {}]   ;;  %s4563_s1 = inlined_call_operand.vmem [shape: bf16[16,128,128], index: 1, kind: input, shape index: {}]   ;;  %s4564_s2 = inlined_call_operand.vmem [shape: bf16[2,4,128], index: 2, kind: output, shape index: {0}]   ;;  %s4565_s3 = inlined_call_operand.vmem [shape: f32[2,1,128], index: 3, kind: output, shape index: {1}]   ;;  %s4566_s4 = inlined_call_operand.vmem [shape: f32[2,1,128], index: 4, kind: output, shape index: {2}]  }
   0x1   :  { %s3865_s17 = smov 0  }
   0x2 LB: > { %s27_s18 = sadd.s32 1, %s3827_s16  ;;  %p2756_p0 = scmp.ge.s32.totalorder %s3831_s17, 1  ;;  %s3831_s17 = sphi %s3865_s17, %s15_s17   ;;  %s3827_s16 = sphi %s3863_s16, %s4570_s16   ;;  %s3823_s15 = sphi %s3861_s15, %s4569_s15  }
   0x3   : > { %p29_p1 = scmp.ge.s32.totalorder %s27_s18, 2  ;;  %p194_p2 = scmp.lt.s32.totalorder %s3831_s17, 3 }
   0x5   : > { %s4572_s18 = smov (%p29_p1, %s27_s18), 0  ;;  %p195_p3 = pnand %p2756_p0, %p194_p2 }
   0x6   : > { %p238_p4 = scmp.lt.s32.totalorder (!%p195_p3), %s3823_s15, 1 }
   0x7   : > { %198 = sbr.rel (%p195_p3) target bundleno = 482 (0x1e2), region = 28 }
   0xc   : > { %v3681_v0 = vld [vmem:[%s4563_s1 + $0x78] sm:$0xff]   ;;  %v3833_v1 = vmov 0.0   ;;  %v3683_v3 = vld [vmem:[%s4563_s1 + $0x70] sm:$0xff]   ;;  %vm3834_vm0 = vmmov 0   ;;  %v3685_v5 = vld [vmem:[%s4563_s1 + $0x68] sm:$0xff]   ;;  %s4574_s15 = smov (!%p238_p4, %s3823_s15), 1  ;;  %v311_v9 = vlaneseq }
   0xd   : > { %3333 = vmatprep.subr.bf16.mxu0 %v3833_v1  ;;  %3353 = vmatprep.subr.bf16.mxu1 %v3833_v1  ;;  %v3682_v2 = vld [vmem:[%s4563_s1 + $0x38] sm:$0xff]   ;;  %v3684_v4 = vld [vmem:[%s4563_s1 + $0x30] sm:$0xff]   ;;  %v3686_v6 = vld [vmem:[%s4563_s1 + $0x28] sm:$0xff]   ;;  %s3653_s7 = smul.u32 24, %s4574_s15  ;;  %v3835_v17 = vmov 1966171168   ;;  %s259_s5 = scalar_lea.vmem %s4565_s3, %s4574_s15 }
   0xe   : > { %3334 = vmatpush3.bf16.msra.mxu0 %v3681_v0  ;;  %3349 = vmatprep.mubr.msk.bf16.mxu0 %vm3834_vm0, %v3833_v1  ;;  %v3687_v7 = vld [vmem:[%s4563_s1 + $0x60] sm:$0xff]   ;;  %v3689_v10 = vld [vmem:[%s4563_s1 + $0x58] sm:$0xff]   ;;  %v3691_v12 = vld [vmem:[%s4563_s1 + $0x50] sm:$0xff]   ;;  %v312_v13 = vshrl.u32 %v311_v9, 7  ;;  %v309_v18 = vunpack.c.l.s4 %v3835_v17  ;;  %vm537_vm1 = vsmask.f32 256 }
   0xf   : > { %3354 = vmatpush3.bf16.msra.mxu1 %v3682_v2  ;;  %3335 = vmatprep.subr.bf16.mxu0 %v3833_v1  ;;  %v3688_v8 = vld [vmem:[%s4563_s1 + $0x20] sm:$0xff]   ;;  %s3924_s14 = scalar_lea.vmem %s4562_s0, %s3653_s7  ;;  %v3690_v11 = vld [vmem:[%s4563_s1 + $0x18] sm:$0xff]   ;;  %v3692_v14 = vld [vmem:[%s4563_s1 + $0x10] sm:$0xff]   ;;  %vm538_vm2 = vsmask.f32 1284  ;;  %s2758_s25 = sshll.u32 %s4574_s15, 1 }
  0x10   : > { %3355 = vmatprep.subr.bf16.mxu1 %v3833_v1  ;;  %3369 = vmatprep.mubr.msk.bf16.mxu1 %vm3834_vm0, %v3833_v1  ;;  %v2759_v15 = vld [vmem:[%s3924_s14 + $0x6] sm:$0x1]  ;;  %v2760_v16 = vld [vmem:[%s3924_s14 + $0x8] sm:$0x1]  ;;  %v267_v19 = vld [vmem:[%s3924_s14] sm:$0x1]  ;;  %v310_v20 = vunpack.c.0.s8 %v309_v18  ;;  %s253_s28 = scalar_lea.vmem %s4564_s2, %s2758_s25  ;;  %s265_s7 = scalar_lea.vmem %s4566_s4, %s4574_s15 }
  0x11   : > { %v268_v21 = vld [vmem:[%s3924_s14 + $0x2] sm:$0x1]  ;;  %v307_v22 = vcombine.low %v2759_v15, %v2760_v16  ;;  %v3693_v24 = vld [vmem:[%s4563_s1 + $0x48] sm:$0xff]   ;;  %v3697_v33 = vld [vmem:[%s4563_s1 + $0xb8] sm:$0xff]   ;;  %vm540_vm4 = vsmask.f32 2312 }
  0x12   : > { %3336 = vmatpush3.bf16.msra.mxu0 %v3683_v3  ;;  %v3943_v23 = vsub.s32 %v310_v20, %v312_v13  ;;  %v413_v25 = vcombine.low %v267_v19, %v268_v21  ;;  %v3694_v26 = vld [vmem:[%s4563_s1 + $0x8] sm:$0xff]   ;;  %v3695_v28 = vld [vmem:[%s4563_s1 + $0x40] sm:$0xff]   ;;  %v3698_v34 = vld [vmem:[%s4563_s1 + $0xf8] sm:$0xff]   ;;  %vm542_vm6 = vsmask.f32 3340 }
  0x13   : > { %3356 = vmatpush3.bf16.msra.mxu1 %v3684_v4  ;;  %3337 = vmatprep.subr.bf16.mxu0 %v3833_v1  ;;  %v3696_v30 = vld [vmem:[%s4563_s1] sm:$0xff]   ;;  %v3699_v35 = vld [vmem:[%s4563_s1 + $0xb0] sm:$0xff]   ;;  %vm539_vm3 = vmor %vm537_vm1, %vm538_vm2  ;;  %vm544_vm7 = vsmask.f32 4368  ;;  %vm546_vm10 = vsmask.f32 5396 }
  0x14   : > { %3357 = vmatprep.subr.bf16.mxu1 %v3833_v1  ;;  %v314_v27 = vrot.slane %v307_v22, %v3943_v23  ;;  %v420_v29 = vrot.slane %v413_v25, %v3943_v23  ;;  %v3700_v36 = vld [vmem:[%s4563_s1 + $0xf0] sm:$0xff]   ;;  %v2793_v37 = vld.sshfl [vmem:[%s3924_s14] sm:$0x11 pattern:$0x75316420]  ;;  %vm541_vm5 = vmor %vm539_vm3, %vm540_vm4 }
  0x15   : > { %v3701_v38 = vld [vmem:[%s4563_s1 + $0xa8] sm:$0xff]   ;;  %v2794_v39 = vld.sshfl [vmem:[%s3924_s14 + $0x2] sm:$0x11 pattern:$0x75316420]  ;;  %vm543_vm8 = vmor %vm541_vm5, %vm542_vm6  ;;  %v528_v44 = vcombine.high %v2793_v37, %v2793_v37  ;;  %v553_v50 = vshrl.u32 %v2793_v37, 16 }
  0x16   : > { %3338 = vmatpush3.bf16.msra.mxu0 %v3685_v5  ;;  %v321_v31 = vrot.slane %v314_v27, %v3943_v23  ;;  %v427_v32 = vrot.slane %v420_v29, %v3943_v23  ;;  %vm545_vm9 = vmor %vm543_vm8, %vm544_vm7  ;;  %v2823_v40 = vld.sshfl [vmem:[%s3924_s14 + $0x6] sm:$0x11 pattern:$0x75316420]  ;;  %v3702_v41 = vld [vmem:[%s4563_s1 + $0xe8] sm:$0xff]   ;;  %v536_v45 = vcombine.high %v2794_v39, %v2794_v39  ;;  %v562_v53 = vshrl.u32 %v2794_v39, 16 }
  0x17   : > { %3358 = vmatpush3.bf16.msra.mxu1 %v3686_v6  ;;  %3339 = vmatprep.subr.bf16.mxu0 %v3833_v1  ;;  %v2824_v42 = vld.sshfl [vmem:[%s3924_s14 + $0x8] sm:$0x11 pattern:$0x75316420]  ;;  %v3703_v43 = vld [vmem:[%s4563_s1 + $0xa0] sm:$0xff]   ;;  %vm547_vm11 = vmor %vm545_vm9, %vm546_vm10  ;;  %v703_v47 = vcombine.high %v2823_v40, %v2823_v40  ;;  %v558_v51 = vshll.u32 %v528_v44, 16 }
  0x18   : > { %3359 = vmatprep.subr.bf16.mxu1 %v3833_v1  ;;  %vm548_vm12 = vsmask.f32 6424  ;;  %v3704_v46 = vld [vmem:[%s4563_s1 + $0xe0] sm:$0xff]   ;;  %vm550_vm13 = vsmask.f32 7452  ;;  %v711_v48 = vcombine.high %v2824_v42, %v2824_v42  ;;  %v3705_v49 = vld [vmem:[%s4563_s1 + $0x98] sm:$0xff]  }
  0x19   : > { %vm549_vm14 = vmor %vm547_vm11, %vm548_vm12  ;;  %v3706_v52 = vld [vmem:[%s4563_s1 + $0xd8] sm:$0xff]   ;;  %v567_v54 = vshll.u32 %v536_v45, 16  ;;  %v713_v55 = vshrl.u32 %v2823_v40, 16  ;;  %v722_v56 = vshrl.u32 %v2824_v42, 16  ;;  %v718_v58 = vshll.u32 %v703_v47, 16  ;;  %v3707_v60 = vld [vmem:[%s4563_s1 + $0x90] sm:$0xff]  }
  0x1a   : > { %3340 = vmatpush3.bf16.msra.mxu0 %v3687_v7  ;;  %vm4013_vm15 = vmor %vm549_vm14, %vm550_vm13  ;;  %v727_v59 = vshll.u32 %v711_v48, 16  ;;  %v3708_v63 = vld [vmem:[%s4563_s1 + $0xd0] sm:$0xff]   ;;  %v3709_v4 = vld [vmem:[%s4563_s1 + $0x88] sm:$0xff]  }
  0x1b   : > { %3360 = vmatpush3.bf16.msra.mxu1 %v3688_v8  ;;  %3341 = vmatprep.subr.bf16.mxu0 %v3833_v1  ;;  %v560_v61 = vsel %vm4013_vm15, %v553_v50, %v558_v51  ;;  %v4025_v62 = vsel %vm4013_vm15, %v562_v53, %v567_v54  ;;  %v720_v0 = vsel %vm4013_vm15, %v713_v55, %v718_v58  ;;  %v3710_v6 = vld [vmem:[%s4563_s1 + $0xc8] sm:$0xff]   ;;  %v3711_v8 = vld [vmem:[%s4563_s1 + $0x80] sm:$0xff]   ;;  %v3713_v13 = vld [vmem:[%s4563_s1 + $0x138] sm:$0xff]  }
  0x1c   : > { %3361 = vmatprep.subr.bf16.mxu1 %v3833_v1  ;;  %v4035_v2 = vsel %vm4013_vm15, %v722_v56, %v727_v59  ;;  %v587_v3 = vcombine.low %v560_v61, %v4025_v62  ;;  %v3715_v15 = vld [vmem:[%s4563_s1 + $0x130] sm:$0xff]   ;;  %v3717_v17 = vld [vmem:[%s4563_s1 + $0x128] sm:$0xff]   ;;  %v3719_v19 = vld [vmem:[%s4563_s1 + $0x120] sm:$0xff]  }
  0x1d   : > { %v747_v5 = vcombine.low %v720_v0, %v4035_v2  ;;  %v3716_v16 = vld [vmem:[%s4563_s1 + $0x170] sm:$0xff]   ;;  %v3718_v18 = vld [vmem:[%s4563_s1 + $0x168] sm:$0xff]   ;;  %v3720_v20 = vld [vmem:[%s4563_s1 + $0x160] sm:$0xff]  }
  0x1e   : > { %3342 = vmatpush3.bf16.msra.mxu0 %v3689_v10  ;;  %v594_v7 = vrot.slane %v587_v3, %v3943_v23  ;;  %v3712_v10 = vld [vmem:[%s4563_s1 + $0xc0] sm:$0xff]   ;;  %v3721_v21 = vld [vmem:[%s4563_s1 + $0x118] sm:$0xff]   ;;  %v2851_v25 = vld [vmem:[%s3924_s14 + $0xc] sm:$0x1] }
  0x1f   : > { %3362 = vmatpush3.bf16.msra.mxu1 %v3690_v11  ;;  %3343 = vmatprep.subr.bf16.mxu0 %v3833_v1  ;;  %v754_v9 = vrot.slane %v747_v5, %v3943_v23  ;;  %v3722_v22 = vld [vmem:[%s4563_s1 + $0x158] sm:$0xff]   ;;  %v3724_v27 = vld [vmem:[%s4563_s1 + $0x150] sm:$0xff]   ;;  %v3728_v37 = vld [vmem:[%s4563_s1 + $0x140] sm:$0xff]  }
  0x20   : > { %3363 = vmatprep.subr.bf16.mxu1 %v3833_v1  ;;  %v601_v11 = vrot.slane %v594_v7, %v3943_v23  ;;  %v2878_v29 = vld [vmem:[%s3924_s14 + $0x14] sm:$0x1]  ;;  %v3729_v40 = vld [vmem:[%s4563_s1 + $0x1b8] sm:$0xff]   ;;  %v3735_v50 = vld [vmem:[%s4563_s1 + $0x1a0] sm:$0xff]  }
  0x21   : > { %v3731_v42 = vld [vmem:[%s4563_s1 + $0x1b0] sm:$0xff]   ;;  %v2905_v44 = vld.sshfl [vmem:[%s3924_s14 + $0xc] sm:$0x11 pattern:$0x75316420]  ;;  %v3736_v53 = vld [vmem:[%s4563_s1 + $0x1e0] sm:$0xff]  }
  0x22   : > { %3344 = vmatpush3.bf16.msra.mxu0 %v3691_v12  ;;  %v761_v12 = vrot.slane %v754_v9, %v3943_v23  ;;  %v2906_v45 = vld.sshfl [vmem:[%s3924_s14 + $0xe] sm:$0x11 pattern:$0x75316420]  ;;  %v1117_v51 = vcombine.high %v2905_v44, %v2905_v44  ;;  %v3737_v56 = vld [vmem:[%s4563_s1 + $0x198] sm:$0xff]   ;;  %v1127_v58 = vshrl.u32 %v2905_v44, 16 }
  0x23   : > { %3364 = vmatpush3.bf16.msra.mxu1 %v3692_v14  ;;  %3345 = vmatprep.subr.bf16.mxu0 %v3833_v1  ;;  %v3714_v14 = vld [vmem:[%s4563_s1 + $0x178] sm:$0xff]   ;;  %v2935_v47 = vld.sshfl [vmem:[%s3924_s14 + $0x12] sm:$0x11 pattern:$0x75316420]  ;;  %v3759_v44 = vld [vmem:[%s4563_s1 + $0x200] sm:$0xff]  }
  0x24   : > { %3365 = vmatprep.subr.bf16.mxu1 %v3833_v1  ;;  %v2936_v48 = vld.sshfl [vmem:[%s3924_s14 + $0x14] sm:$0x11 pattern:$0x75316420]  ;;  %v1277_v54 = vcombine.high %v2935_v47, %v2935_v47  ;;  %v1132_v59 = vshll.u32 %v1117_v51, 16  ;;  %v1287_v0 = vshrl.u32 %v2935_v47, 16 }
  0x25   : > { %v1285_v55 = vcombine.high %v2936_v48, %v2936_v48  ;;  %v3740_v9 = vld [vmem:[%s4563_s1 + $0x1d0] sm:$0xff]  }
  0x26   : > { %3346 = vmatpush3.bf16.msra.mxu0 %v3693_v24  ;;  %v3723_v24 = vld [vmem:[%s4563_s1 + $0x110] sm:$0xff]   ;;  %v1292_v3 = vshll.u32 %v1277_v54, 16  ;;  %v1134_v7 = vsel %vm4013_vm15, %v1127_v58, %v1132_v59  ;;  %v3766_v54 = vld [vmem:[%s4563_s1 + $0x2e8] sm:$0xff]   ;;  %v3767_v58 = vld [vmem:[%s4563_s1 + $0x2a0] sm:$0xff]  }
  0x27   : > { %3366 = vmatpush3.bf16.msra.mxu1 %v3694_v26  ;;  %3347 = vmatprep.subr.bf16.mxu0 %v3833_v1  ;;  %v2852_v26 = vld [vmem:[%s3924_s14 + $0xe] sm:$0x1]  ;;  %v1301_v5 = vshll.u32 %v1285_v55, 16  ;;  %v3763_v51 = vld [vmem:[%s4563_s1 + $0x2b0] sm:$0xff]  }
  0x28   : > { %3367 = vmatprep.subr.bf16.mxu1 %v3833_v1  ;;  %v3018_v55 = vld.sshfl [vmem:[%s3924_s14 + $0x4] sm:$0x11 pattern:$0x75316420] }
  0x29   : > { %v1699_v59 = vcombine.high %v3018_v55, %v3018_v55 }
  0x2a   : > { %3348 = vmatpush3.bf16.msra.mxu0 %v3695_v28  ;;  %v2877_v28 = vld [vmem:[%s3924_s14 + $0x12] sm:$0x1] }
  0x2b   : > { %3368 = vmatpush3.bf16.msra.mxu1 %v3696_v30  ;;  %3373 = vmatprep.subr.bf16.mxu0 %v3833_v1  ;;  %v874_v30 = vcombine.low %v2851_v25, %v2852_v26  ;;  %v3747_v25 = vld [vmem:[%s4563_s1 + $0x230] sm:$0xff]  }
  0x2c   : > { %3393 = vmatprep.subr.bf16.mxu1 %v3833_v1  ;;  %v3748_v26 = vld [vmem:[%s4563_s1 + $0x270] sm:$0xff]  }
  0x2d   : > { %3350 = vmatmul.mubr.bf16.vlgmr.msra.gmra.mxu0 %v321_v31  ;;  %v3725_v31 = vld [vmem:[%s4563_s1 + $0x108] sm:$0xff]  }
  0x2e   : > { %3370 = vmatmul.mubr.bf16.vlgmr.msra.gmra.mxu1 %v427_v32  ;;  %3374 = vmatpush3.bf16.msra.mxu0 %v3697_v33  ;;  %v1001_v32 = vcombine.low %v2877_v28, %v2878_v29  ;;  %v3726_v33 = vld [vmem:[%s4563_s1 + $0x148] sm:$0xff]   ;;  %v3751_v29 = vld [vmem:[%s4563_s1 + $0x220] sm:$0xff]  }
  0x2f   : > { %3394 = vmatpush3.bf16.msra.mxu1 %v3698_v34  ;;  %3375 = vmatprep.subr.bf16.mxu0 %v3833_v1  ;;  %v881_v34 = vrot.slane %v874_v30, %v3943_v23  ;;  %v3750_v28 = vld [vmem:[%s4563_s1 + $0x268] sm:$0xff]   ;;  %v3752_v30 = vld [vmem:[%s4563_s1 + $0x260] sm:$0xff]  }
  0x30   : > { %3395 = vmatprep.subr.bf16.mxu1 %v3833_v1  ;;  %3389 = vmatprep.mubr.msk.bf16.mxu0 %vm3834_vm0, %v3833_v1 }
  0x31   : > { %3409 = vmatprep.mubr.msk.bf16.mxu1 %vm3834_vm0, %v3833_v1 }
  0x32   : > { %3376 = vmatpush3.bf16.msra.mxu0 %v3699_v35  ;;  %v3727_v35 = vld [vmem:[%s4563_s1 + $0x100] sm:$0xff]  }
  0x33   : > { %3396 = vmatpush3.bf16.msra.mxu1 %v3700_v36  ;;  %3377 = vmatprep.subr.bf16.mxu0 %v3833_v1  ;;  %v1008_v36 = vrot.slane %v1001_v32, %v3943_v23  ;;  %v3754_v32 = vld [vmem:[%s4563_s1 + $0x258] sm:$0xff]  }
  0x34   : > { %3397 = vmatprep.subr.bf16.mxu1 %v3833_v1 }
  0x35   : > { %v1015_v39 = vrot.slane %v1008_v36, %v3943_v23  ;;  %v3756_v36 = vld [vmem:[%s4563_s1 + $0x250] sm:$0xff]  }
  0x36   : > { %3378 = vmatpush3.bf16.msra.mxu0 %v3701_v38  ;;  %v888_v38 = vrot.slane %v881_v34, %v3943_v23  ;;  %v2963_v34 = vld [vmem:[%s3924_s14 + $0x2] sm:$0x1] }
  0x37   : > { %3398 = vmatpush3.bf16.msra.mxu1 %v3702_v41  ;;  %3379 = vmatprep.subr.bf16.mxu0 %v3833_v1  ;;  %v3730_v41 = vld [vmem:[%s4563_s1 + $0x1f8] sm:$0xff]  }
  0x38   : > { %3399 = vmatprep.subr.bf16.mxu1 %v3833_v1 }
  0x3a   : > { %3380 = vmatpush3.bf16.msra.mxu0 %v3703_v43  ;;  %v3732_v43 = vld [vmem:[%s4563_s1 + $0x1f0] sm:$0xff]  }
  0x3b   : > { %3400 = vmatpush3.bf16.msra.mxu1 %v3704_v46  ;;  %3381 = vmatprep.subr.bf16.mxu0 %v3833_v1  ;;  %v3733_v46 = vld [vmem:[%s4563_s1 + $0x1a8] sm:$0xff]  }
  0x3c   : > { %3401 = vmatprep.subr.bf16.mxu1 %v3833_v1 }
  0x3e   : > { %3382 = vmatpush3.bf16.msra.mxu0 %v3705_v49  ;;  %v3734_v49 = vld [vmem:[%s4563_s1 + $0x1e8] sm:$0xff]  }
  0x3f   : > { %3402 = vmatpush3.bf16.msra.mxu1 %v3706_v52  ;;  %3383 = vmatprep.subr.bf16.mxu0 %v3833_v1  ;;  %v1125_v52 = vcombine.high %v2906_v45, %v2906_v45 }
  0x40   : > { %3403 = vmatprep.subr.bf16.mxu1 %v3833_v1 }
  0x41   : > { %v1141_v61 = vshll.u32 %v1125_v52, 16  ;;  %v3764_v52 = vld [vmem:[%s4563_s1 + $0x2f0] sm:$0xff]  }
  0x42   : > { %3384 = vmatpush3.bf16.msra.mxu0 %v3707_v60  ;;  %v1136_v60 = vshrl.u32 %v2906_v45, 16 }
  0x43   : > { %3404 = vmatpush3.bf16.msra.mxu1 %v3708_v63  ;;  %3385 = vmatprep.subr.bf16.mxu0 %v3833_v1  ;;  %v3738_v63 = vld [vmem:[%s4563_s1 + $0x1d8] sm:$0xff]  }
  0x44   : > { %3405 = vmatprep.subr.bf16.mxu1 %v3833_v1 }
  0x46   : > { %3386 = vmatpush3.bf16.msra.mxu0 %v3709_v4  ;;  %v1296_v4 = vshrl.u32 %v2936_v48, 16 }
  0x47   : > { %3406 = vmatpush3.bf16.msra.mxu1 %v3710_v6  ;;  %3387 = vmatprep.subr.bf16.mxu0 %v3833_v1  ;;  %v3739_v6 = vld [vmem:[%s4563_s1 + $0x190] sm:$0xff]  }
  0x48   : > { %3407 = vmatprep.subr.bf16.mxu1 %v3833_v1 }
  0x4a   : > { %3388 = vmatpush3.bf16.msra.mxu0 %v3711_v8  ;;  %v4191_v8 = vsel %vm4013_vm15, %v1136_v60, %v1141_v61  ;;  %v3768_v60 = vld [vmem:[%s4563_s1 + $0x2e0] sm:$0xff]  }
  0x4b   : > { %3408 = vmatpush3.bf16.msra.mxu1 %v3712_v10  ;;  %3413 = vmatprep.subr.bf16.mxu0 %v3833_v1  ;;  %v1294_v10 = vsel %vm4013_vm15, %v1287_v0, %v1292_v3  ;;  %v1710_v0 = vshrl.u32 %v3018_v55, 16  ;;  %v1715_v3 = vshll.u32 %v1699_v59, 16  ;;  %v3796_v55 = vld [vmem:[%s4563_s1 + $0x3f0] sm:$0xff]  }
  0x4c   : > { %3433 = vmatprep.subr.bf16.mxu1 %v3833_v1 }
  0x4d   : > { %3390 = vmatmul.mubr.bf16.vlgmr.msra.gmra.mxu0 %v601_v11  ;;  %v4201_v11 = vsel %vm4013_vm15, %v1296_v4, %v1301_v5  ;;  %v3770_v4 = vld [vmem:[%s4563_s1 + $0x2d8] sm:$0xff]  }
  0x4e   : > { %3410 = vmatmul.mubr.bf16.vlgmr.msra.gmra.mxu1 %v761_v12  ;;  %3414 = vmatpush3.bf16.msra.mxu0 %v3713_v13  ;;  %v1161_v12 = vcombine.low %v1134_v7, %v4191_v8  ;;  %v3741_v13 = vld [vmem:[%s4563_s1 + $0x188] sm:$0xff]   ;;  %v3771_v7 = vld [vmem:[%s4563_s1 + $0x290] sm:$0xff]  }
  0x4f   : > { %3434 = vmatpush3.bf16.msra.mxu1 %v3714_v14  ;;  %3415 = vmatprep.subr.bf16.mxu0 %v3833_v1  ;;  %v1321_v14 = vcombine.low %v1294_v10, %v4201_v11  ;;  %v3772_v10 = vld [vmem:[%s4563_s1 + $0x2d0] sm:$0xff]  }
  0x50   : > { %3435 = vmatprep.subr.bf16.mxu1 %v3833_v1  ;;  %3429 = vmatprep.mubr.msk.bf16.mxu0 %vm3834_vm0, %v3833_v1 }
  0x51   : > { %3449 = vmatprep.mubr.msk.bf16.mxu1 %vm3834_vm0, %v3833_v1 }
  0x52   : > { %3416 = vmatpush3.bf16.msra.mxu0 %v3715_v15  ;;  %v3742_v15 = vld [vmem:[%s4563_s1 + $0x1c8] sm:$0xff]  }
  0x53   : > { %3436 = vmatpush3.bf16.msra.mxu1 %v3716_v16  ;;  %3417 = vmatprep.subr.bf16.mxu0 %v3833_v1  ;;  %v1168_v16 = vrot.slane %v1161_v12, %v3943_v23 }
  0x54   : > { %3437 = vmatprep.subr.bf16.mxu1 %v3833_v1 }
  0x56   : > { %3418 = vmatpush3.bf16.msra.mxu0 %v3717_v17  ;;  %v3743_v17 = vld [vmem:[%s4563_s1 + $0x180] sm:$0xff]  }
  0x57   : > { %3438 = vmatpush3.bf16.msra.mxu1 %v3718_v18  ;;  %3419 = vmatprep.subr.bf16.mxu0 %v3833_v1  ;;  %v1328_v18 = vrot.slane %v1321_v14, %v3943_v23  ;;  %v3773_v14 = vld [vmem:[%s4563_s1 + $0x288] sm:$0xff]  }
  0x58   : > { %3439 = vmatprep.subr.bf16.mxu1 %v3833_v1 }
  0x5a   : > { %3420 = vmatpush3.bf16.msra.mxu0 %v3719_v19  ;;  %v3744_v19 = vld [vmem:[%s4563_s1 + $0x1c0] sm:$0xff]  }
  0x5b   : > { %3440 = vmatpush3.bf16.msra.mxu1 %v3720_v20  ;;  %3421 = vmatprep.subr.bf16.mxu0 %v3833_v1  ;;  %v1175_v20 = vrot.slane %v1168_v16, %v3943_v23  ;;  %v3774_v16 = vld [vmem:[%s4563_s1 + $0x2c8] sm:$0xff]  }
  0x5c   : > { %3441 = vmatprep.subr.bf16.mxu1 %v3833_v1 }
  0x5e   : > { %3422 = vmatpush3.bf16.msra.mxu0 %v3721_v21  ;;  %v1335_v21 = vrot.slane %v1328_v18, %v3943_v23 }
  0x5f   : > { %3442 = vmatpush3.bf16.msra.mxu1 %v3722_v22  ;;  %3423 = vmatprep.subr.bf16.mxu0 %v3833_v1  ;;  %v3745_v22 = vld [vmem:[%s4563_s1 + $0x238] sm:$0xff]  }
  0x60   : > { %3443 = vmatprep.subr.bf16.mxu1 %v3833_v1 }
  0x62   : > { %3424 = vmatpush3.bf16.msra.mxu0 %v3723_v24  ;;  %v3746_v24 = vld [vmem:[%s4563_s1 + $0x278] sm:$0xff]  }
  0x63   : > { %3444 = vmatpush3.bf16.msra.mxu1 %v3724_v27  ;;  %3425 = vmatprep.subr.bf16.mxu0 %v3833_v1  ;;  %v3749_v27 = vld [vmem:[%s4563_s1 + $0x228] sm:$0xff]  }
  0x64   : > { %3445 = vmatprep.subr.bf16.mxu1 %v3833_v1 }
  0x66   : > { %3426 = vmatpush3.bf16.msra.mxu0 %v3725_v31  ;;  %v3753_v31 = vld [vmem:[%s4563_s1 + $0x218] sm:$0xff]  }
  0x67   : > { %3446 = vmatpush3.bf16.msra.mxu1 %v3726_v33  ;;  %3427 = vmatprep.subr.bf16.mxu0 %v3833_v1  ;;  %v3755_v33 = vld [vmem:[%s4563_s1 + $0x210] sm:$0xff]  }
  0x68   : > { %3447 = vmatprep.subr.bf16.mxu1 %v3833_v1 }
  0x6a   : > { %3428 = vmatpush3.bf16.msra.mxu0 %v3727_v35  ;;  %v2964_v35 = vld [vmem:[%s3924_s14 + $0x4] sm:$0x1] }
  0x6b   : > { %3448 = vmatpush3.bf16.msra.mxu1 %v3728_v37  ;;  %3453 = vmatprep.subr.bf16.mxu0 %v3833_v1  ;;  %v2989_v37 = vld [vmem:[%s3924_s14 + $0x8] sm:$0x1] }
  0x6c   : > { %3473 = vmatprep.subr.bf16.mxu1 %v3833_v1 }
  0x6d   : > { %3430 = vmatmul.mubr.bf16.vlgmr.msra.gmra.mxu0 %v888_v38  ;;  %v2990_v38 = vld [vmem:[%s3924_s14 + $0xa] sm:$0x1] }
  0x6e   : > { %3450 = vmatmul.mubr.bf16.vlgmr.msra.gmra.mxu1 %v1015_v39  ;;  %3454 = vmatpush3.bf16.msra.mxu0 %v3729_v40  ;;  %v1448_v39 = vcombine.low %v2963_v34, %v2964_v35  ;;  %v3757_v40 = vld [vmem:[%s4563_s1 + $0x208] sm:$0xff]   ;;  %v3076_v34 = vld [vmem:[%s3924_s14 + $0x10] sm:$0x1] }
  0x6f   : > { %3474 = vmatpush3.bf16.msra.mxu1 %v3730_v41  ;;  %3455 = vmatprep.subr.bf16.mxu0 %v3833_v1  ;;  %v1575_v41 = vcombine.low %v2989_v37, %v2990_v38  ;;  %v3788_v35 = vld [vmem:[%s4563_s1 + $0x350] sm:$0xff]  }
  0x70   : > { %3475 = vmatprep.subr.bf16.mxu1 %v3833_v1  ;;  %3469 = vmatprep.mubr.msk.bf16.mxu0 %vm3834_vm0, %v3833_v1  ;;  %v3102_v37 = vld [vmem:[%s3924_s14 + $0x16] sm:$0x1] }
  0x71   : > { %3489 = vmatprep.mubr.msk.bf16.mxu1 %vm3834_vm0, %v3833_v1  ;;  %v1582_v45 = vrot.slane %v1575_v41, %v3943_v23  ;;  %v3790_v41 = vld [vmem:[%s4563_s1 + $0x348] sm:$0xff]  }
  0x72   : > { %3456 = vmatpush3.bf16.msra.mxu0 %v3731_v42  ;;  %v3758_v42 = vld [vmem:[%s4563_s1 + $0x248] sm:$0xff]  }
  0x73   : > { %3476 = vmatpush3.bf16.msra.mxu1 %v3732_v43  ;;  %3457 = vmatprep.subr.bf16.mxu0 %v3833_v1  ;;  %v1455_v43 = vrot.slane %v1448_v39, %v3943_v23  ;;  %v1589_v48 = vrot.slane %v1582_v45, %v3943_v23  ;;  %v3789_v39 = vld [vmem:[%s4563_s1 + $0x308] sm:$0xff]   ;;  %v3792_v45 = vld [vmem:[%s4563_s1 + $0x340] sm:$0xff]  }
  0x74   : > { %3477 = vmatprep.subr.bf16.mxu1 %v3833_v1 }
  0x75   : > { %v1462_v47 = vrot.slane %v1455_v43, %v3943_v23  ;;  %v3791_v43 = vld [vmem:[%s4563_s1 + $0x300] sm:$0xff]  }
  0x76   : > { %3458 = vmatpush3.bf16.msra.mxu0 %v3733_v46  ;;  %v3760_v46 = vld [vmem:[%s4563_s1 + $0x240] sm:$0xff]  }
  0x77   : > { %3478 = vmatpush3.bf16.msra.mxu1 %v3734_v49  ;;  %3459 = vmatprep.subr.bf16.mxu0 %v3833_v1  ;;  %v3761_v49 = vld [vmem:[%s4563_s1 + $0x2b8] sm:$0xff]  }
  0x78   : > { %3479 = vmatprep.subr.bf16.mxu1 %v3833_v1 }
  0x7a   : > { %3460 = vmatpush3.bf16.msra.mxu0 %v3735_v50  ;;  %v3762_v50 = vld [vmem:[%s4563_s1 + $0x2f8] sm:$0xff]  }
  0x7b   : > { %3480 = vmatpush3.bf16.msra.mxu1 %v3736_v53  ;;  %3461 = vmatprep.subr.bf16.mxu0 %v3833_v1  ;;  %v3765_v53 = vld [vmem:[%s4563_s1 + $0x2a8] sm:$0xff]  }
  0x7c   : > { %3481 = vmatprep.subr.bf16.mxu1 %v3833_v1 }
  0x7e   : > { %3462 = vmatpush3.bf16.msra.mxu0 %v3737_v56  ;;  %v3048_v56 = vld.sshfl [vmem:[%s3924_s14 + $0xa] sm:$0x11 pattern:$0x75316420] }
  0x7f   : > { %3482 = vmatpush3.bf16.msra.mxu1 %v3738_v63  ;;  %3463 = vmatprep.subr.bf16.mxu0 %v3833_v1  ;;  %v1859_v61 = vcombine.high %v3048_v56, %v3048_v56  ;;  %v3769_v63 = vld [vmem:[%s4563_s1 + $0x298] sm:$0xff]   ;;  %v1870_v5 = vshrl.u32 %v3048_v56, 16 }
  0x80   : > { %3483 = vmatprep.subr.bf16.mxu1 %v3833_v1 }
  0x82   : > { %3464 = vmatpush3.bf16.msra.mxu0 %v3739_v6  ;;  %v1875_v6 = vshll.u32 %v1859_v61, 16 }
  0x83   : > { %3484 = vmatpush3.bf16.msra.mxu1 %v3740_v9  ;;  %3465 = vmatprep.subr.bf16.mxu0 %v3833_v1  ;;  %v1717_v9 = vsel %vm4013_vm15, %v1710_v0, %v1715_v3  ;;  %v3130_v0 = vld.sshfl [vmem:[%s3924_s14 + $0x10] sm:$0x11 pattern:$0x75316420] }
  0x84   : > { %3485 = vmatprep.subr.bf16.mxu1 %v3833_v1  ;;  %v1877_v12 = vsel %vm4013_vm15, %v1870_v5, %v1875_v6  ;;  %v3799_v5 = vld [vmem:[%s4563_s1 + $0x3a0] sm:$0xff]   ;;  %v2273_v6 = vcombine.high %v3130_v0, %v3130_v0 }
  0x86   : > { %3466 = vmatpush3.bf16.msra.mxu0 %v3741_v13  ;;  %v1735_v13 = vcombine.low %v4025_v62, %v1717_v9  ;;  %v3775_v62 = vld [vmem:[%s4563_s1 + $0x280] sm:$0xff]  }
  0x87   : > { %3486 = vmatpush3.bf16.msra.mxu1 %v3742_v15  ;;  %3467 = vmatprep.subr.bf16.mxu0 %v3833_v1  ;;  %v1895_v15 = vcombine.low %v4035_v2, %v1877_v12  ;;  %v3776_v2 = vld [vmem:[%s4563_s1 + $0x2c0] sm:$0xff]   ;;  %v2284_v12 = vshrl.u32 %v3130_v0, 16 }
  0x88   : > { %3487 = vmatprep.subr.bf16.mxu1 %v3833_v1 }
  0x89   : > { %v1902_v18 = vrot.slane %v1895_v15, %v3943_v23 }
  0x8a   : > { %3468 = vmatpush3.bf16.msra.mxu0 %v3743_v17  ;;  %v1742_v17 = vrot.slane %v1735_v13, %v3943_v23  ;;  %v2289_v13 = vshll.u32 %v2273_v6, 16 }
  0x8b   : > { %3488 = vmatpush3.bf16.msra.mxu1 %v3744_v19  ;;  %3493 = vmatprep.subr.bf16.mxu0 %v3833_v1 }
  0x8c   : > { %3513 = vmatprep.subr.bf16.mxu1 %v3833_v1  ;;  %v1749_v19 = vrot.slane %v1742_v17, %v3943_v23  ;;  %v3803_v17 = vld [vmem:[%s4563_s1 + $0x390] sm:$0xff]  }
  0x8d   : > { %3470 = vmatmul.mubr.bf16.vlgmr.msra.gmra.mxu0 %v1175_v20  ;;  %v1909_v20 = vrot.slane %v1902_v18, %v3943_v23  ;;  %v3804_v18 = vld [vmem:[%s4563_s1 + $0x3d0] sm:$0xff]  }
  0x8e   : > { %3490 = vmatmul.mubr.bf16.vlgmr.msra.gmra.mxu1 %v1335_v21  ;;  %3494 = vmatpush3.bf16.msra.mxu0 %v3745_v22  ;;  %v3777_v21 = vld [vmem:[%s4563_s1 + $0x338] sm:$0xff]  }
  0x8f   : > { %3514 = vmatpush3.bf16.msra.mxu1 %v3746_v24  ;;  %3495 = vmatprep.subr.bf16.mxu0 %v3833_v1  ;;  %v3778_v22 = vld [vmem:[%s4563_s1 + $0x378] sm:$0xff]   ;;  %v3779_v24 = vld [vmem:[%s4563_s1 + $0x330] sm:$0xff]  }
  0x90   : > { %3515 = vmatprep.subr.bf16.mxu1 %v3833_v1  ;;  %3509 = vmatprep.mubr.msk.bf16.mxu0 %vm3834_vm0, %v3833_v1 }
  0x91   : > { %3529 = vmatprep.mubr.msk.bf16.mxu1 %vm3834_vm0, %v3833_v1 }
  0x92   : > { %3496 = vmatpush3.bf16.msra.mxu0 %v3747_v25  ;;  %v3780_v25 = vld [vmem:[%s4563_s1 + $0x370] sm:$0xff]  }
  0x93   : > { %3516 = vmatpush3.bf16.msra.mxu1 %v3748_v26  ;;  %3497 = vmatprep.subr.bf16.mxu0 %v3833_v1  ;;  %v3781_v26 = vld [vmem:[%s4563_s1 + $0x328] sm:$0xff]  }
  0x94   : > { %3517 = vmatprep.subr.bf16.mxu1 %v3833_v1 }
  0x96   : > { %3498 = vmatpush3.bf16.msra.mxu0 %v3749_v27  ;;  %v3782_v27 = vld [vmem:[%s4563_s1 + $0x368] sm:$0xff]  }
  0x97   : > { %3518 = vmatpush3.bf16.msra.mxu1 %v3750_v28  ;;  %3499 = vmatprep.subr.bf16.mxu0 %v3833_v1  ;;  %v3783_v28 = vld [vmem:[%s4563_s1 + $0x320] sm:$0xff]  }
  0x98   : > { %3519 = vmatprep.subr.bf16.mxu1 %v3833_v1 }
  0x9a   : > { %3500 = vmatpush3.bf16.msra.mxu0 %v3751_v29  ;;  %v3784_v29 = vld [vmem:[%s4563_s1 + $0x360] sm:$0xff]  }
  0x9b   : > { %3520 = vmatpush3.bf16.msra.mxu1 %v3752_v30  ;;  %3501 = vmatprep.subr.bf16.mxu0 %v3833_v1  ;;  %v3785_v30 = vld [vmem:[%s4563_s1 + $0x318] sm:$0xff]  }
  0x9c   : > { %3521 = vmatprep.subr.bf16.mxu1 %v3833_v1 }
  0x9e   : > { %3502 = vmatpush3.bf16.msra.mxu0 %v3753_v31  ;;  %v3786_v31 = vld [vmem:[%s4563_s1 + $0x358] sm:$0xff]  }
  0x9f   : > { %3522 = vmatpush3.bf16.msra.mxu1 %v3754_v32  ;;  %3503 = vmatprep.subr.bf16.mxu0 %v3833_v1  ;;  %v3787_v32 = vld [vmem:[%s4563_s1 + $0x310] sm:$0xff]  }
  0xa0   : > { %3523 = vmatprep.subr.bf16.mxu1 %v3833_v1 }
  0xa2   : > { %3504 = vmatpush3.bf16.msra.mxu0 %v3755_v33  ;;  %v3075_v33 = vld [vmem:[%s3924_s14 + $0xe] sm:$0x1] }
  0xa3   : > { %3524 = vmatpush3.bf16.msra.mxu1 %v3756_v36  ;;  %3505 = vmatprep.subr.bf16.mxu0 %v3833_v1  ;;  %v3101_v36 = vld [vmem:[%s3924_s14 + $0x14] sm:$0x1]  ;;  %v2022_v38 = vcombine.low %v3075_v33, %v3076_v34 }
  0xa4   : > { %3525 = vmatprep.subr.bf16.mxu1 %v3833_v1 }
  0xa6   : > { %3506 = vmatpush3.bf16.msra.mxu0 %v3757_v40  ;;  %v2149_v40 = vcombine.low %v3101_v36, %v3102_v37 }
  0xa7   : > { %3526 = vmatpush3.bf16.msra.mxu1 %v3758_v42  ;;  %3507 = vmatprep.subr.bf16.mxu0 %v3833_v1  ;;  %v2029_v42 = vrot.slane %v2022_v38, %v3943_v23 }
  0xa8   : > { %3527 = vmatprep.subr.bf16.mxu1 %v3833_v1 }
  0xaa   : > { %3508 = vmatpush3.bf16.msra.mxu0 %v3759_v44  ;;  %v2156_v44 = vrot.slane %v2149_v40, %v3943_v23 }
  0xab   : > { %3528 = vmatpush3.bf16.msra.mxu1 %v3760_v46  ;;  %3533 = vmatprep.subr.bf16.mxu0 %v3833_v1  ;;  %v2036_v46 = vrot.slane %v2029_v42, %v3943_v23 }
  0xac   : > { %3553 = vmatprep.subr.bf16.mxu1 %v3833_v1 }
  0xad   : > { %3510 = vmatmul.mubr.bf16.vlgmr.msra.gmra.mxu0 %v1462_v47  ;;  %v2163_v47 = vrot.slane %v2156_v44, %v3943_v23 }
  0xae   : > { %3530 = vmatmul.mubr.bf16.vlgmr.msra.gmra.mxu1 %v1589_v48  ;;  %3534 = vmatpush3.bf16.msra.mxu0 %v3761_v49  ;;  %v3793_v48 = vld [vmem:[%s4563_s1 + $0x3b8] sm:$0xff]  }
  0xaf   : > { %3554 = vmatpush3.bf16.msra.mxu1 %v3762_v50  ;;  %3535 = vmatprep.subr.bf16.mxu0 %v3833_v1  ;;  %v3794_v49 = vld [vmem:[%s4563_s1 + $0x3f8] sm:$0xff]  }
  0xb0   : > { %3555 = vmatprep.subr.bf16.mxu1 %v3833_v1  ;;  %3549 = vmatprep.mubr.msk.bf16.mxu0 %vm3834_vm0, %v3833_v1 }
  0xb1   : > { %3569 = vmatprep.mubr.msk.bf16.mxu1 %vm3834_vm0, %v3833_v1 }
  0xb2   : > { %3536 = vmatpush3.bf16.msra.mxu0 %v3763_v51 }
  0xb3   : > { %3556 = vmatpush3.bf16.msra.mxu1 %v3764_v52  ;;  %3537 = vmatprep.subr.bf16.mxu0 %v3833_v1  ;;  %v3795_v52 = vld [vmem:[%s4563_s1 + $0x3b0] sm:$0xff]  }
  0xb4   : > { %3557 = vmatprep.subr.bf16.mxu1 %v3833_v1 }
  0xb6   : > { %3538 = vmatpush3.bf16.msra.mxu0 %v3765_v53 }
  0xb7   : > { %3558 = vmatpush3.bf16.msra.mxu1 %v3766_v54  ;;  %3539 = vmatprep.subr.bf16.mxu0 %v3833_v1 }
  0xb8   : > { %3559 = vmatprep.subr.bf16.mxu1 %v3833_v1 }
  0xba   : > { %3540 = vmatpush3.bf16.msra.mxu0 %v3767_v58 }
  0xbb   : > { %3560 = vmatpush3.bf16.msra.mxu1 %v3768_v60  ;;  %3541 = vmatprep.subr.bf16.mxu0 %v3833_v1  ;;  %v3797_v60 = vld [vmem:[%s4563_s1 + $0x3a8] sm:$0xff]  }
  0xbc   : > { %3561 = vmatprep.subr.bf16.mxu1 %v3833_v1 }
  0xbe   : > { %3542 = vmatpush3.bf16.msra.mxu0 %v3769_v63  ;;  %v3798_v63 = vld [vmem:[%s4563_s1 + $0x3e8] sm:$0xff]  }
  0xbf   : > { %3562 = vmatpush3.bf16.msra.mxu1 %v3770_v4  ;;  %3543 = vmatprep.subr.bf16.mxu0 %v3833_v1  ;;  %v3160_v4 = vld.sshfl [vmem:[%s3924_s14 + $0x16] sm:$0x11 pattern:$0x75316420] }
  0xc0   : > { %3563 = vmatprep.subr.bf16.mxu1 %v3833_v1  ;;  %v2433_v9 = vcombine.high %v3160_v4, %v3160_v4  ;;  %v2444_v15 = vshrl.u32 %v3160_v4, 16 }
  0xc2   : > { %3544 = vmatpush3.bf16.msra.mxu0 %v3771_v7  ;;  %v3800_v7 = vld [vmem:[%s4563_s1 + $0x3e0] sm:$0xff]  }
  0xc3   : > { %3564 = vmatpush3.bf16.msra.mxu1 %v3772_v10  ;;  %3545 = vmatprep.subr.bf16.mxu0 %v3833_v1  ;;  %v3801_v10 = vld [vmem:[%s4563_s1 + $0x398] sm:$0xff]  }
  0xc4   : > { %3565 = vmatprep.subr.bf16.mxu1 %v3833_v1 }
  0xc6   : > { %3546 = vmatpush3.bf16.msra.mxu0 %v3773_v14  ;;  %v3802_v14 = vld [vmem:[%s4563_s1 + $0x3d8] sm:$0xff]  }
  0xc7   : > { %3566 = vmatpush3.bf16.msra.mxu1 %v3774_v16  ;;  %3547 = vmatprep.subr.bf16.mxu0 %v3833_v1  ;;  %v2449_v16 = vshll.u32 %v2433_v9, 16 }
  0xc8   : > { %3567 = vmatprep.subr.bf16.mxu1 %v3833_v1 }
  0xca   : > { %3548 = vmatpush3.bf16.msra.mxu0 %v3775_v62  ;;  %v2291_v62 = vsel %vm4013_vm15, %v2284_v12, %v2289_v13 }
  0xcb   : > { %3568 = vmatpush3.bf16.msra.mxu1 %v3776_v2  ;;  %3573 = vmatprep.subr.bf16.mxu0 %v3833_v1  ;;  %v2451_v2 = vsel %vm4013_vm15, %v2444_v15, %v2449_v16 }
  0xcc   : > { %3593 = vmatprep.subr.bf16.mxu1 %v3833_v1 }
  0xcd   : > { %3550 = vmatmul.mubr.bf16.vlgmr.msra.gmra.mxu0 %v1749_v19  ;;  %v2309_v19 = vcombine.low %v4191_v8, %v2291_v62  ;;  %v3807_v8 = vld [vmem:[%s4563_s1 + $0x380] sm:$0xff]  }
  0xce   : > { %3570 = vmatmul.mubr.bf16.vlgmr.msra.gmra.mxu1 %v1909_v20  ;;  %3574 = vmatpush3.bf16.msra.mxu0 %v3777_v21  ;;  %v3805_v20 = vld [vmem:[%s4563_s1 + $0x388] sm:$0xff]   ;;  %v2469_v21 = vcombine.low %v4201_v11, %v2451_v2  ;;  %v3808_v11 = vld [vmem:[%s4563_s1 + $0x3c0] sm:$0xff]  }
  0xcf   : > { %3594 = vmatpush3.bf16.msra.mxu1 %v3778_v22  ;;  %3575 = vmatprep.subr.bf16.mxu0 %v3833_v1  ;;  %v3806_v22 = vld [vmem:[%s4563_s1 + $0x3c8] sm:$0xff]   ;;  %v2316_v57 = vrot.slane %v2309_v19, %v3943_v23 }
  0xd0   : > { %3595 = vmatprep.subr.bf16.mxu1 %v3833_v1  ;;  %3589 = vmatprep.mubr.msk.bf16.mxu0 %vm3834_vm0, %v3833_v1 }
  0xd1   : > { %3609 = vmatprep.mubr.msk.bf16.mxu1 %vm3834_vm0, %v3833_v1 }
  0xd2   : > { %3576 = vmatpush3.bf16.msra.mxu0 %v3779_v24  ;;  %v2476_v24 = vrot.slane %v2469_v21, %v3943_v23 }
  0xd3   : > { %3596 = vmatpush3.bf16.msra.mxu1 %v3780_v25  ;;  %3577 = vmatprep.subr.bf16.mxu0 %v3833_v1  ;;  %v2323_v25 = vrot.slane %v2316_v57, %v3943_v23 }
  0xd4   : > { %3597 = vmatprep.subr.bf16.mxu1 %v3833_v1 }
  0xd6   : > { %3578 = vmatpush3.bf16.msra.mxu0 %v3781_v26  ;;  %v2483_v26 = vrot.slane %v2476_v24, %v3943_v23 }
  0xd7   : > { %3598 = vmatpush3.bf16.msra.mxu1 %v3782_v27  ;;  %3579 = vmatprep.subr.bf16.mxu0 %v3833_v1 }
  0xd8   : > { %3599 = vmatprep.subr.bf16.mxu1 %v3833_v1 }
  0xda   : > { %3580 = vmatpush3.bf16.msra.mxu0 %v3783_v28 }
  0xdb   : > { %3600 = vmatpush3.bf16.msra.mxu1 %v3784_v29  ;;  %3581 = vmatprep.subr.bf16.mxu0 %v3833_v1 }
  0xdc   : > { %3601 = vmatprep.subr.bf16.mxu1 %v3833_v1 }
  0xde   : > { %3582 = vmatpush3.bf16.msra.mxu0 %v3785_v30 }
  0xdf   : > { %3602 = vmatpush3.bf16.msra.mxu1 %v3786_v31  ;;  %3583 = vmatprep.subr.bf16.mxu0 %v3833_v1 }
  0xe0   : > { %3603 = vmatprep.subr.bf16.mxu1 %v3833_v1 }
  0xe2   : > { %3584 = vmatpush3.bf16.msra.mxu0 %v3787_v32 }
  0xe3   : > { %3604 = vmatpush3.bf16.msra.mxu1 %v3788_v35  ;;  %3585 = vmatprep.subr.bf16.mxu0 %v3833_v1 }
  0xe4   : > { %3605 = vmatprep.subr.bf16.mxu1 %v3833_v1 }
  0xe6   : > { %3586 = vmatpush3.bf16.msra.mxu0 %v3789_v39 }
  0xe7   : > { %3606 = vmatpush3.bf16.msra.mxu1 %v3790_v41  ;;  %3587 = vmatprep.subr.bf16.mxu0 %v3833_v1 }
  0xe8   : > { %3607 = vmatprep.subr.bf16.mxu1 %v3833_v1 }
  0xea   : > { %3588 = vmatpush3.bf16.msra.mxu0 %v3791_v43 }
  0xeb   : > { %3608 = vmatpush3.bf16.msra.mxu1 %v3792_v45  ;;  %3613 = vmatprep.subr.bf16.mxu0 %v3833_v1 }
  0xec   : > { %3633 = vmatprep.subr.bf16.mxu1 %v3833_v1 }
  0xed   : > { %v405_v50 = vpop.f32.mrf.mxu0  ;;  %3590 = vmatmul.mubr.bf16.vlgmr.msra.gmra.mxu0 %v2036_v46 }
  0xee   : > { %v511_v51 = vpop.f32.mrf.mxu1  ;;  %3610 = vmatmul.mubr.bf16.vlgmr.msra.gmra.mxu1 %v2163_v47  ;;  %3614 = vmatpush3.bf16.msra.mxu0 %v3793_v48 }
  0xef   : > { %v4469_v53 = vadd.f32 %v511_v51, %v405_v50  ;;  %3634 = vmatpush3.bf16.msra.mxu1 %v3794_v49  ;;  %v3351_v54 = vpop.f32.mrf.mxu0  ;;  %3615 = vmatprep.subr.bf16.mxu0 %v3833_v1 }
  0xf0   : > { %v3371_v56 = vpop.f32.mrf.mxu1  ;;  %3635 = vmatprep.subr.bf16.mxu1 %v3833_v1  ;;  %3629 = vmatprep.mubr.msk.bf16.mxu0 %vm3834_vm0, %v3833_v1 }
  0xf1   : > { %v408_v58 = vpop.f32.mrf.mxu0  ;;  %3649 = vmatprep.mubr.msk.bf16.mxu1 %vm3834_vm0, %v3833_v1  ;;  %vm2576_vm0 = vcmask 1043456  }
  0xf2   : > { %v514_v59 = vpop.f32.mrf.mxu1  ;;  %3616 = vmatpush3.bf16.msra.mxu0 %v3795_v52 }
  0xf3   : > { %3636 = vmatpush3.bf16.msra.mxu1 %v3796_v55  ;;  %v3352_v61 = vpop.f32.mrf.mxu0  ;;  %3617 = vmatprep.subr.bf16.mxu0 %v3833_v1 }
  0xf4   : > { %v3372_v3 = vpop.f32.mrf.mxu1  ;;  %3637 = vmatprep.subr.bf16.mxu1 %v3833_v1 }
  0xf6   : > { %3618 = vmatpush3.bf16.msra.mxu0 %v3797_v60 }
  0xf7   : > { %3638 = vmatpush3.bf16.msra.mxu1 %v3798_v63  ;;  %3619 = vmatprep.subr.bf16.mxu0 %v3833_v1 }
  0xf8   : > { %3639 = vmatprep.subr.bf16.mxu1 %v3833_v1 }
  0xfa   : > { %3620 = vmatpush3.bf16.msra.mxu0 %v3799_v5 }
  0xfb   : > { %3640 = vmatpush3.bf16.msra.mxu1 %v3800_v7  ;;  %3621 = vmatprep.subr.bf16.mxu0 %v3833_v1 }
  0xfc   : > { %3641 = vmatprep.subr.bf16.mxu1 %v3833_v1 }
  0xfe   : > { %3622 = vmatpush3.bf16.msra.mxu0 %v3801_v10 }
  0xff   : > { %3642 = vmatpush3.bf16.msra.mxu1 %v3802_v14  ;;  %3623 = vmatprep.subr.bf16.mxu0 %v3833_v1 }
 0x100   : > { %3643 = vmatprep.subr.bf16.mxu1 %v3833_v1 }
 0x102   : > { %3624 = vmatpush3.bf16.msra.mxu0 %v3803_v17 }
 0x103   : > { %3644 = vmatpush3.bf16.msra.mxu1 %v3804_v18  ;;  %3625 = vmatprep.subr.bf16.mxu0 %v3833_v1 }
 0x104   : > { %3645 = vmatprep.subr.bf16.mxu1 %v3833_v1 }
 0x106   : > { %3626 = vmatpush3.bf16.msra.mxu0 %v3805_v20 }
 0x107   : > { %3646 = vmatpush3.bf16.msra.mxu1 %v3806_v22  ;;  %3627 = vmatprep.subr.bf16.mxu0 %v3833_v1 }
 0x108   : > { %3647 = vmatprep.subr.bf16.mxu1 %v3833_v1 }
 0x10a   : > { %3628 = vmatpush3.bf16.msra.mxu0 %v3807_v8 }
 0x10b   : > { %3648 = vmatpush3.bf16.msra.mxu1 %v3808_v11 }
 0x10d   : > { %v685_v27 = vpop.f32.mrf.mxu0  ;;  %3630 = vmatmul.mubr.bf16.vlgmr.msra.gmra.mxu0 %v2323_v25 }
 0x10e   : > { %v691_v28 = vadd.f32 %v685_v27, %v4469_v53  ;;  %v845_v29 = vpop.f32.mrf.mxu1  ;;  %3650 = vmatmul.mubr.bf16.vlgmr.msra.gmra.mxu1 %v2483_v26 }
 0x10f   : > { %v3391_v30 = vpop.f32.mrf.mxu0 }
 0x110   : > { %v851_v31 = vadd.f32 %v845_v29, %v691_v28  ;;  %v3411_v32 = vpop.f32.mrf.mxu1 }
 0x111   : > { %v688_v33 = vpop.f32.mrf.mxu0 }
 0x112   : > { %v848_v34 = vpop.f32.mrf.mxu1 }
 0x113   : > { %v3392_v35 = vpop.f32.mrf.mxu0 }
 0x114   : > { %v3412_v36 = vpop.f32.mrf.mxu1 }
 0x12d   : > { %v972_v1 = vpop.f32.mrf.mxu0 }
 0x12e   : > { %v978_v37 = vadd.f32 %v972_v1, %v851_v31  ;;  %v1099_v38 = vpop.f32.mrf.mxu1 }
 0x12f   : > { %v3431_v39 = vpop.f32.mrf.mxu0 }
 0x130   : > { %v1105_v40 = vadd.f32 %v1099_v38, %v978_v37  ;;  %v3451_v23 = vpop.f32.mrf.mxu1 }
 0x131   : > { %v975_v41 = vpop.f32.mrf.mxu0 }
 0x132   : > { %v1102_v42 = vpop.f32.mrf.mxu1 }
 0x133   : > { %v3432_v43 = vpop.f32.mrf.mxu0 }
 0x134   : > { %v3452_v44 = vpop.f32.mrf.mxu1 }
 0x14d   : > { %v1259_v45 = vpop.f32.mrf.mxu0 }
 0x14e   : > { %v1265_v46 = vadd.f32 %v1259_v45, %v1105_v40  ;;  %v1419_v47 = vpop.f32.mrf.mxu1 }
 0x14f   : > { %v3471_v48 = vpop.f32.mrf.mxu0 }
 0x150   : > { %v1425_v49 = vadd.f32 %v1419_v47, %v1265_v46  ;;  %v3491_v50 = vpop.f32.mrf.mxu1 }
 0x151   : > { %v1262_v51 = vpop.f32.mrf.mxu0 }
 0x152   : > { %v1422_v52 = vpop.f32.mrf.mxu1 }
 0x153   : > { %v3472_v53 = vpop.f32.mrf.mxu0 }
 0x154   : > { %v3492_v54 = vpop.f32.mrf.mxu1 }
 0x16d   : > { %v1546_v55 = vpop.f32.mrf.mxu0 }
 0x16e   : > { %v1552_v56 = vadd.f32 %v1546_v55, %v1425_v49  ;;  %v1673_v58 = vpop.f32.mrf.mxu1 }
 0x16f   : > { %v3511_v59 = vpop.f32.mrf.mxu0 }
 0x170   : > { %v1679_v60 = vadd.f32 %v1673_v58, %v1552_v56  ;;  %v3531_v61 = vpop.f32.mrf.mxu1 }
 0x171   : > { %v1549_v63 = vpop.f32.mrf.mxu0 }
 0x172   : > { %v1676_v0 = vpop.f32.mrf.mxu1 }
 0x173   : > { %v3512_v3 = vpop.f32.mrf.mxu0 }
 0x174   : > { %v3532_v4 = vpop.f32.mrf.mxu1 }
 0x18d   : > { %v1833_v5 = vpop.f32.mrf.mxu0 }
 0x18e   : > { %v1993_v6 = vpop.f32.mrf.mxu1  ;;  %v1839_v21 = vadd.f32 %v1833_v5, %v1679_v60 }
 0x18f   : > { %v3551_v7 = vpop.f32.mrf.mxu0 }
 0x190   : > { %v3571_v9 = vpop.f32.mrf.mxu1  ;;  %v1999_v22 = vadd.f32 %v1993_v6, %v1839_v21 }
 0x191   : > { %v1836_v10 = vpop.f32.mrf.mxu0 }
 0x192   : > { %v1996_v12 = vpop.f32.mrf.mxu1 }
 0x193   : > { %v3552_v13 = vpop.f32.mrf.mxu0 }
 0x194   : > { %v3572_v14 = vpop.f32.mrf.mxu1 }
 0x1ad   : > { %v2120_v15 = vpop.f32.mrf.mxu0 }
 0x1ae   : > { %v2247_v16 = vpop.f32.mrf.mxu1  ;;  %v2126_v57 = vadd.f32 %v2120_v15, %v1999_v22 }
 0x1af   : > { %v3591_v17 = vpop.f32.mrf.mxu0 }
 0x1b0   : > { %v3611_v62 = vpop.f32.mrf.mxu1  ;;  %v2253_v8 = vadd.f32 %v2247_v16, %v2126_v57 }
 0x1b1   : > { %v2123_v18 = vpop.f32.mrf.mxu0 }
 0x1b2   : > { %v2250_v2 = vpop.f32.mrf.mxu1 }
 0x1b3   : > { %v3592_v19 = vpop.f32.mrf.mxu0 }
 0x1b4   : > { %v3612_v20 = vpop.f32.mrf.mxu1 }
 0x1cd   : > { %v2407_v24 = vpop.f32.mrf.mxu0 }
 0x1ce   : > { %v2413_v11 = vadd.f32 %v2407_v24, %v2253_v8  ;;  %v2567_v25 = vpop.f32.mrf.mxu1 }
 0x1cf   : > { %v3631_v26 = vpop.f32.mrf.mxu0 }
 0x1d0   : > { %v2573_v27 = vadd.f32 %v2567_v25, %v2413_v11  ;;  %v3651_v28 = vpop.f32.mrf.mxu1 }
 0x1d1   : > { %v2410_v29 = vpop.f32.mrf.mxu0 }
 0x1d2   : > { %v2574_v30 = vpack.c.bf16 %v2573_v27, %v2573_v27  ;;  %v2577_v31 = vsel %vm2576_vm0, %v2573_v27, 0.0  ;;  %v2585_v32 = vmul.f32 %v2573_v27, %v2573_v27  ;;  %v2570_v33 = vpop.f32.mrf.mxu1 }
 0x1d3   : > { %v2578_v34 = vrot.slane %v2577_v31, 4  ;;  %v3632_v35 = vpop.f32.mrf.mxu0 }
 0x1d4   : > { %2575 = vst [vmem:[%s253_s28] sm:$0x3] %v2574_v30  ;;  %v2586_v36 = vsel %vm2576_vm0, %v2585_v32, 0.0  ;;  %v3652_v1 = vpop.f32.mrf.mxu1 }
 0x1d5   : > { %v2579_v37 = vadd.f32 %v2578_v34, %v2577_v31  ;;  %v2587_v38 = vrot.slane %v2586_v36, 4 }
 0x1d7   : > { %v2580_v39 = vrot.slane %v2579_v37, 2  ;;  %v2588_v40 = vadd.f32 %v2587_v38, %v2586_v36 }
 0x1d9   : > { %v2581_v23 = vadd.f32 %v2580_v39, %v2579_v37  ;;  %v2589_v41 = vrot.slane %v2588_v40, 2 }
 0x1db   : > { %v2582_v42 = vrot.slane %v2581_v23, 1  ;;  %v2590_v43 = vadd.f32 %v2589_v41, %v2588_v40 }
 0x1dd   : > { %v2583_v44 = vadd.f32 %v2582_v42, %v2581_v23  ;;  %v2591_v45 = vrot.slane %v2590_v43, 1 }
 0x1df   : > { %2584 = vst [vmem:[%s259_s5] sm:$0x1] %v2583_v44  ;;  %v2592_v46 = vadd.f32 %v2591_v45, %v2590_v43 }
 0x1e1   : > { %2593 = vst [vmem:[%s265_s7] sm:$0x1] %v2592_v46 }
 0x1e2 PF: > { %s15_s17 = sadd.s32 1, %s3831_s17   ;;  %s4569_s15 = smov %s3827_s16 }
 0x1e3   : > { %p12_p5 = scmp.ge.s32.totalorder %s15_s17, 4   ;;  %s4570_s16 = smov %s4572_s18 }
 0x1e5   :  { %14 = sbr.rel (!%p12_p5) target bundleno = 2 (0x2), region = 107 }

// kernel: discriminator3_forward.4
= control target key start
LH: loop header
LB: loop body
LE: loop exit
PB: predicated region body
PF: predicated region fallthrough
CT: control target
= control target key end

     0   :  { %s5578_s15 = smov 0   ;;  %s5580_s16 = smov 0   ;;  %s6465_s0 = inlined_call_operand.vmem [shape: bf16[2,4,9,9,128], index: 0, kind: input, shape index: {}]   ;;  %s6466_s1 = inlined_call_operand.vmem [shape: bf16[16,128,128], index: 1, kind: input, shape index: {}]   ;;  %s6467_s2 = inlined_call_operand.vmem [shape: bf16[2,64,128], index: 2, kind: output, shape index: {0}]   ;;  %s6468_s3 = inlined_call_operand.vmem [shape: f32[2,1,128], index: 3, kind: output, shape index: {1}]   ;;  %s6469_s4 = inlined_call_operand.vmem [shape: f32[2,1,128], index: 4, kind: output, shape index: {2}]  }
   0x1   :  { %s5582_s17 = smov 0  }
   0x2 LB: > { %s27_s18 = sadd.s32 1, %s5547_s16  ;;  %p4122_p0 = scmp.ge.s32.totalorder %s5551_s17, 1  ;;  %s5551_s17 = sphi %s5582_s17, %s15_s17   ;;  %s5547_s16 = sphi %s5580_s16, %s6491_s16   ;;  %s5543_s15 = sphi %s5578_s15, %s6490_s15  }
   0x3   : > { %p29_p1 = scmp.ge.s32.totalorder %s27_s18, 2  ;;  %p194_p2 = scmp.lt.s32.totalorder %s5551_s17, 3 }
   0x5   : > { %s6493_s18 = smov (%p29_p1, %s27_s18), 0  ;;  %p195_p3 = pnand %p4122_p0, %p194_p2 }
   0x7   : > { %198 = sbr.rel (%p195_p3) target bundleno = 514 (0x202), region = 28 }
   0xc   : > { %v5369_v0 = vld [vmem:[%s6466_s1 + $0x78] sm:$0xff]   ;;  %p239_p4 = scmp.lt.s32.totalorder %s5543_s15, 1  ;;  %v5371_v2 = vld [vmem:[%s6466_s1 + $0x70] sm:$0xff]   ;;  %v5373_v4 = vld [vmem:[%s6466_s1 + $0x68] sm:$0xff]   ;;  %vm609_vm0 = vsmask.f32 3328 }
   0xd   : > { %v5370_v1 = vld [vmem:[%s6466_s1 + $0x38] sm:$0xff]   ;;  %4960 = vmatprep.subr.bf16.mxu0 %v5369_v0  ;;  %v5372_v3 = vld [vmem:[%s6466_s1 + $0x30] sm:$0xff]   ;;  %v5374_v5 = vld [vmem:[%s6466_s1 + $0x28] sm:$0xff]   ;;  %vm610_vm1 = vsmask.f32 7440 }
   0xe   : > { %4984 = vmatprep.subr.bf16.mxu1 %v5370_v1  ;;  %4961 = vmatpush3.bf16.msra.mxu0 %v5369_v0  ;;  %s6495_s15 = smov (!%p239_p4, %s5543_s15), 1  ;;  %v5375_v6 = vld [vmem:[%s6466_s1 + $0x60] sm:$0xff]   ;;  %v5377_v8 = vld [vmem:[%s6466_s1 + $0x58] sm:$0xff]   ;;  %v5379_v10 = vld [vmem:[%s6466_s1 + $0x50] sm:$0xff]  }
   0xf   : > { %4985 = vmatpush3.bf16.msra.mxu1 %v5370_v1  ;;  %4962 = vmatprep.subr.bf16.mxu0 %v5371_v2  ;;  %v5376_v7 = vld [vmem:[%s6466_s1 + $0x20] sm:$0xff]   ;;  %s5344_s9 = smul.u32 288, %s6495_s15  ;;  %v5378_v9 = vld [vmem:[%s6466_s1 + $0x18] sm:$0xff]   ;;  %v5380_v11 = vld [vmem:[%s6466_s1 + $0x10] sm:$0xff]   ;;  %s261_s5 = scalar_lea.vmem %s6468_s3, %s6495_s15 }
  0x10   : > { %4986 = vmatprep.subr.bf16.mxu1 %v5372_v3  ;;  %v5381_v14 = vld [vmem:[%s6466_s1 + $0x48] sm:$0xff]   ;;  %v5383_v16 = vld [vmem:[%s6466_s1 + $0x40] sm:$0xff]   ;;  %v5389_v19 = vld [vmem:[%s6466_s1 + $0xb8] sm:$0xff]   ;;  %s267_s8 = scalar_lea.vmem %s6469_s4, %s6495_s15 }
  0x11   : > { %s5632_s20 = scalar_lea.vmem %s6465_s0, %s5344_s9  ;;  %v5382_v15 = vld [vmem:[%s6466_s1 + $0x8] sm:$0xff]   ;;  %v5384_v17 = vld [vmem:[%s6466_s1] sm:$0xff]   ;;  %v5390_v20 = vld [vmem:[%s6466_s1 + $0xf8] sm:$0xff]  }
  0x12   : > { %4963 = vmatpush3.bf16.msra.mxu0 %v5371_v2  ;;  %v5385_v12 = vld [vmem:[%s5632_s20 + $0x48] ss:$8 sps:$4 sm:$0xff]   ;;  %v5387_v18 = vld [vmem:[%s5632_s20 + $0x58] ss:$8 sps:$4 sm:$0xff]   ;;  %v594_v33 = vld [vmem:[%s5632_s20 + $0x4] sm:$0x1] }
  0x13   : > { %4987 = vmatpush3.bf16.msra.mxu1 %v5372_v3  ;;  %4964 = vmatprep.subr.bf16.mxu0 %v5373_v4  ;;  %v5386_v13 = vld [vmem:[%s5632_s20] ss:$8 sps:$4 sm:$0xff]   ;;  %v5388_v21 = vld [vmem:[%s5632_s20 + $0x10] ss:$8 sps:$4 sm:$0xff]   ;;  %v596_v35 = vld [vmem:[%s5632_s20 + $0xc] sm:$0x1] }
  0x14   : > { %4988 = vmatprep.subr.bf16.mxu1 %v5374_v5  ;;  %4976 = vmatprep.mubr.bf16.mxu0 %v5385_v12  ;;  %v5391_v22 = vld [vmem:[%s6466_s1 + $0xb0] sm:$0xff]   ;;  %v5400_v25 = vld [vmem:[%s5632_s20 + $0x20] ss:$8 sps:$4 sm:$0xff]   ;;  %v5397_v36 = vld [vmem:[%s6466_s1 + $0x98] sm:$0xff]   ;;  %v622_v39 = vshll.u32 %v594_v33, 16  ;;  %v636_v43 = vshll.u32 %v596_v35, 16 }
  0x15   : > { %5000 = vmatprep.mubr.bf16.mxu1 %v5386_v13  ;;  %v5392_v23 = vld [vmem:[%s6466_s1 + $0xf0] sm:$0xff]   ;;  %v5393_v26 = vld [vmem:[%s6466_s1 + $0xa8] sm:$0xff]   ;;  %v5395_v28 = vld [vmem:[%s6466_s1 + $0xa0] sm:$0xff]  }
  0x16   : > { %4965 = vmatpush3.bf16.msra.mxu0 %v5373_v4  ;;  %v5399_v24 = vld [vmem:[%s5632_s20 + $0x68] ss:$8 sps:$4 sm:$0xff]   ;;  %v5401_v29 = vld [vmem:[%s5632_s20 + $0x78] ss:$8 sps:$4 sm:$0xff]   ;;  %v4203_v44 = vld [vmem:[%s5632_s20 + $0x4c] sm:$0x1] }
  0x17   : > { %4989 = vmatpush3.bf16.msra.mxu1 %v5374_v5  ;;  %4966 = vmatprep.subr.bf16.mxu0 %v5375_v6  ;;  %v5394_v27 = vld [vmem:[%s6466_s1 + $0xe8] sm:$0xff]   ;;  %v5396_v30 = vld [vmem:[%s6466_s1 + $0xe0] sm:$0xff]   ;;  %v5402_v31 = vld [vmem:[%s5632_s20 + $0x30] ss:$8 sps:$4 sm:$0xff]   ;;  %v624_v48 = vrot.slane %v622_v39, 5  ;;  %v638_v53 = vrot.slane %v636_v43, 5 }
  0x18   : > { %4990 = vmatprep.subr.bf16.mxu1 %v5376_v7  ;;  %v593_v32 = vld [vmem:[%s5632_s20] sm:$0xf]  ;;  %v595_v34 = vld [vmem:[%s5632_s20 + $0x8] sm:$0xf]  ;;  %v4204_v45 = vld [vmem:[%s5632_s20 + $0x50] sm:$0xf] }
  0x19   : > { %v613_v37 = vshrl.u32 %v593_v32, 16  ;;  %v616_v38 = vshll.u32 %v593_v32, 16  ;;  %v627_v40 = vshrl.u32 %v595_v34, 16  ;;  %v4202_v41 = vld [vmem:[%s5632_s20 + $0x48] sm:$0xf]  ;;  %v630_v42 = vshll.u32 %v595_v34, 16  ;;  %vm5704_vm2 = vmor %vm609_vm0, %vm610_vm1 }
  0x1a   : > { %4967 = vmatpush3.bf16.msra.mxu0 %v5375_v6  ;;  %v4205_v50 = vld [vmem:[%s5632_s20 + $0x54] sm:$0x1]  ;;  %v5398_v51 = vld [vmem:[%s6466_s1 + $0xd8] sm:$0xff]   ;;  %v895_v54 = vshrl.u32 %v4202_v41, 16  ;;  %v898_v55 = vshll.u32 %v4202_v41, 16  ;;  %v904_v57 = vshll.u32 %v4203_v44, 16 }
  0x1b   : > { %4991 = vmatpush3.bf16.msra.mxu1 %v5376_v7  ;;  %4968 = vmatprep.subr.bf16.mxu0 %v5377_v8  ;;  %v615_v46 = vrot.slane %v613_v37, 4  ;;  %v618_v47 = vrot.slane %v616_v38, 5  ;;  %v629_v49 = vrot.slane %v627_v40, 4  ;;  %v632_v52 = vrot.slane %v630_v42, 5  ;;  %v597_v60 = vld [vmem:[%s5632_s20 + $0x10] sm:$0xf] }
  0x1c   : > { %4992 = vmatprep.subr.bf16.mxu1 %v5378_v9  ;;  %v909_v58 = vshrl.u32 %v4204_v45, 16  ;;  %v912_v59 = vshll.u32 %v4204_v45, 16  ;;  %v5403_v61 = vld [vmem:[%s6466_s1 + $0x90] sm:$0xff]   ;;  %v897_v0 = vrot.slane %v895_v54, 4  ;;  %v900_v1 = vrot.slane %v898_v55, 5  ;;  %v5406_v32 = vld [vmem:[%s6466_s1 + $0xc8] sm:$0xff]  }
  0x1d   : > { %v619_v56 = vor.u32 %v618_v47, %v615_v46  ;;  %v633_v63 = vor.u32 %v632_v52, %v629_v49  ;;  %v918_v2 = vshll.u32 %v4205_v50, 16  ;;  %v598_v3 = vld [vmem:[%s5632_s20 + $0x14] sm:$0x1]  ;;  %v906_v5 = vrot.slane %v904_v57, 5  ;;  %v600_v13 = vld [vmem:[%s5632_s20 + $0x1c] sm:$0x1] }
  0x1e   : > { %4969 = vmatpush3.bf16.msra.mxu0 %v5377_v8  ;;  %v911_v6 = vrot.slane %v909_v58, 4  ;;  %v914_v7 = vrot.slane %v912_v59, 5  ;;  %v599_v8 = vld [vmem:[%s5632_s20 + $0x18] sm:$0xf]  ;;  %v5407_v41 = vld [vmem:[%s6466_s1 + $0x80] sm:$0xff]  }
  0x1f   : > { %4993 = vmatpush3.bf16.msra.mxu1 %v5378_v9  ;;  %4970 = vmatprep.subr.bf16.mxu0 %v5379_v10  ;;  %v620_v4 = vrot.slane %v619_v56, 4  ;;  %v5404_v9 = vld [vmem:[%s6466_s1 + $0xd0] sm:$0xff]   ;;  %v920_v12 = vrot.slane %v918_v2, 5  ;;  %v658_v35 = vshll.u32 %v599_v8, 16  ;;  %v5408_v49 = vld [vmem:[%s6466_s1 + $0xc0] sm:$0xff]   ;;  %v5409_v58 = vld [vmem:[%s6466_s1 + $0x138] sm:$0xff]  }
  0x20   : > { %4994 = vmatprep.subr.bf16.mxu1 %v5380_v11  ;;  %v601_v59 = vld [vmem:[%s5632_s20 + $0x20] sm:$0xf] }
  0x21   : > { %v660_v43 = vrot.slane %v658_v35, 5 }
  0x22   : > { %4971 = vmatpush3.bf16.msra.mxu0 %v5379_v10  ;;  %v634_v10 = vrot.slane %v633_v63, 4 }
  0x23   : > { %4995 = vmatpush3.bf16.msra.mxu1 %v5380_v11  ;;  %4972 = vmatprep.subr.bf16.mxu0 %v5381_v14  ;;  %v901_v11 = vor.u32 %v900_v1, %v897_v0  ;;  %v602_v0 = vld [vmem:[%s5632_s20 + $0x24] sm:$0x1]  ;;  %v669_v1 = vshrl.u32 %v601_v59, 16 }
  0x24   : > { %4996 = vmatprep.subr.bf16.mxu1 %v5382_v15 }
  0x26   : > { %4973 = vmatpush3.bf16.msra.mxu0 %v5381_v14  ;;  %v641_v14 = vshrl.u32 %v597_v60, 16 }
  0x27   : > { %4997 = vmatpush3.bf16.msra.mxu1 %v5382_v15  ;;  %4974 = vmatprep.subr.bf16.mxu0 %v5383_v16  ;;  %v625_v15 = vsel %vm5704_vm2, %v620_v4, %v624_v48  ;;  %v604_v4 = vld [vmem:[%s5632_s20 + $0x2c] sm:$0x1] }
  0x28   : > { %4998 = vmatprep.subr.bf16.mxu1 %v5384_v17 }
  0x2a   : > { %4975 = vmatpush3.bf16.msra.mxu0 %v5383_v16  ;;  %v915_v16 = vor.u32 %v914_v7, %v911_v6 }
  0x2b   : > { %4999 = vmatpush3.bf16.msra.mxu1 %v5384_v17  ;;  %5008 = vmatprep.subr.bf16.mxu0 %v5389_v19  ;;  %v644_v17 = vshll.u32 %v597_v60, 16 }
  0x2c   : > { %5032 = vmatprep.subr.bf16.mxu1 %v5390_v20 }
  0x2d   : > { %4977 = vmatmul.mubr.bf16.vlgmr.msra.gmra.mxu0 %v5387_v18  ;;  %v650_v18 = vshll.u32 %v598_v3, 16  ;;  %v603_v3 = vld [vmem:[%s5632_s20 + $0x28] sm:$0xf] }
  0x2e   : > { %5001 = vmatmul.mubr.bf16.vlgmr.msra.gmra.mxu1 %v5388_v21  ;;  %5009 = vmatpush3.bf16.msra.mxu0 %v5389_v19  ;;  %v4206_v19 = vld [vmem:[%s5632_s20 + $0x58] sm:$0xf]  ;;  %v639_v21 = vsel %vm5704_vm2, %v634_v10, %v638_v53  ;;  %v678_v10 = vshll.u32 %v602_v0, 16 }
  0x2f   : > { %5033 = vmatpush3.bf16.msra.mxu1 %v5390_v20  ;;  %5010 = vmatprep.subr.bf16.mxu0 %v5391_v22  ;;  %v4207_v20 = vld [vmem:[%s5632_s20 + $0x5c] sm:$0x1]  ;;  %v923_v39 = vshrl.u32 %v4206_v19, 16  ;;  %v926_v40 = vshll.u32 %v4206_v19, 16 }
  0x30   : > { %5034 = vmatprep.subr.bf16.mxu1 %v5392_v23  ;;  %4980 = vmatprep.mubr.bf16.mxu0 %v5399_v24  ;;  %v655_v24 = vshrl.u32 %v599_v8, 16  ;;  %v932_v44 = vshll.u32 %v4207_v20, 16  ;;  %v5410_v8 = vld [vmem:[%s6466_s1 + $0x178] sm:$0xff]   ;;  %v680_v19 = vrot.slane %v678_v10, 5  ;;  %v686_v20 = vshll.u32 %v603_v3, 16 }
  0x31   : > { %5004 = vmatprep.mubr.bf16.mxu1 %v5400_v25  ;;  %v4208_v25 = vld [vmem:[%s5632_s20 + $0x60] sm:$0xf]  ;;  %v925_v46 = vrot.slane %v923_v39, 4  ;;  %v928_v47 = vrot.slane %v926_v40, 5 }
  0x32   : > { %5011 = vmatpush3.bf16.msra.mxu0 %v5391_v22  ;;  %v902_v22 = vrot.slane %v901_v11, 4  ;;  %v657_v34 = vrot.slane %v655_v24, 4  ;;  %v937_v48 = vshrl.u32 %v4208_v25, 16  ;;  %v940_v52 = vshll.u32 %v4208_v25, 16  ;;  %v605_v11 = vld [vmem:[%s5632_s20 + $0x30] sm:$0xf] }
  0x33   : > { %5035 = vmatpush3.bf16.msra.mxu1 %v5392_v23  ;;  %5012 = vmatprep.subr.bf16.mxu0 %v5393_v26  ;;  %v643_v23 = vrot.slane %v641_v14, 4  ;;  %v929_v55 = vor.u32 %v928_v47, %v925_v46  ;;  %v934_v56 = vrot.slane %v932_v44, 5  ;;  %v4211_v46 = vld [vmem:[%s5632_s20 + $0x6c] sm:$0x1]  ;;  %v4212_v47 = vld [vmem:[%s5632_s20 + $0x70] sm:$0xf] }
  0x34   : > { %5036 = vmatprep.subr.bf16.mxu1 %v5394_v27  ;;  %v907_v33 = vsel %vm5704_vm2, %v902_v22, %v906_v5  ;;  %v661_v50 = vor.u32 %v660_v43, %v657_v34  ;;  %v939_v57 = vrot.slane %v937_v48, 4  ;;  %v672_v5 = vshll.u32 %v601_v59, 16  ;;  %v608_v22 = vld [vmem:[%s5632_s20 + $0x3c] sm:$0x1]  ;;  %v5415_v59 = vld [vmem:[%s6466_s1 + $0x120] sm:$0xff]  }
  0x35   : > { %4981 = vmatmul.mubr.bf16.gmra.mxu0 %v5401_v29  ;;  %v646_v29 = vrot.slane %v644_v17, 5  ;;  %v930_v2 = vrot.slane %v929_v55, 4  ;;  %v607_v17 = vld [vmem:[%s5632_s20 + $0x38] sm:$0xf]  ;;  %v965_v0 = vshrl.u32 %v4212_v47, 16 }
  0x36   : > { %5013 = vmatpush3.bf16.msra.mxu0 %v5393_v26  ;;  %5005 = vmatmul.mubr.bf16.gmra.mxu1 %v5402_v31  ;;  %v5405_v26 = vld [vmem:[%s6466_s1 + $0x88] sm:$0xff]   ;;  %v4209_v31 = vld [vmem:[%s5632_s20 + $0x64] sm:$0x1]  ;;  %v662_v60 = vrot.slane %v661_v50, 4  ;;  %v674_v14 = vrot.slane %v672_v5, 5  ;;  %v711_v39 = vshrl.u32 %v607_v17, 16 }
  0x37   : > { %5037 = vmatpush3.bf16.msra.mxu1 %v5394_v27  ;;  %5014 = vmatprep.subr.bf16.mxu0 %v5395_v28  ;;  %v4190_v27 = vcombine.low %v625_v15, %v639_v21  ;;  %v647_v38 = vor.u32 %v646_v29, %v643_v23  ;;  %v946_v53 = vshll.u32 %v4209_v31, 16  ;;  %v683_v15 = vshrl.u32 %v603_v3, 16  ;;  %v5411_v23 = vld [vmem:[%s6466_s1 + $0x130] sm:$0xff]  }
  0x38   : > { %5038 = vmatprep.subr.bf16.mxu1 %v5396_v30  ;;  %v692_v21 = vshll.u32 %v604_v4, 16  ;;  %v688_v29 = vrot.slane %v686_v20, 5  ;;  %v714_v40 = vshll.u32 %v607_v17, 16  ;;  %v713_v50 = vrot.slane %v711_v39, 4 }
  0x39   : > { %5024 = vmatprep.mubr.bf16.mxu0 %v4190_v27  ;;  %v648_v45 = vrot.slane %v647_v38, 4  ;;  %v948_v63 = vrot.slane %v946_v53, 5  ;;  %v685_v25 = vrot.slane %v683_v15, 4  ;;  %v700_v27 = vshll.u32 %v605_v11, 16 }
  0x3a   : > { %5015 = vmatpush3.bf16.msra.mxu0 %v5395_v28  ;;  %v916_v28 = vrot.slane %v915_v16, 4  ;;  %v606_v16 = vld [vmem:[%s5632_s20 + $0x34] sm:$0x1]  ;;  %v967_v10 = vrot.slane %v965_v0, 4  ;;  %v5436_v0 = vld [vmem:[%s6466_s1 + $0x1e8] sm:$0xff]  }
  0x3b   : > { %5039 = vmatpush3.bf16.msra.mxu1 %v5396_v30  ;;  %5016 = vmatprep.subr.bf16.mxu0 %v5397_v36  ;;  %v652_v30 = vrot.slane %v650_v18, 5  ;;  %v706_v31 = vshll.u32 %v606_v16, 16 }
  0x3c   : > { %5040 = vmatprep.subr.bf16.mxu1 %v5398_v51  ;;  %v921_v37 = vsel %vm5704_vm2, %v916_v28, %v920_v12 }
  0x3d   : > { %v4234_v42 = vcombine.low %v907_v33, %v921_v37  ;;  %v653_v54 = vsel %vm5704_vm2, %v648_v45, %v652_v30  ;;  %v694_v30 = vrot.slane %v692_v21, 5  ;;  %v5412_v33 = vld [vmem:[%s6466_s1 + $0x170] sm:$0xff]   ;;  %v689_v37 = vor.u32 %v688_v29, %v685_v25  ;;  %v5418_v29 = vld [vmem:[%s6466_s1 + $0x158] sm:$0xff]  }
  0x3e   : > { %5017 = vmatpush3.bf16.msra.mxu0 %v5397_v36  ;;  %v664_v36 = vshll.u32 %v600_v13, 16  ;;  %v935_v13 = vsel %vm5704_vm2, %v930_v2, %v934_v56  ;;  %v708_v38 = vrot.slane %v706_v31, 5  ;;  %v720_v45 = vshll.u32 %v608_v22, 16  ;;  %v4213_v56 = vld [vmem:[%s5632_s20 + $0x74] sm:$0x1]  ;;  %v5417_v22 = vld [vmem:[%s6466_s1 + $0x118] sm:$0xff]  }
  0x3f   : > { %5041 = vmatpush3.bf16.msra.mxu1 %v5398_v51  ;;  %5018 = vmatprep.subr.bf16.mxu0 %v5403_v61  ;;  %v4215_v2 = vld [vmem:[%s5632_s20 + $0x7c] sm:$0x1] }
  0x40   : > { %5042 = vmatprep.subr.bf16.mxu1 %v5404_v9  ;;  %5048 = vmatprep.mubr.bf16.mxu1 %v4234_v42  ;;  %v666_v51 = vrot.slane %v664_v36, 5  ;;  %v702_v36 = vrot.slane %v700_v27, 5  ;;  %v4210_v42 = vld [vmem:[%s5632_s20 + $0x68] sm:$0xf]  ;;  %v722_v55 = vrot.slane %v720_v45, 5  ;;  %v988_v17 = vshll.u32 %v4215_v2, 16 }
  0x41   : > { %v951_v48 = vshrl.u32 %v4210_v42, 16  ;;  %v954_v53 = vshll.u32 %v4210_v42, 16  ;;  %v5421_v45 = vld [vmem:[%s6466_s1 + $0x108] sm:$0xff]   ;;  %v5439_v2 = vld [vmem:[%s6466_s1 + $0x1a0] sm:$0xff]  }
  0x42   : > { %5019 = vmatpush3.bf16.msra.mxu0 %v5403_v61  ;;  %v942_v61 = vrot.slane %v940_v52, 5  ;;  %v667_v6 = vsel %vm5704_vm2, %v662_v60, %v666_v51  ;;  %v716_v51 = vrot.slane %v714_v40, 5  ;;  %v5414_v52 = vld [vmem:[%s6466_s1 + $0x168] sm:$0xff]   ;;  %v5420_v40 = vld [vmem:[%s6466_s1 + $0x150] sm:$0xff]  }
  0x43   : > { %5043 = vmatpush3.bf16.msra.mxu1 %v5404_v9  ;;  %5020 = vmatprep.subr.bf16.mxu0 %v5405_v26  ;;  %v671_v9 = vrot.slane %v669_v1, 4  ;;  %v4191_v12 = vcombine.low %v653_v54, %v667_v6  ;;  %v4214_v1 = vld [vmem:[%s5632_s20 + $0x78] sm:$0xf]  ;;  %v968_v6 = vshll.u32 %v4212_v47, 16 }
  0x44   : > { %5044 = vmatprep.subr.bf16.mxu1 %v5406_v32  ;;  %v943_v7 = vor.u32 %v942_v61, %v939_v57  ;;  %v953_v57 = vrot.slane %v951_v48, 4  ;;  %v717_v61 = vor.u32 %v716_v51, %v713_v50  ;;  %v979_v15 = vshrl.u32 %v4214_v1, 16  ;;  %v5426_v48 = vld [vmem:[%s5632_s20 + $0xd8] ss:$8 sps:$4 sm:$0xff]   ;;  %v5422_v50 = vld [vmem:[%s6466_s1 + $0x148] sm:$0xff]  }
  0x45   : > { %v675_v24 = vor.u32 %v674_v14, %v671_v9  ;;  %v970_v14 = vrot.slane %v968_v6, 5  ;;  %v982_v16 = vshll.u32 %v4214_v1, 16  ;;  %v5423_v51 = vld [vmem:[%s6466_s1 + $0x100] sm:$0xff]   ;;  %v5438_v1 = vld [vmem:[%s5632_s20 + $0x108] ss:$8 sps:$4 sm:$0xff]  }
  0x46   : > { %5021 = vmatpush3.bf16.msra.mxu0 %v5405_v26  ;;  %v944_v18 = vrot.slane %v943_v7, 4  ;;  %v697_v26 = vshrl.u32 %v605_v11, 16  ;;  %v4216_v7 = vld [vmem:[%s5632_s20 + $0x80] sm:$0xf]  ;;  %v974_v11 = vshll.u32 %v4213_v56, 16  ;;  %v981_v25 = vrot.slane %v979_v15, 4 }
  0x47   : > { %5045 = vmatpush3.bf16.msra.mxu1 %v5406_v32  ;;  %5022 = vmatprep.subr.bf16.mxu0 %v5407_v41  ;;  %v676_v34 = vrot.slane %v675_v24, 4  ;;  %v993_v21 = vshrl.u32 %v4216_v7, 16  ;;  %v971_v24 = vor.u32 %v970_v14, %v967_v10  ;;  %v5428_v56 = vld [vmem:[%s5632_s20 + $0xe8] ss:$8 sps:$4 sm:$0xff]   ;;  %v4319_v6 = vld [vmem:[%s5632_s20 + $0x94] sm:$0x1] }
  0x48   : > { %5046 = vmatprep.subr.bf16.mxu1 %v5408_v49  ;;  %v949_v28 = vsel %vm5704_vm2, %v944_v18, %v948_v63  ;;  %v699_v35 = vrot.slane %v697_v26, 4  ;;  %v956_v63 = vrot.slane %v954_v53, 5  ;;  %v976_v20 = vrot.slane %v974_v11, 5  ;;  %v5429_v53 = vld [vmem:[%s6466_s1 + $0x1b8] sm:$0xff]  }
  0x49   : > { %v4235_v32 = vcombine.low %v935_v13, %v949_v28  ;;  %v681_v43 = vsel %vm5704_vm2, %v676_v34, %v680_v19  ;;  %v5416_v13 = vld [vmem:[%s6466_s1 + $0x160] sm:$0xff]   ;;  %v984_v26 = vrot.slane %v982_v16, 5  ;;  %v995_v27 = vrot.slane %v993_v21, 4  ;;  %v5419_v34 = vld [vmem:[%s6466_s1 + $0x110] sm:$0xff]   ;;  %v4362_v16 = vld [vmem:[%s5632_s20 + $0xd8] sm:$0xf] }
  0x4a   : > { %5023 = vmatpush3.bf16.msra.mxu0 %v5407_v41  ;;  %v5413_v41 = vld [vmem:[%s6466_s1 + $0x128] sm:$0xff]   ;;  %v703_v44 = vor.u32 %v702_v36, %v699_v35  ;;  %v957_v9 = vor.u32 %v956_v63, %v953_v57  ;;  %v996_v28 = vshll.u32 %v4216_v7, 16  ;;  %v972_v31 = vrot.slane %v971_v24, 4  ;;  %v5433_v57 = vld [vmem:[%s5632_s20 + $0xb0] ss:$8 sps:$4 sm:$0xff]  }
  0x4b   : > { %5047 = vmatpush3.bf16.msra.mxu1 %v5408_v49  ;;  %5056 = vmatprep.subr.bf16.mxu0 %v5409_v58  ;;  %v690_v49 = vrot.slane %v689_v37, 4  ;;  %v990_v35 = vrot.slane %v988_v17, 5  ;;  %v5434_v63 = vld [vmem:[%s5632_s20 + $0xc0] ss:$8 sps:$4 sm:$0xff]   ;;  %v4320_v7 = vld [vmem:[%s5632_s20 + $0x98] sm:$0xf] }
  0x4c   : > { %5080 = vmatprep.subr.bf16.mxu1 %v5410_v8  ;;  %v704_v54 = vrot.slane %v703_v44, 4  ;;  %v958_v19 = vrot.slane %v957_v9, 4  ;;  %v998_v36 = vrot.slane %v996_v28, 5  ;;  %v977_v37 = vsel %vm5704_vm2, %v972_v31, %v976_v20  ;;  %v4321_v9 = vld [vmem:[%s5632_s20 + $0x9c] sm:$0x1]  ;;  %v5443_v28 = vld [vmem:[%s6466_s1 + $0x190] sm:$0xff]  }
  0x4d   : > { %5025 = vmatmul.mubr.bf16.vlgmr.msra.gmra.mxu0 %v4191_v12  ;;  %v695_v60 = vsel %vm5704_vm2, %v690_v49, %v694_v30  ;;  %v4217_v12 = vld [vmem:[%s5632_s20 + $0x84] sm:$0x1]  ;;  %v1536_v14 = vshll.u32 %v4320_v7, 16  ;;  %v1542_v15 = vshll.u32 %v4321_v9, 16  ;;  %v4363_v17 = vld [vmem:[%s5632_s20 + $0xdc] sm:$0x1] }
  0x4e   : > { %5057 = vmatpush3.bf16.msra.mxu0 %v5409_v58  ;;  %5049 = vmatmul.mubr.bf16.vlgmr.msra.gmra.mxu1 %v4235_v32  ;;  %v960_v58 = vshll.u32 %v4211_v46, 16  ;;  %v4192_v3 = vcombine.low %v681_v43, %v695_v60  ;;  %v709_v4 = vsel %vm5704_vm2, %v704_v54, %v708_v38  ;;  %v985_v32 = vor.u32 %v984_v26, %v981_v25  ;;  %v5425_v46 = vld [vmem:[%s5632_s20 + $0x90] ss:$8 sps:$4 sm:$0xff]   ;;  %v4365_v25 = vld [vmem:[%s5632_s20 + $0xe4] sm:$0x1] }
  0x4f   : > { %5058 = vmatprep.subr.bf16.mxu0 %v5411_v23  ;;  %5081 = vmatpush3.bf16.msra.mxu1 %v5410_v8  ;;  %v718_v8 = vrot.slane %v717_v61, 4  ;;  %v999_v42 = vor.u32 %v998_v36, %v995_v27  ;;  %v5430_v54 = vld [vmem:[%s6466_s1 + $0x1f8] sm:$0xff]   ;;  %v5432_v60 = vld [vmem:[%s6466_s1 + $0x1f0] sm:$0xff]   ;;  %v5435_v61 = vld [vmem:[%s6466_s1 + $0x1a8] sm:$0xff]   ;;  %v1544_v24 = vrot.slane %v1542_v15, 5  ;;  %v1801_v26 = vshrl.u32 %v4362_v16, 16 }
  0x50   : > { %5082 = vmatprep.subr.bf16.mxu1 %v5412_v33  ;;  %v962_v5 = vrot.slane %v960_v58, 5  ;;  %5028 = vmatprep.mubr.bf16.mxu0 %v4192_v3  ;;  %v986_v38 = vrot.slane %v985_v32, 4  ;;  %v5431_v58 = vld [vmem:[%s6466_s1 + $0x1b0] sm:$0xff]   ;;  %v5440_v3 = vld [vmem:[%s6466_s1 + $0x1e0] sm:$0xff]   ;;  %v1804_v27 = vshll.u32 %v4362_v16, 16 }
  0x51   : > { %v723_v18 = vsel %vm5704_vm2, %v718_v8, %v722_v55  ;;  %v1000_v44 = vrot.slane %v999_v42, 4  ;;  %v5427_v55 = vld [vmem:[%s5632_s20 + $0xa0] ss:$8 sps:$4 sm:$0xff]   ;;  %v5442_v8 = vld [vmem:[%s6466_s1 + $0x1d8] sm:$0xff]   ;;  %v1803_v36 = vrot.slane %v1801_v26, 4 }
  0x52   : > { %5059 = vmatpush3.bf16.msra.mxu0 %v5411_v23  ;;  %v4193_v23 = vcombine.low %v709_v4, %v723_v18  ;;  %v963_v30 = vsel %vm5704_vm2, %v958_v19, %v962_v5  ;;  %v991_v43 = vsel %vm5704_vm2, %v986_v38, %v990_v35  ;;  %v5441_v4 = vld [vmem:[%s6466_s1 + $0x198] sm:$0xff]   ;;  %v4318_v5 = vld [vmem:[%s5632_s20 + $0x90] sm:$0xf]  ;;  %v1824_v38 = vshll.u32 %v4365_v25, 16 }
  0x53   : > { %5060 = vmatprep.subr.bf16.mxu0 %v5413_v41  ;;  %5083 = vmatpush3.bf16.msra.mxu1 %v5412_v33  ;;  %v1002_v33 = vshll.u32 %v4217_v12, 16  ;;  %v1519_v10 = vshrl.u32 %v4318_v5, 16  ;;  %v1522_v11 = vshll.u32 %v4318_v5, 16  ;;  %v1528_v12 = vshll.u32 %v4319_v6, 16  ;;  %v5449_v26 = vld [vmem:[%s6466_s1 + $0x238] sm:$0xff]  }
  0x54   : > { %5084 = vmatprep.subr.bf16.mxu1 %v5414_v52 }
  0x55   : > { %5029 = vmatmul.mubr.bf16.gmra.mxu0 %v4193_v23  ;;  %v1004_v39 = vrot.slane %v1002_v33, 5  ;;  %v1521_v18 = vrot.slane %v1519_v10, 4  ;;  %v1524_v19 = vrot.slane %v1522_v11, 5  ;;  %v1530_v20 = vrot.slane %v1528_v12, 5  ;;  %v4322_v33 = vld [vmem:[%s5632_s20 + $0xa0] sm:$0xf] }
  0x56   : > { %5061 = vmatpush3.bf16.msra.mxu0 %v5413_v41  ;;  %v4236_v41 = vcombine.low %v963_v30, %v977_v37  ;;  %5072 = vmatprep.mubr.bf16.mxu0 %v5425_v46  ;;  %v1538_v23 = vrot.slane %v1536_v14, 5  ;;  %v1810_v30 = vshll.u32 %v4363_v17, 16  ;;  %v1806_v37 = vrot.slane %v1804_v27, 5 }
  0x57   : > { %5062 = vmatprep.subr.bf16.mxu0 %v5415_v59  ;;  %5085 = vmatpush3.bf16.msra.mxu1 %v5414_v52  ;;  %v1005_v47 = vsel %vm5704_vm2, %v1000_v44, %v1004_v39  ;;  %v5424_v52 = vld [vmem:[%s6466_s1 + $0x140] sm:$0xff]   ;;  %v4324_v44 = vld [vmem:[%s5632_s20 + $0xa8] sm:$0xf] }
  0x58   : > { %5086 = vmatprep.subr.bf16.mxu1 %v5416_v13  ;;  %5052 = vmatprep.mubr.bf16.mxu1 %v4236_v41  ;;  %v4237_v49 = vcombine.low %v991_v43, %v1005_v47  ;;  %v4323_v39 = vld [vmem:[%s5632_s20 + $0xa4] sm:$0x1]  ;;  %v1812_v41 = vrot.slane %v1810_v30, 5  ;;  %v1807_v47 = vor.u32 %v1806_v37, %v1803_v36  ;;  %v5451_v37 = vld [vmem:[%s6466_s1 + $0x230] sm:$0xff]  }
  0x5a   : > { %5063 = vmatpush3.bf16.msra.mxu0 %v5415_v59  ;;  %5053 = vmatmul.mubr.bf16.gmra.mxu1 %v4237_v49  ;;  %v5437_v59 = vld [vmem:[%s5632_s20 + $0xf8] ss:$8 sps:$4 sm:$0xff]   ;;  %v1547_v49 = vshrl.u32 %v4322_v33, 16 }
  0x5b   : > { %5064 = vmatprep.subr.bf16.mxu0 %v5417_v22  ;;  %5087 = vmatpush3.bf16.msra.mxu1 %v5416_v13  ;;  %v1533_v13 = vshrl.u32 %v4320_v7, 16  ;;  %v1564_v7 = vshll.u32 %v4324_v44, 16 }
  0x5c   : > { %5088 = vmatprep.subr.bf16.mxu1 %v5418_v29  ;;  %5096 = vmatprep.mubr.bf16.mxu1 %v5426_v48  ;;  %v1826_v48 = vrot.slane %v1824_v38, 5  ;;  %v4327_v38 = vld [vmem:[%s5632_s20 + $0xb4] sm:$0x1] }
  0x5d   : > { %v1535_v21 = vrot.slane %v1533_v13, 4  ;;  %v5448_v13 = vld [vmem:[%s6466_s1 + $0x1c0] sm:$0xff]   ;;  %v1566_v16 = vrot.slane %v1564_v7, 5 }
  0x5e   : > { %5065 = vmatpush3.bf16.msra.mxu0 %v5417_v22  ;;  %v4364_v22 = vld [vmem:[%s5632_s20 + $0xe0] sm:$0xf] }
  0x5f   : > { %5066 = vmatprep.subr.bf16.mxu0 %v5419_v34  ;;  %5089 = vmatpush3.bf16.msra.mxu1 %v5418_v29  ;;  %v1525_v29 = vor.u32 %v1524_v19, %v1521_v18  ;;  %v1815_v31 = vshrl.u32 %v4364_v22, 16  ;;  %v1818_v32 = vshll.u32 %v4364_v22, 16  ;;  %v1539_v35 = vor.u32 %v1538_v23, %v1535_v21 }
  0x60   : > { %5090 = vmatprep.subr.bf16.mxu1 %v5420_v40 }
  0x61   : > { %v1817_v42 = vrot.slane %v1815_v31, 4  ;;  %v1820_v43 = vrot.slane %v1818_v32, 5  ;;  %v1540_v46 = vrot.slane %v1539_v35, 4  ;;  %v4326_v35 = vld [vmem:[%s5632_s20 + $0xb0] sm:$0xf] }
  0x62   : > { %5067 = vmatpush3.bf16.msra.mxu0 %v5419_v34  ;;  %v5444_v34 = vld [vmem:[%s6466_s1 + $0x1d0] sm:$0xff]  }
  0x63   : > { %5068 = vmatprep.subr.bf16.mxu0 %v5421_v45  ;;  %5091 = vmatpush3.bf16.msra.mxu1 %v5420_v40  ;;  %v1526_v40 = vrot.slane %v1525_v29, 4 }
  0x64   : > { %5092 = vmatprep.subr.bf16.mxu1 %v5422_v50 }
  0x66   : > { %5069 = vmatpush3.bf16.msra.mxu0 %v5421_v45  ;;  %v5445_v45 = vld [vmem:[%s6466_s1 + $0x188] sm:$0xff]  }
  0x67   : > { %5070 = vmatprep.subr.bf16.mxu0 %v5423_v51  ;;  %5093 = vmatpush3.bf16.msra.mxu1 %v5422_v50  ;;  %v1531_v50 = vsel %vm5704_vm2, %v1526_v40, %v1530_v20  ;;  %v1575_v40 = vshrl.u32 %v4326_v35, 16 }
  0x68   : > { %5094 = vmatprep.subr.bf16.mxu1 %v5424_v52 }
  0x6a   : > { %5071 = vmatpush3.bf16.msra.mxu0 %v5423_v51  ;;  %v1821_v51 = vor.u32 %v1820_v43, %v1817_v42  ;;  %v4329_v43 = vld [vmem:[%s5632_s20 + $0xbc] sm:$0x1] }
  0x6b   : > { %5104 = vmatprep.subr.bf16.mxu0 %v5429_v53  ;;  %5095 = vmatpush3.bf16.msra.mxu1 %v5424_v52  ;;  %v4325_v52 = vld [vmem:[%s5632_s20 + $0xac] sm:$0x1] }
  0x6c   : > { %5128 = vmatprep.subr.bf16.mxu1 %v5430_v54 }
  0x6d   : > { %5073 = vmatmul.mubr.bf16.vlgmr.msra.gmra.mxu0 %v5427_v55  ;;  %v4366_v55 = vld [vmem:[%s5632_s20 + $0xe8] sm:$0xf] }
  0x6e   : > { %5105 = vmatpush3.bf16.msra.mxu0 %v5429_v53  ;;  %5076 = vmatprep.mubr.bf16.mxu0 %v5433_v57  ;;  %v1550_v53 = vshll.u32 %v4322_v33, 16  ;;  %v1545_v57 = vsel %vm5704_vm2, %v1540_v46, %v1544_v24  ;;  %v1829_v11 = vshrl.u32 %v4366_v55, 16  ;;  %v1832_v12 = vshll.u32 %v4366_v55, 16  ;;  %v4330_v46 = vld [vmem:[%s5632_s20 + $0xc0] sm:$0xf] }
  0x6f   : > { %5097 = vmatmul.mubr.bf16.vlgmr.msra.gmra.mxu1 %v5428_v56  ;;  %5106 = vmatprep.subr.bf16.mxu0 %v5431_v58  ;;  %v5446_v56 = vld [vmem:[%s6466_s1 + $0x1c8] sm:$0xff]  }
  0x70   : > { %5129 = vmatpush3.bf16.msra.mxu1 %v5430_v54  ;;  %5100 = vmatprep.mubr.bf16.mxu1 %v5437_v59  ;;  %v1556_v54 = vshll.u32 %v4323_v39, 16  ;;  %v1549_v59 = vrot.slane %v1547_v49, 4  ;;  %v1831_v19 = vrot.slane %v1829_v11, 4  ;;  %v1834_v20 = vrot.slane %v1832_v12, 5  ;;  %v4328_v39 = vld [vmem:[%s5632_s20 + $0xb8] sm:$0xf] }
  0x71   : > { %5130 = vmatprep.subr.bf16.mxu1 %v5432_v60  ;;  %v1577_v49 = vrot.slane %v1575_v40, 4 }
  0x72   : > { %5107 = vmatpush3.bf16.msra.mxu0 %v5431_v58  ;;  %v1808_v58 = vrot.slane %v1807_v47, 4  ;;  %v1558_v15 = vrot.slane %v1556_v54, 5  ;;  %v1835_v27 = vor.u32 %v1834_v20, %v1831_v19 }
  0x73   : > { %5108 = vmatprep.subr.bf16.mxu0 %v5435_v61 }
  0x74   : > { %5131 = vmatpush3.bf16.msra.mxu1 %v5432_v60  ;;  %v1561_v60 = vshrl.u32 %v4324_v44, 16  ;;  %v1813_v5 = vsel %vm5704_vm2, %v1808_v58, %v1812_v41  ;;  %v1836_v36 = vrot.slane %v1835_v27, 4  ;;  %v1578_v44 = vshll.u32 %v4326_v35, 16  ;;  %v5452_v58 = vld [vmem:[%s6466_s1 + $0x270] sm:$0xff]  }
  0x75   : > { %5077 = vmatmul.mubr.bf16.gmra.mxu0 %v5434_v63  ;;  %5132 = vmatprep.subr.bf16.mxu1 %v5436_v0  ;;  %v4350_v63 = vcombine.low %v1531_v50, %v1545_v57  ;;  %v1589_v50 = vshrl.u32 %v4328_v39, 16  ;;  %v4333_v57 = vld [vmem:[%s5632_s20 + $0xcc] sm:$0x1] }
  0x76   : > { %5109 = vmatpush3.bf16.msra.mxu0 %v5435_v61  ;;  %v4367_v61 = vld [vmem:[%s5632_s20 + $0xec] sm:$0x1]  ;;  %v1563_v6 = vrot.slane %v1561_v60, 4  ;;  %v1580_v54 = vrot.slane %v1578_v44, 5  ;;  %v1598_v60 = vshll.u32 %v4329_v43, 16 }
  0x77   : > { %5101 = vmatmul.mubr.bf16.gmra.mxu1 %v5438_v1  ;;  %5110 = vmatprep.subr.bf16.mxu0 %v5439_v2  ;;  %v1552_v1 = vrot.slane %v1550_v53, 5  ;;  %v1838_v17 = vshll.u32 %v4367_v61, 16  ;;  %v1603_v61 = vshrl.u32 %v4330_v46, 16  ;;  %v4377_v44 = vld [vmem:[%s5632_s20 + $0x114] sm:$0x1] }
  0x78   : > { %5133 = vmatpush3.bf16.msra.mxu1 %v5436_v0  ;;  %v1822_v0 = vrot.slane %v1821_v51, 4  ;;  %5120 = vmatprep.mubr.bf16.mxu0 %v4350_v63  ;;  %v1567_v22 = vor.u32 %v1566_v16, %v1563_v6  ;;  %v4331_v51 = vld [vmem:[%s5632_s20 + $0xc4] sm:$0x1]  ;;  %v1606_v63 = vshll.u32 %v4330_v46, 16  ;;  %v1626_v16 = vshll.u32 %v4333_v57, 16 }
  0x79   : > { %5134 = vmatprep.subr.bf16.mxu1 %v5440_v3  ;;  %v1553_v10 = vor.u32 %v1552_v1, %v1549_v59  ;;  %v1591_v59 = vrot.slane %v1589_v50, 4  ;;  %v1581_v1 = vor.u32 %v1580_v54, %v1577_v49  ;;  %v1605_v6 = vrot.slane %v1603_v61, 4  ;;  %v5457_v50 = vld [vmem:[%s6466_s1 + $0x218] sm:$0xff]  }
  0x7a   : > { %5111 = vmatpush3.bf16.msra.mxu0 %v5439_v2  ;;  %v4368_v2 = vld [vmem:[%s5632_s20 + $0xf0] sm:$0xf]  ;;  %v1827_v9 = vsel %vm5704_vm2, %v1822_v0, %v1826_v48  ;;  %v1568_v31 = vrot.slane %v1567_v22, 4  ;;  %v1608_v7 = vrot.slane %v1606_v63, 5 }
  0x7b   : > { %5112 = vmatprep.subr.bf16.mxu0 %v5441_v4  ;;  %v4394_v14 = vcombine.low %v1813_v5, %v1827_v9  ;;  %v1554_v18 = vrot.slane %v1553_v10, 4  ;;  %v1843_v21 = vshrl.u32 %v4368_v2, 16  ;;  %v1846_v24 = vshll.u32 %v4368_v2, 16 }
  0x7c   : > { %5135 = vmatpush3.bf16.msra.mxu1 %v5440_v3  ;;  %v4369_v3 = vld [vmem:[%s5632_s20 + $0xf4] sm:$0x1]  ;;  %v1600_v5 = vrot.slane %v1598_v60, 5  ;;  %v1582_v9 = vrot.slane %v1581_v1, 4 }
  0x7d   : > { %5136 = vmatprep.subr.bf16.mxu1 %v5442_v8  ;;  %5144 = vmatprep.mubr.bf16.mxu1 %v4394_v14  ;;  %v1852_v25 = vshll.u32 %v4369_v3, 16  ;;  %v1845_v29 = vrot.slane %v1843_v21, 4  ;;  %v1559_v30 = vsel %vm5704_vm2, %v1554_v18, %v1558_v15  ;;  %v1848_v32 = vrot.slane %v1846_v24, 5  ;;  %v4372_v18 = vld [vmem:[%s5632_s20 + $0x100] sm:$0xf]  ;;  %v5459_v60 = vld [vmem:[%s6466_s1 + $0x210] sm:$0xff]  }
  0x7e   : > { %5113 = vmatpush3.bf16.msra.mxu0 %v5441_v4  ;;  %v5447_v4 = vld [vmem:[%s6466_s1 + $0x180] sm:$0xff]   ;;  %v1612_v3 = vshll.u32 %v4331_v51, 16  ;;  %v1609_v14 = vor.u32 %v1608_v7, %v1605_v6 }
  0x7f   : > { %5114 = vmatprep.subr.bf16.mxu0 %v5443_v28  ;;  %v1854_v33 = vrot.slane %v1852_v25, 5  ;;  %v1849_v42 = vor.u32 %v1848_v32, %v1845_v29  ;;  %v5454_v25 = vld [vmem:[%s6466_s1 + $0x268] sm:$0xff]  }
  0x80   : > { %5137 = vmatpush3.bf16.msra.mxu1 %v5442_v8  ;;  %v1570_v8 = vshll.u32 %v4325_v52, 16  ;;  %v4332_v52 = vld [vmem:[%s5632_s20 + $0xc8] sm:$0xf]  ;;  %v1614_v11 = vrot.slane %v1612_v3, 5 }
  0x81   : > { %5138 = vmatprep.subr.bf16.mxu1 %v5444_v34  ;;  %v1850_v53 = vrot.slane %v1849_v42, 4  ;;  %v1617_v12 = vshrl.u32 %v4332_v52, 16  ;;  %v1620_v15 = vshll.u32 %v4332_v52, 16  ;;  %v4374_v32 = vld [vmem:[%s5632_s20 + $0x108] sm:$0xf]  ;;  %v1874_v42 = vshll.u32 %v4372_v18, 16 }
  0x82   : > { %5115 = vmatpush3.bf16.msra.mxu0 %v5443_v28  ;;  %v1572_v23 = vrot.slane %v1570_v8, 5  ;;  %v1840_v28 = vrot.slane %v1838_v17, 5  ;;  %v5453_v8 = vld [vmem:[%s6466_s1 + $0x228] sm:$0xff]   ;;  %v4371_v17 = vld [vmem:[%s5632_s20 + $0xfc] sm:$0x1]  ;;  %v1888_v49 = vshll.u32 %v4374_v32, 16 }
  0x83   : > { %5116 = vmatprep.subr.bf16.mxu0 %v5445_v45  ;;  %v1855_v0 = vsel %vm5704_vm2, %v1850_v53, %v1854_v33  ;;  %v1619_v21 = vrot.slane %v1617_v12, 4  ;;  %v1622_v24 = vrot.slane %v1620_v15, 5  ;;  %v5455_v33 = vld [vmem:[%s6466_s1 + $0x220] sm:$0xff]   ;;  %v1876_v52 = vrot.slane %v1874_v42, 5  ;;  %v5461_v12 = vld [vmem:[%s6466_s1 + $0x208] sm:$0xff]  }
  0x84   : > { %5139 = vmatpush3.bf16.msra.mxu1 %v5444_v34  ;;  %v5450_v34 = vld [vmem:[%s6466_s1 + $0x278] sm:$0xff]   ;;  %v1573_v41 = vsel %vm5704_vm2, %v1568_v31, %v1572_v23  ;;  %v1841_v48 = vsel %vm5704_vm2, %v1836_v36, %v1840_v28  ;;  %v1610_v23 = vrot.slane %v1609_v14, 4  ;;  %v1871_v31 = vshrl.u32 %v4372_v18, 16  ;;  %v5462_v18 = vld [vmem:[%s6466_s1 + $0x248] sm:$0xff]   ;;  %v4480_v42 = vld [vmem:[%s5632_s20 + $0x10] sm:$0xf] }
  0x85   : > { %5140 = vmatprep.subr.bf16.mxu1 %v5446_v56  ;;  %v4351_v47 = vcombine.low %v1559_v30, %v1573_v41  ;;  %v1866_v30 = vshll.u32 %v4371_v17, 16  ;;  %v1623_v35 = vor.u32 %v1622_v24, %v1619_v21  ;;  %v1628_v36 = vrot.slane %v1626_v16, 5  ;;  %v5463_v21 = vld [vmem:[%s6466_s1 + $0x200] sm:$0xff]   ;;  %v5469_v24 = vld [vmem:[%s6466_s1 + $0x2b8] sm:$0xff]  }
  0x86   : > { %5117 = vmatpush3.bf16.msra.mxu0 %v5445_v45  ;;  %v1584_v45 = vshll.u32 %v4327_v38, 16  ;;  %v4375_v38 = vld [vmem:[%s5632_s20 + $0x10c] sm:$0x1]  ;;  %v1615_v40 = vsel %vm5704_vm2, %v1610_v23, %v1614_v11  ;;  %v1873_v41 = vrot.slane %v1871_v31, 4  ;;  %v5460_v11 = vld [vmem:[%s6466_s1 + $0x250] sm:$0xff]  }
  0x87   : > { %5118 = vmatprep.subr.bf16.mxu0 %v5447_v4  ;;  %v1624_v46 = vrot.slane %v1623_v35, 4  ;;  %v1868_v51 = vrot.slane %v1866_v30, 5  ;;  %v1894_v53 = vshll.u32 %v4375_v38, 16  ;;  %v5466_v23 = vld [vmem:[%s5632_s20 + $0x50] ss:$8 sps:$4 sm:$0xff]   ;;  %v5479_v35 = vld [vmem:[%s6466_s1 + $0x2a0] sm:$0xff]  }
  0x88   : > { %5141 = vmatpush3.bf16.msra.mxu1 %v5446_v56  ;;  %v1586_v55 = vrot.slane %v1584_v45, 5  ;;  %v1592_v56 = vshll.u32 %v4328_v39, 16  ;;  %v4376_v39 = vld [vmem:[%s5632_s20 + $0x110] sm:$0xf]  ;;  %v5456_v45 = vld [vmem:[%s6466_s1 + $0x260] sm:$0xff]   ;;  %v1877_v63 = vor.u32 %v1876_v52, %v1873_v41 }
  0x89   : > { %5142 = vmatprep.subr.bf16.mxu1 %v5448_v13  ;;  %v1899_v54 = vshrl.u32 %v4376_v39, 16  ;;  %v1902_v3 = vshll.u32 %v4376_v39, 16  ;;  %v5468_v30 = vld [vmem:[%s5632_s20 + $0x60] ss:$8 sps:$4 sm:$0xff]   ;;  %v5472_v31 = vld [vmem:[%s6466_s1 + $0x2f0] sm:$0xff]   ;;  %v5481_v39 = vld [vmem:[%s6466_s1 + $0x298] sm:$0xff]  }
  0x8a   : > { %5119 = vmatpush3.bf16.msra.mxu0 %v5447_v4  ;;  %v1594_v2 = vrot.slane %v1592_v56, 5  ;;  %v4395_v4 = vcombine.low %v1841_v48, %v1855_v0  ;;  %v1587_v19 = vsel %vm5704_vm2, %v1582_v9, %v1586_v55  ;;  %v1885_v48 = vshrl.u32 %v4374_v32, 16  ;;  %v5475_v32 = vld [vmem:[%s6466_s1 + $0x2a8] sm:$0xff]   ;;  %v5480_v38 = vld [vmem:[%s6466_s1 + $0x2e0] sm:$0xff]   ;;  %v4522_v52 = vld [vmem:[%s5632_s20 + $0x50] sm:$0xf] }
  0x8b   : > { %5152 = vmatprep.subr.bf16.mxu0 %v5449_v26  ;;  %v1629_v55 = vsel %vm5704_vm2, %v1624_v46, %v1628_v36  ;;  %v1901_v1 = vrot.slane %v1899_v54, 4  ;;  %v1878_v6 = vrot.slane %v1877_v63, 4  ;;  %v1904_v9 = vrot.slane %v1902_v3, 5  ;;  %v5476_v36 = vld [vmem:[%s6466_s1 + $0x2e8] sm:$0xff]  }
  0x8c   : > { %5143 = vmatpush3.bf16.msra.mxu1 %v5448_v13  ;;  %v1595_v10 = vor.u32 %v1594_v2, %v1591_v59  ;;  %v4370_v13 = vld [vmem:[%s5632_s20 + $0xf8] sm:$0xf]  ;;  %v1887_v57 = vrot.slane %v1885_v48, 4  ;;  %v4353_v61 = vcombine.low %v1615_v40, %v1629_v55  ;;  %v4478_v40 = vld [vmem:[%s5632_s20 + $0x8] sm:$0xf]  ;;  %v2439_v48 = vshrl.u32 %v4480_v42, 16 }
  0x8d   : > { %5121 = vmatmul.mubr.bf16.vlgmr.msra.gmra.mxu0 %v4351_v47  ;;  %5176 = vmatprep.subr.bf16.mxu1 %v5450_v34  ;;  %v1857_v22 = vshrl.u32 %v4370_v13, 16  ;;  %v1860_v27 = vshll.u32 %v4370_v13, 16  ;;  %v5458_v59 = vld [vmem:[%s6466_s1 + $0x258] sm:$0xff]   ;;  %v1905_v15 = vor.u32 %v1904_v9, %v1901_v1  ;;  %v4479_v41 = vld [vmem:[%s5632_s20 + $0xc] sm:$0x1]  ;;  %v2428_v46 = vshll.u32 %v4478_v40, 16 }
  0x8e   : > { %5153 = vmatpush3.bf16.msra.mxu0 %v5449_v26  ;;  %v1596_v20 = vrot.slane %v1595_v10, 4  ;;  %v4373_v26 = vld [vmem:[%s5632_s20 + $0x104] sm:$0x1]  ;;  %v2707_v63 = vshrl.u32 %v4522_v52, 16 }
  0x8f   : > { %5154 = vmatprep.subr.bf16.mxu0 %v5451_v37  ;;  %5145 = vmatmul.mubr.bf16.vlgmr.msra.gmra.mxu1 %v4395_v4  ;;  %v1859_v29 = vrot.slane %v1857_v22, 4  ;;  %v1880_v43 = vshll.u32 %v4373_v26, 16  ;;  %v1908_v4 = vshll.u32 %v4377_v44, 16  ;;  %v1906_v17 = vrot.slane %v1905_v15, 4  ;;  %v5467_v26 = vld [vmem:[%s5632_s20 + $0x18] ss:$8 sps:$4 sm:$0xff]  }
  0x90   : > { %5177 = vmatpush3.bf16.msra.mxu1 %v5450_v34  ;;  %v1601_v28 = vsel %vm5704_vm2, %v1596_v20, %v1600_v5  ;;  %v4481_v44 = vld [vmem:[%s5632_s20 + $0x14] sm:$0x1]  ;;  %v2430_v55 = vrot.slane %v2428_v46, 5 }
  0x91   : > { %5178 = vmatprep.subr.bf16.mxu1 %v5452_v58  ;;  %v4352_v34 = vcombine.low %v1587_v19, %v1601_v28  ;;  %v1882_v0 = vrot.slane %v1880_v43, 5  ;;  %v1910_v10 = vrot.slane %v1908_v4, 5  ;;  %v5465_v19 = vld [vmem:[%s5632_s20 + $0x8] ss:$8 sps:$4 sm:$0xff]  }
  0x92   : > { %5155 = vmatpush3.bf16.msra.mxu0 %v5451_v37  ;;  %v1862_v37 = vrot.slane %v1860_v27, 5  ;;  %v5473_v27 = vld [vmem:[%s5632_s20 + $0x28] ss:$8 sps:$4 sm:$0xff]  }
  0x93   : > { %5156 = vmatprep.subr.bf16.mxu0 %v5453_v8  ;;  %5124 = vmatprep.mubr.bf16.mxu0 %v4352_v34  ;;  %v1883_v13 = vsel %vm5704_vm2, %v1878_v6, %v1882_v0  ;;  %v1911_v20 = vsel %vm5704_vm2, %v1906_v17, %v1910_v10  ;;  %v5471_v28 = vld [vmem:[%s6466_s1 + $0x2b0] sm:$0xff]   ;;  %v5474_v34 = vld [vmem:[%s5632_s20 + $0x38] ss:$8 sps:$4 sm:$0xff]   ;;  %v2710_v0 = vshll.u32 %v4522_v52, 16  ;;  %v5485_v6 = vld [vmem:[%s6466_s1 + $0x288] sm:$0xff]  }
  0x94   : > { %5179 = vmatpush3.bf16.msra.mxu1 %v5452_v58  ;;  %v1863_v47 = vor.u32 %v1862_v37, %v1859_v29  ;;  %v1890_v58 = vrot.slane %v1888_v49, 5  ;;  %v5470_v29 = vld [vmem:[%s6466_s1 + $0x2f8] sm:$0xff]   ;;  %v5478_v37 = vld [vmem:[%s5632_s20 + $0x80] ss:$8 sps:$4 sm:$0xff]   ;;  %v5483_v43 = vld [vmem:[%s6466_s1 + $0x290] sm:$0xff]  }
  0x95   : > { %5180 = vmatprep.subr.bf16.mxu1 %v5454_v25  ;;  %5125 = vmatmul.mubr.bf16.gmra.mxu0 %v4353_v61  ;;  %v5482_v49 = vld [vmem:[%s6466_s1 + $0x2d8] sm:$0xff]   ;;  %v2712_v9 = vrot.slane %v2710_v0, 5  ;;  %v5484_v17 = vld [vmem:[%s6466_s1 + $0x2d0] sm:$0xff]  }
  0x96   : > { %5157 = vmatpush3.bf16.msra.mxu0 %v5453_v8  ;;  %v1864_v56 = vrot.slane %v1863_v47, 4  ;;  %v1891_v2 = vor.u32 %v1890_v58, %v1887_v57  ;;  %v1896_v8 = vrot.slane %v1894_v53, 5  ;;  %5168 = vmatprep.mubr.bf16.mxu0 %v5465_v19  ;;  %v2434_v47 = vshll.u32 %v4479_v41, 16  ;;  %v4523_v53 = vld [vmem:[%s5632_s20 + $0x54] sm:$0x1]  ;;  %v5489_v52 = vld [vmem:[%s6466_s1 + $0x338] sm:$0xff]  }
  0x97   : > { %5158 = vmatprep.subr.bf16.mxu0 %v5455_v33  ;;  %v2441_v57 = vrot.slane %v2439_v48, 4  ;;  %v4524_v58 = vld [vmem:[%s5632_s20 + $0x58] sm:$0xf]  ;;  %v4525_v61 = vld [vmem:[%s5632_s20 + $0x5c] sm:$0x1] }
  0x98   : > { %5181 = vmatpush3.bf16.msra.mxu1 %v5454_v25  ;;  %v1869_v5 = vsel %vm5704_vm2, %v1864_v56, %v1868_v51  ;;  %v1892_v7 = vrot.slane %v1891_v2, 4  ;;  %v5464_v25 = vld [vmem:[%s6466_s1 + $0x240] sm:$0xff]   ;;  %v2448_v51 = vshll.u32 %v4481_v44, 16  ;;  %v2436_v56 = vrot.slane %v2434_v47, 5 }
  0x99   : > { %5182 = vmatprep.subr.bf16.mxu1 %v5456_v45  ;;  %v4396_v14 = vcombine.low %v1869_v5, %v1883_v13  ;;  %v2716_v2 = vshll.u32 %v4523_v53, 16  ;;  %v2721_v3 = vshrl.u32 %v4524_v58, 16  ;;  %v2724_v4 = vshll.u32 %v4524_v58, 16  ;;  %v4482_v5 = vld [vmem:[%s5632_s20 + $0x18] sm:$0xf] }
  0x9a   : > { %5159 = vmatpush3.bf16.msra.mxu0 %v5455_v33  ;;  %v1897_v16 = vsel %vm5704_vm2, %v1892_v7, %v1896_v8  ;;  %v5477_v33 = vld [vmem:[%s5632_s20 + $0x70] ss:$8 sps:$4 sm:$0xff]   ;;  %v2709_v8 = vrot.slane %v2707_v63, 4  ;;  %v2730_v10 = vshll.u32 %v4525_v61, 16 }
  0x9b   : > { %5160 = vmatprep.subr.bf16.mxu0 %v5457_v50  ;;  %5148 = vmatprep.mubr.bf16.mxu1 %v4396_v14  ;;  %v4397_v22 = vcombine.low %v1897_v16, %v1911_v20  ;;  %v2718_v13 = vrot.slane %v2716_v2, 5  ;;  %v2723_v14 = vrot.slane %v2721_v3, 4  ;;  %v2726_v15 = vrot.slane %v2724_v4, 5  ;;  %v4484_v16 = vld [vmem:[%s5632_s20 + $0x20] sm:$0xf] }
  0x9c   : > { %5183 = vmatpush3.bf16.msra.mxu1 %v5456_v45  ;;  %v2425_v45 = vshrl.u32 %v4478_v40, 16  ;;  %v2713_v19 = vor.u32 %v2712_v9, %v2709_v8  ;;  %v2732_v20 = vrot.slane %v2730_v10, 5  ;;  %v5491_v9 = vld [vmem:[%s6466_s1 + $0x330] sm:$0xff]   ;;  %v4487_v10 = vld [vmem:[%s5632_s20 + $0x2c] sm:$0x1] }
  0x9d   : > { %5184 = vmatprep.subr.bf16.mxu1 %v5458_v59  ;;  %5149 = vmatmul.mubr.bf16.gmra.mxu1 %v4397_v22 }
  0x9e   : > { %5161 = vmatpush3.bf16.msra.mxu0 %v5457_v50  ;;  %5192 = vmatprep.mubr.bf16.mxu1 %v5466_v23  ;;  %v2442_v50 = vshll.u32 %v4480_v42, 16  ;;  %v2427_v54 = vrot.slane %v2425_v45, 4  ;;  %v2727_v23 = vor.u32 %v2726_v15, %v2723_v14  ;;  %v2470_v42 = vshll.u32 %v4484_v16, 16  ;;  %v4489_v15 = vld [vmem:[%s5632_s20 + $0x34] sm:$0x1] }
  0x9f   : > { %5162 = vmatprep.subr.bf16.mxu0 %v5459_v60 }
  0xa0   : > { %5185 = vmatpush3.bf16.msra.mxu1 %v5458_v59  ;;  %v2444_v59 = vrot.slane %v2442_v50, 5  ;;  %v2431_v1 = vor.u32 %v2430_v55, %v2427_v54  ;;  %v2472_v50 = vrot.slane %v2470_v42, 5 }
  0xa1   : > { %5186 = vmatprep.subr.bf16.mxu1 %v5460_v11 }
  0xa2   : > { %5163 = vmatpush3.bf16.msra.mxu0 %v5459_v60  ;;  %v2450_v60 = vrot.slane %v2448_v51, 5  ;;  %v2445_v7 = vor.u32 %v2444_v59, %v2441_v57  ;;  %v5488_v57 = vld [vmem:[%s6466_s1 + $0x2c0] sm:$0xff]  }
  0xa3   : > { %5164 = vmatprep.subr.bf16.mxu0 %v5461_v12 }
  0xa4   : > { %5187 = vmatpush3.bf16.msra.mxu1 %v5460_v11  ;;  %v4483_v11 = vld [vmem:[%s5632_s20 + $0x1c] sm:$0x1] }
  0xa5   : > { %5188 = vmatprep.subr.bf16.mxu1 %v5462_v18 }
  0xa6   : > { %5165 = vmatpush3.bf16.msra.mxu0 %v5461_v12  ;;  %v2432_v12 = vrot.slane %v2431_v1, 4 }
  0xa7   : > { %5166 = vmatprep.subr.bf16.mxu0 %v5463_v21 }
  0xa8   : > { %5189 = vmatpush3.bf16.msra.mxu1 %v5462_v18  ;;  %v2446_v18 = vrot.slane %v2445_v7, 4  ;;  %v2437_v22 = vsel %vm5704_vm2, %v2432_v12, %v2436_v56  ;;  %v4486_v7 = vld [vmem:[%s5632_s20 + $0x28] sm:$0xf] }
  0xa9   : > { %5190 = vmatprep.subr.bf16.mxu1 %v5464_v25  ;;  %v2481_v12 = vshrl.u32 %v4486_v7, 16 }
  0xaa   : > { %5167 = vmatpush3.bf16.msra.mxu0 %v5463_v21  ;;  %v2453_v21 = vshrl.u32 %v4482_v5, 16 }
  0xab   : > { %5200 = vmatprep.subr.bf16.mxu0 %v5469_v24 }
  0xac   : > { %5191 = vmatpush3.bf16.msra.mxu1 %v5464_v25  ;;  %v2456_v25 = vshll.u32 %v4482_v5, 16 }
  0xad   : > { %5169 = vmatmul.mubr.bf16.vlgmr.msra.gmra.mxu0 %v5467_v26  ;;  %5224 = vmatprep.subr.bf16.mxu1 %v5470_v29  ;;  %v2462_v26 = vshll.u32 %v4483_v11, 16  ;;  %v4488_v11 = vld [vmem:[%s5632_s20 + $0x30] sm:$0xf] }
  0xae   : > { %5201 = vmatpush3.bf16.msra.mxu0 %v5469_v24  ;;  %5172 = vmatprep.mubr.bf16.mxu0 %v5473_v27  ;;  %v4485_v24 = vld [vmem:[%s5632_s20 + $0x24] sm:$0x1]  ;;  %v4526_v27 = vld [vmem:[%s5632_s20 + $0x60] sm:$0xf] }
  0xaf   : > { %5202 = vmatprep.subr.bf16.mxu0 %v5471_v28  ;;  %5193 = vmatmul.mubr.bf16.vlgmr.msra.gmra.mxu1 %v5468_v30  ;;  %v2714_v30 = vrot.slane %v2713_v19, 4  ;;  %v2735_v46 = vshrl.u32 %v4526_v27, 16  ;;  %v2738_v47 = vshll.u32 %v4526_v27, 16 }
  0xb0   : > { %5225 = vmatpush3.bf16.msra.mxu1 %v5470_v29  ;;  %5196 = vmatprep.mubr.bf16.mxu1 %v5477_v33  ;;  %v2451_v29 = vsel %vm5704_vm2, %v2446_v18, %v2450_v60  ;;  %v4527_v33 = vld [vmem:[%s5632_s20 + $0x64] sm:$0x1]  ;;  %v4490_v18 = vld [vmem:[%s5632_s20 + $0x38] sm:$0xf] }
  0xb1   : > { %5226 = vmatprep.subr.bf16.mxu1 %v5472_v31  ;;  %v2719_v40 = vsel %vm5704_vm2, %v2714_v30, %v2718_v13  ;;  %v2744_v51 = vshll.u32 %v4527_v33, 16  ;;  %v2737_v54 = vrot.slane %v2735_v46, 4  ;;  %v2740_v55 = vrot.slane %v2738_v47, 5  ;;  %v5492_v30 = vld [vmem:[%s6466_s1 + $0x370] sm:$0xff]  }
  0xb2   : > { %5203 = vmatpush3.bf16.msra.mxu0 %v5471_v28  ;;  %v5487_v28 = vld [vmem:[%s6466_s1 + $0x280] sm:$0xff]   ;;  %v2509_v33 = vshrl.u32 %v4490_v18, 16 }
  0xb3   : > { %5204 = vmatprep.subr.bf16.mxu0 %v5475_v32  ;;  %v2741_v63 = vor.u32 %v2740_v55, %v2737_v54  ;;  %v2746_v0 = vrot.slane %v2744_v51, 5 }
  0xb4   : > { %5227 = vmatpush3.bf16.msra.mxu1 %v5472_v31  ;;  %v2455_v31 = vrot.slane %v2453_v21, 4  ;;  %v2483_v21 = vrot.slane %v2481_v12, 4 }
  0xb5   : > { %5173 = vmatmul.mubr.bf16.gmra.mxu0 %v5474_v34  ;;  %5228 = vmatprep.subr.bf16.mxu1 %v5476_v36  ;;  %v4510_v34 = vcombine.low %v2437_v22, %v2451_v29  ;;  %v2742_v8 = vrot.slane %v2741_v63, 4  ;;  %v2495_v22 = vshrl.u32 %v4488_v11, 16  ;;  %v4493_v29 = vld [vmem:[%s5632_s20 + $0x44] sm:$0x1] }
  0xb6   : > { %5205 = vmatpush3.bf16.msra.mxu0 %v5475_v32  ;;  %v2467_v32 = vshrl.u32 %v4484_v16, 16  ;;  %v2484_v16 = vshll.u32 %v4486_v7, 16  ;;  %v2532_v51 = vshll.u32 %v4493_v29, 16 }
  0xb7   : > { %5206 = vmatprep.subr.bf16.mxu0 %v5479_v35  ;;  %5197 = vmatmul.mubr.bf16.gmra.mxu1 %v5478_v37  ;;  %v4528_v37 = vld [vmem:[%s5632_s20 + $0x68] sm:$0xf] }
  0xb8   : > { %5229 = vmatpush3.bf16.msra.mxu1 %v5476_v36  ;;  %v2458_v36 = vrot.slane %v2456_v25, 5  ;;  %v2469_v41 = vrot.slane %v2467_v32, 4  ;;  %5216 = vmatprep.mubr.bf16.mxu0 %v4510_v34  ;;  %v2749_v56 = vshrl.u32 %v4528_v37, 16  ;;  %v2752_v60 = vshll.u32 %v4528_v37, 16 }
  0xb9   : > { %5230 = vmatprep.subr.bf16.mxu1 %v5480_v38  ;;  %v2504_v32 = vshll.u32 %v4489_v15, 16  ;;  %v2512_v34 = vshll.u32 %v4490_v18, 16 }
  0xba   : > { %5207 = vmatpush3.bf16.msra.mxu0 %v5479_v35  ;;  %v2728_v35 = vrot.slane %v2727_v23, 4  ;;  %v2459_v45 = vor.u32 %v2458_v36, %v2455_v31  ;;  %v2473_v58 = vor.u32 %v2472_v50, %v2469_v41  ;;  %v2751_v1 = vrot.slane %v2749_v56, 4  ;;  %v4491_v23 = vld [vmem:[%s5632_s20 + $0x3c] sm:$0x1] }
  0xbb   : > { %5208 = vmatprep.subr.bf16.mxu0 %v5481_v39  ;;  %v2754_v4 = vrot.slane %v2752_v60, 5  ;;  %v2497_v31 = vrot.slane %v2495_v22, 4  ;;  %v2511_v41 = vrot.slane %v2509_v33, 4  ;;  %v2514_v42 = vrot.slane %v2512_v34, 5  ;;  %v5494_v60 = vld [vmem:[%s6466_s1 + $0x368] sm:$0xff]   ;;  %v5497_v22 = vld [vmem:[%s6466_s1 + $0x318] sm:$0xff]  }
  0xbc   : > { %5231 = vmatpush3.bf16.msra.mxu1 %v5480_v38  ;;  %v4529_v38 = vld [vmem:[%s5632_s20 + $0x6c] sm:$0x1]  ;;  %v2733_v44 = vsel %vm5704_vm2, %v2728_v35, %v2732_v20  ;;  %v2460_v53 = vrot.slane %v2459_v45, 4  ;;  %v2474_v3 = vrot.slane %v2473_v58, 4  ;;  %v2747_v20 = vsel %vm5704_vm2, %v2742_v8, %v2746_v0 }
  0xbd   : > { %5232 = vmatprep.subr.bf16.mxu1 %v5482_v49  ;;  %v4554_v48 = vcombine.low %v2719_v40, %v2733_v44  ;;  %v2758_v61 = vshll.u32 %v4529_v38, 16  ;;  %v2755_v14 = vor.u32 %v2754_v4, %v2751_v1  ;;  %v2518_v38 = vshll.u32 %v4491_v23, 16  ;;  %v4534_v4 = vld [vmem:[%s5632_s20 + $0x80] sm:$0xf] }
  0xbe   : > { %5209 = vmatpush3.bf16.msra.mxu0 %v5481_v39  ;;  %v5486_v39 = vld [vmem:[%s6466_s1 + $0x2c8] sm:$0xff]   ;;  %v2506_v40 = vrot.slane %v2504_v32, 5  ;;  %v2534_v8 = vrot.slane %v2532_v51, 5  ;;  %v5499_v32 = vld [vmem:[%s6466_s1 + $0x310] sm:$0xff]  }
  0xbf   : > { %5210 = vmatprep.subr.bf16.mxu0 %v5483_v43  ;;  %5240 = vmatprep.mubr.bf16.mxu1 %v4554_v48  ;;  %v2760_v5 = vrot.slane %v2758_v61, 5  ;;  %v2756_v25 = vrot.slane %v2755_v14, 4  ;;  %v2520_v46 = vrot.slane %v2518_v38, 5  ;;  %v4530_v48 = vld [vmem:[%s5632_s20 + $0x70] sm:$0xf] }
  0xc0   : > { %5233 = vmatpush3.bf16.msra.mxu1 %v5482_v49  ;;  %v2464_v49 = vrot.slane %v2462_v26, 5  ;;  %v2486_v26 = vrot.slane %v2484_v16, 5  ;;  %v4533_v61 = vld [vmem:[%s5632_s20 + $0x7c] sm:$0x1]  ;;  %v2766_v63 = vshll.u32 %v4530_v48, 16 }
  0xc1   : > { %5234 = vmatprep.subr.bf16.mxu1 %v5484_v17  ;;  %v2761_v35 = vsel %vm5704_vm2, %v2756_v25, %v2760_v5  ;;  %v5495_v5 = vld [vmem:[%s6466_s1 + $0x320] sm:$0xff]   ;;  %v2786_v15 = vshll.u32 %v4533_v61, 16  ;;  %v4537_v16 = vld [vmem:[%s5632_s20 + $0x8c] sm:$0x1]  ;;  %v5507_v61 = vld [vmem:[%s5632_s20 + $0xa8] ss:$8 sps:$4 sm:$0xff]  }
  0xc2   : > { %5211 = vmatpush3.bf16.msra.mxu0 %v5483_v43  ;;  %v2476_v43 = vshll.u32 %v4485_v24, 16  ;;  %v2465_v2 = vsel %vm5704_vm2, %v2460_v53, %v2464_v49  ;;  %v4492_v24 = vld [vmem:[%s5632_s20 + $0x40] sm:$0xf]  ;;  %v2487_v36 = vor.u32 %v2486_v26, %v2483_v21  ;;  %v2515_v49 = vor.u32 %v2514_v42, %v2511_v41  ;;  %v4532_v53 = vld [vmem:[%s5632_s20 + $0x78] sm:$0xf] }
  0xc3   : > { %5212 = vmatprep.subr.bf16.mxu0 %v5485_v6  ;;  %v2523_v47 = vshrl.u32 %v4492_v24, 16  ;;  %v2526_v50 = vshll.u32 %v4492_v24, 16  ;;  %v2780_v14 = vshll.u32 %v4532_v53, 16  ;;  %v2794_v21 = vshll.u32 %v4534_v4, 16 }
  0xc4   : > { %5235 = vmatpush3.bf16.msra.mxu1 %v5484_v17  ;;  %v2478_v59 = vrot.slane %v2476_v43, 5  ;;  %v2490_v17 = vshll.u32 %v4487_v10, 16  ;;  %v5493_v43 = vld [vmem:[%s6466_s1 + $0x328] sm:$0xff]   ;;  %v2488_v44 = vrot.slane %v2487_v36, 4  ;;  %v2516_v58 = vrot.slane %v2515_v49, 4 }
  0xc5   : > { %5236 = vmatprep.subr.bf16.mxu1 %v5486_v39  ;;  %v2525_v56 = vrot.slane %v2523_v47, 4  ;;  %v4535_v10 = vld [vmem:[%s5632_s20 + $0x84] sm:$0x1]  ;;  %v2782_v24 = vrot.slane %v2780_v14, 5  ;;  %v5501_v47 = vld [vmem:[%s6466_s1 + $0x308] sm:$0xff]  }
  0xc6   : > { %5213 = vmatpush3.bf16.msra.mxu0 %v5485_v6  ;;  %v5490_v6 = vld [vmem:[%s6466_s1 + $0x378] sm:$0xff]   ;;  %v2479_v13 = vsel %vm5704_vm2, %v2474_v3, %v2478_v59  ;;  %v2492_v27 = vrot.slane %v2490_v17, 5  ;;  %v2528_v59 = vrot.slane %v2526_v50, 5  ;;  %v2777_v3 = vshrl.u32 %v4532_v53, 16  ;;  %v5496_v17 = vld [vmem:[%s6466_s1 + $0x360] sm:$0xff]   ;;  %v5502_v53 = vld [vmem:[%s6466_s1 + $0x348] sm:$0xff]  }
  0xc7   : > { %5214 = vmatprep.subr.bf16.mxu0 %v5487_v28  ;;  %v4511_v19 = vcombine.low %v2465_v2, %v2479_v13  ;;  %v2521_v12 = vsel %vm5704_vm2, %v2516_v58, %v2520_v46  ;;  %v2800_v25 = vshll.u32 %v4535_v10, 16  ;;  %v5500_v46 = vld [vmem:[%s6466_s1 + $0x350] sm:$0xff]   ;;  %v5506_v58 = vld [vmem:[%s5632_s20 + $0xe0] ss:$8 sps:$4 sm:$0xff]  }
  0xc8   : > { %5237 = vmatpush3.bf16.msra.mxu1 %v5486_v39  ;;  %v4555_v39 = vcombine.low %v2747_v20, %v2761_v35  ;;  %v2493_v54 = vsel %vm5704_vm2, %v2488_v44, %v2492_v27  ;;  %v2529_v7 = vor.u32 %v2528_v59, %v2525_v56  ;;  %v2779_v13 = vrot.slane %v2777_v3, 4  ;;  %v5503_v56 = vld [vmem:[%s6466_s1 + $0x300] sm:$0xff]   ;;  %v5509_v59 = vld [vmem:[%s6466_s1 + $0x3b8] sm:$0xff]  }
  0xc9   : > { %5238 = vmatprep.subr.bf16.mxu1 %v5488_v57  ;;  %v2791_v20 = vshrl.u32 %v4534_v4, 16  ;;  %v2788_v35 = vrot.slane %v2786_v15, 5  ;;  %v5510_v3 = vld [vmem:[%s6466_s1 + $0x3f8] sm:$0xff]  }
  0xca   : > { %5215 = vmatpush3.bf16.msra.mxu0 %v5487_v28  ;;  %v2498_v28 = vshll.u32 %v4488_v11, 16  ;;  %v4536_v11 = vld [vmem:[%s5632_s20 + $0x88] sm:$0xf]  ;;  %v2530_v18 = vrot.slane %v2529_v7, 4  ;;  %v2783_v34 = vor.u32 %v2782_v24, %v2779_v13 }
  0xcb   : > { %5248 = vmatprep.subr.bf16.mxu0 %v5489_v52  ;;  %v2805_v26 = vshrl.u32 %v4536_v11, 16  ;;  %v2793_v29 = vrot.slane %v2791_v20, 4  ;;  %v2808_v38 = vshll.u32 %v4536_v11, 16  ;;  %v5515_v11 = vld [vmem:[%s6466_s1 + $0x3a8] sm:$0xff]  }
  0xcc   : > { %5239 = vmatpush3.bf16.msra.mxu1 %v5488_v57  ;;  %v2500_v37 = vrot.slane %v2498_v28, 5  ;;  %v2763_v57 = vshrl.u32 %v4530_v48, 16  ;;  %v2535_v27 = vsel %vm5704_vm2, %v2530_v18, %v2534_v8  ;;  %v2784_v41 = vrot.slane %v2783_v34, 4  ;;  %v5512_v8 = vld [vmem:[%s6466_s1 + $0x3f0] sm:$0xff]   ;;  %v5517_v13 = vld [vmem:[%s5632_s20 + $0x100] ss:$8 sps:$4 sm:$0xff]  }
  0xcd   : > { %5217 = vmatmul.mubr.bf16.vlgmr.msra.gmra.mxu0 %v4511_v19  ;;  %5272 = vmatprep.subr.bf16.mxu1 %v5490_v6  ;;  %v4513_v33 = vcombine.low %v2521_v12, %v2535_v27  ;;  %v2807_v36 = vrot.slane %v2805_v26, 4  ;;  %v2810_v44 = vrot.slane %v2808_v38, 5  ;;  %v5520_v26 = vld [vmem:[%s6466_s1 + $0x3e0] sm:$0xff]  }
  0xce   : > { %5249 = vmatpush3.bf16.msra.mxu0 %v5489_v52  ;;  %v2501_v45 = vor.u32 %v2500_v37, %v2497_v31  ;;  %v4531_v52 = vld [vmem:[%s5632_s20 + $0x74] sm:$0x1]  ;;  %v2765_v1 = vrot.slane %v2763_v57, 4  ;;  %v5498_v31 = vld [vmem:[%s6466_s1 + $0x358] sm:$0xff]   ;;  %v2789_v48 = vsel %vm5704_vm2, %v2784_v41, %v2788_v35  ;;  %v4640_v34 = vld [vmem:[%s5632_s20 + $0xa0] sm:$0xf] }
  0xcf   : > { %5250 = vmatprep.subr.bf16.mxu0 %v5491_v9  ;;  %5241 = vmatmul.mubr.bf16.vlgmr.msra.gmra.mxu1 %v4555_v39  ;;  %v2772_v2 = vshll.u32 %v4531_v52, 16  ;;  %v2814_v39 = vshll.u32 %v4537_v16, 16  ;;  %v2811_v50 = vor.u32 %v2810_v44, %v2807_v36  ;;  %v5514_v16 = vld [vmem:[%s5632_s20 + $0xc8] ss:$8 sps:$4 sm:$0xff]   ;;  %v5522_v41 = vld [vmem:[%s6466_s1 + $0x3d8] sm:$0xff]   ;;  %v3348_v44 = vshll.u32 %v4640_v34, 16 }
  0xd0   : > { %5273 = vmatpush3.bf16.msra.mxu1 %v5490_v6  ;;  %v2502_v55 = vrot.slane %v2501_v45, 4 }
  0xd1   : > { %5274 = vmatprep.subr.bf16.mxu1 %v5492_v30  ;;  %v2774_v23 = vrot.slane %v2772_v2, 5  ;;  %v2816_v45 = vrot.slane %v2814_v39, 5  ;;  %v2812_v52 = vrot.slane %v2811_v50, 4 }
  0xd2   : > { %5251 = vmatpush3.bf16.msra.mxu0 %v5491_v9  ;;  %v2507_v0 = vsel %vm5704_vm2, %v2502_v55, %v2506_v40  ;;  %v2768_v9 = vrot.slane %v2766_v63, 5  ;;  %v5513_v63 = vld [vmem:[%s5632_s20 + $0xb8] ss:$8 sps:$4 sm:$0xff]  }
  0xd3   : > { %5252 = vmatprep.subr.bf16.mxu0 %v5493_v43  ;;  %v4512_v6 = vcombine.low %v2493_v54, %v2507_v0  ;;  %v5505_v54 = vld [vmem:[%s5632_s20 + $0x98] ss:$8 sps:$4 sm:$0xff]   ;;  %v2817_v55 = vsel %vm5704_vm2, %v2812_v52, %v2816_v45  ;;  %v4683_v52 = vld [vmem:[%s5632_s20 + $0xe4] sm:$0x1] }
  0xd4   : > { %5275 = vmatpush3.bf16.msra.mxu1 %v5492_v30  ;;  %v2769_v19 = vor.u32 %v2768_v9, %v2765_v1  ;;  %v2796_v30 = vrot.slane %v2794_v21, 5  ;;  %v5511_v1 = vld [vmem:[%s6466_s1 + $0x3b0] sm:$0xff]   ;;  %v5516_v21 = vld [vmem:[%s6466_s1 + $0x3e8] sm:$0xff]  }
  0xd5   : > { %5220 = vmatprep.mubr.bf16.mxu0 %v4512_v6  ;;  %5276 = vmatprep.subr.bf16.mxu1 %v5494_v60  ;;  %v5508_v6 = vld [vmem:[%s5632_s20 + $0xf0] ss:$8 sps:$4 sm:$0xff]  }
  0xd6   : > { %5253 = vmatpush3.bf16.msra.mxu0 %v5493_v43  ;;  %v2770_v28 = vrot.slane %v2769_v19, 4  ;;  %v2797_v37 = vor.u32 %v2796_v30, %v2793_v29  ;;  %v2802_v43 = vrot.slane %v2800_v25, 5  ;;  %v5519_v19 = vld [vmem:[%s6466_s1 + $0x3a0] sm:$0xff]  }
  0xd7   : > { %5254 = vmatprep.subr.bf16.mxu0 %v5495_v5  ;;  %5221 = vmatmul.mubr.bf16.gmra.mxu0 %v4513_v33  ;;  %v4639_v33 = vld [vmem:[%s5632_s20 + $0x9c] sm:$0x1] }
  0xd8   : > { %5277 = vmatpush3.bf16.msra.mxu1 %v5494_v60  ;;  %v2775_v40 = vsel %vm5704_vm2, %v2770_v28, %v2774_v23  ;;  %v2798_v42 = vrot.slane %v2797_v37, 4  ;;  %5264 = vmatprep.mubr.bf16.mxu0 %v5505_v54  ;;  %v5504_v60 = vld [vmem:[%s6466_s1 + $0x340] sm:$0xff]   ;;  %v5518_v23 = vld [vmem:[%s5632_s20 + $0x110] ss:$8 sps:$4 sm:$0xff]   ;;  %v3350_v54 = vrot.slane %v3348_v44, 5 }
  0xd9   : > { %5278 = vmatprep.subr.bf16.mxu1 %v5496_v17  ;;  %v4556_v49 = vcombine.low %v2775_v40, %v2789_v48  ;;  %v5521_v28 = vld [vmem:[%s6466_s1 + $0x398] sm:$0xff]   ;;  %v4641_v37 = vld [vmem:[%s5632_s20 + $0xa4] sm:$0x1]  ;;  %v3340_v40 = vshll.u32 %v4639_v33, 16 }
  0xda   : > { %5255 = vmatpush3.bf16.msra.mxu0 %v5495_v5  ;;  %v2803_v51 = vsel %vm5704_vm2, %v2798_v42, %v2802_v43  ;;  %v3345_v43 = vshrl.u32 %v4640_v34, 16  ;;  %v3354_v45 = vshll.u32 %v4641_v37, 16  ;;  %v5527_v33 = vld [vmem:[%s6466_s1 + $0x380] sm:$0xff]  }
  0xdb   : > { %5256 = vmatprep.subr.bf16.mxu0 %v5497_v22  ;;  %5244 = vmatprep.mubr.bf16.mxu1 %v4556_v49  ;;  %v4557_v57 = vcombine.low %v2803_v51, %v2817_v55  ;;  %v3342_v51 = vrot.slane %v3340_v40, 5  ;;  %v5526_v40 = vld [vmem:[%s6466_s1 + $0x3c8] sm:$0xff]  }
  0xdc   : > { %5279 = vmatpush3.bf16.msra.mxu1 %v5496_v17  ;;  %v3356_v55 = vrot.slane %v3354_v45, 5 }
  0xdd   : > { %5280 = vmatprep.subr.bf16.mxu1 %v5498_v31  ;;  %5245 = vmatmul.mubr.bf16.gmra.mxu1 %v4557_v57 }
  0xde   : > { %5257 = vmatpush3.bf16.msra.mxu0 %v5497_v22  ;;  %5288 = vmatprep.mubr.bf16.mxu1 %v5506_v58 }
  0xdf   : > { %5258 = vmatprep.subr.bf16.mxu0 %v5499_v32 }
  0xe0   : > { %5281 = vmatpush3.bf16.msra.mxu1 %v5498_v31 }
  0xe1   : > { %5282 = vmatprep.subr.bf16.mxu1 %v5500_v46 }
  0xe2   : > { %5259 = vmatpush3.bf16.msra.mxu0 %v5499_v32  ;;  %v4638_v32 = vld [vmem:[%s5632_s20 + $0x98] sm:$0xf] }
  0xe3   : > { %5260 = vmatprep.subr.bf16.mxu0 %v5501_v47  ;;  %v3331_v38 = vshrl.u32 %v4638_v32, 16  ;;  %v3334_v39 = vshll.u32 %v4638_v32, 16  ;;  %v4686_v32 = vld [vmem:[%s5632_s20 + $0xf0] sm:$0xf] }
  0xe4   : > { %5283 = vmatpush3.bf16.msra.mxu1 %v5500_v46  ;;  %v4682_v46 = vld [vmem:[%s5632_s20 + $0xe0] sm:$0xf] }
  0xe5   : > { %5284 = vmatprep.subr.bf16.mxu1 %v5502_v53  ;;  %v3333_v49 = vrot.slane %v3331_v38, 4  ;;  %v3336_v50 = vrot.slane %v3334_v39, 5  ;;  %v3613_v57 = vshrl.u32 %v4682_v46, 16  ;;  %v4687_v39 = vld [vmem:[%s5632_s20 + $0xf4] sm:$0x1] }
  0xe6   : > { %5261 = vmatpush3.bf16.msra.mxu0 %v5501_v47  ;;  %v5523_v47 = vld [vmem:[%s6466_s1 + $0x390] sm:$0xff]  }
  0xe7   : > { %5262 = vmatprep.subr.bf16.mxu0 %v5503_v56  ;;  %v3337_v58 = vor.u32 %v3336_v50, %v3333_v49  ;;  %v4689_v49 = vld [vmem:[%s5632_s20 + $0xfc] sm:$0x1]  ;;  %v3641_v50 = vshrl.u32 %v4686_v32, 16 }
  0xe8   : > { %5285 = vmatpush3.bf16.msra.mxu1 %v5502_v53  ;;  %v3347_v53 = vrot.slane %v3345_v43, 4 }
  0xe9   : > { %5286 = vmatprep.subr.bf16.mxu1 %v5504_v60 }
  0xea   : > { %5263 = vmatpush3.bf16.msra.mxu0 %v5503_v56  ;;  %v4684_v56 = vld [vmem:[%s5632_s20 + $0xe8] sm:$0xf] }
  0xeb   : > { %5296 = vmatprep.subr.bf16.mxu0 %v5509_v59 }
  0xec   : > { %5287 = vmatpush3.bf16.msra.mxu1 %v5504_v60  ;;  %v3616_v60 = vshll.u32 %v4682_v46, 16 }
  0xed   : > { %v4978_v0 = vpop.f32.mrf.mxu0  ;;  %5265 = vmatmul.mubr.bf16.vlgmr.msra.gmra.mxu0 %v5507_v61  ;;  %5320 = vmatprep.subr.bf16.mxu1 %v5510_v3  ;;  %v3622_v61 = vshll.u32 %v4683_v52, 16 }
  0xee   : > { %v5002_v2 = vpop.f32.mrf.mxu1  ;;  %5297 = vmatpush3.bf16.msra.mxu0 %v5509_v59  ;;  %5268 = vmatprep.mubr.bf16.mxu0 %v5513_v63  ;;  %v4685_v59 = vld [vmem:[%s5632_s20 + $0xec] sm:$0x1]  ;;  %v3627_v63 = vshrl.u32 %v4684_v56, 16 }
  0xef   : > { %v6175_v4 = vadd.f32 %v5002_v2, %v4978_v0  ;;  %v425_v5 = vpop.f32.mrf.mxu0  ;;  %5298 = vmatprep.subr.bf16.mxu0 %v5511_v1  ;;  %5289 = vmatmul.mubr.bf16.vlgmr.msra.gmra.mxu1 %v5508_v6  ;;  %v5524_v0 = vld [vmem:[%s6466_s1 + $0x3d0] sm:$0xff]   ;;  %v3351_v2 = vor.u32 %v3350_v54, %v3347_v53  ;;  %v3636_v6 = vshll.u32 %v4685_v59, 16  ;;  %v3643_v59 = vrot.slane %v3641_v50, 4 }
  0xf0   : > { %v562_v7 = vpop.f32.mrf.mxu1  ;;  %5321 = vmatpush3.bf16.msra.mxu1 %v5510_v3  ;;  %5292 = vmatprep.mubr.bf16.mxu1 %v5517_v13  ;;  %v3615_v3 = vrot.slane %v3613_v57, 4  ;;  %v4643_v13 = vld [vmem:[%s5632_s20 + $0xac] sm:$0x1] }
  0xf1   : > { %v6181_v9 = vadd.f32 %v562_v7, %v425_v5  ;;  %v4979_v10 = vpop.f32.mrf.mxu0  ;;  %5322 = vmatprep.subr.bf16.mxu1 %v5512_v8  ;;  %v3630_v5 = vshll.u32 %v4684_v56, 16  ;;  %v4642_v7 = vld [vmem:[%s5632_s20 + $0xa8] sm:$0xf]  ;;  %v4646_v56 = vld [vmem:[%s5632_s20 + $0xb8] sm:$0xf] }
  0xf2   : > { %v5003_v12 = vpop.f32.mrf.mxu1  ;;  %5299 = vmatpush3.bf16.msra.mxu0 %v5511_v1  ;;  %v5525_v1 = vld [vmem:[%s6466_s1 + $0x388] sm:$0xff]  }
  0xf3   : > { %v6187_v14 = vadd.f32 %v5003_v12, %v4979_v10  ;;  %v428_v15 = vpop.f32.mrf.mxu0  ;;  %5300 = vmatprep.subr.bf16.mxu0 %v5515_v11  ;;  %v3618_v10 = vrot.slane %v3616_v60, 5  ;;  %v3629_v12 = vrot.slane %v3627_v63, 4 }
  0xf4   : > { %v565_v17 = vpop.f32.mrf.mxu1  ;;  %5323 = vmatpush3.bf16.msra.mxu1 %v5512_v8  ;;  %v3338_v8 = vrot.slane %v3337_v58, 4 }
  0xf5   : > { %v6190_v18 = vadd.f32 %v565_v17, %v428_v15  ;;  %v4982_v20 = vpop.f32.mrf.mxu0  ;;  %5269 = vmatmul.mubr.bf16.gmra.mxu0 %v5514_v16  ;;  %5324 = vmatprep.subr.bf16.mxu1 %v5516_v21  ;;  %v3352_v15 = vrot.slane %v3351_v2, 4  ;;  %v3632_v16 = vrot.slane %v3630_v5, 5  ;;  %v3638_v17 = vrot.slane %v3636_v6, 5  ;;  %v4647_v5 = vld [vmem:[%s5632_s20 + $0xbc] sm:$0x1] }
  0xf6   : > { %v5006_v22 = vpop.f32.mrf.mxu1  ;;  %5301 = vmatpush3.bf16.msra.mxu0 %v5515_v11  ;;  %v3624_v11 = vrot.slane %v3622_v61, 5  ;;  %v5528_v61 = vld [vmem:[%s6466_s1 + $0x3c0] sm:$0xff]  }
  0xf7   : > { %v6199_v24 = vadd.f32 %v5006_v22, %v4982_v20  ;;  %v441_v25 = vpop.f32.mrf.mxu0  ;;  %5302 = vmatprep.subr.bf16.mxu0 %v5519_v19  ;;  %5293 = vmatmul.mubr.bf16.gmra.mxu1 %v5518_v23  ;;  %v3359_v20 = vshrl.u32 %v4642_v7, 16  ;;  %v3619_v22 = vor.u32 %v3618_v10, %v3615_v3  ;;  %v4645_v23 = vld [vmem:[%s5632_s20 + $0xb4] sm:$0x1] }
  0xf8   : > { %v578_v27 = vpop.f32.mrf.mxu1  ;;  %5325 = vmatpush3.bf16.msra.mxu1 %v5516_v21  ;;  %v3343_v21 = vsel %vm5704_vm2, %v3338_v8, %v3342_v51  ;;  %v3382_v44 = vshll.u32 %v4645_v23, 16  ;;  %v3644_v51 = vshll.u32 %v4686_v32, 16  ;;  %v3387_v8 = vshrl.u32 %v4646_v56, 16 }
  0xf9   : > { %v6207_v29 = vadd.f32 %v578_v27, %v441_v25  ;;  %v4983_v30 = vpop.f32.mrf.mxu0  ;;  %5326 = vmatprep.subr.bf16.mxu1 %v5520_v26  ;;  %v3362_v25 = vshll.u32 %v4642_v7, 16  ;;  %v3357_v27 = vsel %vm5704_vm2, %v3352_v15, %v3356_v55  ;;  %v3650_v55 = vshll.u32 %v4687_v39, 16 }
  0xfa   : > { %v5007_v31 = vpop.f32.mrf.mxu1  ;;  %5303 = vmatpush3.bf16.msra.mxu0 %v5519_v19  ;;  %v4644_v19 = vld [vmem:[%s5632_s20 + $0xb0] sm:$0xf]  ;;  %v4670_v34 = vcombine.low %v3343_v21, %v3357_v27  ;;  %v3384_v54 = vrot.slane %v3382_v44, 5  ;;  %v3646_v60 = vrot.slane %v3644_v51, 5  ;;  %v3664_v7 = vshll.u32 %v4689_v49, 16 }
  0xfb   : > { %v6212_v35 = vadd.f32 %v5007_v31, %v4983_v30  ;;  %v444_v36 = vpop.f32.mrf.mxu0  ;;  %5304 = vmatprep.subr.bf16.mxu0 %v5521_v28  ;;  %v3361_v30 = vrot.slane %v3359_v20, 4  ;;  %v3373_v31 = vshrl.u32 %v4644_v19, 16  ;;  %v3364_v37 = vrot.slane %v3362_v25, 5  ;;  %v4692_v51 = vld [vmem:[%s5632_s20 + $0x108] sm:$0xf] }
  0xfc   : > { %v581_v42 = vpop.f32.mrf.mxu1  ;;  %5327 = vmatpush3.bf16.msra.mxu1 %v5520_v26  ;;  %v3368_v26 = vshll.u32 %v4643_v13, 16  ;;  %v3376_v43 = vshll.u32 %v4644_v19, 16  ;;  %5312 = vmatprep.mubr.bf16.mxu0 %v4670_v34  ;;  %v3647_v6 = vor.u32 %v3646_v60, %v3643_v59  ;;  %v4648_v13 = vld [vmem:[%s5632_s20 + $0xc0] sm:$0xf]  ;;  %v3390_v15 = vshll.u32 %v4646_v56, 16 }
  0xfd   : > { %v6222_v48 = vadd.f32 %v581_v42, %v444_v36  ;;  %5328 = vmatprep.subr.bf16.mxu1 %v5522_v41  ;;  %v3620_v36 = vrot.slane %v3619_v22, 4  ;;  %v3365_v46 = vor.u32 %v3364_v37, %v3361_v30  ;;  %v3666_v19 = vrot.slane %v3664_v7, 5  ;;  %v4650_v59 = vld [vmem:[%s5632_s20 + $0xc8] sm:$0xf] }
  0xfe   : > { %5305 = vmatpush3.bf16.msra.mxu0 %v5521_v28  ;;  %v3633_v28 = vor.u32 %v3632_v16, %v3629_v12  ;;  %v3370_v38 = vrot.slane %v3368_v26, 5  ;;  %v3378_v53 = vrot.slane %v3376_v43, 5  ;;  %v3389_v20 = vrot.slane %v3387_v8, 4  ;;  %v4649_v26 = vld [vmem:[%s5632_s20 + $0xc4] sm:$0x1] }
  0xff   : > { %5306 = vmatprep.subr.bf16.mxu0 %v5523_v47  ;;  %v3625_v45 = vsel %vm5704_vm2, %v3620_v36, %v3624_v11  ;;  %v3366_v58 = vrot.slane %v3365_v46, 4  ;;  %v3396_v21 = vshll.u32 %v4647_v5, 16  ;;  %v3392_v27 = vrot.slane %v3390_v15, 5 }
 0x100   : > { %5329 = vmatpush3.bf16.msra.mxu1 %v5522_v41  ;;  %v3634_v42 = vrot.slane %v3633_v28, 4  ;;  %v3375_v41 = vrot.slane %v3373_v31, 4  ;;  %v4690_v28 = vld [vmem:[%s5632_s20 + $0x100] sm:$0xf]  ;;  %v3401_v36 = vshrl.u32 %v4648_v13, 16  ;;  %v3404_v43 = vshll.u32 %v4648_v13, 16 }
 0x101   : > { %5330 = vmatprep.subr.bf16.mxu1 %v5524_v0  ;;  %v3398_v34 = vrot.slane %v3396_v21, 5  ;;  %v3393_v39 = vor.u32 %v3392_v27, %v3389_v20  ;;  %v3410_v44 = vshll.u32 %v4649_v26, 16  ;;  %v3669_v46 = vshrl.u32 %v4690_v28, 16  ;;  %v4653_v26 = vld [vmem:[%s5632_s20 + $0xd4] sm:$0x1] }
 0x102   : > { %5307 = vmatpush3.bf16.msra.mxu0 %v5523_v47  ;;  %v4688_v47 = vld [vmem:[%s5632_s20 + $0xf8] sm:$0xf]  ;;  %v3639_v52 = vsel %vm5704_vm2, %v3634_v42, %v3638_v17  ;;  %v3379_v63 = vor.u32 %v3378_v53, %v3375_v41  ;;  %v3648_v17 = vrot.slane %v3647_v6, 4  ;;  %v3403_v41 = vrot.slane %v3401_v36, 4  ;;  %v4651_v6 = vld [vmem:[%s5632_s20 + $0xcc] sm:$0x1] }
 0x103   : > { %5308 = vmatprep.subr.bf16.mxu0 %v5525_v1  ;;  %v4714_v57 = vcombine.low %v3625_v45, %v3639_v52  ;;  %v3655_v2 = vshrl.u32 %v4688_v47, 16  ;;  %v3658_v3 = vshll.u32 %v4688_v47, 16  ;;  %v4691_v45 = vld [vmem:[%s5632_s20 + $0x104] sm:$0x1]  ;;  %v4693_v52 = vld [vmem:[%s5632_s20 + $0x10c] sm:$0x1] }
 0x104   : > { %5331 = vmatpush3.bf16.msra.mxu1 %v5524_v0  ;;  %v3371_v0 = vsel %vm5704_vm2, %v3366_v58, %v3370_v38  ;;  %v3380_v10 = vrot.slane %v3379_v63, 4  ;;  %v3406_v56 = vrot.slane %v3404_v43, 5  ;;  %v3671_v58 = vrot.slane %v3669_v46, 4 }
 0x105   : > { %5332 = vmatprep.subr.bf16.mxu1 %v5526_v40  ;;  %5336 = vmatprep.mubr.bf16.mxu1 %v4714_v57  ;;  %v3657_v11 = vrot.slane %v3655_v2, 4  ;;  %v3660_v12 = vrot.slane %v3658_v3, 5  ;;  %v3412_v57 = vrot.slane %v3410_v44, 5  ;;  %v3678_v3 = vshll.u32 %v4691_v45, 16  ;;  %v4696_v45 = vld [vmem:[%s5632_s20 + $0x118] sm:$0xf] }
 0x106   : > { %5309 = vmatpush3.bf16.msra.mxu0 %v5525_v1  ;;  %v3652_v1 = vrot.slane %v3650_v55, 5  ;;  %v3385_v23 = vsel %vm5704_vm2, %v3380_v10, %v3384_v54  ;;  %v3407_v2 = vor.u32 %v3406_v56, %v3403_v41  ;;  %v3683_v5 = vshrl.u32 %v4692_v51, 16 }
 0x107   : > { %5310 = vmatprep.subr.bf16.mxu0 %v5527_v33  ;;  %v3661_v25 = vor.u32 %v3660_v12, %v3657_v11  ;;  %v4671_v31 = vcombine.low %v3371_v0, %v3385_v23  ;;  %v3686_v0 = vshll.u32 %v4692_v51, 16  ;;  %v3692_v10 = vshll.u32 %v4693_v52, 16  ;;  %v4652_v11 = vld [vmem:[%s5632_s20 + $0xd0] sm:$0xf] }
 0x108   : > { %5333 = vmatpush3.bf16.msra.mxu1 %v5526_v40  ;;  %v3653_v32 = vsel %vm5704_vm2, %v3648_v17, %v3652_v1  ;;  %v3415_v12 = vshrl.u32 %v4650_v59, 16  ;;  %v3680_v13 = vrot.slane %v3678_v3, 5  ;;  %v3685_v15 = vrot.slane %v3683_v5, 4 }
 0x109   : > { %5334 = vmatprep.subr.bf16.mxu1 %v5528_v61  ;;  %v3662_v38 = vrot.slane %v3661_v25, 4  ;;  %v3418_v21 = vshll.u32 %v4650_v59, 16  ;;  %v3424_v27 = vshll.u32 %v4651_v6, 16  ;;  %v3438_v44 = vshll.u32 %v4653_v26, 16 }
 0x10a   : > { %5311 = vmatpush3.bf16.msra.mxu0 %v5527_v33  ;;  %v3417_v20 = vrot.slane %v3415_v12, 4  ;;  %v3711_v59 = vshrl.u32 %v4696_v45, 16 }
 0x10b   : > { %v3667_v47 = vsel %vm5704_vm2, %v3662_v38, %v3666_v19  ;;  %v3694_v19 = vrot.slane %v3692_v10, 5  ;;  %v3426_v38 = vrot.slane %v3424_v27, 5 }
 0x10c   : > { %5335 = vmatpush3.bf16.msra.mxu1 %v5528_v61  ;;  %v4715_v53 = vcombine.low %v3653_v32, %v3667_v47 }
 0x10d   : > { %v5026_v16 = vpop.f32.mrf.mxu0  ;;  %5313 = vmatmul.mubr.bf16.vlgmr.msra.gmra.mxu0 %v4671_v31 }
 0x10e   : > { %v872_v22 = vadd.f32 %v5026_v16, %v6175_v4  ;;  %v5050_v30 = vpop.f32.mrf.mxu1  ;;  %v3688_v16 = vrot.slane %v3686_v0, 5  ;;  %v3713_v0 = vrot.slane %v3711_v59, 4 }
 0x10f   : > { %v839_v33 = vpop.f32.mrf.mxu0  ;;  %5337 = vmatmul.mubr.bf16.vlgmr.msra.gmra.mxu1 %v4715_v53 }
 0x110   : > { %v6270_v37 = vadd.f32 %v5050_v30, %v872_v22  ;;  %v870_v4 = vadd.f32 %v839_v33, %v6181_v9  ;;  %v1121_v40 = vpop.f32.mrf.mxu1  ;;  %v3394_v9 = vrot.slane %v3393_v39, 4  ;;  %v3689_v23 = vor.u32 %v3688_v16, %v3685_v15  ;;  %v4694_v30 = vld [vmem:[%s5632_s20 + $0x110] sm:$0xf] }
 0x111   : > { %v5027_v42 = vpop.f32.mrf.mxu0  ;;  %v3432_v39 = vshll.u32 %v4652_v11, 16  ;;  %v3697_v46 = vshrl.u32 %v4694_v30, 16 }
 0x112   : > { %v6276_v49 = vadd.f32 %v1121_v40, %v870_v4  ;;  %v873_v50 = vadd.f32 %v5027_v42, %v6187_v14  ;;  %v5051_v54 = vpop.f32.mrf.mxu1  ;;  %v3399_v63 = vsel %vm5704_vm2, %v3394_v9, %v3398_v34  ;;  %v3672_v14 = vshll.u32 %v4690_v28, 16  ;;  %v4695_v40 = vld [vmem:[%s5632_s20 + $0x114] sm:$0x1] }
 0x113   : > { %v842_v55 = vpop.f32.mrf.mxu0  ;;  %v3429_v28 = vshrl.u32 %v4652_v11, 16  ;;  %v3420_v34 = vrot.slane %v3418_v21, 5  ;;  %v3690_v36 = vrot.slane %v3689_v23, 4  ;;  %v3700_v9 = vshll.u32 %v4694_v30, 16 }
 0x114   : > { %v6282_v60 = vadd.f32 %v5051_v54, %v873_v50  ;;  %v871_v61 = vadd.f32 %v842_v55, %v6190_v18  ;;  %v1124_v1 = vpop.f32.mrf.mxu1  ;;  %v3674_v8 = vrot.slane %v3672_v14, 5  ;;  %v3408_v18 = vrot.slane %v3407_v2, 4  ;;  %v4697_v50 = vld [vmem:[%s5632_s20 + $0x11c] sm:$0x1]  ;;  %s4736_s20 = sshll.u32 %s6495_s15, 5 }
 0x115   : > { %v5030_v25 = vpop.f32.mrf.mxu0  ;;  %v3431_v4 = vrot.slane %v3429_v28, 4  ;;  %v3421_v43 = vor.u32 %v3420_v34, %v3417_v20  ;;  %v3695_v47 = vsel %vm5704_vm2, %v3690_v36, %v3694_v19  ;;  %v3699_v54 = vrot.slane %v3697_v46, 4  ;;  %s6423_s28 = scalar_lea.vmem %s6467_s2, %s4736_s20 }
 0x116   : > { %v6288_v7 = vadd.f32 %v1124_v1, %v871_v61  ;;  %v3675_v17 = vor.u32 %v3674_v8, %v3671_v58  ;;  %v3413_v22 = vsel %vm5704_vm2, %v3408_v18, %v3412_v57  ;;  %v876_v33 = vadd.f32 %v5030_v25, %v6199_v24 }
 0x117   : > { %v4672_v31 = vcombine.low %v3399_v63, %v3413_v22  ;;  %v855_v42 = vpop.f32.mrf.mxu0  ;;  %v3434_v24 = vrot.slane %v3432_v39, 5  ;;  %v3422_v53 = vrot.slane %v3421_v43, 4  ;;  %v3706_v55 = vshll.u32 %v4695_v40, 16 }
 0x118   : > { %v3676_v32 = vrot.slane %v3675_v17, 4  ;;  %v3440_v57 = vrot.slane %v3438_v44, 5  ;;  %v3702_v58 = vrot.slane %v3700_v9, 5  ;;  %v3714_v14 = vshll.u32 %v4696_v45, 16 }
 0x119   : > { %5316 = vmatprep.mubr.bf16.mxu0 %v4672_v31  ;;  %v5031_v51 = vpop.f32.mrf.mxu0  ;;  %v3435_v56 = vor.u32 %v3434_v24, %v3431_v4  ;;  %v3427_v63 = vsel %vm5704_vm2, %v3422_v53, %v3426_v38  ;;  %v3720_v1 = vshll.u32 %v4697_v50, 16  ;;  %v874_v2 = vadd.f32 %v855_v42, %v6207_v29 }
 0x11a   : > { %v3681_v41 = vsel %vm5704_vm2, %v3676_v32, %v3680_v13  ;;  %v3703_v5 = vor.u32 %v3702_v58, %v3699_v54  ;;  %v877_v6 = vadd.f32 %v5031_v51, %v6212_v35  ;;  %v3708_v8 = vrot.slane %v3706_v55, 5  ;;  %v5054_v13 = vpop.f32.mrf.mxu1 }
 0x11b   : > { %v4716_v52 = vcombine.low %v3681_v41, %v3695_v47  ;;  %v858_v61 = vpop.f32.mrf.mxu0  ;;  %v3436_v3 = vrot.slane %v3435_v56, 4  ;;  %v3716_v10 = vrot.slane %v3714_v14, 5  ;;  %v3722_v17 = vrot.slane %v3720_v1, 5 }
 0x11c   : > { %v875_v11 = vadd.f32 %v858_v61, %v6222_v48  ;;  %v3704_v18 = vrot.slane %v3703_v5, 4  ;;  %v1158_v19 = vadd.f32 %v5054_v13, %v876_v33  ;;  %v1137_v20 = vpop.f32.mrf.mxu1 }
 0x11d   : > { %5340 = vmatprep.mubr.bf16.mxu1 %v4716_v52  ;;  %v3441_v12 = vsel %vm5704_vm2, %v3436_v3, %v3440_v57  ;;  %v3717_v16 = vor.u32 %v3716_v10, %v3713_v0  ;;  %v1156_v35 = vadd.f32 %v1137_v20, %v874_v2 }
 0x11e   : > { %v4673_v15 = vcombine.low %v3427_v63, %v3441_v12  ;;  %v3709_v29 = vsel %vm5704_vm2, %v3704_v18, %v3708_v8  ;;  %v5055_v22 = vpop.f32.mrf.mxu1 }
 0x11f   : > { %v3718_v21 = vrot.slane %v3717_v16, 4  ;;  %v1159_v23 = vadd.f32 %v5055_v22, %v877_v6 }
 0x120   : > { %5317 = vmatmul.mubr.bf16.gmra.mxu0 %v4673_v15  ;;  %v1140_v26 = vpop.f32.mrf.mxu1 }
 0x121   : > { %v3723_v48 = vsel %vm5704_vm2, %v3718_v21, %v3722_v17  ;;  %v1157_v27 = vadd.f32 %v1140_v26, %v875_v11 }
 0x122   : > { %v4717_v25 = vcombine.low %v3709_v29, %v3723_v48 }
 0x124   : > { %5341 = vmatmul.mubr.bf16.gmra.mxu1 %v4717_v25 }
 0x12d   : > { %v5074_v28 = vpop.f32.mrf.mxu0 }
 0x12e   : > { %v1325_v30 = vadd.f32 %v5074_v28, %v6270_v37 }
 0x12f   : > { %v5098_v31 = vpop.f32.mrf.mxu1  ;;  %v1292_v32 = vpop.f32.mrf.mxu0 }
 0x130   : > { %v6315_v33 = vadd.f32 %v5098_v31, %v1325_v30  ;;  %v1323_v34 = vadd.f32 %v1292_v32, %v6276_v49 }
 0x131   : > { %v1463_v36 = vpop.f32.mrf.mxu1  ;;  %v6318_v38 = vpop.f32.mrf.mxu0 }
 0x132   : > { %v6320_v4 = vadd.f32 %v1463_v36, %v1323_v34 }
 0x133   : > { %v6322_v62 = vpop.f32.mrf.mxu1  ;;  %v6324_v39 = vpop.f32.mrf.mxu0 }
 0x135   : > { %v6326_v40 = vpop.f32.mrf.mxu1  ;;  %v5078_v42 = vpop.f32.mrf.mxu0 }
 0x136   : > { %v1329_v41 = vadd.f32 %v5078_v42, %v1158_v19 }
 0x137   : > { %v1308_v37 = vpop.f32.mrf.mxu0  ;;  %v5102_v43 = vpop.f32.mrf.mxu1 }
 0x138   : > { %v1327_v44 = vadd.f32 %v1308_v37, %v1156_v35  ;;  %v1500_v45 = vadd.f32 %v5102_v43, %v1329_v41 }
 0x139   : > { %v5079_v46 = vpop.f32.mrf.mxu0  ;;  %v1479_v47 = vpop.f32.mrf.mxu1 }
 0x13a   : > { %v1330_v49 = vadd.f32 %v5079_v46, %v1159_v23  ;;  %v1498_v24 = vadd.f32 %v1479_v47, %v1327_v44 }
 0x13b   : > { %v1311_v50 = vpop.f32.mrf.mxu0  ;;  %v5103_v9 = vpop.f32.mrf.mxu1 }
 0x13c   : > { %v1328_v51 = vadd.f32 %v1311_v50, %v1157_v27  ;;  %v6328_v52 = vadd.f32 %v5103_v9, %v1330_v49 }
 0x13d   : > { %v1482_v53 = vpop.f32.mrf.mxu1 }
 0x13e   : > { %v6330_v54 = vadd.f32 %v1482_v53, %v1328_v51 }
 0x14d   : > { %v5122_v55 = vpop.f32.mrf.mxu0 }
 0x14f   : > { %v1745_v56 = vpop.f32.mrf.mxu0  ;;  %v6332_v58 = vpop.f32.mrf.mxu1 }
 0x151   : > { %v5123_v57 = vpop.f32.mrf.mxu0  ;;  %v6334_v61 = vpop.f32.mrf.mxu1 }
 0x153   : > { %v1748_v59 = vpop.f32.mrf.mxu0  ;;  %v5147_v3 = vpop.f32.mrf.mxu1 }
 0x155   : > { %v5126_v63 = vpop.f32.mrf.mxu0  ;;  %v2030_v5 = vpop.f32.mrf.mxu1 }
 0x156   : > { %v1782_v14 = vadd.f32 %v5126_v63, %v1500_v45  ;;  %v1326_v63 = vadd.f32 %v6318_v38, %v6282_v60 }
 0x157   : > { %v1761_v1 = vpop.f32.mrf.mxu0 }
 0x158   : > { %v1780_v2 = vadd.f32 %v1761_v1, %v1498_v24  ;;  %v1324_v1 = vadd.f32 %v6324_v39, %v6288_v7 }
 0x159   : > { %v6340_v11 = vpop.f32.mrf.mxu0 }
 0x15b   : > { %v6342_v12 = vpop.f32.mrf.mxu0 }
 0x15d   : > { %v5150_v0 = vpop.f32.mrf.mxu1 }
 0x15e   : > { %v6336_v6 = vadd.f32 %v5150_v0, %v1782_v14  ;;  %v1497_v0 = vadd.f32 %v6322_v62, %v1326_v63 }
 0x15f   : > { %v2043_v8 = vpop.f32.mrf.mxu1 }
 0x160   : > { %v6338_v10 = vadd.f32 %v2043_v8, %v1780_v2 }
 0x161   : > { %v6344_v13 = vpop.f32.mrf.mxu1 }
 0x163   : > { %v6346_v16 = vpop.f32.mrf.mxu1 }
 0x16d   : > { %v5170_v18 = vpop.f32.mrf.mxu0 }
 0x16f   : > { %v2198_v15 = vpop.f32.mrf.mxu0  ;;  %v5194_v19 = vpop.f32.mrf.mxu1 }
 0x171   : > { %v5171_v17 = vpop.f32.mrf.mxu0  ;;  %v2369_v29 = vpop.f32.mrf.mxu1 }
 0x173   : > { %v2201_v20 = vpop.f32.mrf.mxu0  ;;  %v5195_v35 = vpop.f32.mrf.mxu1 }
 0x175   : > { %v6348_v21 = vpop.f32.mrf.mxu0  ;;  %v2372_v48 = vpop.f32.mrf.mxu1 }
 0x177   : > { %v6350_v22 = vpop.f32.mrf.mxu0  ;;  %v6352_v23 = vpop.f32.mrf.mxu1 }
 0x179   : > { %v6354_v25 = vpop.f32.mrf.mxu0  ;;  %v6356_v26 = vpop.f32.mrf.mxu1 }
 0x17b   : > { %v6358_v27 = vpop.f32.mrf.mxu0  ;;  %v6360_v30 = vpop.f32.mrf.mxu1 }
 0x17d   : > { %v6362_v32 = vpop.f32.mrf.mxu1 }
 0x17e   : > { %6472 = vst [vmem:[#allocation2_spill] sm:$0xff] %v6362_v32 }
 0x18d   : > { %v5218_v28 = vpop.f32.mrf.mxu0 }
 0x18f   : > { %v2651_v31 = vpop.f32.mrf.mxu0  ;;  %v5242_v34 = vpop.f32.mrf.mxu1 }
 0x191   : > { %v5219_v36 = vpop.f32.mrf.mxu0  ;;  %v2933_v42 = vpop.f32.mrf.mxu1 }
 0x193   : > { %v2654_v41 = vpop.f32.mrf.mxu0  ;;  %v5243_v37 = vpop.f32.mrf.mxu1 }
 0x195   : > { %v2936_v44 = vpop.f32.mrf.mxu1 }
 0x197   : > { %v6364_v43 = vpop.f32.mrf.mxu0 }
 0x198   : > { %6473 = vst [vmem:[#allocation3_spill] sm:$0xff] %v6364_v43 }
 0x199   : > { %v6366_v45 = vpop.f32.mrf.mxu0 }
 0x19a   : > { %6474 = vst [vmem:[#allocation4_spill] sm:$0xff] %v6366_v45 }
 0x19b   : > { %v6370_v47 = vpop.f32.mrf.mxu0 }
 0x19c   : > { %6476 = vst [vmem:[#allocation6_spill] sm:$0xff] %v6370_v47 }
 0x19d   : > { %v6368_v46 = vpop.f32.mrf.mxu1  ;;  %v6374_v24 = vpop.f32.mrf.mxu0 }
 0x19e   : > { %6475 = vst [vmem:[#allocation5_spill] sm:$0xff] %v6368_v46  ;;  %6478 = vst [vmem:[#allocation8_spill] sm:$0xff] %v6374_v24  ;;  %v1495_v46 = vadd.f32 %v6326_v40, %v1324_v1  ;;  %v1779_v24 = vadd.f32 %v5123_v57, %v1497_v0 }
 0x19f   : > { %v6372_v49 = vpop.f32.mrf.mxu1 }
 0x1a0   : > { %6477 = vst [vmem:[#allocation7_spill] sm:$0xff] %v6372_v49  ;;  %v1778_v49 = vadd.f32 %v5122_v55, %v6315_v33  ;;  %v1777_v47 = vadd.f32 %v1748_v59, %v1495_v46  ;;  %v2061_v32 = vadd.f32 %v5147_v3, %v1779_v24 }
 0x1a1   : > { %v6376_v50 = vpop.f32.mrf.mxu1 }
 0x1a2   : > { %6479 = vst [vmem:[#allocation9_spill] sm:$0xff] %v6376_v50  ;;  %v1776_v50 = vadd.f32 %v1745_v56, %v6320_v4  ;;  %v2060_v60 = vadd.f32 %v6332_v58, %v1778_v49  ;;  %v2059_v39 = vadd.f32 %v2030_v5, %v1777_v47  ;;  %v2232_v45 = vadd.f32 %v5171_v17, %v2061_v32 }
 0x1a3   : > { %v6378_v51 = vpop.f32.mrf.mxu1 }
 0x1a4   : > { %6480 = vst [vmem:[#allocation10_spill] sm:$0xff] %v6378_v51  ;;  %v2058_v38 = vadd.f32 %v6334_v61, %v1776_v50  ;;  %v2231_v62 = vadd.f32 %v5170_v18, %v2060_v60  ;;  %v2230_v1 = vadd.f32 %v2201_v20, %v2059_v39  ;;  %v2403_v57 = vadd.f32 %v5195_v35, %v2232_v45 }
 0x1a5   : > { %v1781_v45 = vadd.f32 %v6342_v12, %v6330_v54  ;;  %v2235_v54 = vadd.f32 %v6348_v21, %v6336_v6 }
 0x1a6   : > { %v2229_v63 = vadd.f32 %v2198_v15, %v2058_v38  ;;  %v2402_v55 = vadd.f32 %v5194_v19, %v2231_v62  ;;  %v2401_v59 = vadd.f32 %v2372_v48, %v2230_v1  ;;  %v2685_v61 = vadd.f32 %v5219_v36, %v2403_v57  ;;  %v6483_v57 = vld [vmem:[#allocation3_spill] sm:$0xff] }
 0x1a7   : > { %v2406_v21 = vadd.f32 %v6352_v23, %v2235_v54  ;;  %v6485_v23 = vld [vmem:[#allocation8_spill] sm:$0xff] }
 0x1a8   : > { %v2400_v56 = vadd.f32 %v2369_v29, %v2229_v63  ;;  %v2684_v58 = vadd.f32 %v5218_v28, %v2402_v55  ;;  %v2683_v5 = vadd.f32 %v2654_v41, %v2401_v59  ;;  %v2967_v17 = vadd.f32 %v5243_v37, %v2685_v61  ;;  %v6482_v55 = vld [vmem:[#allocation2_spill] sm:$0xff] }
 0x1a9   : > { %v2688_v59 = vadd.f32 %v6483_v57, %v2406_v21 }
 0x1aa   : > { %v2682_v46 = vadd.f32 %v2651_v31, %v2400_v56  ;;  %v2966_v18 = vadd.f32 %v5242_v34, %v2684_v58  ;;  %v2965_v47 = vadd.f32 %v2936_v44, %v2683_v5  ;;  %v1783_v31 = vadd.f32 %v6340_v11, %v6328_v52  ;;  %v6484_v58 = vld [vmem:[#allocation6_spill] sm:$0xff] }
 0x1ab   : > { %v2233_v52 = vadd.f32 %v6350_v22, %v6338_v10 }
 0x1ac   : > { %v2964_v15 = vadd.f32 %v2933_v42, %v2682_v46 }
 0x1ad   : > { %v5266_v9 = vpop.f32.mrf.mxu0 }
 0x1ae   : > { %v3137_v19 = vadd.f32 %v5266_v9, %v2966_v18 }
 0x1af   : > { %v3104_v53 = vpop.f32.mrf.mxu0  ;;  %v5290_v14 = vpop.f32.mrf.mxu1 }
 0x1b0   : > { %v3135_v29 = vadd.f32 %v3104_v53, %v2964_v15  ;;  %v3308_v34 = vadd.f32 %v5290_v14, %v3137_v19 }
 0x1b1   : > { %v5267_v2 = vpop.f32.mrf.mxu0  ;;  %v3275_v8 = vpop.f32.mrf.mxu1 }
 0x1b2   : > { %v3138_v35 = vadd.f32 %v5267_v2, %v2967_v17  ;;  %v3306_v42 = vadd.f32 %v3275_v8, %v3135_v29 }
 0x1b3   : > { %v3107_v51 = vpop.f32.mrf.mxu0  ;;  %v5291_v43 = vpop.f32.mrf.mxu1 }
 0x1b4   : > { %v3136_v28 = vadd.f32 %v3107_v51, %v2965_v47  ;;  %v3309_v37 = vadd.f32 %v5291_v43, %v3138_v35  ;;  %v2065_v51 = vadd.f32 %v6344_v13, %v1783_v31  ;;  %v2063_v43 = vadd.f32 %v6346_v16, %v1781_v45  ;;  %v6487_v35 = vld [vmem:[#allocation5_spill] sm:$0xff] }
 0x1b5   : > { %v6390_v7 = vpop.f32.mrf.mxu0  ;;  %v3278_v40 = vpop.f32.mrf.mxu1  ;;  %v2404_v13 = vadd.f32 %v6356_v26, %v2233_v52 }
 0x1b6   : > { %v3307_v50 = vadd.f32 %v3278_v40, %v3136_v28  ;;  %v2236_v12 = vadd.f32 %v6354_v25, %v2065_v51  ;;  %v2234_v62 = vadd.f32 %v6358_v27, %v2063_v43  ;;  %v6481_v25 = vld [vmem:[#allocation4_spill] sm:$0xff]  ;;  %v6488_v28 = vld [vmem:[#allocation9_spill] sm:$0xff] }
 0x1b7   : > { %v6392_v33 = vpop.f32.mrf.mxu0  ;;  %v6394_v4 = vpop.f32.mrf.mxu1  ;;  %v2686_v63 = vadd.f32 %v6481_v25, %v2404_v13 }
 0x1b8   : > { %v2407_v22 = vadd.f32 %v6360_v30, %v2236_v12  ;;  %v2405_v56 = vadd.f32 %v6482_v55, %v2234_v62  ;;  %v6486_v30 = vld [vmem:[#allocation7_spill] sm:$0xff] }
 0x1b9   : > { %v6396_v3 = vpop.f32.mrf.mxu0  ;;  %v6398_v49 = vpop.f32.mrf.mxu1  ;;  %v2968_v17 = vadd.f32 %v6486_v30, %v2686_v63 }
 0x1ba   : > { %v2689_v46 = vadd.f32 %v6484_v58, %v2407_v22  ;;  %v2687_v15 = vadd.f32 %v6485_v23, %v2405_v56 }
 0x1bb   : > { %v6400_v20 = vpop.f32.mrf.mxu0  ;;  %v6402_v32 = vpop.f32.mrf.mxu1 }
 0x1bc   : > { %v2971_v31 = vadd.f32 %v6488_v28, %v2689_v46 }
 0x1bd   : > { %v6406_v36 = vpop.f32.mrf.mxu1 }
 0x1cd   : > { %v5314_v48 = vpop.f32.mrf.mxu0 }
 0x1ce   : > { %v3590_v9 = vadd.f32 %v5314_v48, %v3308_v34  ;;  %v2970_v48 = vadd.f32 %v6487_v35, %v2688_v59 }
 0x1cf   : > { %v3557_v41 = vpop.f32.mrf.mxu0  ;;  %v5338_v24 = vpop.f32.mrf.mxu1 }
 0x1d0   : > { %v3588_v53 = vadd.f32 %v3557_v41, %v3306_v42  ;;  %v3872_v60 = vadd.f32 %v5338_v24, %v3590_v9  ;;  %v3139_v41 = vadd.f32 %v6392_v33, %v2968_v17  ;;  %v6489_v42 = vld [vmem:[#allocation10_spill] sm:$0xff]  ;;  %v3141_v45 = vadd.f32 %v6390_v7, %v2970_v48 }
 0x1d1   : > { %v5315_v44 = vpop.f32.mrf.mxu0  ;;  %v3839_v11 = vpop.f32.mrf.mxu1  ;;  %v3142_v24 = vadd.f32 %v6396_v3, %v2971_v31 }
 0x1d2   : > { %v3591_v2 = vadd.f32 %v5315_v44, %v3309_v37  ;;  %v3870_v38 = vadd.f32 %v3839_v11, %v3588_v53  ;;  %v3934_v61 = vmul.f32 %v3872_v60, %v3872_v60  ;;  %v2969_v37 = vadd.f32 %v6489_v42, %v2687_v15 }
 0x1d3   : > { %v3560_v0 = vpop.f32.mrf.mxu0  ;;  %v5339_v8 = vpop.f32.mrf.mxu1  ;;  %v3313_v51 = vadd.f32 %v6402_v32, %v3142_v24 }
 0x1d4   : > { %v3589_v14 = vadd.f32 %v3560_v0, %v3307_v50  ;;  %v3873_v39 = vadd.f32 %v5339_v8, %v3591_v2  ;;  %v3932_v40 = vmul.f32 %v3870_v38, %v3870_v38  ;;  %v3310_v50 = vadd.f32 %v6398_v49, %v3139_v41 }
 0x1d5   : > { %v3842_v10 = vpop.f32.mrf.mxu1  ;;  %v3140_v9 = vadd.f32 %v6400_v20, %v2969_v37  ;;  %v3312_v2 = vadd.f32 %v6394_v4, %v3141_v45 }
 0x1d6   : > { %v4753_v16 = vpack.c.bf16 %v3873_v39, %v3872_v60  ;;  %v3871_v6 = vadd.f32 %v3842_v10, %v3589_v14  ;;  %v3935_v47 = vmul.f32 %v3873_v39, %v3873_v39 }
 0x1d7   : > { %v3311_v0 = vadd.f32 %v6406_v36, %v3140_v9 }
 0x1d8   : > { %4765 = vst [vmem:[%s6423_s28 + $0x8] sm:$0xff] %v4753_v16   ;;  %v4748_v26 = vpack.c.bf16 %v3871_v6, %v3870_v38  ;;  %v3918_v27 = vadd.f32 %v3871_v6, %v3870_v38  ;;  %v3933_v1 = vmul.f32 %v3871_v6, %v3871_v6 }
 0x1da   : > { %4749 = vst [vmem:[%s6423_s28] sm:$0xff] %v4748_v26   ;;  %v3919_v5 = vadd.f32 %v3918_v27, %v3872_v60  ;;  %v3940_v18 = vadd.f32 %v3933_v1, %v3932_v40 }
 0x1dc   : > { %v3941_v19 = vadd.f32 %v3940_v18, %v3934_v61  ;;  %v3920_v29 = vadd.f32 %v3919_v5, %v3873_v39 }
 0x1de   : > { %v3942_v34 = vadd.f32 %v3941_v19, %v3935_v47 }
 0x1e0   : > { %v5318_v44 = vpop.f32.mrf.mxu0 }
 0x1e1   : > { %v3594_v14 = vadd.f32 %v5318_v44, %v3312_v2 }
 0x1e2   : > { %v3573_v53 = vpop.f32.mrf.mxu0 }
 0x1e3   : > { %v3592_v52 = vadd.f32 %v3573_v53, %v3310_v50 }
 0x1e4   : > { %v5319_v11 = vpop.f32.mrf.mxu0  ;;  %v5342_v33 = vpop.f32.mrf.mxu1 }
 0x1e5   : > { %v3595_v7 = vadd.f32 %v5319_v11, %v3313_v51  ;;  %v3876_v20 = vadd.f32 %v5342_v33, %v3594_v14 }
 0x1e6   : > { %v3576_v43 = vpop.f32.mrf.mxu0  ;;  %v3855_v3 = vpop.f32.mrf.mxu1 }
 0x1e7   : > { %v3874_v54 = vadd.f32 %v3855_v3, %v3592_v52  ;;  %v3593_v49 = vadd.f32 %v3576_v43, %v3311_v0  ;;  %v3938_v16 = vmul.f32 %v3876_v20, %v3876_v20 }
 0x1e8   : > { %v5343_v12 = vpop.f32.mrf.mxu1 }
 0x1e9   : > { %v3921_v8 = vadd.f32 %v3920_v29, %v3874_v54  ;;  %v3936_v60 = vmul.f32 %v3874_v54, %v3874_v54  ;;  %v3877_v4 = vadd.f32 %v5343_v12, %v3595_v7 }
 0x1ea   : > { %v3858_v38 = vpop.f32.mrf.mxu1 }
 0x1eb   : > { %v3943_v32 = vadd.f32 %v3942_v34, %v3936_v60  ;;  %v4763_v39 = vpack.c.bf16 %v3877_v4, %v3876_v20  ;;  %v3875_v13 = vadd.f32 %v3858_v38, %v3593_v49  ;;  %v3939_v22 = vmul.f32 %v3877_v4, %v3877_v4 }
 0x1ed   : > { %4767 = vst [vmem:[%s6423_s28 + $0x18] sm:$0xff] %v4763_v39   ;;  %v4758_v62 = vpack.c.bf16 %v3875_v13, %v3874_v54  ;;  %v3922_v36 = vadd.f32 %v3921_v8, %v3875_v13  ;;  %v3937_v10 = vmul.f32 %v3875_v13, %v3875_v13 }
 0x1ef   : > { %4766 = vst [vmem:[%s6423_s28 + $0x10] sm:$0xff] %v4758_v62   ;;  %v3923_v6 = vadd.f32 %v3922_v36, %v3876_v20  ;;  %v3944_v21 = vadd.f32 %v3943_v32, %v3937_v10 }
 0x1f1   : > { %v3924_v25 = vadd.f32 %v3923_v6, %v3877_v4  ;;  %v3945_v63 = vadd.f32 %v3944_v21, %v3938_v16 }
 0x1f3   : > { %v3925_v40 = vrot.slane %v3924_v25, 4  ;;  %v3946_v26 = vadd.f32 %v3945_v63, %v3939_v22 }
 0x1f5   : > { %v3926_v27 = vadd.f32 %v3925_v40, %v3924_v25  ;;  %v3947_v1 = vrot.slane %v3946_v26, 4 }
 0x1f7   : > { %v3927_v55 = vrot.slane %v3926_v27, 2  ;;  %v3948_v56 = vadd.f32 %v3947_v1, %v3946_v26 }
 0x1f9   : > { %v3928_v57 = vadd.f32 %v3927_v55, %v3926_v27  ;;  %v3949_v59 = vrot.slane %v3948_v56, 2 }
 0x1fb   : > { %v3929_v58 = vrot.slane %v3928_v57, 1  ;;  %v3950_v46 = vadd.f32 %v3949_v59, %v3948_v56 }
 0x1fd   : > { %v3930_v61 = vadd.f32 %v3929_v58, %v3928_v57  ;;  %v3951_v5 = vrot.slane %v3950_v46, 1 }
 0x1ff   : > { %3931 = vst [vmem:[%s261_s5] sm:$0x1] %v3930_v61  ;;  %v3952_v18 = vadd.f32 %v3951_v5, %v3950_v46 }
 0x201   : > { %3953 = vst [vmem:[%s267_s8] sm:$0x1] %v3952_v18 }
 0x202 PF: > { %s15_s17 = sadd.s32 1, %s5551_s17   ;;  %s6490_s15 = smov %s5547_s16 }
 0x203   : > { %p12_p5 = scmp.ge.s32.totalorder %s15_s17, 4   ;;  %s6491_s16 = smov %s6493_s18 }
 0x205   :  { %14 = sbr.rel (!%p12_p5) target bundleno = 2 (0x2), region = 107 }

// kernel: discriminator3_forward.5
= control target key start
LH: loop header
LB: loop body
LE: loop exit
PB: predicated region body
PF: predicated region fallthrough
CT: control target
= control target key end

     0   :  { %s4498_s15 = smov 0   ;;  %s4500_s16 = smov 0   ;;  %s5350_s0 = inlined_call_operand.vmem [shape: bf16[2,4,5,5,128], index: 0, kind: input, shape index: {}]   ;;  %s5351_s1 = inlined_call_operand.vmem [shape: bf16[16,128,128], index: 1, kind: input, shape index: {}]   ;;  %s5352_s2 = inlined_call_operand.vmem [shape: bf16[2,16,128], index: 2, kind: output, shape index: {0}]   ;;  %s5353_s3 = inlined_call_operand.vmem [shape: f32[2,1,128], index: 3, kind: output, shape index: {1}]   ;;  %s5354_s4 = inlined_call_operand.vmem [shape: f32[2,1,128], index: 4, kind: output, shape index: {2}]  }
   0x1   :  { %s4502_s17 = smov 0  }
   0x2 LB: > { %s27_s18 = sadd.s32 1, %s4464_s16  ;;  %p3322_p0 = scmp.ge.s32.totalorder %s4468_s17, 1  ;;  %s4468_s17 = sphi %s4502_s17, %s15_s17   ;;  %s4464_s16 = sphi %s4500_s16, %s5360_s16   ;;  %s4460_s15 = sphi %s4498_s15, %s5359_s15  }
   0x3   : > { %p29_p1 = scmp.ge.s32.totalorder %s27_s18, 2  ;;  %p194_p2 = scmp.lt.s32.totalorder %s4468_s17, 3 }
   0x5   : > { %s5362_s18 = smov (%p29_p1, %s27_s18), 0  ;;  %p195_p3 = pnand %p3322_p0, %p194_p2 }
   0x6   : > { %p239_p4 = scmp.lt.s32.totalorder (!%p195_p3), %s4460_s15, 1 }
   0x7   : > { %198 = sbr.rel (%p195_p3) target bundleno = 487 (0x1e7), region = 28 }
   0xc   : > { %v4286_v0 = vld [vmem:[%s5351_s1 + $0x78] sm:$0xff]   ;;  %v4470_v1 = vmov 0.0   ;;  %v4288_v3 = vld [vmem:[%s5351_s1 + $0x70] sm:$0xff]   ;;  %vm4471_vm0 = vmmov 0   ;;  %v4290_v5 = vld [vmem:[%s5351_s1 + $0x68] sm:$0xff]   ;;  %s5364_s15 = smov (!%p239_p4, %s4460_s15), 1  ;;  %v320_v9 = vlaneseq }
   0xd   : > { %3938 = vmatprep.subr.bf16.mxu0 %v4470_v1  ;;  %3958 = vmatprep.subr.bf16.mxu1 %v4470_v1  ;;  %v4287_v2 = vld [vmem:[%s5351_s1 + $0x38] sm:$0xff]   ;;  %v4289_v4 = vld [vmem:[%s5351_s1 + $0x30] sm:$0xff]   ;;  %v4291_v6 = vld [vmem:[%s5351_s1 + $0x28] sm:$0xff]   ;;  %s4258_s9 = smul.u32 80, %s5364_s15  ;;  %v4472_v16 = vmov 1983009808   ;;  %s261_s30 = scalar_lea.vmem %s5353_s3, %s5364_s15 }
   0xe   : > { %3939 = vmatpush3.bf16.msra.mxu0 %v4286_v0  ;;  %3954 = vmatprep.mubr.msk.bf16.mxu0 %vm4471_vm0, %v4470_v1  ;;  %v4292_v7 = vld [vmem:[%s5351_s1 + $0x60] sm:$0xff]   ;;  %v4294_v10 = vld [vmem:[%s5351_s1 + $0x58] sm:$0xff]   ;;  %v4296_v12 = vld [vmem:[%s5351_s1 + $0x50] sm:$0xff]   ;;  %v321_v14 = vshrl.u32 %v320_v9, 7  ;;  %v318_v17 = vunpack.c.l.s4 %v4472_v16  ;;  %vm573_vm1 = vsmask.f32 1280  ;;  %s267_s7 = scalar_lea.vmem %s5354_s4, %s5364_s15 }
   0xf   : > { %3959 = vmatpush3.bf16.msra.mxu1 %v4287_v2  ;;  %3940 = vmatprep.subr.bf16.mxu0 %v4470_v1  ;;  %v4293_v8 = vld [vmem:[%s5351_s1 + $0x20] sm:$0xff]   ;;  %v4295_v11 = vld [vmem:[%s5351_s1 + $0x18] sm:$0xff]   ;;  %s4569_s20 = scalar_lea.vmem %s5350_s0, %s4258_s9  ;;  %v4297_v13 = vld [vmem:[%s5351_s1 + $0x10] sm:$0xff]   ;;  %vm574_vm2 = vsmask.f32 3336  ;;  %s3786_s24 = sshll.u32 %s5364_s15, 3 }
  0x10   : > { %3960 = vmatprep.subr.bf16.mxu1 %v4470_v1  ;;  %3974 = vmatprep.mubr.msk.bf16.mxu1 %vm4471_vm0, %v4470_v1  ;;  %v4430_v15 = vld.sshfl [vmem:[%s4569_s20 + $0x14] sm:$0xf pattern:$0x76325410]  ;;  %v4298_v18 = vld [vmem:[%s5351_s1 + $0x48] sm:$0xff]   ;;  %v319_v20 = vunpack.c.0.s8 %v318_v17  ;;  %v4300_v25 = vld [vmem:[%s5351_s1 + $0x40] sm:$0xff]   ;;  %s255_s27 = scalar_lea.vmem %s5352_s2, %s3786_s24 }
  0x11   : > { %v4431_v19 = vld.sshfl [vmem:[%s4569_s20 + $0x1c] sm:$0xf pattern:$0x76325410]  ;;  %v4299_v23 = vld [vmem:[%s5351_s1 + $0x8] sm:$0xff]   ;;  %v4308_v31 = vld [vmem:[%s5351_s1 + $0xb0] sm:$0xff]  }
  0x12   : > { %3941 = vmatpush3.bf16.msra.mxu0 %v4288_v3  ;;  %v4432_v21 = vld.sshfl [vmem:[%s4569_s20] sm:$0xf pattern:$0x76325410]  ;;  %v4591_v24 = vsub.s32 %v319_v20, %v321_v14  ;;  %v331_v27 = vcombine.low %v4430_v15, %v4431_v19  ;;  %v4306_v29 = vld [vmem:[%s5351_s1 + $0xb8] sm:$0xff]   ;;  %v4309_v32 = vld [vmem:[%s5351_s1 + $0xf0] sm:$0xff]  }
  0x13   : > { %3961 = vmatpush3.bf16.msra.mxu1 %v4289_v4  ;;  %3942 = vmatprep.subr.bf16.mxu0 %v4470_v1  ;;  %v4433_v22 = vld.sshfl [vmem:[%s4569_s20 + $0x8] sm:$0xf pattern:$0x76325410]  ;;  %v4301_v26 = vld [vmem:[%s5351_s1] sm:$0xff]   ;;  %v4307_v30 = vld [vmem:[%s5351_s1 + $0xf8] sm:$0xff]  }
  0x14   : > { %3962 = vmatprep.subr.bf16.mxu1 %v4470_v1  ;;  %v442_v28 = vcombine.low %v4432_v21, %v4433_v22  ;;  %v4310_v33 = vld [vmem:[%s5351_s1 + $0xa8] sm:$0xff]   ;;  %v3362_v34 = vld.sshfl [vmem:[%s4569_s20] sm:$0x13 pattern:$0x76325410]  ;;  %vm575_vm3 = vmor %vm573_vm1, %vm574_vm2 }
  0x15   : > { %v4311_v35 = vld [vmem:[%s5351_s1 + $0xe8] sm:$0xff]   ;;  %v3363_v36 = vld.sshfl [vmem:[%s4569_s20 + $0x4] sm:$0x13 pattern:$0x76325410]  ;;  %v548_v37 = vcombine.high %v3362_v34, %v3362_v34  ;;  %v581_v44 = vshrl.u32 %v3362_v34, 16 }
  0x16   : > { %3943 = vmatpush3.bf16.msra.mxu0 %v4290_v5  ;;  %v3364_v38 = vld.sshfl [vmem:[%s4569_s20 + $0x8] sm:$0x13 pattern:$0x76325410]  ;;  %v556_v39 = vcombine.high %v3363_v36, %v3363_v36  ;;  %vm576_vm4 = vsmask.f32 5392 }
  0x17   : > { %3963 = vmatpush3.bf16.msra.mxu1 %v4291_v6  ;;  %3944 = vmatprep.subr.bf16.mxu0 %v4470_v1  ;;  %v3365_v40 = vld.sshfl [vmem:[%s4569_s20 + $0xc] sm:$0x13 pattern:$0x76325410]  ;;  %v564_v41 = vcombine.high %v3364_v38, %v3364_v38  ;;  %v4312_v42 = vld [vmem:[%s5351_s1 + $0xa0] sm:$0xff]   ;;  %v584_v45 = vshll.u32 %v3362_v34, 16  ;;  %vm4640_vm6 = vmor %vm575_vm3, %vm576_vm4 }
  0x18   : > { %3964 = vmatprep.subr.bf16.mxu1 %v4470_v1  ;;  %v572_v43 = vcombine.high %v3365_v40, %v3365_v40  ;;  %vm578_vm5 = vsmask.f32 7448  ;;  %v4313_v46 = vld [vmem:[%s5351_s1 + $0xe0] sm:$0xff]   ;;  %v590_v47 = vshll.u32 %v548_v37, 16  ;;  %v595_v48 = vshrl.u32 %v3363_v36, 16  ;;  %v4314_v60 = vld [vmem:[%s5351_s1 + $0x98] sm:$0xff]  }
  0x19   : > { %v598_v49 = vshll.u32 %v3363_v36, 16  ;;  %v604_v50 = vshll.u32 %v556_v39, 16  ;;  %v583_v52 = vrot.slane %v581_v44, 6  ;;  %v586_v53 = vrot.slane %v584_v45, 7  ;;  %v4315_v2 = vld [vmem:[%s5351_s1 + $0xd8] sm:$0xff]   ;;  %vm4655_vm7 = vmor %vm4640_vm6, %vm578_vm5  ;;  %v4318_v37 = vld [vmem:[%s5351_s1 + $0x88] sm:$0xff]  }
  0x1a   : > { %3945 = vmatpush3.bf16.msra.mxu0 %v4292_v7  ;;  %v609_v54 = vshrl.u32 %v3364_v38, 16  ;;  %v612_v55 = vshll.u32 %v3364_v38, 16  ;;  %v592_v56 = vrot.slane %v590_v47, 7  ;;  %v597_v57 = vrot.slane %v595_v48, 6  ;;  %v4427_v3 = vld [vmem:[%s5351_s1 + $0x3c8] sm:$0xff]  }
  0x1b   : > { %3965 = vmatpush3.bf16.msra.mxu1 %v4293_v8  ;;  %3946 = vmatprep.subr.bf16.mxu0 %v4470_v1  ;;  %v600_v58 = vrot.slane %v598_v49, 7  ;;  %v606_v59 = vrot.slane %v604_v50, 7  ;;  %v587_v61 = vor.u32 %v586_v53, %v583_v52  ;;  %v618_v0 = vshll.u32 %v564_v41, 16 }
  0x1c   : > { %3966 = vmatprep.subr.bf16.mxu1 %v4470_v1  ;;  %v611_v62 = vrot.slane %v609_v54, 6  ;;  %v614_v63 = vrot.slane %v612_v55, 7  ;;  %v623_v5 = vshrl.u32 %v3365_v40, 16  ;;  %v626_v6 = vshll.u32 %v3365_v40, 16 }
  0x1d   : > { %v601_v4 = vor.u32 %v600_v58, %v597_v57  ;;  %v632_v7 = vshll.u32 %v572_v43, 16  ;;  %v588_v8 = vrot.slane %v587_v61, 2  ;;  %v4320_v58 = vld [vmem:[%s5351_s1 + $0x80] sm:$0xff]  }
  0x1e   : > { %3947 = vmatpush3.bf16.msra.mxu0 %v4294_v10  ;;  %v615_v9 = vor.u32 %v614_v63, %v611_v62  ;;  %v620_v10 = vrot.slane %v618_v0, 7  ;;  %v628_v14 = vrot.slane %v626_v6, 7  ;;  %v4321_v63 = vld [vmem:[%s5351_s1 + $0xc0] sm:$0xff]  }
  0x1f   : > { %3967 = vmatpush3.bf16.msra.mxu1 %v4295_v11  ;;  %3948 = vmatprep.subr.bf16.mxu0 %v4470_v1  ;;  %v3394_v11 = vld.sshfl [vmem:[%s4569_s20 + $0x14] sm:$0x13 pattern:$0x76325410]  ;;  %v634_v15 = vrot.slane %v632_v7, 7  ;;  %v593_v16 = vsel %vm4655_vm7, %v588_v8, %v592_v56 }
  0x20   : > { %3968 = vmatprep.subr.bf16.mxu1 %v4470_v1  ;;  %v616_v17 = vrot.slane %v615_v9, 2  ;;  %v777_v19 = vcombine.high %v3394_v11, %v3394_v11  ;;  %v803_v20 = vshrl.u32 %v3394_v11, 16 }
  0x22   : > { %3949 = vmatpush3.bf16.msra.mxu0 %v4296_v12  ;;  %v602_v12 = vrot.slane %v601_v4, 2  ;;  %v812_v36 = vshll.u32 %v777_v19, 16 }
  0x23   : > { %3969 = vmatpush3.bf16.msra.mxu1 %v4297_v13  ;;  %3950 = vmatprep.subr.bf16.mxu0 %v4470_v1  ;;  %v625_v13 = vrot.slane %v623_v5, 6 }
  0x24   : > { %3970 = vmatprep.subr.bf16.mxu1 %v4470_v1  ;;  %v607_v21 = vsel %vm4655_vm7, %v602_v12, %v606_v59  ;;  %v814_v44 = vrot.slane %v812_v36, 7  ;;  %v3482_v36 = vld.sshfl [vmem:[%s4569_s20 + $0x28] sm:$0x13 pattern:$0x76325410] }
  0x25   : > { %v629_v22 = vor.u32 %v628_v14, %v625_v13 }
  0x26   : > { %3951 = vmatpush3.bf16.msra.mxu0 %v4298_v18  ;;  %v3395_v18 = vld.sshfl [vmem:[%s4569_s20 + $0x18] sm:$0x13 pattern:$0x76325410] }
  0x27   : > { %3971 = vmatpush3.bf16.msra.mxu1 %v4299_v23  ;;  %3952 = vmatprep.subr.bf16.mxu0 %v4470_v1  ;;  %v3396_v23 = vld.sshfl [vmem:[%s4569_s20 + $0x1c] sm:$0x13 pattern:$0x76325410]  ;;  %v817_v39 = vshrl.u32 %v3395_v18, 16  ;;  %v820_v40 = vshll.u32 %v3395_v18, 16 }
  0x28   : > { %3972 = vmatprep.subr.bf16.mxu1 %v4470_v1  ;;  %v793_v34 = vcombine.high %v3396_v23, %v3396_v23  ;;  %v831_v45 = vshrl.u32 %v3396_v23, 16  ;;  %v834_v53 = vshll.u32 %v3396_v23, 16 }
  0x29   : > { %v819_v48 = vrot.slane %v817_v39, 6  ;;  %v822_v49 = vrot.slane %v820_v40, 7  ;;  %v4336_v39 = vld [vmem:[%s5351_s1 + $0x100] sm:$0xff]  }
  0x2a   : > { %3953 = vmatpush3.bf16.msra.mxu0 %v4300_v25  ;;  %v785_v25 = vcombine.high %v3395_v18, %v3395_v18  ;;  %v833_v52 = vrot.slane %v831_v45, 6  ;;  %v840_v54 = vshll.u32 %v793_v34, 16  ;;  %v836_v61 = vrot.slane %v834_v53, 7 }
  0x2b   : > { %3973 = vmatpush3.bf16.msra.mxu1 %v4301_v26  ;;  %3978 = vmatprep.subr.bf16.mxu0 %v4470_v1  ;;  %v806_v26 = vshll.u32 %v3394_v11, 16  ;;  %v823_v55 = vor.u32 %v822_v49, %v819_v48  ;;  %v4434_v34 = vld.sshfl [vmem:[%s4569_s20 + $0x28] sm:$0xf pattern:$0x76325410]  ;;  %v1298_v45 = vshll.u32 %v3482_v36, 16 }
  0x2c   : > { %3998 = vmatprep.subr.bf16.mxu1 %v4470_v1  ;;  %v826_v41 = vshll.u32 %v785_v25, 16  ;;  %v837_v6 = vor.u32 %v836_v61, %v833_v52  ;;  %v842_v7 = vrot.slane %v840_v54, 7  ;;  %v4326_v25 = vld [vmem:[%s5351_s1 + $0x128] sm:$0xff]   ;;  %v4342_v52 = vld [vmem:[%s5351_s1 + $0x1b8] sm:$0xff]   ;;  %v4344_v61 = vld [vmem:[%s5351_s1 + $0x1b0] sm:$0xff]  }
  0x2d   : > { %3955 = vmatmul.mubr.bf16.vlgmr.msra.gmra.mxu0 %v331_v27  ;;  %v4316_v27 = vld [vmem:[%s5351_s1 + $0x90] sm:$0xff]   ;;  %v4436_v40 = vld.sshfl [vmem:[%s4569_s20 + $0x3c] sm:$0xf pattern:$0x76325410] }
  0x2e   : > { %3975 = vmatmul.mubr.bf16.vlgmr.msra.gmra.mxu1 %v442_v28  ;;  %3979 = vmatpush3.bf16.msra.mxu0 %v4306_v29  ;;  %v621_v28 = vsel %vm4655_vm7, %v616_v17, %v620_v10  ;;  %v653_v29 = vcombine.low %v593_v16, %v607_v21  ;;  %v828_v50 = vrot.slane %v826_v41, 7  ;;  %v838_v12 = vrot.slane %v837_v6, 2  ;;  %v4437_v41 = vld.sshfl [vmem:[%s4569_s20 + $0x44] sm:$0xf pattern:$0x76325410] }
  0x2f   : > { %3999 = vmatpush3.bf16.msra.mxu1 %v4307_v30  ;;  %3980 = vmatprep.subr.bf16.mxu0 %v4470_v1  ;;  %v3397_v30 = vld.sshfl [vmem:[%s4569_s20 + $0x20] sm:$0x13 pattern:$0x76325410]  ;;  %v4343_v6 = vld [vmem:[%s5351_s1 + $0x1f8] sm:$0xff]  }
  0x30   : > { %4000 = vmatprep.subr.bf16.mxu1 %v4470_v1  ;;  %3994 = vmatprep.mubr.msk.bf16.mxu0 %vm4471_vm0, %v4470_v1  ;;  %v801_v38 = vcombine.high %v3397_v30, %v3397_v30  ;;  %v845_v56 = vshrl.u32 %v3397_v30, 16  ;;  %v848_v57 = vshll.u32 %v3397_v30, 16  ;;  %v661_v59 = vrot.slane %v653_v29, %v4591_v24  ;;  %v4330_v29 = vld [vmem:[%s5351_s1 + $0x118] sm:$0xff]   ;;  %v4329_v30 = vld [vmem:[%s5351_s1 + $0x160] sm:$0xff]  }
  0x31   : > { %4014 = vmatprep.mubr.msk.bf16.mxu1 %vm4471_vm0, %v4470_v1  ;;  %v843_v16 = vsel %vm4655_vm7, %v838_v12, %v842_v7 }
  0x32   : > { %3981 = vmatpush3.bf16.msra.mxu0 %v4308_v31  ;;  %v805_v31 = vrot.slane %v803_v20, 6  ;;  %v854_v62 = vshll.u32 %v801_v38, 16  ;;  %v847_v4 = vrot.slane %v845_v56, 6  ;;  %v850_v5 = vrot.slane %v848_v57, 7  ;;  %v4324_v20 = vld [vmem:[%s5351_s1 + $0x130] sm:$0xff]   ;;  %v4337_v56 = vld [vmem:[%s5351_s1 + $0x140] sm:$0xff]  }
  0x33   : > { %4001 = vmatpush3.bf16.msra.mxu1 %v4309_v32  ;;  %3982 = vmatprep.subr.bf16.mxu0 %v4470_v1  ;;  %v4317_v32 = vld [vmem:[%s5351_s1 + $0xd0] sm:$0xff]   ;;  %v3483_v38 = vld.sshfl [vmem:[%s4569_s20 + $0x2c] sm:$0x13 pattern:$0x76325410]  ;;  %v1300_v57 = vrot.slane %v1298_v45, 7 }
  0x34   : > { %4002 = vmatprep.subr.bf16.mxu1 %v4470_v1  ;;  %v856_v8 = vrot.slane %v854_v62, 7  ;;  %v851_v10 = vor.u32 %v850_v5, %v847_v4  ;;  %v1277_v48 = vcombine.high %v3483_v38, %v3483_v38  ;;  %v1312_v49 = vshll.u32 %v3483_v38, 16  ;;  %v4800_v5 = vld.sshfl [vmem:[%s4569_s20 + $0x40] sm:$0x13 pattern:$0x76325410] }
  0x36   : > { %3983 = vmatpush3.bf16.msra.mxu0 %v4310_v33  ;;  %v630_v33 = vrot.slane %v629_v22, 2  ;;  %v852_v14 = vrot.slane %v851_v10, 2  ;;  %v4323_v22 = vld [vmem:[%s5351_s1 + $0x178] sm:$0xff]   ;;  %v1314_v62 = vrot.slane %v1312_v49, 7  ;;  %v1161_v10 = vcombine.low %v4436_v40, %v4437_v41 }
  0x37   : > { %4003 = vmatpush3.bf16.msra.mxu1 %v4311_v35  ;;  %3984 = vmatprep.subr.bf16.mxu0 %v4470_v1  ;;  %v808_v35 = vrot.slane %v806_v26, 7  ;;  %v4325_v26 = vld [vmem:[%s5351_s1 + $0x170] sm:$0xff]  }
  0x38   : > { %4004 = vmatprep.subr.bf16.mxu1 %v4470_v1  ;;  %v857_v17 = vsel %vm4655_vm7, %v852_v14, %v856_v8  ;;  %v4346_v14 = vld [vmem:[%s5351_s1 + $0x1a8] sm:$0xff]  }
  0x39   : > { %v809_v43 = vor.u32 %v808_v35, %v805_v31  ;;  %v876_v18 = vcombine.low %v843_v16, %v857_v17  ;;  %v4332_v31 = vld [vmem:[%s5351_s1 + $0x110] sm:$0xff]   ;;  %v3517_v17 = vld.sshfl [vmem:[%s4569_s20 + $0x48] sm:$0x13 pattern:$0x76325410] }
  0x3a   : > { %3985 = vmatpush3.bf16.msra.mxu0 %v4312_v42  ;;  %v635_v42 = vsel %vm4655_vm7, %v630_v33, %v634_v15  ;;  %v4322_v15 = vld [vmem:[%s5351_s1 + $0x138] sm:$0xff]   ;;  %v4334_v33 = vld [vmem:[%s5351_s1 + $0x108] sm:$0xff]   ;;  %v4435_v35 = vld.sshfl [vmem:[%s4569_s20 + $0x30] sm:$0xf pattern:$0x76325410] }
  0x3b   : > { %4005 = vmatpush3.bf16.msra.mxu1 %v4313_v46  ;;  %3986 = vmatprep.subr.bf16.mxu0 %v4470_v1  ;;  %v4319_v46 = vld [vmem:[%s5351_s1 + $0xc8] sm:$0xff]   ;;  %v654_v47 = vcombine.low %v621_v28, %v635_v42  ;;  %v810_v51 = vrot.slane %v809_v43, 2  ;;  %v890_v21 = vrot.slane %v876_v18, %v4591_v24  ;;  %v1295_v42 = vshrl.u32 %v3482_v36, 16 }
  0x3c   : > { %4006 = vmatprep.subr.bf16.mxu1 %v4470_v1  ;;  %v4327_v28 = vld [vmem:[%s5351_s1 + $0x168] sm:$0xff]   ;;  %v3484_v43 = vld.sshfl [vmem:[%s4569_s20 + $0x30] sm:$0x13 pattern:$0x76325410] }
  0x3d   : > { %v815_v0 = vsel %vm4655_vm7, %v810_v51, %v814_v44  ;;  %v1269_v44 = vcombine.high %v3482_v36, %v3482_v36  ;;  %v3485_v51 = vld.sshfl [vmem:[%s4569_s20 + $0x34] sm:$0x13 pattern:$0x76325410]  ;;  %v1285_v53 = vcombine.high %v3484_v43, %v3484_v43  ;;  %v1297_v54 = vrot.slane %v1295_v42, 6 }
  0x3e   : > { %3987 = vmatpush3.bf16.msra.mxu0 %v4314_v60  ;;  %v668_v60 = vrot.slane %v654_v47, %v4591_v24  ;;  %v4335_v47 = vld [vmem:[%s5351_s1 + $0x148] sm:$0xff]   ;;  %v1340_v4 = vshll.u32 %v3485_v51, 16 }
  0x3f   : > { %4007 = vmatpush3.bf16.msra.mxu1 %v4315_v2  ;;  %3988 = vmatprep.subr.bf16.mxu0 %v4470_v1  ;;  %v824_v2 = vrot.slane %v823_v55, 2  ;;  %v4784_v55 = vshll.u32 %v1269_v44, 16  ;;  %v4808_v8 = vshll.u32 %v1285_v53, 16 }
  0x40   : > { %4008 = vmatprep.subr.bf16.mxu1 %v4470_v1  ;;  %v669_v11 = vcombine.low %v661_v59, %v668_v60  ;;  %v1323_v59 = vshrl.u32 %v3484_v43, 16  ;;  %v1326_v60 = vshll.u32 %v3484_v43, 16 }
  0x41   : > { %v829_v9 = vsel %vm4655_vm7, %v824_v2, %v828_v50  ;;  %v1026_v50 = vcombine.low %v4434_v34, %v4435_v35  ;;  %v1337_v2 = vshrl.u32 %v3485_v51, 16  ;;  %v1306_v7 = vrot.slane %v4784_v55, 7  ;;  %v4348_v34 = vld [vmem:[%s5351_s1 + $0x1a0] sm:$0xff]  }
  0x42   : > { %3989 = vmatpush3.bf16.msra.mxu0 %v4316_v27  ;;  %v875_v13 = vcombine.low %v815_v0, %v829_v9  ;;  %v4328_v27 = vld [vmem:[%s5351_s1 + $0x120] sm:$0xff]   ;;  %v4796_v0 = vld.sshfl [vmem:[%s4569_s20 + $0x3c] sm:$0x13 pattern:$0x76325410]  ;;  %v1325_v12 = vrot.slane %v1323_v59, 6 }
  0x43   : > { %4009 = vmatpush3.bf16.msra.mxu1 %v4317_v32  ;;  %3990 = vmatprep.subr.bf16.mxu0 %v4470_v1  ;;  %v4331_v32 = vld [vmem:[%s5351_s1 + $0x158] sm:$0xff]   ;;  %v4811_v9 = vld.sshfl [vmem:[%s4569_s20 + $0x44] sm:$0x13 pattern:$0x76325410]  ;;  %v1339_v18 = vrot.slane %v1337_v2, 6  ;;  %v1491_v36 = vcombine.high %v4796_v0, %v4796_v0 }
  0x44   : > { %4010 = vmatprep.subr.bf16.mxu1 %v4470_v1  ;;  %v883_v19 = vrot.slane %v875_v13, %v4591_v24  ;;  %v1328_v13 = vrot.slane %v1326_v60, 7  ;;  %v1334_v45 = vrot.slane %v4808_v8, 7  ;;  %v1507_v49 = vcombine.high %v4811_v9, %v4811_v9  ;;  %v4349_v60 = vld [vmem:[%s5351_s1 + $0x1e0] sm:$0xff]  }
  0x45   : > { %v1526_v53 = vshll.u32 %v1491_v36, 16  ;;  %v4360_v36 = vld [vmem:[%s5351_s1 + $0x230] sm:$0xff]  }
  0x46   : > { %3991 = vmatpush3.bf16.msra.mxu0 %v4318_v37  ;;  %v891_v23 = vcombine.low %v883_v19, %v890_v21  ;;  %v4333_v37 = vld [vmem:[%s5351_s1 + $0x150] sm:$0xff]   ;;  %v1342_v19 = vrot.slane %v1340_v4, 7  ;;  %v1520_v21 = vshll.u32 %v4796_v0, 16 }
  0x47   : > { %4011 = vmatpush3.bf16.msra.mxu1 %v4319_v46  ;;  %3992 = vmatprep.subr.bf16.mxu0 %v4470_v1  ;;  %v1309_v46 = vshrl.u32 %v3483_v38, 16  ;;  %v1562_v38 = vshll.u32 %v3517_v17, 16 }
  0x48   : > { %4012 = vmatprep.subr.bf16.mxu1 %v4470_v1  ;;  %v1343_v35 = vor.u32 %v1342_v19, %v1339_v18  ;;  %v1522_v41 = vrot.slane %v1520_v21, 7  ;;  %v4354_v18 = vld [vmem:[%s5351_s1 + $0x188] sm:$0xff]   ;;  %v4353_v19 = vld [vmem:[%s5351_s1 + $0x1d0] sm:$0xff]  }
  0x4a   : > { %3993 = vmatpush3.bf16.msra.mxu0 %v4320_v58  ;;  %v1311_v58 = vrot.slane %v1309_v46, 6 }
  0x4b   : > { %4013 = vmatpush3.bf16.msra.mxu1 %v4321_v63  ;;  %4018 = vmatprep.subr.bf16.mxu0 %v4470_v1  ;;  %v4793_v63 = vshll.u32 %v1277_v48, 16  ;;  %v4350_v48 = vld [vmem:[%s5351_s1 + $0x198] sm:$0xff]  }
  0x4c   : > { %4038 = vmatprep.subr.bf16.mxu1 %v4470_v1  ;;  %v1315_v16 = vor.u32 %v1314_v62, %v1311_v58 }
  0x4d   : > { %3995 = vmatmul.mubr.bf16.vlgmr.msra.gmra.mxu0 %v669_v11  ;;  %v1301_v11 = vor.u32 %v1300_v57, %v1297_v54 }
  0x4e   : > { %4019 = vmatpush3.bf16.msra.mxu0 %v4322_v15  ;;  %4034 = vmatprep.mubr.msk.bf16.mxu0 %vm4471_vm0, %v4470_v1  ;;  %v1293_v15 = vcombine.high %v3485_v51, %v3485_v51 }
  0x4f   : > { %4020 = vmatprep.subr.bf16.mxu0 %v4470_v1  ;;  %4015 = vmatmul.mubr.bf16.vlgmr.msra.gmra.mxu1 %v891_v23  ;;  %v1534_v23 = vshll.u32 %v4800_v5, 16 }
  0x50   : > { %4039 = vmatpush3.bf16.msra.mxu1 %v4323_v22  ;;  %4054 = vmatprep.mubr.msk.bf16.mxu1 %vm4471_vm0, %v4470_v1  ;;  %v1531_v22 = vshrl.u32 %v4800_v5, 16 }
  0x51   : > { %4040 = vmatprep.subr.bf16.mxu1 %v4470_v1  ;;  %v1536_v43 = vrot.slane %v1534_v23, 7 }
  0x52   : > { %4021 = vmatpush3.bf16.msra.mxu0 %v4324_v20  ;;  %v1517_v20 = vshrl.u32 %v4796_v0, 16  ;;  %v1533_v42 = vrot.slane %v1531_v22, 6 }
  0x53   : > { %4022 = vmatprep.subr.bf16.mxu0 %v4470_v1 }
  0x54   : > { %4041 = vmatpush3.bf16.msra.mxu1 %v4325_v26  ;;  %v1302_v26 = vrot.slane %v1301_v11, 2  ;;  %v1519_v40 = vrot.slane %v1517_v20, 6  ;;  %v1537_v59 = vor.u32 %v1536_v43, %v1533_v42  ;;  %v4363_v42 = vld [vmem:[%s5351_s1 + $0x268] sm:$0xff]   ;;  %v4366_v43 = vld [vmem:[%s5351_s1 + $0x218] sm:$0xff]  }
  0x55   : > { %4042 = vmatprep.subr.bf16.mxu1 %v4470_v1 }
  0x56   : > { %4023 = vmatpush3.bf16.msra.mxu0 %v4326_v25  ;;  %v4345_v25 = vld [vmem:[%s5351_s1 + $0x1f0] sm:$0xff]   ;;  %v1523_v58 = vor.u32 %v1522_v41, %v1519_v40  ;;  %v1307_v4 = vsel %vm4655_vm7, %v1302_v26, %v1306_v7  ;;  %v4364_v41 = vld [vmem:[%s5351_s1 + $0x220] sm:$0xff]  }
  0x57   : > { %4024 = vmatprep.subr.bf16.mxu0 %v4470_v1  ;;  %v4361_v40 = vld [vmem:[%s5351_s1 + $0x270] sm:$0xff]  }
  0x58   : > { %4043 = vmatpush3.bf16.msra.mxu1 %v4327_v28  ;;  %v1545_v28 = vshrl.u32 %v4811_v9, 16  ;;  %v1524_v55 = vrot.slane %v1523_v58, 2  ;;  %v4369_v58 = vld [vmem:[%s5351_s1 + $0x250] sm:$0xff]  }
  0x59   : > { %4044 = vmatprep.subr.bf16.mxu1 %v4470_v1 }
  0x5a   : > { %4025 = vmatpush3.bf16.msra.mxu0 %v4328_v27  ;;  %v1329_v27 = vor.u32 %v1328_v13, %v1325_v12  ;;  %v1547_v46 = vrot.slane %v1545_v28, 6  ;;  %v1538_v12 = vrot.slane %v1537_v59, 2  ;;  %v4967_v59 = vld.sshfl [vmem:[%s4569_s20 + $0x18] sm:$0xf pattern:$0x76325410] }
  0x5b   : > { %4026 = vmatprep.subr.bf16.mxu0 %v4470_v1 }
  0x5c   : > { %4045 = vmatpush3.bf16.msra.mxu1 %v4329_v30  ;;  %v1316_v30 = vrot.slane %v1315_v16, 2  ;;  %v1330_v44 = vrot.slane %v1329_v27, 2  ;;  %v4356_v27 = vld [vmem:[%s5351_s1 + $0x180] sm:$0xff]  }
  0x5d   : > { %4046 = vmatprep.subr.bf16.mxu1 %v4470_v1 }
  0x5e   : > { %4027 = vmatpush3.bf16.msra.mxu0 %v4330_v29  ;;  %v1548_v29 = vshll.u32 %v4811_v9, 16  ;;  %v4351_v9 = vld [vmem:[%s5351_s1 + $0x1d8] sm:$0xff]  }
  0x5f   : > { %4028 = vmatprep.subr.bf16.mxu0 %v4470_v1 }
  0x60   : > { %4047 = vmatpush3.bf16.msra.mxu1 %v4331_v32  ;;  %v1346_v32 = vshll.u32 %v1293_v15, 16 }
  0x61   : > { %4048 = vmatprep.subr.bf16.mxu1 %v4470_v1 }
  0x62   : > { %4029 = vmatpush3.bf16.msra.mxu0 %v4332_v31  ;;  %v1320_v31 = vrot.slane %v4793_v63, 7  ;;  %v1348_v57 = vrot.slane %v1346_v32, 7  ;;  %v1554_v63 = vshll.u32 %v1507_v49, 16  ;;  %v4358_v32 = vld [vmem:[%s5351_s1 + $0x238] sm:$0xff]  }
  0x63   : > { %4030 = vmatprep.subr.bf16.mxu0 %v4470_v1  ;;  %v4438_v49 = vld.sshfl [vmem:[%s4569_s20 + $0x4] sm:$0xf pattern:$0x76325410] }
  0x64   : > { %4049 = vmatpush3.bf16.msra.mxu1 %v4333_v37  ;;  %v1499_v37 = vcombine.high %v4800_v5, %v4800_v5  ;;  %v1321_v5 = vsel %vm4655_vm7, %v1316_v30, %v1320_v31  ;;  %v1556_v13 = vrot.slane %v1554_v63, 7  ;;  %v4355_v30 = vld [vmem:[%s5351_s1 + $0x1c8] sm:$0xff]   ;;  %v4372_v63 = vld [vmem:[%s5351_s1 + $0x200] sm:$0xff]  }
  0x65   : > { %4050 = vmatprep.subr.bf16.mxu1 %v4470_v1  ;;  %v1367_v16 = vcombine.low %v1307_v4, %v1321_v5 }
  0x66   : > { %4031 = vmatpush3.bf16.msra.mxu0 %v4334_v33  ;;  %v1559_v33 = vshrl.u32 %v3517_v17, 16  ;;  %v1540_v54 = vshll.u32 %v1499_v37, 16 }
  0x67   : > { %4032 = vmatprep.subr.bf16.mxu0 %v4470_v1 }
  0x68   : > { %4051 = vmatpush3.bf16.msra.mxu1 %v4335_v47  ;;  %v1550_v47 = vrot.slane %v1548_v29, 7  ;;  %v1561_v51 = vrot.slane %v1559_v33, 6  ;;  %v1542_v8 = vrot.slane %v1540_v54, 7 }
  0x69   : > { %4052 = vmatprep.subr.bf16.mxu1 %v4470_v1 }
  0x6a   : > { %4033 = vmatpush3.bf16.msra.mxu0 %v4336_v39  ;;  %v4347_v39 = vld [vmem:[%s5351_s1 + $0x1e8] sm:$0xff]   ;;  %v1551_v62 = vor.u32 %v1550_v47, %v1547_v46  ;;  %v1543_v21 = vsel %vm4655_vm7, %v1538_v12, %v1542_v8  ;;  %v4368_v46 = vld [vmem:[%s5351_s1 + $0x210] sm:$0xff]   ;;  %v4378_v12 = vld [vmem:[%s5351_s1 + $0x2b8] sm:$0xff]  }
  0x6b   : > { %4058 = vmatprep.subr.bf16.mxu0 %v4470_v1  ;;  %v3603_v47 = vld.sshfl [vmem:[%s4569_s20 + $0x8] sm:$0x13 pattern:$0x76325410] }
  0x6c   : > { %4053 = vmatpush3.bf16.msra.mxu1 %v4337_v56  ;;  %v1344_v56 = vrot.slane %v1343_v35, 2  ;;  %v1552_v7 = vrot.slane %v1551_v62, 2  ;;  %v4357_v35 = vld [vmem:[%s5351_s1 + $0x1c0] sm:$0xff]   ;;  %v2023_v54 = vshrl.u32 %v3603_v47, 16  ;;  %v1991_v62 = vcombine.high %v3603_v47, %v3603_v47 }
  0x6d   : > { %4035 = vmatmul.mubr.bf16.vlgmr.msra.gmra.mxu0 %v1026_v50  ;;  %4078 = vmatprep.subr.bf16.mxu1 %v4470_v1  ;;  %v1515_v50 = vcombine.high %v3517_v17, %v3517_v17 }
  0x6e   : > { %4059 = vmatpush3.bf16.msra.mxu0 %v4342_v52  ;;  %4074 = vmatprep.mubr.msk.bf16.mxu0 %vm4471_vm0, %v4470_v1  ;;  %v1564_v52 = vrot.slane %v1562_v38, 7  ;;  %v1349_v11 = vsel %vm4655_vm7, %v1344_v56, %v1348_v57  ;;  %v1557_v22 = vsel %vm4655_vm7, %v1552_v7, %v1556_v13  ;;  %v4359_v38 = vld [vmem:[%s5351_s1 + $0x278] sm:$0xff]   ;;  %v4370_v56 = vld [vmem:[%s5351_s1 + $0x208] sm:$0xff]   ;;  %v2026_v57 = vshll.u32 %v3603_v47, 16 }
  0x6f   : > { %4060 = vmatprep.subr.bf16.mxu0 %v4470_v1  ;;  %4055 = vmatmul.mubr.bf16.vlgmr.msra.gmra.mxu1 %v1161_v10  ;;  %v1568_v2 = vshll.u32 %v1515_v50, 16  ;;  %v1335_v10 = vsel %vm4655_vm7, %v1330_v44, %v1334_v45  ;;  %v4365_v44 = vld [vmem:[%s5351_s1 + $0x260] sm:$0xff]   ;;  %v4439_v50 = vld.sshfl [vmem:[%s4569_s20 + $0xc] sm:$0xf pattern:$0x76325410] }
  0x70   : > { %4079 = vmatpush3.bf16.msra.mxu1 %v4343_v6  ;;  %4094 = vmatprep.mubr.msk.bf16.mxu1 %vm4471_vm0, %v4470_v1  ;;  %v1565_v0 = vor.u32 %v1564_v52, %v1561_v51  ;;  %v1528_v6 = vrot.slane %v1526_v53, 7  ;;  %v1368_v17 = vcombine.low %v1335_v10, %v1349_v11  ;;  %v3602_v45 = vld.sshfl [vmem:[%s4569_s20 + $0x4] sm:$0x13 pattern:$0x76325410]  ;;  %v2028_v8 = vrot.slane %v2026_v57, 7 }
  0x71   : > { %4080 = vmatprep.subr.bf16.mxu1 %v4470_v1  ;;  %v1570_v15 = vrot.slane %v1568_v2, 7  ;;  %v3604_v51 = vld.sshfl [vmem:[%s4569_s20 + $0xc] sm:$0x13 pattern:$0x76325410]  ;;  %v2009_v52 = vshrl.u32 %v3602_v45, 16 }
  0x72   : > { %4061 = vmatpush3.bf16.msra.mxu0 %v4344_v61  ;;  %v4352_v61 = vld [vmem:[%s5351_s1 + $0x190] sm:$0xff]   ;;  %v1529_v20 = vsel %vm4655_vm7, %v1524_v55, %v1528_v6  ;;  %v1382_v26 = vrot.slane %v1368_v17, %v4591_v24  ;;  %v2012_v53 = vshll.u32 %v3602_v45, 16  ;;  %v1999_v2 = vcombine.high %v3604_v51, %v3604_v51  ;;  %v4371_v11 = vld [vmem:[%s5351_s1 + $0x248] sm:$0xff]  }
  0x73   : > { %4062 = vmatprep.subr.bf16.mxu0 %v4470_v1  ;;  %v1589_v28 = vcombine.low %v1529_v20, %v1543_v21  ;;  %v2011_v4 = vrot.slane %v2009_v52, 6  ;;  %v2025_v6 = vrot.slane %v2023_v54, 6  ;;  %v2040_v10 = vshll.u32 %v3604_v51, 16  ;;  %v4383_v57 = vld [vmem:[%s5351_s1 + $0x2e8] sm:$0xff]  }
  0x74   : > { %4081 = vmatpush3.bf16.msra.mxu1 %v4345_v25  ;;  %v1375_v25 = vrot.slane %v1367_v16, %v4591_v24  ;;  %v2014_v5 = vrot.slane %v2012_v53, 7  ;;  %v1740_v55 = vcombine.low %v4438_v49, %v4439_v50  ;;  %v4373_v16 = vld [vmem:[%s5351_s1 + $0x240] sm:$0xff]  }
  0x75   : > { %4082 = vmatprep.subr.bf16.mxu1 %v4470_v1  ;;  %v1597_v33 = vrot.slane %v1589_v28, %v4591_v24  ;;  %v2029_v17 = vor.u32 %v2028_v8, %v2025_v6  ;;  %v2042_v20 = vrot.slane %v2040_v10, 7  ;;  %v4384_v49 = vld [vmem:[%s5351_s1 + $0x2a0] sm:$0xff]  }
  0x76   : > { %4063 = vmatpush3.bf16.msra.mxu0 %v4346_v14  ;;  %v1566_v14 = vrot.slane %v1565_v0, 2  ;;  %v1383_v31 = vcombine.low %v1375_v25, %v1382_v26  ;;  %v3605_v0 = vld.sshfl [vmem:[%s4569_s20 + $0x10] sm:$0x13 pattern:$0x76325410]  ;;  %v2015_v13 = vor.u32 %v2014_v5, %v2011_v4 }
  0x77   : > { %4064 = vmatprep.subr.bf16.mxu0 %v4470_v1  ;;  %v2054_v21 = vshll.u32 %v3605_v0, 16  ;;  %v3634_v25 = vld.sshfl [vmem:[%s4569_s20 + $0x18] sm:$0x13 pattern:$0x76325410] }
  0x78   : > { %4083 = vmatpush3.bf16.msra.mxu1 %v4347_v39  ;;  %v1571_v23 = vsel %vm4655_vm7, %v1566_v14, %v1570_v15  ;;  %v4362_v39 = vld [vmem:[%s5351_s1 + $0x228] sm:$0xff]   ;;  %v4987_v14 = vshll.u32 %v1991_v62, 16  ;;  %v4989_v15 = vshll.u32 %v1999_v2, 16  ;;  %v2205_v52 = vcombine.high %v3634_v25, %v3634_v25 }
  0x79   : > { %4084 = vmatprep.subr.bf16.mxu1 %v4470_v1  ;;  %v1590_v29 = vcombine.low %v1557_v22, %v1571_v23  ;;  %v4380_v22 = vld [vmem:[%s5351_s1 + $0x2b0] sm:$0xff]   ;;  %v3635_v26 = vld.sshfl [vmem:[%s4569_s20 + $0x1c] sm:$0x13 pattern:$0x76325410] }
  0x7a   : > { %4065 = vmatpush3.bf16.msra.mxu0 %v4348_v34  ;;  %v2034_v28 = vrot.slane %v4987_v14, 7  ;;  %v2213_v53 = vcombine.high %v3635_v26, %v3635_v26  ;;  %v2240_v6 = vshll.u32 %v2205_v52, 16  ;;  %v4395_v52 = vld [vmem:[%s5351_s1 + $0x378] sm:$0xff]  }
  0x7b   : > { %4066 = vmatprep.subr.bf16.mxu0 %v4470_v1  ;;  %v1604_v34 = vrot.slane %v1590_v29, %v4591_v24 }
  0x7c   : > { %4085 = vmatpush3.bf16.msra.mxu1 %v4349_v60  ;;  %v4970_v60 = vld.sshfl [vmem:[%s4569_s20 + $0x20] sm:$0xf pattern:$0x76325410]  ;;  %v2254_v8 = vshll.u32 %v2213_v53, 16  ;;  %v4398_v53 = vld [vmem:[%s5351_s1 + $0x328] sm:$0xff]  }
  0x7d   : > { %4086 = vmatprep.subr.bf16.mxu1 %v4470_v1  ;;  %v1605_v37 = vcombine.low %v1597_v33, %v1604_v34  ;;  %v1875_v29 = vcombine.low %v4967_v59, %v4970_v60  ;;  %v3636_v33 = vld.sshfl [vmem:[%s4569_s20 + $0x20] sm:$0x13 pattern:$0x76325410]  ;;  %v2007_v34 = vcombine.high %v3605_v0, %v3605_v0 }
  0x7e   : > { %4067 = vmatpush3.bf16.msra.mxu0 %v4350_v48  ;;  %v4367_v48 = vld [vmem:[%s5351_s1 + $0x258] sm:$0xff]   ;;  %v2259_v47 = vshrl.u32 %v3636_v33, 16 }
  0x7f   : > { %4068 = vmatprep.subr.bf16.mxu0 %v4470_v1 }
  0x80   : > { %4087 = vmatpush3.bf16.msra.mxu1 %v4351_v9  ;;  %v2037_v9 = vshrl.u32 %v3604_v51, 16  ;;  %v2261_v62 = vrot.slane %v2259_v47, 6 }
  0x81   : > { %4088 = vmatprep.subr.bf16.mxu1 %v4470_v1 }
  0x82   : > { %4069 = vmatpush3.bf16.msra.mxu0 %v4352_v61  ;;  %v1983_v61 = vcombine.high %v3602_v45, %v3602_v45 }
  0x83   : > { %4070 = vmatprep.subr.bf16.mxu0 %v4470_v1 }
  0x84   : > { %4089 = vmatpush3.bf16.msra.mxu1 %v4353_v19  ;;  %v4984_v7 = vshll.u32 %v1983_v61, 16  ;;  %v2051_v19 = vshrl.u32 %v3605_v0, 16  ;;  %v2221_v61 = vcombine.high %v3636_v33, %v3636_v33  ;;  %v4386_v0 = vld [vmem:[%s5351_s1 + $0x298] sm:$0xff]  }
  0x85   : > { %4090 = vmatprep.subr.bf16.mxu1 %v4470_v1 }
  0x86   : > { %4071 = vmatpush3.bf16.msra.mxu0 %v4354_v18  ;;  %v2039_v18 = vrot.slane %v2037_v9, 6  ;;  %v2020_v23 = vrot.slane %v4984_v7, 7 }
  0x87   : > { %4072 = vmatprep.subr.bf16.mxu0 %v4470_v1 }
  0x88   : > { %4091 = vmatpush3.bf16.msra.mxu1 %v4355_v30  ;;  %v4379_v30 = vld [vmem:[%s5351_s1 + $0x2f8] sm:$0xff]  }
  0x89   : > { %4092 = vmatprep.subr.bf16.mxu1 %v4470_v1 }
  0x8a   : > { %4073 = vmatpush3.bf16.msra.mxu0 %v4356_v27  ;;  %v5002_v27 = vrot.slane %v2015_v13, 2 }
  0x8b   : > { %4098 = vmatprep.subr.bf16.mxu0 %v4470_v1 }
  0x8c   : > { %4093 = vmatpush3.bf16.msra.mxu1 %v4357_v35  ;;  %v2043_v35 = vor.u32 %v2042_v20, %v2039_v18  ;;  %v2021_v20 = vsel %vm4655_vm7, %v5002_v27, %v2020_v23 }
  0x8d   : > { %4075 = vmatmul.mubr.bf16.vlgmr.msra.gmra.mxu0 %v1383_v31  ;;  %4118 = vmatprep.subr.bf16.mxu1 %v4470_v1  ;;  %v5012_v31 = vrot.slane %v2029_v17, 2  ;;  %v4388_v17 = vld [vmem:[%s5351_s1 + $0x290] sm:$0xff]  }
  0x8e   : > { %4099 = vmatpush3.bf16.msra.mxu0 %v4358_v32  ;;  %4114 = vmatprep.mubr.msk.bf16.mxu0 %vm4471_vm0, %v4470_v1  ;;  %v2048_v32 = vrot.slane %v4989_v15, 7  ;;  %v2044_v45 = vrot.slane %v2043_v35, 2  ;;  %v4390_v15 = vld [vmem:[%s5351_s1 + $0x288] sm:$0xff]  }
  0x8f   : > { %4100 = vmatprep.subr.bf16.mxu0 %v4470_v1  ;;  %4095 = vmatmul.mubr.bf16.vlgmr.msra.gmra.mxu1 %v1605_v37  ;;  %v2056_v37 = vrot.slane %v2054_v21, 7  ;;  %v2035_v21 = vsel %vm4655_vm7, %v5012_v31, %v2034_v28 }
  0x90   : > { %4119 = vmatpush3.bf16.msra.mxu1 %v4359_v38  ;;  %4134 = vmatprep.mubr.msk.bf16.mxu1 %vm4471_vm0, %v4470_v1  ;;  %v3637_v38 = vld.sshfl [vmem:[%s4569_s20 + $0x24] sm:$0x13 pattern:$0x76325410]  ;;  %v2049_v7 = vsel %vm4655_vm7, %v2044_v45, %v2048_v32  ;;  %v4389_v32 = vld [vmem:[%s5351_s1 + $0x2d0] sm:$0xff]  }
  0x91   : > { %4120 = vmatprep.subr.bf16.mxu1 %v4470_v1  ;;  %v2273_v50 = vshrl.u32 %v3637_v38, 16  ;;  %v2276_v51 = vshll.u32 %v3637_v38, 16  ;;  %v2229_v2 = vcombine.high %v3637_v38, %v3637_v38 }
  0x92   : > { %4101 = vmatpush3.bf16.msra.mxu0 %v4360_v36  ;;  %v2053_v36 = vrot.slane %v2051_v19, 6 }
  0x93   : > { %4102 = vmatprep.subr.bf16.mxu0 %v4470_v1  ;;  %v2275_v4 = vrot.slane %v2273_v50, 6  ;;  %v2278_v5 = vrot.slane %v2276_v51, 7  ;;  %v2282_v19 = vshll.u32 %v2229_v2, 16  ;;  %v4396_v50 = vld [vmem:[%s5351_s1 + $0x330] sm:$0xff]  }
  0x94   : > { %4121 = vmatpush3.bf16.msra.mxu1 %v4361_v40  ;;  %v2231_v40 = vshrl.u32 %v3634_v25, 16  ;;  %v4405_v2 = vld [vmem:[%s5351_s1 + $0x350] sm:$0xff]  }
  0x95   : > { %4122 = vmatprep.subr.bf16.mxu1 %v4470_v1  ;;  %v2279_v18 = vor.u32 %v2278_v5, %v2275_v4  ;;  %v2284_v31 = vrot.slane %v2282_v19, 7  ;;  %v3722_v4 = vld.sshfl [vmem:[%s4569_s20 + $0x2c] sm:$0x13 pattern:$0x76325410]  ;;  %v4408_v5 = vld [vmem:[%s5351_s1 + $0x300] sm:$0xff]  }
  0x96   : > { %4103 = vmatpush3.bf16.msra.mxu0 %v4362_v39  ;;  %v4382_v39 = vld [vmem:[%s5351_s1 + $0x2a8] sm:$0xff]   ;;  %v2233_v54 = vrot.slane %v2231_v40, 6  ;;  %v5179_v19 = vld.sshfl [vmem:[%s4569_s20 + $0x38] sm:$0x13 pattern:$0x76325410] }
  0x97   : > { %4104 = vmatprep.subr.bf16.mxu0 %v4470_v1 }
  0x98   : > { %4123 = vmatpush3.bf16.msra.mxu1 %v4363_v42  ;;  %v2245_v42 = vshrl.u32 %v3635_v26, 16 }
  0x99   : > { %4124 = vmatprep.subr.bf16.mxu1 %v4470_v1 }
  0x9a   : > { %4105 = vmatpush3.bf16.msra.mxu0 %v4364_v41  ;;  %v2234_v41 = vshll.u32 %v3634_v25, 16  ;;  %v2247_v59 = vrot.slane %v2245_v42, 6  ;;  %v2256_v25 = vrot.slane %v2254_v8, 7 }
  0x9b   : > { %4106 = vmatprep.subr.bf16.mxu0 %v4470_v1  ;;  %v4444_v8 = vld.sshfl [vmem:[%s4569_s20 + $0x40] sm:$0xf pattern:$0x76325410] }
  0x9c   : > { %4125 = vmatpush3.bf16.msra.mxu1 %v4365_v44  ;;  %v4381_v44 = vld [vmem:[%s5351_s1 + $0x2f0] sm:$0xff]  }
  0x9d   : > { %4126 = vmatprep.subr.bf16.mxu1 %v4470_v1 }
  0x9e   : > { %4107 = vmatpush3.bf16.msra.mxu0 %v4366_v43  ;;  %v2248_v43 = vshll.u32 %v3635_v26, 16  ;;  %v4387_v26 = vld [vmem:[%s5351_s1 + $0x2d8] sm:$0xff]  }
  0x9f   : > { %4108 = vmatprep.subr.bf16.mxu0 %v4470_v1 }
  0xa0   : > { %4127 = vmatpush3.bf16.msra.mxu1 %v4367_v48  ;;  %v2262_v48 = vshll.u32 %v3636_v33, 16  ;;  %v2250_v60 = vrot.slane %v2248_v43, 7  ;;  %v2081_v33 = vcombine.low %v2021_v20, %v2035_v21  ;;  %v4409_v20 = vld [vmem:[%s5351_s1 + $0x340] sm:$0xff]   ;;  %v2697_v21 = vcombine.high %v3722_v4, %v3722_v4 }
  0xa1   : > { %4128 = vmatprep.subr.bf16.mxu1 %v4470_v1 }
  0xa2   : > { %4109 = vmatpush3.bf16.msra.mxu0 %v4368_v46  ;;  %v2060_v46 = vshll.u32 %v2007_v34, 16 }
  0xa3   : > { %4110 = vmatprep.subr.bf16.mxu0 %v4470_v1 }
  0xa4   : > { %4129 = vmatpush3.bf16.msra.mxu1 %v4369_v58  ;;  %v2057_v58 = vor.u32 %v2056_v37, %v2053_v36  ;;  %v2062_v10 = vrot.slane %v2060_v46, 7  ;;  %v4394_v46 = vld [vmem:[%s5351_s1 + $0x338] sm:$0xff]  }
  0xa5   : > { %4130 = vmatprep.subr.bf16.mxu1 %v4470_v1 }
  0xa6   : > { %4111 = vmatpush3.bf16.msra.mxu0 %v4370_v56  ;;  %v2236_v56 = vrot.slane %v2234_v41, 7  ;;  %v2058_v9 = vrot.slane %v2057_v58, 2  ;;  %v4392_v41 = vld [vmem:[%s5351_s1 + $0x280] sm:$0xff]   ;;  %v4402_v58 = vld [vmem:[%s5351_s1 + $0x318] sm:$0xff]  }
  0xa7   : > { %4112 = vmatprep.subr.bf16.mxu0 %v4470_v1 }
  0xa8   : > { %4131 = vmatpush3.bf16.msra.mxu1 %v4371_v11  ;;  %v2237_v11 = vor.u32 %v2236_v56, %v2233_v54  ;;  %v2063_v23 = vsel %vm4655_vm7, %v2058_v9, %v2062_v10  ;;  %v4397_v54 = vld [vmem:[%s5351_s1 + $0x370] sm:$0xff]   ;;  %v4400_v56 = vld [vmem:[%s5351_s1 + $0x320] sm:$0xff]   ;;  %v4445_v9 = vld.sshfl [vmem:[%s4569_s20 + $0x48] sm:$0xf pattern:$0x76325410] }
  0xa9   : > { %4132 = vmatprep.subr.bf16.mxu1 %v4470_v1  ;;  %v2082_v34 = vcombine.low %v2049_v7, %v2063_v23  ;;  %v4407_v10 = vld [vmem:[%s5351_s1 + $0x348] sm:$0xff]   ;;  %v4416_v23 = vld [vmem:[%s5351_s1 + $0x3b0] sm:$0xff]  }
  0xaa   : > { %4113 = vmatpush3.bf16.msra.mxu0 %v4372_v63  ;;  %v2264_v63 = vrot.slane %v2262_v48, 7  ;;  %v2238_v14 = vrot.slane %v2237_v11, 2  ;;  %v2723_v11 = vshrl.u32 %v3722_v4, 16 }
  0xab   : > { %4138 = vmatprep.subr.bf16.mxu0 %v4470_v1  ;;  %v2096_v40 = vrot.slane %v2082_v34, %v4591_v24  ;;  %v5203_v34 = vld.sshfl [vmem:[%s4569_s20 + $0x40] sm:$0x13 pattern:$0x76325410] }
  0xac   : > { %4133 = vmatpush3.bf16.msra.mxu1 %v4373_v16  ;;  %v2265_v13 = vor.u32 %v2264_v63, %v2261_v62  ;;  %v2268_v16 = vshll.u32 %v2221_v61, 16  ;;  %v4403_v61 = vld [vmem:[%s5351_s1 + $0x358] sm:$0xff]   ;;  %v4442_v62 = vld.sshfl [vmem:[%s4569_s20 + $0x2c] sm:$0xf pattern:$0x76325410] }
  0xad   : > { %4115 = vmatmul.mubr.bf16.vlgmr.msra.gmra.mxu0 %v1740_v55  ;;  %4158 = vmatprep.subr.bf16.mxu1 %v4470_v1  ;;  %v2251_v55 = vor.u32 %v2250_v60, %v2247_v59  ;;  %v4401_v59 = vld [vmem:[%s5351_s1 + $0x360] sm:$0xff]   ;;  %v4404_v60 = vld [vmem:[%s5351_s1 + $0x310] sm:$0xff]  }
  0xae   : > { %4139 = vmatpush3.bf16.msra.mxu0 %v4378_v12  ;;  %4154 = vmatprep.mubr.msk.bf16.mxu0 %vm4471_vm0, %v4470_v1  ;;  %v4385_v12 = vld [vmem:[%s5351_s1 + $0x2e0] sm:$0xff]   ;;  %v2266_v28 = vrot.slane %v2265_v13, 2  ;;  %v4443_v63 = vld.sshfl [vmem:[%s4569_s20 + $0x34] sm:$0xf pattern:$0x76325410] }
  0xaf   : > { %4140 = vmatprep.subr.bf16.mxu0 %v4470_v1  ;;  %4135 = vmatmul.mubr.bf16.vlgmr.msra.gmra.mxu1 %v1875_v29  ;;  %v2252_v27 = vrot.slane %v2251_v55, 2  ;;  %v2270_v29 = vrot.slane %v2268_v16, 7  ;;  %v2726_v55 = vshll.u32 %v3722_v4, 16 }
  0xb0   : > { %4159 = vmatpush3.bf16.msra.mxu1 %v4379_v30  ;;  %4174 = vmatprep.mubr.msk.bf16.mxu1 %vm4471_vm0, %v4470_v1  ;;  %v2280_v30 = vrot.slane %v2279_v18, 2  ;;  %v5175_v18 = vld.sshfl [vmem:[%s4569_s20 + $0x34] sm:$0x13 pattern:$0x76325410] }
  0xb1   : > { %4160 = vmatprep.subr.bf16.mxu1 %v4470_v1  ;;  %v2257_v36 = vsel %vm4655_vm7, %v2252_v27, %v2256_v25  ;;  %v2271_v37 = vsel %vm4655_vm7, %v2266_v28, %v2270_v29  ;;  %v5184_v25 = vrot.slane %v2723_v11, 6  ;;  %v2751_v28 = vshrl.u32 %v5175_v18, 16 }
  0xb2   : > { %4141 = vmatpush3.bf16.msra.mxu0 %v4380_v22  ;;  %v2242_v22 = vrot.slane %v2240_v6, 7  ;;  %v2285_v38 = vsel %vm4655_vm7, %v2280_v30, %v2284_v31  ;;  %v3723_v6 = vld.sshfl [vmem:[%s4569_s20 + $0x30] sm:$0x13 pattern:$0x76325410]  ;;  %v2754_v29 = vshll.u32 %v5175_v18, 16 }
  0xb3   : > { %4142 = vmatprep.subr.bf16.mxu0 %v4470_v1  ;;  %v2304_v43 = vcombine.low %v2271_v37, %v2285_v38  ;;  %v2737_v13 = vshrl.u32 %v3723_v6, 16  ;;  %v2740_v16 = vshll.u32 %v3723_v6, 16  ;;  %v2765_v31 = vshrl.u32 %v5179_v19, 16 }
  0xb4   : > { %4161 = vmatpush3.bf16.msra.mxu1 %v4381_v44  ;;  %v2243_v35 = vsel %vm4655_vm7, %v2238_v14, %v2242_v22  ;;  %v4391_v44 = vld [vmem:[%s5351_s1 + $0x2c8] sm:$0xff]   ;;  %v2705_v22 = vcombine.high %v3723_v6, %v3723_v6  ;;  %v5212_v37 = vld.sshfl [vmem:[%s4569_s20 + $0x44] sm:$0x13 pattern:$0x76325410] }
  0xb5   : > { %4162 = vmatprep.subr.bf16.mxu1 %v4470_v1  ;;  %v2303_v42 = vcombine.low %v2243_v35, %v2257_v36  ;;  %v2318_v48 = vrot.slane %v2304_v43, %v4591_v24  ;;  %v5192_v14 = vrot.slane %v2737_v13, 6  ;;  %v5194_v27 = vrot.slane %v2740_v16, 7  ;;  %v4415_v35 = vld [vmem:[%s5351_s1 + $0x3f8] sm:$0xff]  }
  0xb6   : > { %4143 = vmatpush3.bf16.msra.mxu0 %v4382_v39  ;;  %v2089_v39 = vrot.slane %v2081_v33, %v4591_v24  ;;  %v2768_v33 = vshll.u32 %v5179_v19, 16 }
  0xb7   : > { %4144 = vmatprep.subr.bf16.mxu0 %v4470_v1  ;;  %v2311_v47 = vrot.slane %v2303_v42, %v4591_v24  ;;  %v5221_v42 = vld.sshfl [vmem:[%s4569_s20 + $0x48] sm:$0x13 pattern:$0x76325410] }
  0xb8   : > { %4163 = vmatpush3.bf16.msra.mxu1 %v4383_v57  ;;  %v2097_v45 = vcombine.low %v2089_v39, %v2096_v40  ;;  %v4399_v57 = vld [vmem:[%s5351_s1 + $0x368] sm:$0xff]   ;;  %v2713_v39 = vcombine.high %v5175_v18, %v5175_v18  ;;  %v5216_v40 = vshll.u32 %v2697_v21, 16 }
  0xb9   : > { %4164 = vmatprep.subr.bf16.mxu1 %v4470_v1  ;;  %v2319_v51 = vcombine.low %v2311_v47, %v2318_v48  ;;  %v2756_v47 = vrot.slane %v2754_v29, 7  ;;  %v5229_v48 = vld.sshfl [vmem:[%s4569_s20 + $0x4c] sm:$0x13 pattern:$0x76325410] }
  0xba   : > { %4145 = vmatpush3.bf16.msra.mxu0 %v4384_v49  ;;  %v4393_v49 = vld [vmem:[%s5351_s1 + $0x2c0] sm:$0xff]   ;;  %v2990_v4 = vshll.u32 %v5229_v48, 16  ;;  %v2760_v6 = vshll.u32 %v2713_v39, 16  ;;  %v2943_v16 = vcombine.high %v5229_v48, %v5229_v48 }
  0xbb   : > { %4146 = vmatprep.subr.bf16.mxu0 %v4470_v1 }
  0xbc   : > { %4165 = vmatpush3.bf16.msra.mxu1 %v4385_v12  ;;  %v2454_v12 = vcombine.low %v4442_v62, %v4443_v63  ;;  %v2973_v63 = vshrl.u32 %v5221_v42, 16 }
  0xbd   : > { %4166 = vmatprep.subr.bf16.mxu1 %v4470_v1 }
  0xbe   : > { %4147 = vmatpush3.bf16.msra.mxu0 %v4386_v0  ;;  %v4406_v0 = vld [vmem:[%s5351_s1 + $0x308] sm:$0xff]   ;;  %v2975_v21 = vrot.slane %v2973_v63, 6 }
  0xbf   : > { %4148 = vmatprep.subr.bf16.mxu0 %v4470_v1 }
  0xc0   : > { %4167 = vmatpush3.bf16.msra.mxu1 %v4387_v26  ;;  %v5186_v26 = vrot.slane %v2726_v55, 7  ;;  %v2927_v55 = vcombine.high %v5212_v37, %v5212_v37 }
  0xc1   : > { %4168 = vmatprep.subr.bf16.mxu1 %v4470_v1 }
  0xc2   : > { %4149 = vmatpush3.bf16.msra.mxu0 %v4388_v17  ;;  %v4414_v17 = vld [vmem:[%s5351_s1 + $0x3b8] sm:$0xff]  }
  0xc3   : > { %4150 = vmatprep.subr.bf16.mxu0 %v4470_v1 }
  0xc4   : > { %4169 = vmatpush3.bf16.msra.mxu1 %v4389_v32  ;;  %v2589_v32 = vcombine.low %v4444_v8, %v4445_v9  ;;  %v2919_v9 = vcombine.high %v5203_v34, %v5203_v34 }
  0xc5   : > { %4170 = vmatprep.subr.bf16.mxu1 %v4470_v1 }
  0xc6   : > { %4151 = vmatpush3.bf16.msra.mxu0 %v4390_v15 }
  0xc7   : > { %4152 = vmatprep.subr.bf16.mxu0 %v4470_v1 }
  0xc8   : > { %4171 = vmatpush3.bf16.msra.mxu1 %v4391_v44  ;;  %v2721_v44 = vcombine.high %v5179_v19, %v5179_v19 }
  0xc9   : > { %4172 = vmatprep.subr.bf16.mxu1 %v4470_v1 }
  0xca   : > { %4153 = vmatpush3.bf16.msra.mxu0 %v4392_v41  ;;  %v5218_v41 = vshll.u32 %v2705_v22, 16  ;;  %v2774_v8 = vshll.u32 %v2721_v44, 16 }
  0xcb   : > { %4178 = vmatprep.subr.bf16.mxu0 %v4470_v1 }
  0xcc   : > { %4173 = vmatpush3.bf16.msra.mxu1 %v4393_v49 }
  0xcd   : > { %4155 = vmatmul.mubr.bf16.vlgmr.msra.gmra.mxu0 %v2097_v45  ;;  %4198 = vmatprep.subr.bf16.mxu1 %v4470_v1  ;;  %v2729_v45 = vor.u32 %v5186_v26, %v5184_v25  ;;  %v2992_v26 = vrot.slane %v2990_v4, 7 }
  0xce   : > { %4179 = vmatpush3.bf16.msra.mxu0 %v4394_v46  ;;  %4194 = vmatprep.mubr.msk.bf16.mxu0 %vm4471_vm0, %v4470_v1  ;;  %v2753_v46 = vrot.slane %v2751_v28, 6  ;;  %v4422_v28 = vld [vmem:[%s5351_s1 + $0x398] sm:$0xff]  }
  0xcf   : > { %4180 = vmatprep.subr.bf16.mxu0 %v4470_v1  ;;  %4175 = vmatmul.mubr.bf16.vlgmr.msra.gmra.mxu1 %v2319_v51  ;;  %v2743_v51 = vor.u32 %v5194_v27, %v5192_v14  ;;  %v2748_v27 = vrot.slane %v5218_v41, 7  ;;  %v2996_v41 = vshll.u32 %v2943_v16, 16 }
  0xd0   : > { %4199 = vmatpush3.bf16.msra.mxu1 %v4395_v52  ;;  %4214 = vmatprep.mubr.msk.bf16.mxu1 %vm4471_vm0, %v4470_v1  ;;  %v2767_v52 = vrot.slane %v2765_v31, 6 }
  0xd1   : > { %4200 = vmatprep.subr.bf16.mxu1 %v4470_v1  ;;  %v2744_v14 = vrot.slane %v2743_v51, 2  ;;  %v4423_v51 = vld [vmem:[%s5351_s1 + $0x3d8] sm:$0xff]  }
  0xd2   : > { %4181 = vmatpush3.bf16.msra.mxu0 %v4396_v50  ;;  %v4418_v50 = vld [vmem:[%s5351_s1 + $0x3a8] sm:$0xff]  }
  0xd3   : > { %4182 = vmatprep.subr.bf16.mxu0 %v4470_v1  ;;  %v2749_v44 = vsel %vm4655_vm7, %v2744_v14, %v2748_v27 }
  0xd4   : > { %4201 = vmatpush3.bf16.msra.mxu1 %v4397_v54  ;;  %v2945_v54 = vshrl.u32 %v5203_v34, 16 }
  0xd5   : > { %4202 = vmatprep.subr.bf16.mxu1 %v4470_v1 }
  0xd6   : > { %4183 = vmatpush3.bf16.msra.mxu0 %v4398_v53  ;;  %v2770_v53 = vrot.slane %v2768_v33, 7  ;;  %v2947_v13 = vrot.slane %v2945_v54, 6  ;;  %v2776_v33 = vrot.slane %v2774_v8, 7 }
  0xd7   : > { %4184 = vmatprep.subr.bf16.mxu0 %v4470_v1 }
  0xd8   : > { %4203 = vmatpush3.bf16.msra.mxu1 %v4399_v57  ;;  %v2771_v11 = vor.u32 %v2770_v53, %v2767_v52 }
  0xd9   : > { %4204 = vmatprep.subr.bf16.mxu1 %v4470_v1 }
  0xda   : > { %4185 = vmatpush3.bf16.msra.mxu0 %v4400_v56  ;;  %v2772_v31 = vrot.slane %v2771_v11, 2 }
  0xdb   : > { %4186 = vmatprep.subr.bf16.mxu0 %v4470_v1 }
  0xdc   : > { %4205 = vmatpush3.bf16.msra.mxu1 %v4401_v59  ;;  %v2959_v59 = vshrl.u32 %v5212_v37, 16 }
  0xdd   : > { %4206 = vmatprep.subr.bf16.mxu1 %v4470_v1 }
  0xde   : > { %4187 = vmatpush3.bf16.msra.mxu0 %v4402_v58  ;;  %v2948_v58 = vshll.u32 %v5203_v34, 16  ;;  %v2961_v18 = vrot.slane %v2959_v59, 6 }
  0xdf   : > { %4188 = vmatprep.subr.bf16.mxu0 %v4470_v1 }
  0xe0   : > { %4207 = vmatpush3.bf16.msra.mxu1 %v4403_v61  ;;  %v4417_v61 = vld [vmem:[%s5351_s1 + $0x3f0] sm:$0xff]  }
  0xe1   : > { %4208 = vmatprep.subr.bf16.mxu1 %v4470_v1 }
  0xe2   : > { %4189 = vmatpush3.bf16.msra.mxu0 %v4404_v60  ;;  %v2962_v60 = vshll.u32 %v5212_v37, 16  ;;  %v4421_v37 = vld [vmem:[%s5351_s1 + $0x3e0] sm:$0xff]  }
  0xe3   : > { %4190 = vmatprep.subr.bf16.mxu0 %v4470_v1 }
  0xe4   : > { %4209 = vmatpush3.bf16.msra.mxu1 %v4405_v2  ;;  %v2987_v2 = vshrl.u32 %v5229_v48, 16  ;;  %v2964_v19 = vrot.slane %v2962_v60, 7  ;;  %v4426_v60 = vld [vmem:[%s5351_s1 + $0x388] sm:$0xff]  }
  0xe5   : > { %4210 = vmatprep.subr.bf16.mxu1 %v4470_v1 }
  0xe6   : > { %4191 = vmatpush3.bf16.msra.mxu0 %v4406_v0  ;;  %v2976_v0 = vshll.u32 %v5221_v42, 16  ;;  %v2989_v25 = vrot.slane %v2987_v2, 6 }
  0xe7   : > { %4192 = vmatprep.subr.bf16.mxu0 %v4470_v1 }
  0xe8   : > { %4211 = vmatpush3.bf16.msra.mxu1 %v4407_v10  ;;  %v4420_v10 = vld [vmem:[%s5351_s1 + $0x3a0] sm:$0xff]   ;;  %v2978_v22 = vrot.slane %v2976_v0, 7 }
  0xe9   : > { %4212 = vmatprep.subr.bf16.mxu1 %v4470_v1 }
  0xea   : > { %4193 = vmatpush3.bf16.msra.mxu0 %v4408_v5  ;;  %v2757_v5 = vor.u32 %v2756_v47, %v2753_v46  ;;  %v2777_v46 = vsel %vm4655_vm7, %v2772_v31, %v2776_v33 }
  0xeb   : > { %4218 = vmatprep.subr.bf16.mxu0 %v4470_v1 }
  0xec   : > { %4213 = vmatpush3.bf16.msra.mxu1 %v4409_v20  ;;  %v4419_v20 = vld [vmem:[%s5351_s1 + $0x3e8] sm:$0xff]   ;;  %v2758_v29 = vrot.slane %v2757_v5, 2 }
  0xed   : > { %v415_v7 = vpop.f32.mrf.mxu0  ;;  %4195 = vmatmul.mubr.bf16.vlgmr.msra.gmra.mxu0 %v2454_v12  ;;  %4238 = vmatprep.subr.bf16.mxu1 %v4470_v1  ;;  %v2935_v12 = vcombine.high %v5221_v42, %v5221_v42  ;;  %v4424_v42 = vld [vmem:[%s5351_s1 + $0x390] sm:$0xff]  }
  0xee   : > { %v526_v30 = vpop.f32.mrf.mxu1  ;;  %4219 = vmatpush3.bf16.msra.mxu0 %v4414_v17  ;;  %4234 = vmatprep.mubr.msk.bf16.mxu0 %vm4471_vm0, %v4470_v1  ;;  %v2950_v17 = vrot.slane %v2948_v58, 7 }
  0xef   : > { %v5205_v15 = vadd.f32 %v526_v30, %v415_v7  ;;  %v3956_v36 = vpop.f32.mrf.mxu0  ;;  %4220 = vmatprep.subr.bf16.mxu0 %v4470_v1  ;;  %4215 = vmatmul.mubr.bf16.vlgmr.msra.gmra.mxu1 %v2589_v32  ;;  %v2730_v7 = vrot.slane %v2729_v45, 2  ;;  %v2762_v30 = vrot.slane %v2760_v6, 7  ;;  %v2954_v32 = vshll.u32 %v2919_v9, 16  ;;  %v4428_v6 = vld [vmem:[%s5351_s1 + $0x380] sm:$0xff]  }
  0xf0   : > { %v3976_v38 = vpop.f32.mrf.mxu1  ;;  %4239 = vmatpush3.bf16.msra.mxu1 %v4415_v35  ;;  %4254 = vmatprep.mubr.msk.bf16.mxu1 %vm4471_vm0, %v4470_v1  ;;  %v2951_v34 = vor.u32 %v2950_v17, %v2947_v13  ;;  %v2965_v35 = vor.u32 %v2964_v19, %v2961_v18  ;;  %v2968_v36 = vshll.u32 %v2927_v55, 16  ;;  %v2982_v39 = vshll.u32 %v2935_v12, 16  ;;  %v4429_v12 = vld [vmem:[%s5351_s1 + $0x3c0] sm:$0xff]  }
  0xf1   : > { %v418_v43 = vpop.f32.mrf.mxu0  ;;  %4240 = vmatprep.subr.bf16.mxu1 %v4470_v1  ;;  %v2979_v38 = vor.u32 %v2978_v22, %v2975_v21  ;;  %v2763_v45 = vsel %vm4655_vm7, %v2758_v29, %v2762_v30  ;;  %v2956_v48 = vrot.slane %v2954_v32, 7 }
  0xf2   : > { %v529_v49 = vpop.f32.mrf.mxu1  ;;  %4221 = vmatpush3.bf16.msra.mxu0 %v4416_v23  ;;  %v2734_v23 = vrot.slane %v5216_v40, 7  ;;  %v2993_v40 = vor.u32 %v2992_v26, %v2989_v25  ;;  %v2952_v47 = vrot.slane %v2951_v34, 2  ;;  %v2984_v53 = vrot.slane %v2982_v39, 7 }
  0xf3   : > { %v5237_v56 = vadd.f32 %v529_v49, %v418_v43  ;;  %v3957_v57 = vpop.f32.mrf.mxu0  ;;  %4222 = vmatprep.subr.bf16.mxu0 %v4470_v1  ;;  %v2966_v49 = vrot.slane %v2965_v35, 2  ;;  %v2980_v52 = vrot.slane %v2979_v38, 2  ;;  %v2796_v59 = vcombine.low %v2763_v45, %v2777_v46 }
  0xf4   : > { %v3977_v62 = vpop.f32.mrf.mxu1  ;;  %4241 = vmatpush3.bf16.msra.mxu1 %v4417_v61  ;;  %v2735_v43 = vsel %vm4655_vm7, %v2730_v7, %v2734_v23  ;;  %v2994_v54 = vrot.slane %v2993_v40, 2  ;;  %v2998_v57 = vrot.slane %v2996_v41, 7  ;;  %v4425_v61 = vld [vmem:[%s5351_s1 + $0x3d0] sm:$0xff]  }
  0xf5   : > { %4242 = vmatprep.subr.bf16.mxu1 %v4470_v1  ;;  %v2795_v58 = vcombine.low %v2735_v43, %v2749_v44  ;;  %v2957_v62 = vsel %vm4655_vm7, %v2952_v47, %v2956_v48  ;;  %v2985_v0 = vsel %vm4655_vm7, %v2980_v52, %v2984_v53  ;;  %v2810_v5 = vrot.slane %v2796_v59, %v4591_v24 }
  0xf6   : > { %4223 = vmatpush3.bf16.msra.mxu0 %v4418_v50  ;;  %v2970_v50 = vrot.slane %v2968_v36, 7  ;;  %v2999_v2 = vsel %vm4655_vm7, %v2994_v54, %v2998_v57 }
  0xf7   : > { %4224 = vmatprep.subr.bf16.mxu0 %v4470_v1  ;;  %v2803_v4 = vrot.slane %v2795_v58, %v4591_v24  ;;  %v3018_v9 = vcombine.low %v2985_v0, %v2999_v2 }
  0xf8   : > { %4243 = vmatpush3.bf16.msra.mxu1 %v4419_v20  ;;  %v2971_v63 = vsel %vm4655_vm7, %v2966_v49, %v2970_v50 }
  0xf9   : > { %4244 = vmatprep.subr.bf16.mxu1 %v4470_v1  ;;  %v3017_v8 = vcombine.low %v2957_v62, %v2971_v63  ;;  %v3032_v55 = vrot.slane %v3018_v9, %v4591_v24 }
  0xfa   : > { %4225 = vmatpush3.bf16.msra.mxu0 %v4420_v10  ;;  %v2811_v10 = vcombine.low %v2803_v4, %v2810_v5 }
  0xfb   : > { %4226 = vmatprep.subr.bf16.mxu0 %v4470_v1  ;;  %v3025_v11 = vrot.slane %v3017_v8, %v4591_v24 }
  0xfc   : > { %4245 = vmatpush3.bf16.msra.mxu1 %v4421_v37 }
  0xfd   : > { %4246 = vmatprep.subr.bf16.mxu1 %v4470_v1  ;;  %v3033_v17 = vcombine.low %v3025_v11, %v3032_v55 }
  0xfe   : > { %4227 = vmatpush3.bf16.msra.mxu0 %v4422_v28 }
  0xff   : > { %4228 = vmatprep.subr.bf16.mxu0 %v4470_v1 }
 0x100   : > { %4247 = vmatpush3.bf16.msra.mxu1 %v4423_v51 }
 0x101   : > { %4248 = vmatprep.subr.bf16.mxu1 %v4470_v1 }
 0x102   : > { %4229 = vmatpush3.bf16.msra.mxu0 %v4424_v42 }
 0x103   : > { %4230 = vmatprep.subr.bf16.mxu0 %v4470_v1 }
 0x104   : > { %4249 = vmatpush3.bf16.msra.mxu1 %v4425_v61 }
 0x105   : > { %4250 = vmatprep.subr.bf16.mxu1 %v4470_v1 }
 0x106   : > { %4231 = vmatpush3.bf16.msra.mxu0 %v4426_v60 }
 0x107   : > { %4232 = vmatprep.subr.bf16.mxu0 %v4470_v1 }
 0x108   : > { %4251 = vmatpush3.bf16.msra.mxu1 %v4427_v3 }
 0x109   : > { %4252 = vmatprep.subr.bf16.mxu1 %v4470_v1 }
 0x10a   : > { %4233 = vmatpush3.bf16.msra.mxu0 %v4428_v6 }
 0x10c   : > { %4253 = vmatpush3.bf16.msra.mxu1 %v4429_v12 }
 0x10d   : > { %v753_v13 = vpop.f32.mrf.mxu0  ;;  %4235 = vmatmul.mubr.bf16.vlgmr.msra.gmra.mxu0 %v2811_v10 }
 0x10e   : > { %v760_v16 = vadd.f32 %v753_v13, %v5205_v15 }
 0x10f   : > { %v3996_v18 = vpop.f32.mrf.mxu0  ;;  %v975_v21 = vpop.f32.mrf.mxu1  ;;  %4255 = vmatmul.mubr.bf16.vlgmr.msra.gmra.mxu1 %v3033_v17 }
 0x110   : > { %v982_v22 = vadd.f32 %v975_v21, %v760_v16 }
 0x111   : > { %v756_v19 = vpop.f32.mrf.mxu0  ;;  %v4016_v25 = vpop.f32.mrf.mxu1 }
 0x112   : > { %v761_v20 = vadd.f32 %v756_v19, %v5237_v56 }
 0x113   : > { %v3997_v24 = vpop.f32.mrf.mxu0  ;;  %v978_v26 = vpop.f32.mrf.mxu1 }
 0x114   : > { %v983_v7 = vadd.f32 %v978_v26, %v761_v20 }
 0x115   : > { %v4017_v23 = vpop.f32.mrf.mxu1 }
 0x12d   : > { %v1110_v14 = vpop.f32.mrf.mxu0 }
 0x12e   : > { %v1117_v1 = vadd.f32 %v1110_v14, %v982_v22 }
 0x12f   : > { %v4036_v27 = vpop.f32.mrf.mxu0  ;;  %v1245_v15 = vpop.f32.mrf.mxu1 }
 0x130   : > { %v1252_v31 = vadd.f32 %v1245_v15, %v1117_v1 }
 0x131   : > { %v1113_v28 = vpop.f32.mrf.mxu0  ;;  %v4056_v33 = vpop.f32.mrf.mxu1 }
 0x132   : > { %v1118_v29 = vadd.f32 %v1113_v28, %v983_v7 }
 0x133   : > { %v4037_v30 = vpop.f32.mrf.mxu0  ;;  %v1248_v34 = vpop.f32.mrf.mxu1 }
 0x134   : > { %v1253_v32 = vadd.f32 %v1248_v34, %v1118_v29 }
 0x135   : > { %v4057_v56 = vpop.f32.mrf.mxu1 }
 0x14d   : > { %v1467_v35 = vpop.f32.mrf.mxu0 }
 0x14e   : > { %v1474_v36 = vadd.f32 %v1467_v35, %v1252_v31 }
 0x14f   : > { %v4076_v37 = vpop.f32.mrf.mxu0  ;;  %v1689_v40 = vpop.f32.mrf.mxu1 }
 0x150   : > { %v1696_v42 = vadd.f32 %v1689_v40, %v1474_v36 }
 0x151   : > { %v1470_v38 = vpop.f32.mrf.mxu0  ;;  %v4096_v43 = vpop.f32.mrf.mxu1 }
 0x152   : > { %v1475_v39 = vadd.f32 %v1470_v38, %v1253_v32 }
 0x153   : > { %v4077_v41 = vpop.f32.mrf.mxu0  ;;  %v1692_v44 = vpop.f32.mrf.mxu1 }
 0x154   : > { %v1697_v45 = vadd.f32 %v1692_v44, %v1475_v39 }
 0x155   : > { %v4097_v46 = vpop.f32.mrf.mxu1 }
 0x16d   : > { %v1824_v47 = vpop.f32.mrf.mxu0 }
 0x16e   : > { %v1831_v48 = vadd.f32 %v1824_v47, %v1696_v42 }
 0x16f   : > { %v4116_v49 = vpop.f32.mrf.mxu0  ;;  %v1959_v52 = vpop.f32.mrf.mxu1 }
 0x170   : > { %v1966_v54 = vadd.f32 %v1959_v52, %v1831_v48 }
 0x171   : > { %v1827_v50 = vpop.f32.mrf.mxu0  ;;  %v4136_v57 = vpop.f32.mrf.mxu1 }
 0x172   : > { %v1832_v51 = vadd.f32 %v1827_v50, %v1697_v45 }
 0x173   : > { %v4117_v53 = vpop.f32.mrf.mxu0  ;;  %v1962_v58 = vpop.f32.mrf.mxu1 }
 0x174   : > { %v1967_v59 = vadd.f32 %v1962_v58, %v1832_v51 }
 0x175   : > { %v4137_v60 = vpop.f32.mrf.mxu1 }
 0x18d   : > { %v2181_v61 = vpop.f32.mrf.mxu0 }
 0x18e   : > { %v2188_v62 = vadd.f32 %v2181_v61, %v1966_v54 }
 0x18f   : > { %v4156_v63 = vpop.f32.mrf.mxu0  ;;  %v2403_v2 = vpop.f32.mrf.mxu1 }
 0x190   : > { %v2410_v18 = vadd.f32 %v2403_v2, %v2188_v62 }
 0x191   : > { %v2184_v0 = vpop.f32.mrf.mxu0  ;;  %v4176_v5 = vpop.f32.mrf.mxu1 }
 0x192   : > { %v2189_v17 = vadd.f32 %v2184_v0, %v1967_v59 }
 0x193   : > { %v4157_v4 = vpop.f32.mrf.mxu0  ;;  %v2406_v6 = vpop.f32.mrf.mxu1 }
 0x194   : > { %v2411_v19 = vadd.f32 %v2406_v6, %v2189_v17 }
 0x195   : > { %v4177_v8 = vpop.f32.mrf.mxu1 }
 0x1ad   : > { %v2538_v9 = vpop.f32.mrf.mxu0 }
 0x1ae   : > { %v2545_v20 = vadd.f32 %v2538_v9, %v2410_v18 }
 0x1af   : > { %v4196_v3 = vpop.f32.mrf.mxu0  ;;  %v2673_v11 = vpop.f32.mrf.mxu1 }
 0x1b0   : > { %v2680_v25 = vadd.f32 %v2673_v11, %v2545_v20 }
 0x1b1   : > { %v2541_v10 = vpop.f32.mrf.mxu0  ;;  %v4216_v12 = vpop.f32.mrf.mxu1 }
 0x1b2   : > { %v2546_v24 = vadd.f32 %v2541_v10, %v2411_v19 }
 0x1b3   : > { %v4197_v55 = vpop.f32.mrf.mxu0  ;;  %v2676_v13 = vpop.f32.mrf.mxu1 }
 0x1b4   : > { %v2681_v7 = vadd.f32 %v2676_v13, %v2546_v24 }
 0x1b5   : > { %v4217_v16 = vpop.f32.mrf.mxu1 }
 0x1cd   : > { %v2895_v21 = vpop.f32.mrf.mxu0 }
 0x1ce   : > { %v2902_v23 = vadd.f32 %v2895_v21, %v2680_v25 }
 0x1cf   : > { %v4236_v22 = vpop.f32.mrf.mxu0  ;;  %v3117_v14 = vpop.f32.mrf.mxu1 }
 0x1d0   : > { %v3124_v29 = vadd.f32 %v3117_v14, %v2902_v23 }
 0x1d1   : > { %v2898_v26 = vpop.f32.mrf.mxu0  ;;  %v4256_v28 = vpop.f32.mrf.mxu1 }
 0x1d2   : > { %v2903_v27 = vadd.f32 %v2898_v26, %v2681_v7  ;;  %v3144_v33 = vmul.f32 %v3124_v29, %v3124_v29 }
 0x1d3   : > { %v4237_v1 = vpop.f32.mrf.mxu0  ;;  %v3120_v15 = vpop.f32.mrf.mxu1 }
 0x1d4   : > { %v3125_v30 = vadd.f32 %v3120_v15, %v2903_v27 }
 0x1d5   : > { %v4257_v31 = vpop.f32.mrf.mxu1 }
 0x1d6   : > { %v3792_v34 = vpack.c.bf16 %v3125_v30, %v3124_v29  ;;  %v3136_v32 = vadd.f32 %v3125_v30, %v3124_v29  ;;  %v3145_v56 = vmul.f32 %v3125_v30, %v3125_v30 }
 0x1d8   : > { %3793 = vst [vmem:[%s255_s27] sm:$0xff] %v3792_v34   ;;  %v3137_v35 = vrot.slane %v3136_v32, 4  ;;  %v3146_v36 = vadd.f32 %v3145_v56, %v3144_v33 }
 0x1da   : > { %v3138_v37 = vadd.f32 %v3137_v35, %v3136_v32  ;;  %v3147_v38 = vrot.slane %v3146_v36, 4 }
 0x1dc   : > { %v3139_v39 = vrot.slane %v3138_v37, 2  ;;  %v3148_v40 = vadd.f32 %v3147_v38, %v3146_v36 }
 0x1de   : > { %v3140_v41 = vadd.f32 %v3139_v39, %v3138_v37  ;;  %v3149_v42 = vrot.slane %v3148_v40, 2 }
 0x1e0   : > { %v3141_v43 = vrot.slane %v3140_v41, 1  ;;  %v3150_v44 = vadd.f32 %v3149_v42, %v3148_v40 }
 0x1e2   : > { %v3142_v45 = vadd.f32 %v3141_v43, %v3140_v41  ;;  %v3151_v46 = vrot.slane %v3150_v44, 1 }
 0x1e4   : > { %3143 = vst [vmem:[%s261_s30] sm:$0x1] %v3142_v45  ;;  %v3152_v47 = vadd.f32 %v3151_v46, %v3150_v44 }
 0x1e6   : > { %3153 = vst [vmem:[%s267_s7] sm:$0x1] %v3152_v47 }
 0x1e7 PF: > { %s15_s17 = sadd.s32 1, %s4468_s17   ;;  %s5359_s15 = smov %s4464_s16 }
 0x1e8   : > { %p12_p5 = scmp.ge.s32.totalorder %s15_s17, 4   ;;  %s5360_s16 = smov %s5362_s18 }
 0x1ea   :  { %14 = sbr.rel (!%p12_p5) target bundleno = 2 (0x2), region = 107 }

// kernel: discriminator3_forward.7
= control target key start
LH: loop header
LB: loop body
LE: loop exit
PB: predicated region body
PF: predicated region fallthrough
CT: control target
= control target key end

     0   :  { %s3165_s9 = smov 0   ;;  %s3167_s10 = smov 0   ;;  %s3766_s0 = inlined_call_operand.vmem [shape: bf16[2,1,4,4,128], index: 0, kind: input, shape index: {}]   ;;  %s3767_s1 = inlined_call_operand.vmem [shape: bf16[16,128,128], index: 1, kind: input, shape index: {}]   ;;  %s3768_s2 = inlined_call_operand.vmem [shape: f32[2,1,128], index: 2, kind: output, shape index: {}]  }
   0x1   :  { %s3169_s11 = smov 0  }
   0x2 LB: > { %s24_s12 = sadd.s32 1, %s3141_s10  ;;  %p2113_p0 = scmp.ge.s32.totalorder %s3145_s11, 1  ;;  %s3145_s11 = sphi %s3169_s11, %s12_s11   ;;  %s3141_s10 = sphi %s3167_s10, %s3770_s10   ;;  %s3137_s9 = sphi %s3165_s9, %s3769_s9  }
   0x3   : > { %p26_p1 = scmp.ge.s32.totalorder %s24_s12, 2  ;;  %p135_p2 = scmp.lt.s32.totalorder %s3145_s11, 3 }
   0x5   : > { %s3772_s12 = smov (%p26_p1, %s24_s12), 0  ;;  %p136_p3 = pnand %p2113_p0, %p135_p2 }
   0x6   : > { %p162_p4 = scmp.lt.s32.totalorder (!%p136_p3), %s3137_s9, 1 }
   0x7   : > { %139 = sbr.rel (%p136_p3) target bundleno = 469 (0x1d5), region = 28 }
   0xc   : > { %v2995_v0 = vld [vmem:[%s3767_s1 + $0x78] sm:$0xff]   ;;  %v3147_v1 = vmov 0.0   ;;  %v2997_v3 = vld [vmem:[%s3767_s1 + $0x70] sm:$0xff]   ;;  %vm3148_vm0 = vmmov 0   ;;  %v2999_v5 = vld [vmem:[%s3767_s1 + $0x68] sm:$0xff]   ;;  %s3774_s9 = smov (!%p162_p4, %s3137_s9), 1  ;;  %v216_v9 = vlaneseq }
   0xd   : > { %2648 = vmatprep.subr.bf16.mxu0 %v3147_v1  ;;  %2668 = vmatprep.subr.bf16.mxu1 %v3147_v1  ;;  %v2996_v2 = vld [vmem:[%s3767_s1 + $0x38] sm:$0xff]   ;;  %v2998_v4 = vld [vmem:[%s3767_s1 + $0x30] sm:$0xff]   ;;  %v3000_v6 = vld [vmem:[%s3767_s1 + $0x28] sm:$0xff]   ;;  %s2503_s5 = sshll.u32 %s3774_s9, 3  ;;  %v3149_v12 = vmov 1983009808   ;;  %s176_s20 = scalar_lea.vmem %s3768_s2, %s3774_s9 }
   0xe   : > { %2649 = vmatpush3.bf16.msra.mxu0 %v2995_v0  ;;  %2664 = vmatprep.mubr.msk.bf16.mxu0 %vm3148_vm0, %v3147_v1  ;;  %v3001_v7 = vld [vmem:[%s3767_s1 + $0x60] sm:$0xff]   ;;  %v3003_v10 = vld [vmem:[%s3767_s1 + $0x58] sm:$0xff]   ;;  %v214_v13 = vunpack.c.l.s4 %v3149_v12  ;;  %v217_v14 = vshrl.u32 %v216_v9, 7  ;;  %v3005_v15 = vld [vmem:[%s3767_s1 + $0x50] sm:$0xff]   ;;  %s3244_s16 = scalar_lea.vmem %s3766_s0, %s2503_s5 }
   0xf   : > { %2669 = vmatpush3.bf16.msra.mxu1 %v2996_v2  ;;  %2650 = vmatprep.subr.bf16.mxu0 %v3147_v1  ;;  %v3002_v8 = vld [vmem:[%s3767_s1 + $0x20] sm:$0xff]   ;;  %v3004_v11 = vld [vmem:[%s3767_s1 + $0x18] sm:$0xff]   ;;  %v3006_v16 = vld [vmem:[%s3767_s1 + $0x10] sm:$0xff]  }
  0x10   : > { %2670 = vmatprep.subr.bf16.mxu1 %v3147_v1  ;;  %2684 = vmatprep.mubr.msk.bf16.mxu1 %vm3148_vm0, %v3147_v1  ;;  %v215_v17 = vunpack.c.0.s8 %v214_v13  ;;  %v3007_v18 = vld [vmem:[%s3767_s1 + $0x48] sm:$0xff]   ;;  %v178_v20 = vld [vmem:[%s3244_s16] sm:$0x1]  ;;  %v3011_v26 = vld [vmem:[%s3767_s1 + $0xb8] sm:$0xff]  }
  0x11   : > { %v3008_v21 = vld [vmem:[%s3767_s1 + $0x8] sm:$0xff]   ;;  %v3009_v23 = vld [vmem:[%s3767_s1 + $0x40] sm:$0xff]   ;;  %v3012_v27 = vld [vmem:[%s3767_s1 + $0xf8] sm:$0xff]  }
  0x12   : > { %2651 = vmatpush3.bf16.msra.mxu0 %v2997_v3  ;;  %v3250_v19 = vsub.s32 %v215_v17, %v217_v14  ;;  %v3010_v24 = vld [vmem:[%s3767_s1] sm:$0xff]   ;;  %v3013_v28 = vld [vmem:[%s3767_s1 + $0xb0] sm:$0xff]   ;;  %v3015_v30 = vld [vmem:[%s3767_s1 + $0xa8] sm:$0xff]  }
  0x13   : > { %2671 = vmatpush3.bf16.msra.mxu1 %v2998_v4  ;;  %2652 = vmatprep.subr.bf16.mxu0 %v3147_v1  ;;  %v3014_v29 = vld [vmem:[%s3767_s1 + $0xf0] sm:$0xff]   ;;  %v3016_v31 = vld [vmem:[%s3767_s1 + $0xe8] sm:$0xff]   ;;  %v3017_v32 = vld [vmem:[%s3767_s1 + $0xa0] sm:$0xff]  }
  0x14   : > { %2672 = vmatprep.subr.bf16.mxu1 %v3147_v1  ;;  %v219_v22 = vrot.slane %v178_v20, %v3250_v19  ;;  %v3018_v33 = vld [vmem:[%s3767_s1 + $0xe0] sm:$0xff]   ;;  %v3019_v34 = vld [vmem:[%s3767_s1 + $0x98] sm:$0xff]   ;;  %v3021_v36 = vld [vmem:[%s3767_s1 + $0x90] sm:$0xff]  }
  0x15   : > { %v3020_v35 = vld [vmem:[%s3767_s1 + $0xd8] sm:$0xff]   ;;  %v3022_v37 = vld [vmem:[%s3767_s1 + $0xd0] sm:$0xff]   ;;  %v2164_v38 = vld.sshfl [vmem:[%s3244_s16] sm:$0x2 pattern:$0x76325410] }
  0x16   : > { %2653 = vmatpush3.bf16.msra.mxu0 %v2999_v5  ;;  %v221_v25 = vshrl.u32 %v219_v22, 16  ;;  %v3023_v39 = vld [vmem:[%s3767_s1 + $0x88] sm:$0xff]   ;;  %v3025_v41 = vld [vmem:[%s3767_s1 + $0x80] sm:$0xff]   ;;  %v544_v42 = vshrl.u32 %v2164_v38, 16  ;;  %v426_v44 = vrot.slane %v2164_v38, 1  ;;  %v3027_v46 = vld [vmem:[%s3767_s1 + $0x138] sm:$0xff]  }
  0x17   : > { %2673 = vmatpush3.bf16.msra.mxu1 %v3000_v6  ;;  %2654 = vmatprep.subr.bf16.mxu0 %v3147_v1  ;;  %v3024_v40 = vld [vmem:[%s3767_s1 + $0xc8] sm:$0xff]   ;;  %v3026_v43 = vld [vmem:[%s3767_s1 + $0xc0] sm:$0xff]   ;;  %v3028_v47 = vld [vmem:[%s3767_s1 + $0x178] sm:$0xff]  }
  0x18   : > { %2674 = vmatprep.subr.bf16.mxu1 %v3147_v1  ;;  %v546_v45 = vrot.slane %v544_v42, 1  ;;  %v3029_v48 = vld [vmem:[%s3767_s1 + $0x130] sm:$0xff]   ;;  %v3031_v50 = vld [vmem:[%s3767_s1 + $0x128] sm:$0xff]   ;;  %v3033_v52 = vld [vmem:[%s3767_s1 + $0x120] sm:$0xff]  }
  0x19   : > { %v3030_v49 = vld [vmem:[%s3767_s1 + $0x170] sm:$0xff]   ;;  %v3032_v51 = vld [vmem:[%s3767_s1 + $0x168] sm:$0xff]   ;;  %v3034_v53 = vld [vmem:[%s3767_s1 + $0x160] sm:$0xff]  }
  0x1a   : > { %2655 = vmatpush3.bf16.msra.mxu0 %v3001_v7  ;;  %v3035_v54 = vld [vmem:[%s3767_s1 + $0x118] sm:$0xff]   ;;  %v3037_v56 = vld [vmem:[%s3767_s1 + $0x110] sm:$0xff]   ;;  %v3039_v58 = vld [vmem:[%s3767_s1 + $0x108] sm:$0xff]  }
  0x1b   : > { %2675 = vmatpush3.bf16.msra.mxu1 %v3002_v8  ;;  %2656 = vmatprep.subr.bf16.mxu0 %v3147_v1  ;;  %v3036_v55 = vld [vmem:[%s3767_s1 + $0x158] sm:$0xff]   ;;  %v3038_v57 = vld [vmem:[%s3767_s1 + $0x150] sm:$0xff]   ;;  %v3040_v59 = vld [vmem:[%s3767_s1 + $0x148] sm:$0xff]  }
  0x1c   : > { %2676 = vmatprep.subr.bf16.mxu1 %v3147_v1  ;;  %v2198_v60 = vld [vmem:[%s3244_s16 + $0x2] sm:$0x1]  ;;  %v3043_v2 = vld [vmem:[%s3767_s1 + $0x1b8] sm:$0xff]   ;;  %v3045_v4 = vld [vmem:[%s3767_s1 + $0x1b0] sm:$0xff]  }
  0x1d   : > { %v3041_v61 = vld [vmem:[%s3767_s1 + $0x100] sm:$0xff]   ;;  %v769_v62 = vrot.slane %v2198_v60, %v3250_v19  ;;  %v3044_v3 = vld [vmem:[%s3767_s1 + $0x1f8] sm:$0xff]   ;;  %v3046_v5 = vld [vmem:[%s3767_s1 + $0x1f0] sm:$0xff]  }
  0x1e   : > { %2657 = vmatpush3.bf16.msra.mxu0 %v3003_v10  ;;  %v3042_v63 = vld [vmem:[%s3767_s1 + $0x140] sm:$0xff]   ;;  %v3047_v6 = vld [vmem:[%s3767_s1 + $0x1a8] sm:$0xff]   ;;  %v3051_v10 = vld [vmem:[%s3767_s1 + $0x198] sm:$0xff]  }
  0x1f   : > { %2677 = vmatpush3.bf16.msra.mxu1 %v3004_v11  ;;  %2658 = vmatprep.subr.bf16.mxu0 %v3147_v1  ;;  %v771_v0 = vshrl.u32 %v769_v62, 16  ;;  %v3048_v7 = vld [vmem:[%s3767_s1 + $0x1e8] sm:$0xff]   ;;  %v3049_v8 = vld [vmem:[%s3767_s1 + $0x1a0] sm:$0xff]   ;;  %v3052_v11 = vld [vmem:[%s3767_s1 + $0x1d8] sm:$0xff]  }
  0x20   : > { %2678 = vmatprep.subr.bf16.mxu1 %v3147_v1  ;;  %v3050_v9 = vld [vmem:[%s3767_s1 + $0x1e0] sm:$0xff]   ;;  %v3053_v12 = vld [vmem:[%s3767_s1 + $0x190] sm:$0xff]   ;;  %v3075_v42 = vld [vmem:[%s3767_s1 + $0x2b8] sm:$0xff]  }
  0x21   : > { %v3054_v13 = vld [vmem:[%s3767_s1 + $0x1d0] sm:$0xff]   ;;  %v2264_v14 = vld.sshfl [vmem:[%s3244_s16 + $0x2] sm:$0x2 pattern:$0x76325410]  ;;  %v3091_v62 = vld [vmem:[%s3767_s1 + $0x338] sm:$0xff]  }
  0x22   : > { %2659 = vmatpush3.bf16.msra.mxu0 %v3005_v15  ;;  %v3055_v15 = vld [vmem:[%s3767_s1 + $0x188] sm:$0xff]   ;;  %v3057_v17 = vld [vmem:[%s3767_s1 + $0x180] sm:$0xff]  }
  0x23   : > { %2679 = vmatpush3.bf16.msra.mxu1 %v3006_v16  ;;  %2660 = vmatprep.subr.bf16.mxu0 %v3147_v1  ;;  %v3056_v16 = vld [vmem:[%s3767_s1 + $0x1c8] sm:$0xff]   ;;  %v3073_v38 = vld [vmem:[%s3767_s1 + $0x200] sm:$0xff]  }
  0x24   : > { %2680 = vmatprep.subr.bf16.mxu1 %v3147_v1 }
  0x26   : > { %2661 = vmatpush3.bf16.msra.mxu0 %v3007_v18  ;;  %v1007_v18 = vshrl.u32 %v2264_v14, 16 }
  0x27   : > { %2681 = vmatpush3.bf16.msra.mxu1 %v3008_v21  ;;  %2662 = vmatprep.subr.bf16.mxu0 %v3147_v1  ;;  %v889_v21 = vrot.slane %v2264_v14, 1  ;;  %v3105_v14 = vld [vmem:[%s3767_s1 + $0x300] sm:$0xff]  }
  0x28   : > { %2682 = vmatprep.subr.bf16.mxu1 %v3147_v1  ;;  %v1009_v22 = vrot.slane %v1007_v18, 1  ;;  %v3107_v18 = vld [vmem:[%s3767_s1 + $0x3b8] sm:$0xff]  }
  0x2a   : > { %2663 = vmatpush3.bf16.msra.mxu0 %v3009_v23  ;;  %v3059_v23 = vld [vmem:[%s3767_s1 + $0x238] sm:$0xff]  }
  0x2b   : > { %2683 = vmatpush3.bf16.msra.mxu1 %v3010_v24  ;;  %2688 = vmatprep.subr.bf16.mxu0 %v3147_v1  ;;  %v3060_v24 = vld [vmem:[%s3767_s1 + $0x278] sm:$0xff]  }
  0x2c   : > { %2708 = vmatprep.subr.bf16.mxu1 %v3147_v1 }
  0x2d   : > { %2665 = vmatmul.mubr.bf16.vlgmr.msra.gmra.mxu0 %v221_v25  ;;  %v3061_v25 = vld [vmem:[%s3767_s1 + $0x230] sm:$0xff]  }
  0x2e   : > { %2685 = vmatmul.mubr.bf16.vlgmr.msra.gmra.mxu1 %v178_v20  ;;  %2689 = vmatpush3.bf16.msra.mxu0 %v3011_v26  ;;  %v3058_v20 = vld [vmem:[%s3767_s1 + $0x1c0] sm:$0xff]   ;;  %v3062_v26 = vld [vmem:[%s3767_s1 + $0x270] sm:$0xff]  }
  0x2f   : > { %2709 = vmatpush3.bf16.msra.mxu1 %v3012_v27  ;;  %2690 = vmatprep.subr.bf16.mxu0 %v3147_v1  ;;  %v3063_v27 = vld [vmem:[%s3767_s1 + $0x228] sm:$0xff]  }
  0x30   : > { %2710 = vmatprep.subr.bf16.mxu1 %v3147_v1  ;;  %2704 = vmatprep.mubr.msk.bf16.mxu0 %vm3148_vm0, %v3147_v1 }
  0x31   : > { %2724 = vmatprep.mubr.msk.bf16.mxu1 %vm3148_vm0, %v3147_v1 }
  0x32   : > { %2691 = vmatpush3.bf16.msra.mxu0 %v3013_v28  ;;  %v3064_v28 = vld [vmem:[%s3767_s1 + $0x268] sm:$0xff]  }
  0x33   : > { %2711 = vmatpush3.bf16.msra.mxu1 %v3014_v29  ;;  %2692 = vmatprep.subr.bf16.mxu0 %v3147_v1  ;;  %v3065_v29 = vld [vmem:[%s3767_s1 + $0x220] sm:$0xff]  }
  0x34   : > { %2712 = vmatprep.subr.bf16.mxu1 %v3147_v1 }
  0x36   : > { %2693 = vmatpush3.bf16.msra.mxu0 %v3015_v30  ;;  %v3066_v30 = vld [vmem:[%s3767_s1 + $0x260] sm:$0xff]  }
  0x37   : > { %2713 = vmatpush3.bf16.msra.mxu1 %v3016_v31  ;;  %2694 = vmatprep.subr.bf16.mxu0 %v3147_v1  ;;  %v3067_v31 = vld [vmem:[%s3767_s1 + $0x218] sm:$0xff]  }
  0x38   : > { %2714 = vmatprep.subr.bf16.mxu1 %v3147_v1 }
  0x3a   : > { %2695 = vmatpush3.bf16.msra.mxu0 %v3017_v32  ;;  %v3068_v32 = vld [vmem:[%s3767_s1 + $0x258] sm:$0xff]  }
  0x3b   : > { %2715 = vmatpush3.bf16.msra.mxu1 %v3018_v33  ;;  %2696 = vmatprep.subr.bf16.mxu0 %v3147_v1  ;;  %v3069_v33 = vld [vmem:[%s3767_s1 + $0x210] sm:$0xff]  }
  0x3c   : > { %2716 = vmatprep.subr.bf16.mxu1 %v3147_v1 }
  0x3e   : > { %2697 = vmatpush3.bf16.msra.mxu0 %v3019_v34  ;;  %v3070_v34 = vld [vmem:[%s3767_s1 + $0x250] sm:$0xff]  }
  0x3f   : > { %2717 = vmatpush3.bf16.msra.mxu1 %v3020_v35  ;;  %2698 = vmatprep.subr.bf16.mxu0 %v3147_v1  ;;  %v3071_v35 = vld [vmem:[%s3767_s1 + $0x208] sm:$0xff]  }
  0x40   : > { %2718 = vmatprep.subr.bf16.mxu1 %v3147_v1 }
  0x42   : > { %2699 = vmatpush3.bf16.msra.mxu0 %v3021_v36  ;;  %v3072_v36 = vld [vmem:[%s3767_s1 + $0x248] sm:$0xff]  }
  0x43   : > { %2719 = vmatpush3.bf16.msra.mxu1 %v3022_v37  ;;  %2700 = vmatprep.subr.bf16.mxu0 %v3147_v1  ;;  %v2299_v37 = vld [vmem:[%s3244_s16 + $0x4] sm:$0x1] }
  0x44   : > { %2720 = vmatprep.subr.bf16.mxu1 %v3147_v1 }
  0x46   : > { %2701 = vmatpush3.bf16.msra.mxu0 %v3023_v39  ;;  %v1232_v39 = vrot.slane %v2299_v37, %v3250_v19 }
  0x47   : > { %2721 = vmatpush3.bf16.msra.mxu1 %v3024_v40  ;;  %2702 = vmatprep.subr.bf16.mxu0 %v3147_v1  ;;  %v3074_v40 = vld [vmem:[%s3767_s1 + $0x240] sm:$0xff]  }
  0x48   : > { %2722 = vmatprep.subr.bf16.mxu1 %v3147_v1 }
  0x4a   : > { %2703 = vmatpush3.bf16.msra.mxu0 %v3025_v41  ;;  %v1234_v41 = vshrl.u32 %v1232_v39, 16  ;;  %v3119_v39 = vld [vmem:[%s3767_s1 + $0x388] sm:$0xff]  }
  0x4b   : > { %2723 = vmatpush3.bf16.msra.mxu1 %v3026_v43  ;;  %2728 = vmatprep.subr.bf16.mxu0 %v3147_v1  ;;  %v3076_v43 = vld [vmem:[%s3767_s1 + $0x2f8] sm:$0xff]  }
  0x4c   : > { %2748 = vmatprep.subr.bf16.mxu1 %v3147_v1 }
  0x4d   : > { %2705 = vmatmul.mubr.bf16.vlgmr.msra.gmra.mxu0 %v426_v44  ;;  %v3077_v44 = vld [vmem:[%s3767_s1 + $0x2b0] sm:$0xff]  }
  0x4e   : > { %2725 = vmatmul.mubr.bf16.vlgmr.msra.gmra.mxu1 %v546_v45  ;;  %2729 = vmatpush3.bf16.msra.mxu0 %v3027_v46  ;;  %v3078_v45 = vld [vmem:[%s3767_s1 + $0x2f0] sm:$0xff]   ;;  %v3079_v46 = vld [vmem:[%s3767_s1 + $0x2a8] sm:$0xff]  }
  0x4f   : > { %2749 = vmatpush3.bf16.msra.mxu1 %v3028_v47  ;;  %2730 = vmatprep.subr.bf16.mxu0 %v3147_v1  ;;  %v3080_v47 = vld [vmem:[%s3767_s1 + $0x2e8] sm:$0xff]  }
  0x50   : > { %2750 = vmatprep.subr.bf16.mxu1 %v3147_v1  ;;  %2744 = vmatprep.mubr.msk.bf16.mxu0 %vm3148_vm0, %v3147_v1 }
  0x51   : > { %2764 = vmatprep.mubr.msk.bf16.mxu1 %vm3148_vm0, %v3147_v1 }
  0x52   : > { %2731 = vmatpush3.bf16.msra.mxu0 %v3029_v48  ;;  %v3081_v48 = vld [vmem:[%s3767_s1 + $0x2a0] sm:$0xff]  }
  0x53   : > { %2751 = vmatpush3.bf16.msra.mxu1 %v3030_v49  ;;  %2732 = vmatprep.subr.bf16.mxu0 %v3147_v1  ;;  %v3082_v49 = vld [vmem:[%s3767_s1 + $0x2e0] sm:$0xff]  }
  0x54   : > { %2752 = vmatprep.subr.bf16.mxu1 %v3147_v1 }
  0x56   : > { %2733 = vmatpush3.bf16.msra.mxu0 %v3031_v50  ;;  %v3083_v50 = vld [vmem:[%s3767_s1 + $0x298] sm:$0xff]  }
  0x57   : > { %2753 = vmatpush3.bf16.msra.mxu1 %v3032_v51  ;;  %2734 = vmatprep.subr.bf16.mxu0 %v3147_v1  ;;  %v3084_v51 = vld [vmem:[%s3767_s1 + $0x2d8] sm:$0xff]  }
  0x58   : > { %2754 = vmatprep.subr.bf16.mxu1 %v3147_v1 }
  0x5a   : > { %2735 = vmatpush3.bf16.msra.mxu0 %v3033_v52  ;;  %v3085_v52 = vld [vmem:[%s3767_s1 + $0x290] sm:$0xff]  }
  0x5b   : > { %2755 = vmatpush3.bf16.msra.mxu1 %v3034_v53  ;;  %2736 = vmatprep.subr.bf16.mxu0 %v3147_v1  ;;  %v3086_v53 = vld [vmem:[%s3767_s1 + $0x2d0] sm:$0xff]  }
  0x5c   : > { %2756 = vmatprep.subr.bf16.mxu1 %v3147_v1 }
  0x5e   : > { %2737 = vmatpush3.bf16.msra.mxu0 %v3035_v54  ;;  %v3087_v54 = vld [vmem:[%s3767_s1 + $0x288] sm:$0xff]  }
  0x5f   : > { %2757 = vmatpush3.bf16.msra.mxu1 %v3036_v55  ;;  %2738 = vmatprep.subr.bf16.mxu0 %v3147_v1  ;;  %v3088_v55 = vld [vmem:[%s3767_s1 + $0x2c8] sm:$0xff]  }
  0x60   : > { %2758 = vmatprep.subr.bf16.mxu1 %v3147_v1 }
  0x62   : > { %2739 = vmatpush3.bf16.msra.mxu0 %v3037_v56  ;;  %v2365_v56 = vld.sshfl [vmem:[%s3244_s16 + $0x4] sm:$0x2 pattern:$0x76325410] }
  0x63   : > { %2759 = vmatpush3.bf16.msra.mxu1 %v3038_v57  ;;  %2740 = vmatprep.subr.bf16.mxu0 %v3147_v1  ;;  %v3089_v57 = vld [vmem:[%s3767_s1 + $0x280] sm:$0xff]  }
  0x64   : > { %2760 = vmatprep.subr.bf16.mxu1 %v3147_v1 }
  0x66   : > { %2741 = vmatpush3.bf16.msra.mxu0 %v3039_v58  ;;  %v1470_v58 = vshrl.u32 %v2365_v56, 16 }
  0x67   : > { %2761 = vmatpush3.bf16.msra.mxu1 %v3040_v59  ;;  %2742 = vmatprep.subr.bf16.mxu0 %v3147_v1  ;;  %v3090_v59 = vld [vmem:[%s3767_s1 + $0x2c0] sm:$0xff]  }
  0x68   : > { %2762 = vmatprep.subr.bf16.mxu1 %v3147_v1 }
  0x6a   : > { %2743 = vmatpush3.bf16.msra.mxu0 %v3041_v61  ;;  %v1472_v61 = vrot.slane %v1470_v58, 1 }
  0x6b   : > { %2763 = vmatpush3.bf16.msra.mxu1 %v3042_v63  ;;  %2768 = vmatprep.subr.bf16.mxu0 %v3147_v1  ;;  %v3092_v63 = vld [vmem:[%s3767_s1 + $0x378] sm:$0xff]  }
  0x6c   : > { %2788 = vmatprep.subr.bf16.mxu1 %v3147_v1 }
  0x6d   : > { %2745 = vmatmul.mubr.bf16.vlgmr.msra.gmra.mxu0 %v2198_v60  ;;  %v1352_v60 = vrot.slane %v2365_v56, 1 }
  0x6e   : > { %2765 = vmatmul.mubr.bf16.vlgmr.msra.gmra.mxu1 %v771_v0  ;;  %2769 = vmatpush3.bf16.msra.mxu0 %v3043_v2  ;;  %v3093_v0 = vld [vmem:[%s3767_s1 + $0x330] sm:$0xff]  }
  0x6f   : > { %2789 = vmatpush3.bf16.msra.mxu1 %v3044_v3  ;;  %2770 = vmatprep.subr.bf16.mxu0 %v3147_v1  ;;  %v3094_v2 = vld [vmem:[%s3767_s1 + $0x370] sm:$0xff]   ;;  %v3095_v3 = vld [vmem:[%s3767_s1 + $0x328] sm:$0xff]  }
  0x70   : > { %2790 = vmatprep.subr.bf16.mxu1 %v3147_v1  ;;  %2784 = vmatprep.mubr.msk.bf16.mxu0 %vm3148_vm0, %v3147_v1 }
  0x71   : > { %2804 = vmatprep.mubr.msk.bf16.mxu1 %vm3148_vm0, %v3147_v1 }
  0x72   : > { %2771 = vmatpush3.bf16.msra.mxu0 %v3045_v4  ;;  %v3096_v4 = vld [vmem:[%s3767_s1 + $0x368] sm:$0xff]  }
  0x73   : > { %2791 = vmatpush3.bf16.msra.mxu1 %v3046_v5  ;;  %2772 = vmatprep.subr.bf16.mxu0 %v3147_v1  ;;  %v3097_v5 = vld [vmem:[%s3767_s1 + $0x320] sm:$0xff]  }
  0x74   : > { %2792 = vmatprep.subr.bf16.mxu1 %v3147_v1 }
  0x76   : > { %2773 = vmatpush3.bf16.msra.mxu0 %v3047_v6  ;;  %v3098_v6 = vld [vmem:[%s3767_s1 + $0x360] sm:$0xff]  }
  0x77   : > { %2793 = vmatpush3.bf16.msra.mxu1 %v3048_v7  ;;  %2774 = vmatprep.subr.bf16.mxu0 %v3147_v1  ;;  %v3099_v7 = vld [vmem:[%s3767_s1 + $0x318] sm:$0xff]  }
  0x78   : > { %2794 = vmatprep.subr.bf16.mxu1 %v3147_v1 }
  0x7a   : > { %2775 = vmatpush3.bf16.msra.mxu0 %v3049_v8  ;;  %v3100_v8 = vld [vmem:[%s3767_s1 + $0x358] sm:$0xff]  }
  0x7b   : > { %2795 = vmatpush3.bf16.msra.mxu1 %v3050_v9  ;;  %2776 = vmatprep.subr.bf16.mxu0 %v3147_v1  ;;  %v3101_v9 = vld [vmem:[%s3767_s1 + $0x310] sm:$0xff]  }
  0x7c   : > { %2796 = vmatprep.subr.bf16.mxu1 %v3147_v1 }
  0x7e   : > { %2777 = vmatpush3.bf16.msra.mxu0 %v3051_v10  ;;  %v3102_v10 = vld [vmem:[%s3767_s1 + $0x350] sm:$0xff]  }
  0x7f   : > { %2797 = vmatpush3.bf16.msra.mxu1 %v3052_v11  ;;  %2778 = vmatprep.subr.bf16.mxu0 %v3147_v1  ;;  %v3103_v11 = vld [vmem:[%s3767_s1 + $0x308] sm:$0xff]  }
  0x80   : > { %2798 = vmatprep.subr.bf16.mxu1 %v3147_v1 }
  0x82   : > { %2779 = vmatpush3.bf16.msra.mxu0 %v3053_v12  ;;  %v3104_v12 = vld [vmem:[%s3767_s1 + $0x348] sm:$0xff]  }
  0x83   : > { %2799 = vmatpush3.bf16.msra.mxu1 %v3054_v13  ;;  %2780 = vmatprep.subr.bf16.mxu0 %v3147_v1  ;;  %v2400_v13 = vld [vmem:[%s3244_s16 + $0x6] sm:$0x1] }
  0x84   : > { %2800 = vmatprep.subr.bf16.mxu1 %v3147_v1 }
  0x86   : > { %2781 = vmatpush3.bf16.msra.mxu0 %v3055_v15  ;;  %v1695_v15 = vrot.slane %v2400_v13, %v3250_v19  ;;  %v3108_v19 = vld [vmem:[%s3767_s1 + $0x3f8] sm:$0xff]  }
  0x87   : > { %2801 = vmatpush3.bf16.msra.mxu1 %v3056_v16  ;;  %2782 = vmatprep.subr.bf16.mxu0 %v3147_v1  ;;  %v3106_v16 = vld [vmem:[%s3767_s1 + $0x340] sm:$0xff]  }
  0x88   : > { %2802 = vmatprep.subr.bf16.mxu1 %v3147_v1 }
  0x8a   : > { %2783 = vmatpush3.bf16.msra.mxu0 %v3057_v17  ;;  %v1697_v17 = vshrl.u32 %v1695_v15, 16 }
  0x8b   : > { %2803 = vmatpush3.bf16.msra.mxu1 %v3058_v20  ;;  %2808 = vmatprep.subr.bf16.mxu0 %v3147_v1 }
  0x8c   : > { %2828 = vmatprep.subr.bf16.mxu1 %v3147_v1 }
  0x8d   : > { %2785 = vmatmul.mubr.bf16.vlgmr.msra.gmra.mxu0 %v889_v21 }
  0x8e   : > { %2805 = vmatmul.mubr.bf16.vlgmr.msra.gmra.mxu1 %v1009_v22  ;;  %2809 = vmatpush3.bf16.msra.mxu0 %v3059_v23  ;;  %v3109_v22 = vld [vmem:[%s3767_s1 + $0x3b0] sm:$0xff]  }
  0x8f   : > { %2829 = vmatpush3.bf16.msra.mxu1 %v3060_v24  ;;  %2810 = vmatprep.subr.bf16.mxu0 %v3147_v1 }
  0x90   : > { %2830 = vmatprep.subr.bf16.mxu1 %v3147_v1  ;;  %2824 = vmatprep.mubr.msk.bf16.mxu0 %vm3148_vm0, %v3147_v1 }
  0x91   : > { %2844 = vmatprep.mubr.msk.bf16.mxu1 %vm3148_vm0, %v3147_v1 }
  0x92   : > { %2811 = vmatpush3.bf16.msra.mxu0 %v3061_v25  ;;  %v3110_v25 = vld [vmem:[%s3767_s1 + $0x3f0] sm:$0xff]  }
  0x93   : > { %2831 = vmatpush3.bf16.msra.mxu1 %v3062_v26  ;;  %2812 = vmatprep.subr.bf16.mxu0 %v3147_v1 }
  0x94   : > { %2832 = vmatprep.subr.bf16.mxu1 %v3147_v1 }
  0x96   : > { %2813 = vmatpush3.bf16.msra.mxu0 %v3063_v27 }
  0x97   : > { %2833 = vmatpush3.bf16.msra.mxu1 %v3064_v28  ;;  %2814 = vmatprep.subr.bf16.mxu0 %v3147_v1 }
  0x98   : > { %2834 = vmatprep.subr.bf16.mxu1 %v3147_v1 }
  0x9a   : > { %2815 = vmatpush3.bf16.msra.mxu0 %v3065_v29  ;;  %v3111_v29 = vld [vmem:[%s3767_s1 + $0x3a8] sm:$0xff]  }
  0x9b   : > { %2835 = vmatpush3.bf16.msra.mxu1 %v3066_v30  ;;  %2816 = vmatprep.subr.bf16.mxu0 %v3147_v1 }
  0x9c   : > { %2836 = vmatprep.subr.bf16.mxu1 %v3147_v1 }
  0x9e   : > { %2817 = vmatpush3.bf16.msra.mxu0 %v3067_v31  ;;  %v3112_v31 = vld [vmem:[%s3767_s1 + $0x3e8] sm:$0xff]  }
  0x9f   : > { %2837 = vmatpush3.bf16.msra.mxu1 %v3068_v32  ;;  %2818 = vmatprep.subr.bf16.mxu0 %v3147_v1 }
  0xa0   : > { %2838 = vmatprep.subr.bf16.mxu1 %v3147_v1 }
  0xa2   : > { %2819 = vmatpush3.bf16.msra.mxu0 %v3069_v33  ;;  %v3113_v33 = vld [vmem:[%s3767_s1 + $0x3a0] sm:$0xff]  }
  0xa3   : > { %2839 = vmatpush3.bf16.msra.mxu1 %v3070_v34  ;;  %2820 = vmatprep.subr.bf16.mxu0 %v3147_v1  ;;  %v3114_v34 = vld [vmem:[%s3767_s1 + $0x3e0] sm:$0xff]  }
  0xa4   : > { %2840 = vmatprep.subr.bf16.mxu1 %v3147_v1 }
  0xa6   : > { %2821 = vmatpush3.bf16.msra.mxu0 %v3071_v35  ;;  %v3115_v35 = vld [vmem:[%s3767_s1 + $0x398] sm:$0xff]  }
  0xa7   : > { %2841 = vmatpush3.bf16.msra.mxu1 %v3072_v36  ;;  %2822 = vmatprep.subr.bf16.mxu0 %v3147_v1  ;;  %v3116_v36 = vld [vmem:[%s3767_s1 + $0x3d8] sm:$0xff]  }
  0xa8   : > { %2842 = vmatprep.subr.bf16.mxu1 %v3147_v1 }
  0xaa   : > { %2823 = vmatpush3.bf16.msra.mxu0 %v3073_v38  ;;  %v3118_v38 = vld [vmem:[%s3767_s1 + $0x3d0] sm:$0xff]  }
  0xab   : > { %2843 = vmatpush3.bf16.msra.mxu1 %v3074_v40  ;;  %2848 = vmatprep.subr.bf16.mxu0 %v3147_v1  ;;  %v3120_v40 = vld [vmem:[%s3767_s1 + $0x3c8] sm:$0xff]  }
  0xac   : > { %2868 = vmatprep.subr.bf16.mxu1 %v3147_v1 }
  0xad   : > { %2825 = vmatmul.mubr.bf16.vlgmr.msra.gmra.mxu0 %v2299_v37  ;;  %v3117_v37 = vld [vmem:[%s3767_s1 + $0x390] sm:$0xff]  }
  0xae   : > { %2845 = vmatmul.mubr.bf16.vlgmr.msra.gmra.mxu1 %v1234_v41  ;;  %2849 = vmatpush3.bf16.msra.mxu0 %v3075_v42  ;;  %v2466_v41 = vld.sshfl [vmem:[%s3244_s16 + $0x6] sm:$0x2 pattern:$0x76325410] }
  0xaf   : > { %2869 = vmatpush3.bf16.msra.mxu1 %v3076_v43  ;;  %2850 = vmatprep.subr.bf16.mxu0 %v3147_v1  ;;  %v3121_v42 = vld [vmem:[%s3767_s1 + $0x380] sm:$0xff]   ;;  %v1933_v43 = vshrl.u32 %v2466_v41, 16 }
  0xb0   : > { %2870 = vmatprep.subr.bf16.mxu1 %v3147_v1  ;;  %2864 = vmatprep.mubr.msk.bf16.mxu0 %vm3148_vm0, %v3147_v1 }
  0xb1   : > { %2884 = vmatprep.mubr.msk.bf16.mxu1 %vm3148_vm0, %v3147_v1 }
  0xb2   : > { %2851 = vmatpush3.bf16.msra.mxu0 %v3077_v44  ;;  %v3122_v44 = vld [vmem:[%s3767_s1 + $0x3c0] sm:$0xff]  }
  0xb3   : > { %2871 = vmatpush3.bf16.msra.mxu1 %v3078_v45  ;;  %2852 = vmatprep.subr.bf16.mxu0 %v3147_v1  ;;  %v1815_v45 = vrot.slane %v2466_v41, 1 }
  0xb4   : > { %2872 = vmatprep.subr.bf16.mxu1 %v3147_v1 }
  0xb6   : > { %2853 = vmatpush3.bf16.msra.mxu0 %v3079_v46  ;;  %v1935_v46 = vrot.slane %v1933_v43, 1 }
  0xb7   : > { %2873 = vmatpush3.bf16.msra.mxu1 %v3080_v47  ;;  %2854 = vmatprep.subr.bf16.mxu0 %v3147_v1 }
  0xb8   : > { %2874 = vmatprep.subr.bf16.mxu1 %v3147_v1 }
  0xba   : > { %2855 = vmatpush3.bf16.msra.mxu0 %v3081_v48 }
  0xbb   : > { %2875 = vmatpush3.bf16.msra.mxu1 %v3082_v49  ;;  %2856 = vmatprep.subr.bf16.mxu0 %v3147_v1 }
  0xbc   : > { %2876 = vmatprep.subr.bf16.mxu1 %v3147_v1 }
  0xbe   : > { %2857 = vmatpush3.bf16.msra.mxu0 %v3083_v50 }
  0xbf   : > { %2877 = vmatpush3.bf16.msra.mxu1 %v3084_v51  ;;  %2858 = vmatprep.subr.bf16.mxu0 %v3147_v1 }
  0xc0   : > { %2878 = vmatprep.subr.bf16.mxu1 %v3147_v1 }
  0xc2   : > { %2859 = vmatpush3.bf16.msra.mxu0 %v3085_v52 }
  0xc3   : > { %2879 = vmatpush3.bf16.msra.mxu1 %v3086_v53  ;;  %2860 = vmatprep.subr.bf16.mxu0 %v3147_v1 }
  0xc4   : > { %2880 = vmatprep.subr.bf16.mxu1 %v3147_v1 }
  0xc6   : > { %2861 = vmatpush3.bf16.msra.mxu0 %v3087_v54 }
  0xc7   : > { %2881 = vmatpush3.bf16.msra.mxu1 %v3088_v55  ;;  %2862 = vmatprep.subr.bf16.mxu0 %v3147_v1 }
  0xc8   : > { %2882 = vmatprep.subr.bf16.mxu1 %v3147_v1 }
  0xca   : > { %2863 = vmatpush3.bf16.msra.mxu0 %v3089_v57 }
  0xcb   : > { %2883 = vmatpush3.bf16.msra.mxu1 %v3090_v59  ;;  %2888 = vmatprep.subr.bf16.mxu0 %v3147_v1 }
  0xcc   : > { %2908 = vmatprep.subr.bf16.mxu1 %v3147_v1 }
  0xcd   : > { %2865 = vmatmul.mubr.bf16.vlgmr.msra.gmra.mxu0 %v1352_v60 }
  0xce   : > { %2885 = vmatmul.mubr.bf16.vlgmr.msra.gmra.mxu1 %v1472_v61  ;;  %2889 = vmatpush3.bf16.msra.mxu0 %v3091_v62 }
  0xcf   : > { %2909 = vmatpush3.bf16.msra.mxu1 %v3092_v63  ;;  %2890 = vmatprep.subr.bf16.mxu0 %v3147_v1 }
  0xd0   : > { %2910 = vmatprep.subr.bf16.mxu1 %v3147_v1  ;;  %2904 = vmatprep.mubr.msk.bf16.mxu0 %vm3148_vm0, %v3147_v1 }
  0xd1   : > { %2924 = vmatprep.mubr.msk.bf16.mxu1 %vm3148_vm0, %v3147_v1 }
  0xd2   : > { %2891 = vmatpush3.bf16.msra.mxu0 %v3093_v0 }
  0xd3   : > { %2911 = vmatpush3.bf16.msra.mxu1 %v3094_v2  ;;  %2892 = vmatprep.subr.bf16.mxu0 %v3147_v1 }
  0xd4   : > { %2912 = vmatprep.subr.bf16.mxu1 %v3147_v1 }
  0xd6   : > { %2893 = vmatpush3.bf16.msra.mxu0 %v3095_v3 }
  0xd7   : > { %2913 = vmatpush3.bf16.msra.mxu1 %v3096_v4  ;;  %2894 = vmatprep.subr.bf16.mxu0 %v3147_v1 }
  0xd8   : > { %2914 = vmatprep.subr.bf16.mxu1 %v3147_v1 }
  0xda   : > { %2895 = vmatpush3.bf16.msra.mxu0 %v3097_v5 }
  0xdb   : > { %2915 = vmatpush3.bf16.msra.mxu1 %v3098_v6  ;;  %2896 = vmatprep.subr.bf16.mxu0 %v3147_v1 }
  0xdc   : > { %2916 = vmatprep.subr.bf16.mxu1 %v3147_v1 }
  0xde   : > { %2897 = vmatpush3.bf16.msra.mxu0 %v3099_v7 }
  0xdf   : > { %2917 = vmatpush3.bf16.msra.mxu1 %v3100_v8  ;;  %2898 = vmatprep.subr.bf16.mxu0 %v3147_v1 }
  0xe0   : > { %2918 = vmatprep.subr.bf16.mxu1 %v3147_v1 }
  0xe2   : > { %2899 = vmatpush3.bf16.msra.mxu0 %v3101_v9 }
  0xe3   : > { %2919 = vmatpush3.bf16.msra.mxu1 %v3102_v10  ;;  %2900 = vmatprep.subr.bf16.mxu0 %v3147_v1 }
  0xe4   : > { %2920 = vmatprep.subr.bf16.mxu1 %v3147_v1 }
  0xe6   : > { %2901 = vmatpush3.bf16.msra.mxu0 %v3103_v11 }
  0xe7   : > { %2921 = vmatpush3.bf16.msra.mxu1 %v3104_v12  ;;  %2902 = vmatprep.subr.bf16.mxu0 %v3147_v1 }
  0xe8   : > { %2922 = vmatprep.subr.bf16.mxu1 %v3147_v1 }
  0xea   : > { %2903 = vmatpush3.bf16.msra.mxu0 %v3105_v14 }
  0xeb   : > { %2923 = vmatpush3.bf16.msra.mxu1 %v3106_v16  ;;  %2928 = vmatprep.subr.bf16.mxu0 %v3147_v1 }
  0xec   : > { %2948 = vmatprep.subr.bf16.mxu1 %v3147_v1 }
  0xed   : > { %v306_v20 = vpop.f32.mrf.mxu0  ;;  %2905 = vmatmul.mubr.bf16.vlgmr.msra.gmra.mxu0 %v2400_v13 }
  0xee   : > { %v394_v21 = vpop.f32.mrf.mxu1  ;;  %2925 = vmatmul.mubr.bf16.vlgmr.msra.gmra.mxu1 %v1697_v17  ;;  %2929 = vmatpush3.bf16.msra.mxu0 %v3107_v18 }
  0xef   : > { %v395_v23 = vadd.f32 %v394_v21, %v306_v20  ;;  %2949 = vmatpush3.bf16.msra.mxu1 %v3108_v19  ;;  %v2666_v24 = vpop.f32.mrf.mxu0  ;;  %2930 = vmatprep.subr.bf16.mxu0 %v3147_v1 }
  0xf0   : > { %v2686_v26 = vpop.f32.mrf.mxu1  ;;  %2950 = vmatprep.subr.bf16.mxu1 %v3147_v1  ;;  %2944 = vmatprep.mubr.msk.bf16.mxu0 %vm3148_vm0, %v3147_v1 }
  0xf1   : > { %v309_v27 = vpop.f32.mrf.mxu0  ;;  %2964 = vmatprep.mubr.msk.bf16.mxu1 %vm3148_vm0, %v3147_v1 }
  0xf2   : > { %v397_v28 = vpop.f32.mrf.mxu1  ;;  %2931 = vmatpush3.bf16.msra.mxu0 %v3109_v22 }
  0xf3   : > { %2951 = vmatpush3.bf16.msra.mxu1 %v3110_v25  ;;  %v2667_v30 = vpop.f32.mrf.mxu0  ;;  %2932 = vmatprep.subr.bf16.mxu0 %v3147_v1 }
  0xf4   : > { %v2687_v32 = vpop.f32.mrf.mxu1  ;;  %2952 = vmatprep.subr.bf16.mxu1 %v3147_v1 }
  0xf6   : > { %2933 = vmatpush3.bf16.msra.mxu0 %v3111_v29 }
  0xf7   : > { %2953 = vmatpush3.bf16.msra.mxu1 %v3112_v31  ;;  %2934 = vmatprep.subr.bf16.mxu0 %v3147_v1 }
  0xf8   : > { %2954 = vmatprep.subr.bf16.mxu1 %v3147_v1 }
  0xfa   : > { %2935 = vmatpush3.bf16.msra.mxu0 %v3113_v33 }
  0xfb   : > { %2955 = vmatpush3.bf16.msra.mxu1 %v3114_v34  ;;  %2936 = vmatprep.subr.bf16.mxu0 %v3147_v1 }
  0xfc   : > { %2956 = vmatprep.subr.bf16.mxu1 %v3147_v1 }
  0xfe   : > { %2937 = vmatpush3.bf16.msra.mxu0 %v3115_v35 }
  0xff   : > { %2957 = vmatpush3.bf16.msra.mxu1 %v3116_v36  ;;  %2938 = vmatprep.subr.bf16.mxu0 %v3147_v1 }
 0x100   : > { %2958 = vmatprep.subr.bf16.mxu1 %v3147_v1 }
 0x102   : > { %2939 = vmatpush3.bf16.msra.mxu0 %v3117_v37 }
 0x103   : > { %2959 = vmatpush3.bf16.msra.mxu1 %v3118_v38  ;;  %2940 = vmatprep.subr.bf16.mxu0 %v3147_v1 }
 0x104   : > { %2960 = vmatprep.subr.bf16.mxu1 %v3147_v1 }
 0x106   : > { %2941 = vmatpush3.bf16.msra.mxu0 %v3119_v39 }
 0x107   : > { %2961 = vmatpush3.bf16.msra.mxu1 %v3120_v40  ;;  %2942 = vmatprep.subr.bf16.mxu0 %v3147_v1 }
 0x108   : > { %2962 = vmatprep.subr.bf16.mxu1 %v3147_v1 }
 0x10a   : > { %2943 = vmatpush3.bf16.msra.mxu0 %v3121_v42 }
 0x10b   : > { %2963 = vmatpush3.bf16.msra.mxu1 %v3122_v44 }
 0x10d   : > { %v510_v47 = vpop.f32.mrf.mxu0  ;;  %2945 = vmatmul.mubr.bf16.vlgmr.msra.gmra.mxu0 %v1815_v45 }
 0x10e   : > { %v516_v48 = vadd.f32 %v510_v47, %v395_v23  ;;  %v630_v49 = vpop.f32.mrf.mxu1  ;;  %2965 = vmatmul.mubr.bf16.vlgmr.msra.gmra.mxu1 %v1935_v46 }
 0x10f   : > { %v2706_v50 = vpop.f32.mrf.mxu0 }
 0x110   : > { %v636_v51 = vadd.f32 %v630_v49, %v516_v48  ;;  %v2726_v52 = vpop.f32.mrf.mxu1 }
 0x111   : > { %v513_v53 = vpop.f32.mrf.mxu0 }
 0x112   : > { %v633_v54 = vpop.f32.mrf.mxu1 }
 0x113   : > { %v2707_v55 = vpop.f32.mrf.mxu0 }
 0x114   : > { %v2727_v56 = vpop.f32.mrf.mxu1 }
 0x12d   : > { %v738_v57 = vpop.f32.mrf.mxu0 }
 0x12e   : > { %v744_v58 = vadd.f32 %v738_v57, %v636_v51  ;;  %v856_v59 = vpop.f32.mrf.mxu1 }
 0x12f   : > { %v2746_v1 = vpop.f32.mrf.mxu0 }
 0x130   : > { %v862_v60 = vadd.f32 %v856_v59, %v744_v58  ;;  %v2766_v61 = vpop.f32.mrf.mxu1 }
 0x131   : > { %v741_v62 = vpop.f32.mrf.mxu0 }
 0x132   : > { %v859_v63 = vpop.f32.mrf.mxu1 }
 0x133   : > { %v2747_v0 = vpop.f32.mrf.mxu0 }
 0x134   : > { %v2767_v2 = vpop.f32.mrf.mxu1 }
 0x14d   : > { %v973_v3 = vpop.f32.mrf.mxu0 }
 0x14e   : > { %v979_v4 = vadd.f32 %v973_v3, %v862_v60  ;;  %v1093_v5 = vpop.f32.mrf.mxu1 }
 0x14f   : > { %v2786_v6 = vpop.f32.mrf.mxu0 }
 0x150   : > { %v1099_v7 = vadd.f32 %v1093_v5, %v979_v4  ;;  %v2806_v8 = vpop.f32.mrf.mxu1 }
 0x151   : > { %v976_v9 = vpop.f32.mrf.mxu0 }
 0x152   : > { %v1096_v10 = vpop.f32.mrf.mxu1 }
 0x153   : > { %v2787_v11 = vpop.f32.mrf.mxu0 }
 0x154   : > { %v2807_v12 = vpop.f32.mrf.mxu1 }
 0x16d   : > { %v1201_v13 = vpop.f32.mrf.mxu0 }
 0x16e   : > { %v1207_v14 = vadd.f32 %v1201_v13, %v1099_v7  ;;  %v1319_v15 = vpop.f32.mrf.mxu1 }
 0x16f   : > { %v2826_v16 = vpop.f32.mrf.mxu0 }
 0x170   : > { %v1325_v17 = vadd.f32 %v1319_v15, %v1207_v14  ;;  %v2846_v18 = vpop.f32.mrf.mxu1 }
 0x171   : > { %v1204_v19 = vpop.f32.mrf.mxu0 }
 0x172   : > { %v1322_v20 = vpop.f32.mrf.mxu1 }
 0x173   : > { %v2827_v21 = vpop.f32.mrf.mxu0 }
 0x174   : > { %v2847_v22 = vpop.f32.mrf.mxu1 }
 0x18d   : > { %v1436_v23 = vpop.f32.mrf.mxu0 }
 0x18e   : > { %v1556_v24 = vpop.f32.mrf.mxu1  ;;  %v1442_v39 = vadd.f32 %v1436_v23, %v1325_v17 }
 0x18f   : > { %v2866_v25 = vpop.f32.mrf.mxu0 }
 0x190   : > { %v2886_v26 = vpop.f32.mrf.mxu1  ;;  %v1562_v40 = vadd.f32 %v1556_v24, %v1442_v39 }
 0x191   : > { %v1439_v27 = vpop.f32.mrf.mxu0 }
 0x192   : > { %v1559_v28 = vpop.f32.mrf.mxu1 }
 0x193   : > { %v2867_v29 = vpop.f32.mrf.mxu0 }
 0x194   : > { %v2887_v30 = vpop.f32.mrf.mxu1 }
 0x1ad   : > { %v1664_v31 = vpop.f32.mrf.mxu0 }
 0x1ae   : > { %v1782_v32 = vpop.f32.mrf.mxu1  ;;  %v1670_v41 = vadd.f32 %v1664_v31, %v1562_v40 }
 0x1af   : > { %v2906_v33 = vpop.f32.mrf.mxu0 }
 0x1b0   : > { %v2926_v34 = vpop.f32.mrf.mxu1  ;;  %v1788_v42 = vadd.f32 %v1782_v32, %v1670_v41 }
 0x1b1   : > { %v1667_v35 = vpop.f32.mrf.mxu0 }
 0x1b2   : > { %v1785_v36 = vpop.f32.mrf.mxu1 }
 0x1b3   : > { %v2907_v37 = vpop.f32.mrf.mxu0 }
 0x1b4   : > { %v2927_v38 = vpop.f32.mrf.mxu1 }
 0x1cd   : > { %v1899_v43 = vpop.f32.mrf.mxu0 }
 0x1ce   : > { %v1905_v44 = vadd.f32 %v1899_v43, %v1788_v42  ;;  %v2019_v45 = vpop.f32.mrf.mxu1 }
 0x1cf   : > { %v2946_v46 = vpop.f32.mrf.mxu0 }
 0x1d0   : > { %v2025_v47 = vadd.f32 %v2019_v45, %v1905_v44  ;;  %v2966_v48 = vpop.f32.mrf.mxu1 }
 0x1d1   : > { %v1902_v49 = vpop.f32.mrf.mxu0 }
 0x1d2   : > { %2026 = vst [vmem:[%s176_s20] sm:$0x1] %v2025_v47  ;;  %v2022_v50 = vpop.f32.mrf.mxu1 }
 0x1d3   : > { %v2947_v51 = vpop.f32.mrf.mxu0 }
 0x1d4   : > { %v2967_v52 = vpop.f32.mrf.mxu1 }
 0x1d5 PF: > { %s12_s11 = sadd.s32 1, %s3145_s11   ;;  %s3769_s9 = smov %s3141_s10 }
 0x1d6   : > { %p9_p5 = scmp.ge.s32.totalorder %s12_s11, 4   ;;  %s3770_s10 = smov %s3772_s12 }
 0x1d8   :  { %11 = sbr.rel (!%p9_p5) target bundleno = 2 (0x2), region = 79 }

</bundles_post_ra>
